<compile_context>
chip_gen: v5e
topology: v5e:2x2
jax: 0.10.0
libtpu: 0.0.40
codegen_flags: <defaults>
</compile_context>

<pallas_src>
import jax
import jax.numpy as jnp
import numpy as np
from jax.experimental import pallas as pl
from jax.experimental.pallas import tpu as pltpu

NETWORK_CHANNELS = 64
ADJUST = {512: 0.05, 1024: 0.03, 2048: 0.05, 4096: 0.25, 8192: 1, 16384: 20}

_LAYER_DEFS = [
    (1, 8, (2, 2, 2)),
    (8, 16, (2, 2, 2)),
    (16, 32, (2, 2, 2)),
    (32, NETWORK_CHANNELS, (2, 2, 2)),
    (NETWORK_CHANNELS, NETWORK_CHANNELS, (2, 2, 2)),
    (NETWORK_CHANNELS, NETWORK_CHANNELS, (2, 1, 2)),
]


def _leaky(v):
    return jnp.where(v > 0, v, 0.2 * v)


# --------------------------- layout bookkeeping ----------------------------- #
def _digit_factors(dims, kernels):
    """Per spatial axis: successive conv parities (least-significant digit first)
    followed by the residual extent, for a chain of stride==kernel convs."""
    facs = [[], [], []]
    rem = list(dims)
    for k in kernels:
        for a in range(3):
            facs[a].append(k[a])
            rem[a] //= k[a]
    for a in range(3):
        facs[a].append(rem[a])
    return facs


def _morton_input(x5, kernels):
    """(B, C, D, H, W) row-major -> (B, kp2, C*kp1, S2).

    axis 1: layer-2 parity group of the layer-1 output coordinate
    axis 2: layer-1 im2col row (ci, kd, kh, kw)
    axis 3: parity-major (Morton) index of the layer-2 output coordinate with
            respect to all remaining layers.
    One XLA copy over the input; every later layer then chains for free.
    """
    B, C, D, H, W = x5.shape
    L = len(kernels)
    facs = _digit_factors((D, H, W), kernels)
    shape = [B, C]
    for a, dim in enumerate((D, H, W)):
        assert int(np.prod(facs[a])) == dim
        shape += [facs[a][L]] + [facs[a][t] for t in range(L - 1, -1, -1)]
    xr = x5.reshape(shape)

    def dpos(a, t):          # position of the layer-(t+1) parity digit of axis a
        return 2 + a * (L + 1) + (L - t)

    def rpos(a):             # position of the residual extent of axis a
        return 2 + a * (L + 1)

    perm = [0]
    perm += [dpos(0, 1), dpos(1, 1), dpos(2, 1)]   # layer-2 parities (q2)
    perm += [1]                                    # input channel
    perm += [dpos(0, 0), dpos(1, 0), dpos(2, 0)]   # layer-1 parities (im2col rows)
    for t in range(2, L):
        perm += [dpos(0, t), dpos(1, t), dpos(2, t)]
    perm += [rpos(0), rpos(1), rpos(2)]
    xr = xr.transpose(perm)

    kp1 = int(np.prod(kernels[0]))
    kp2 = int(np.prod(kernels[1]))
    s2 = (D * H * W) // (kp1 * kp2)
    return xr.reshape(B, kp2, C * kp1, s2)


def _unmorton_features(y, dims, kernels):
    """(B, Co, S) with parity-major columns w.r.t. `kernels` -> (B, Co*D*H*W)
    in the row-major NCDHW flatten that the reference/`features` spec uses."""
    B, Co = y.shape[0], y.shape[1]
    L = len(kernels)
    facs = _digit_factors(dims, kernels)
    shape = [B, Co]
    for t in range(L):
        shape += [facs[0][t], facs[1][t], facs[2][t]]
    shape += [facs[0][L], facs[1][L], facs[2][L]]
    yr = y.reshape(shape)

    def dpos(a, t):
        return 2 + 3 * t + a

    def rpos(a):
        return 2 + 3 * L + a

    perm = [0, 1]
    for a in range(3):
        perm += [rpos(a)] + [dpos(a, t) for t in range(L - 1, -1, -1)]
    yr = yr.transpose(perm)
    return yr.reshape(B, Co * dims[0] * dims[1] * dims[2])


# ------------------------------ Pallas kernel ------------------------------- #
def _make_fused_kernel(n_chunks, cs, qs, ss):
    """One grid step = (batch b, column chunk c) of the whole 6-layer network.

    qs = number of parity groups feeding layers 2..6  (8, 8, 8, 8, 4)
    ss = column counts of layer 3..6 outputs          (S3, S4, S5, S6)
    """
    q2, q3, q4, q5, q6 = qs
    S3, S4, S5, S6 = ss

    def kernel(xt1_ref, w1_ref, b1_ref, w2_ref, b2_ref, w3_ref, b3_ref,
               w4_ref, b4_ref, w5_ref, b5_ref, w6_ref, b6_ref,
               f1_ref, f2_ref, f3_ref, f4_ref, f5_ref, f6_ref, act2_ref):
        c = pl.program_id(1)

        # ---- layers 1 & 2 on this chunk of columns (pipelined over chunks) ----
        w1 = w1_ref[...]                                    # (8, 8)
        b1 = b1_ref[...]                                    # (8, 1)
        co2 = w2_ref.shape[1]
        acc2 = jnp.zeros((co2, cs), jnp.float32)
        for q in range(q2):                                 # 8 parity groups
            x_q = xt1_ref[q]                                # (K1, cs), lane dense
            y1_q = jnp.dot(w1, x_q, preferred_element_type=jnp.float32) + b1
            f1_ref[q] = y1_q                                # pre-activation features
            acc2 = acc2 + jnp.dot(w2_ref[q], _leaky(y1_q),
                                  preferred_element_type=jnp.float32)
        y2 = acc2 + b2_ref[...]                             # (Co2, cs)
        f2_ref[...] = y2
        act2_ref[c] = _leaky(y2)                            # stays in VMEM for the tail

        # ---- layers 3-6 once every chunk of the layer-2 output is resident ----
        @pl.when(c == n_chunks - 1)
        def _tail():
            co3 = w3_ref.shape[1]
            acc3 = jnp.zeros((co3, S3), jnp.float32)
            for q in range(q3):
                col = q * S3
                piece = act2_ref[col // cs][:, (col % cs):(col % cs) + S3]
                acc3 = acc3 + jnp.dot(w3_ref[q], piece,
                                      preferred_element_type=jnp.float32)
            y3 = acc3 + b3_ref[...]
            f3_ref[...] = y3
            a3 = _leaky(y3)

            co4 = w4_ref.shape[1]
            acc4 = jnp.zeros((co4, S4), jnp.float32)
            for q in range(q4):
                acc4 = acc4 + jnp.dot(w4_ref[q], a3[:, q * S4:(q + 1) * S4],
                                      preferred_element_type=jnp.float32)
            y4 = acc4 + b4_ref[...]
            f4_ref[...] = y4
            a4 = _leaky(y4)

            co5 = w5_ref.shape[1]
            acc5 = jnp.zeros((co5, S5), jnp.float32)
            for q in range(q5):
                acc5 = acc5 + jnp.dot(w5_ref[q], a4[:, q * S5:(q + 1) * S5],
                                      preferred_element_type=jnp.float32)
            y5 = acc5 + b5_ref[...]
            f5_ref[...] = y5
            a5 = _leaky(y5)

            co6 = w6_ref.shape[1]
            acc6 = jnp.zeros((co6, S6), jnp.float32)
            for q in range(q6):
                acc6 = acc6 + jnp.dot(w6_ref[q], a5[:, q * S6:(q + 1) * S6],
                                      preferred_element_type=jnp.float32)
            f6_ref[...] = acc6 + b6_ref[...]

    return kernel


# -------------------------------- JAX glue ---------------------------------- #
def _prep_params(params, band_size):
    """Reshape conv weights for the kernel; fold the input scaling into layer 1."""
    adj = ADJUST[band_size]
    out = []
    for idx, (w, b, k) in enumerate(params):
        co, ci = w.shape[0], w.shape[1]
        kp = int(np.prod(k))
        if idx == 0:
            # conv(adjust * x, W) == conv(x, adjust * W); K order = (ci, kd, kh, kw)
            wm = w.reshape(co, ci * kp) * adj
        else:
            # per-parity weight slices: (kd*kh*kw, Co, Ci)
            wm = jnp.transpose(w, (2, 3, 4, 0, 1)).reshape(kp, co, ci)
        out.append((wm, b.reshape(co, 1)))
    return out


def branch_encoder_forward(x, params, periodicity, band_size, n_chunks=2):
    kernels = [k for (_, _, k) in params]
    co = [w.shape[0] for (w, _, _) in params]

    x5 = x.reshape(-1, 1, NETWORK_CHANNELS, 32, periodicity)
    B = x5.shape[0]

    # per-layer output spatial dims and flattened sizes
    dims, S = [], []
    d, h, w = NETWORK_CHANNELS, 32, periodicity
    for k in kernels:
        assert d % k[0] == 0 and h % k[1] == 0 and w % k[2] == 0
        d, h, w = d // k[0], h // k[1], w // k[2]
        dims.append((d, h, w))
        S.append(d * h * w)

    kp = [int(np.prod(k)) for k in kernels]
    assert S[1] % n_chunks == 0
    cs = S[1] // n_chunks
    assert cs % S[2] == 0 and cs % 128 == 0, "pick n_chunks in {1, 2, 4, 8}"

    xt1 = _morton_input(x5, kernels)                       # (B, 8, 8, S2)
    (w1m, b1), (w2r, b2), (w3r, b3), (w4r, b4), (w5r, b5), (w6r, b6) = \
        _prep_params(params, band_size)

    kern = _make_fused_kernel(
        n_chunks, cs,
        qs=(kp[1], kp[2], kp[3], kp[4], kp[5]),
        ss=(S[2], S[3], S[4], S[5]))

    def full(shape):
        return pl.BlockSpec(shape, lambda b, c: (0,) * len(shape))

    in_specs = [
        pl.BlockSpec((None, kp[1], kp[0], cs), lambda b, c: (b, 0, 0, c)),
        full(w1m.shape), full(b1.shape),
        full(w2r.shape), full(b2.shape),
        full(w3r.shape), full(b3.shape),
        full(w4r.shape), full(b4.shape),
        full(w5r.shape), full(b5.shape),
        full(w6r.shape), full(b6.shape),
    ]
    out_shape = (
        jax.ShapeDtypeStruct((B, kp[1], co[0], S[1]), jnp.float32),  # (b, q2, co, s2)
        jax.ShapeDtypeStruct((B, co[1], S[1]), jnp.float32),
        jax.ShapeDtypeStruct((B, co[2], S[2]), jnp.float32),
        jax.ShapeDtypeStruct((B, co[3], S[3]), jnp.float32),
        jax.ShapeDtypeStruct((B, co[4], S[4]), jnp.float32),
        jax.ShapeDtypeStruct((B, co[5], S[5]), jnp.float32),
    )
    out_specs = (
        pl.BlockSpec((None, kp[1], co[0], cs), lambda b, c: (b, 0, 0, c)),
        pl.BlockSpec((None, co[1], cs), lambda b, c: (b, 0, c)),
        pl.BlockSpec((None, co[2], S[2]), lambda b, c: (b, 0, 0)),
        pl.BlockSpec((None, co[3], S[3]), lambda b, c: (b, 0, 0)),
        pl.BlockSpec((None, co[4], S[4]), lambda b, c: (b, 0, 0)),
        pl.BlockSpec((None, co[5], S[5]), lambda b, c: (b, 0, 0)),
    )

    f1, f2, f3, f4, f5, f6 = pl.pallas_call(
        kern,
        out_shape=out_shape,
        grid_spec=pltpu.PrefetchScalarGridSpec(
            num_scalar_prefetch=0,
            grid=(B, n_chunks),
            in_specs=in_specs,
            out_specs=out_specs,
            scratch_shapes=[pltpu.VMEM((n_chunks, co[1], cs), jnp.float32)]),
        compiler_params=pltpu.CompilerParams(
            dimension_semantics=("parallel", "arbitrary")),
    )(xt1, w1m, b1, w2r, b2, w3r, b3, w4r, b4, w5r, b5, w6r, b6)

    # (b, q2, co, s2) -> (b, co, S1), then parity-major -> NCDHW flatten.
    f1 = f1.transpose(0, 2, 1, 3).reshape(B, co[0], S[0])
    feats = [
        _unmorton_features(f1, dims[0], kernels[1:]),
        _unmorton_features(f2, dims[1], kernels[2:]),
        _unmorton_features(f3, dims[2], kernels[3:]),
        _unmorton_features(f4, dims[3], kernels[4:]),
        _unmorton_features(f5, dims[4], kernels[5:]),
        _unmorton_features(f6, dims[5], kernels[6:]),
    ]
    features = jnp.concatenate(feats, axis=1)
    last = feats[-1]                                       # final pre-activation slab
    x_out = _leaky(last).reshape(-1, NETWORK_CHANNELS)
    return x_out, features


# ------------------------- Plain-XLA reference check ------------------------ #
def branch_encoder_reference(x, params, periodicity, band_size):
    x = x * ADJUST[band_size]
    x = x.reshape(-1, 1, NETWORK_CHANNELS, 32, periodicity)
    B = x.shape[0]
    feats = []
    for (w, b, k) in params:
        x = jax.lax.conv_general_dilated(
            x, w, window_strides=k, padding="VALID",
            dimension_numbers=("NCDHW", "OIDHW", "NCDHW"),
            precision=jax.lax.Precision.HIGHEST)
        x = x + b.reshape(1, -1, 1, 1, 1)
        feats.append(x.reshape(B, -1))
        x = jnp.where(x > 0, x, 0.2 * x)
    return x.reshape(-1, NETWORK_CHANNELS), jnp.concatenate(feats, axis=1)


def init_params(key):
    """Deterministic init mimicking PyTorch Conv3d default (kaiming-uniform-ish)."""
    params = []
    for ci, co, k in _LAYER_DEFS:
        key, wk, bk = jax.random.split(key, 3)
        fan_in = ci * k[0] * k[1] * k[2]
        bound = 1.0 / float(fan_in) ** 0.5
        w = jax.random.uniform(wk, (co, ci) + k, jnp.float32, -bound, bound)
        b = jax.random.uniform(bk, (co,), jnp.float32, -bound, bound)
        params.append((w, b, k))
    return params


# --------------------------------- Demo run --------------------------------- #
if __name__ == "__main__":
    periodicity = 64   # smallest value consistent with six /2 reductions of W
    band_size = 512

    key = jax.random.PRNGKey(0)
    pkey, xkey = jax.random.split(key)
    params = init_params(pkey)

    # Input is anything that views to (-1, 1, 64, 32, periodicity); batch = 2.
    x = jax.random.normal(xkey, (2, NETWORK_CHANNELS, 32, periodicity), jnp.float32)

    fwd = jax.jit(lambda v: branch_encoder_forward(v, params, periodicity, band_size))
    x_out, features = fwd(x)
    jax.block_until_ready((x_out, features))

    assert x_out.shape == (2, NETWORK_CHANNELS)
    assert features.shape == (2, 131072 + 32768 + 8192 + 2048 + 256 + 64)

    # Cross-check against a plain-XLA reference (loose tolerance for MXU f32 path).
    ref_fn = jax.jit(lambda v: branch_encoder_reference(v, params, periodicity, band_size))
    ref_out, ref_feat = ref_fn(x)
    jax.block_until_ready((ref_out, ref_feat))
    assert jnp.allclose(x_out, ref_out, rtol=5e-2, atol=5e-3)
    assert jnp.allclose(features, ref_feat, rtol=5e-2, atol=5e-3)

    print("KERNEL_OK")
</pallas_src>

<mosaic_0001>
module attributes {stable_mosaic.version = 11 : i64} {
  func.func @kernel(%arg0: i32, %arg1: i32, %arg2: memref<1x8x8x1024xf32, #tpu.memory_space<vmem>>, %arg3: memref<8x8xf32, #tpu.memory_space<vmem>>, %arg4: memref<8x1xf32, #tpu.memory_space<vmem>>, %arg5: memref<8x16x8xf32, #tpu.memory_space<vmem>>, %arg6: memref<16x1xf32, #tpu.memory_space<vmem>>, %arg7: memref<8x32x16xf32, #tpu.memory_space<vmem>>, %arg8: memref<32x1xf32, #tpu.memory_space<vmem>>, %arg9: memref<8x64x32xf32, #tpu.memory_space<vmem>>, %arg10: memref<64x1xf32, #tpu.memory_space<vmem>>, %arg11: memref<8x64x64xf32, #tpu.memory_space<vmem>>, %arg12: memref<64x1xf32, #tpu.memory_space<vmem>>, %arg13: memref<4x64x64xf32, #tpu.memory_space<vmem>>, %arg14: memref<64x1xf32, #tpu.memory_space<vmem>>, %arg15: memref<1x8x8x1024xf32, #tpu.memory_space<vmem>>, %arg16: memref<1x16x1024xf32, #tpu.memory_space<vmem>>, %arg17: memref<1x32x256xf32, #tpu.memory_space<vmem>>, %arg18: memref<1x64x32xf32, #tpu.memory_space<vmem>>, %arg19: memref<1x64x4xf32, #tpu.memory_space<vmem>>, %arg20: memref<1x64x1xf32, #tpu.memory_space<vmem>>, %arg21: memref<2x16x1024xf32, #tpu.memory_space<vmem>>) attributes {dimension_semantics = [#tpu.dimension_semantics<parallel>, #tpu.dimension_semantics<arbitrary>], iteration_bounds = array<i64: 2, 2>, scalar_prefetch = 0 : i64, scratch_operands = 1 : i64, tpu.core_type = #tpu.core_type<tc>, window_params = [{transform_indices = @transform_0, window_bounds = array<i64: 1, 8, 8, 1024>}, {pipeline_mode = #tpu.pipeline_mode<synchronous>, transform_indices = @transform_1, window_bounds = array<i64: 8, 8>}, {pipeline_mode = #tpu.pipeline_mode<synchronous>, transform_indices = @transform_2, window_bounds = array<i64: 8, 1>}, {pipeline_mode = #tpu.pipeline_mode<synchronous>, transform_indices = @transform_3, window_bounds = array<i64: 8, 16, 8>}, {pipeline_mode = #tpu.pipeline_mode<synchronous>, transform_indices = @transform_4, window_bounds = array<i64: 16, 1>}, {pipeline_mode = #tpu.pipeline_mode<synchronous>, transform_indices = @transform_5, window_bounds = array<i64: 8, 32, 16>}, {pipeline_mode = #tpu.pipeline_mode<synchronous>, transform_indices = @transform_6, window_bounds = array<i64: 32, 1>}, {pipeline_mode = #tpu.pipeline_mode<synchronous>, transform_indices = @transform_7, window_bounds = array<i64: 8, 64, 32>}, {pipeline_mode = #tpu.pipeline_mode<synchronous>, transform_indices = @transform_8, window_bounds = array<i64: 64, 1>}, {pipeline_mode = #tpu.pipeline_mode<synchronous>, transform_indices = @transform_9, window_bounds = array<i64: 8, 64, 64>}, {pipeline_mode = #tpu.pipeline_mode<synchronous>, transform_indices = @transform_10, window_bounds = array<i64: 64, 1>}, {pipeline_mode = #tpu.pipeline_mode<synchronous>, transform_indices = @transform_11, window_bounds = array<i64: 4, 64, 64>}, {pipeline_mode = #tpu.pipeline_mode<synchronous>, transform_indices = @transform_12, window_bounds = array<i64: 64, 1>}, {transform_indices = @transform_13, window_bounds = array<i64: 1, 8, 8, 1024>}, {transform_indices = @transform_14, window_bounds = array<i64: 1, 16, 1024>}, {transform_indices = @transform_15, window_bounds = array<i64: 1, 32, 256>}, {transform_indices = @transform_16, window_bounds = array<i64: 1, 64, 32>}, {transform_indices = @transform_17, window_bounds = array<i64: 1, 64, 4>}, {transform_indices = @transform_18, window_bounds = array<i64: 1, 64, 1>}]} {
    %c0 = arith.constant 0 : index
    %c0_0 = arith.constant 0 : index
    %0 = vector.load %arg3[%c0, %c0_0] : memref<8x8xf32, #tpu.memory_space<vmem>>, vector<8x8xf32>
    %c0_1 = arith.constant 0 : index
    %c0_2 = arith.constant 0 : index
    %1 = vector.load %arg4[%c0_1, %c0_2] : memref<8x1xf32, #tpu.memory_space<vmem>>, vector<8x1xf32>
    %cst = arith.constant 0.000000e+00 : f32
    %2 = vector.broadcast %cst : f32 to vector<16x1024xf32>
    %c0_3 = arith.constant 0 : index
    %c0_4 = arith.constant 0 : index
    %c0_5 = arith.constant 0 : index
    %c0_6 = arith.constant 0 : index
    %3 = vector.load %arg2[%c0_3, %c0_4, %c0_5, %c0_6] : memref<1x8x8x1024xf32, #tpu.memory_space<vmem>>, vector<1x1x8x1024xf32>
    %4 = vector.shape_cast %3 : vector<1x1x8x1024xf32> to vector<8x1024xf32>
    %cst_7 = arith.constant dense<0.000000e+00> : vector<8x1024xf32>
    %5 = tpu.matmul %0, %4, %cst_7 {dimension_numbers = #tpu.dot_dimension_numbers<[1], [0], [0], [1], [0, 0, 1, 1], [], []>} : vector<8x8xf32>, vector<8x1024xf32>, vector<8x1024xf32> -> vector<8x1024xf32>
    %6 = vector.broadcast %1 : vector<8x1xf32> to vector<8x1024xf32>
    %7 = arith.addf %5, %6 : vector<8x1024xf32>
    %c0_8 = arith.constant 0 : index
    %c0_9 = arith.constant 0 : index
    %c0_10 = arith.constant 0 : index
    %c0_11 = arith.constant 0 : index
    %8 = vector.load %arg15[%c0_8, %c0_9, %c0_10, %c0_11] : memref<1x8x8x1024xf32, #tpu.memory_space<vmem>>, vector<1x1x8x1024xf32>
    %9 = vector.shape_cast %8 : vector<1x1x8x1024xf32> to vector<8x1024xf32>
    %10 = vector.shape_cast %7 : vector<8x1024xf32> to vector<1x1x8x1024xf32>
    tpu.vector_store %arg15[%c0_8, %c0_9, %c0_10, %c0_11], %10 {strides = array<i32>} : memref<1x8x8x1024xf32, #tpu.memory_space<vmem>>, vector<1x1x8x1024xf32>,
    %c0_12 = arith.constant 0 : index
    %c0_13 = arith.constant 0 : index
    %c0_14 = arith.constant 0 : index
    %11 = vector.load %arg5[%c0_12, %c0_13, %c0_14] : memref<8x16x8xf32, #tpu.memory_space<vmem>>, vector<1x16x8xf32>
    %12 = vector.shape_cast %11 : vector<1x16x8xf32> to vector<16x8xf32>
    %cst_15 = arith.constant 0.000000e+00 : f32
    %13 = vector.broadcast %cst_15 : f32 to vector<8x1024xf32>
    %14 = arith.cmpf ogt, %7, %13 : vector<8x1024xf32>
    %cst_16 = arith.constant 2.000000e-01 : f32
    %15 = vector.broadcast %cst_16 : f32 to vector<8x1024xf32>
    %16 = arith.mulf %15, %7 : vector<8x1024xf32>
    %17 = arith.select %14, %7, %16 : vector<8x1024xi1>, vector<8x1024xf32>
    %cst_17 = arith.constant dense<0.000000e+00> : vector<16x1024xf32>
    %18 = tpu.matmul %12, %17, %cst_17 {dimension_numbers = #tpu.dot_dimension_numbers<[1], [0], [0], [1], [0, 0, 1, 1], [], []>} : vector<16x8xf32>, vector<8x1024xf32>, vector<16x1024xf32> -> vector<16x1024xf32>
    %19 = arith.addf %2, %18 : vector<16x1024xf32>
    %c0_18 = arith.constant 0 : index
    %c1 = arith.constant 1 : index
    %c0_19 = arith.constant 0 : index
    %c0_20 = arith.constant 0 : index
    %20 = vector.load %arg2[%c0_18, %c1, %c0_19, %c0_20] : memref<1x8x8x1024xf32, #tpu.memory_space<vmem>>, vector<1x1x8x1024xf32>
    %21 = vector.shape_cast %20 : vector<1x1x8x1024xf32> to vector<8x1024xf32>
    %cst_21 = arith.constant dense<0.000000e+00> : vector<8x1024xf32>
    %22 = tpu.matmul %0, %21, %cst_21 {dimension_numbers = #tpu.dot_dimension_numbers<[1], [0], [0], [1], [0, 0, 1, 1], [], []>} : vector<8x8xf32>, vector<8x1024xf32>, vector<8x1024xf32> -> vector<8x1024xf32>
    %23 = vector.broadcast %1 : vector<8x1xf32> to vector<8x1024xf32>
    %24 = arith.addf %22, %23 : vector<8x1024xf32>
    %c0_22 = arith.constant 0 : index
    %c1_23 = arith.constant 1 : index
    %c0_24 = arith.constant 0 : index
    %c0_25 = arith.constant 0 : index
    %25 = vector.load %arg15[%c0_22, %c1_23, %c0_24, %c0_25] : memref<1x8x8x1024xf32, #tpu.memory_space<vmem>>, vector<1x1x8x1024xf32>
    %26 = vector.shape_cast %25 : vector<1x1x8x1024xf32> to vector<8x1024xf32>
    %27 = vector.shape_cast %24 : vector<8x1024xf32> to vector<1x1x8x1024xf32>
    tpu.vector_store %arg15[%c0_22, %c1_23, %c0_24, %c0_25], %27 {strides = array<i32>} : memref<1x8x8x1024xf32, #tpu.memory_space<vmem>>, vector<1x1x8x1024xf32>,
    %c1_26 = arith.constant 1 : index
    %c0_27 = arith.constant 0 : index
    %c0_28 = arith.constant 0 : index
    %28 = vector.load %arg5[%c1_26, %c0_27, %c0_28] : memref<8x16x8xf32, #tpu.memory_space<vmem>>, vector<1x16x8xf32>
    %29 = vector.shape_cast %28 : vector<1x16x8xf32> to vector<16x8xf32>
    %cst_29 = arith.constant 0.000000e+00 : f32
    %30 = vector.broadcast %cst_29 : f32 to vector<8x1024xf32>
    %31 = arith.cmpf ogt, %24, %30 : vector<8x1024xf32>
    %cst_30 = arith.constant 2.000000e-01 : f32
    %32 = vector.broadcast %cst_30 : f32 to vector<8x1024xf32>
    %33 = arith.mulf %32, %24 : vector<8x1024xf32>
    %34 = arith.select %31, %24, %33 : vector<8x1024xi1>, vector<8x1024xf32>
    %cst_31 = arith.constant dense<0.000000e+00> : vector<16x1024xf32>
    %35 = tpu.matmul %29, %34, %cst_31 {dimension_numbers = #tpu.dot_dimension_numbers<[1], [0], [0], [1], [0, 0, 1, 1], [], []>} : vector<16x8xf32>, vector<8x1024xf32>, vector<16x1024xf32> -> vector<16x1024xf32>
    %36 = arith.addf %19, %35 : vector<16x1024xf32>
    %c0_32 = arith.constant 0 : index
    %c2 = arith.constant 2 : index
    %c0_33 = arith.constant 0 : index
    %c0_34 = arith.constant 0 : index
    %37 = vector.load %arg2[%c0_32, %c2, %c0_33, %c0_34] : memref<1x8x8x1024xf32, #tpu.memory_space<vmem>>, vector<1x1x8x1024xf32>
    %38 = vector.shape_cast %37 : vector<1x1x8x1024xf32> to vector<8x1024xf32>
    %cst_35 = arith.constant dense<0.000000e+00> : vector<8x1024xf32>
    %39 = tpu.matmul %0, %38, %cst_35 {dimension_numbers = #tpu.dot_dimension_numbers<[1], [0], [0], [1], [0, 0, 1, 1], [], []>} : vector<8x8xf32>, vector<8x1024xf32>, vector<8x1024xf32> -> vector<8x1024xf32>
    %40 = vector.broadcast %1 : vector<8x1xf32> to vector<8x1024xf32>
    %41 = arith.addf %39, %40 : vector<8x1024xf32>
    %c0_36 = arith.constant 0 : index
    %c2_37 = arith.constant 2 : index
    %c0_38 = arith.constant 0 : index
    %c0_39 = arith.constant 0 : index
    %42 = vector.load %arg15[%c0_36, %c2_37, %c0_38, %c0_39] : memref<1x8x8x1024xf32, #tpu.memory_space<vmem>>, vector<1x1x8x1024xf32>
    %43 = vector.shape_cast %42 : vector<1x1x8x1024xf32> to vector<8x1024xf32>
    %44 = vector.shape_cast %41 : vector<8x1024xf32> to vector<1x1x8x1024xf32>
    tpu.vector_store %arg15[%c0_36, %c2_37, %c0_38, %c0_39], %44 {strides = array<i32>} : memref<1x8x8x1024xf32, #tpu.memory_space<vmem>>, vector<1x1x8x1024xf32>,
    %c2_40 = arith.constant 2 : index
    %c0_41 = arith.constant 0 : index
    %c0_42 = arith.constant 0 : index
    %45 = vector.load %arg5[%c2_40, %c0_41, %c0_42] : memref<8x16x8xf32, #tpu.memory_space<vmem>>, vector<1x16x8xf32>
    %46 = vector.shape_cast %45 : vector<1x16x8xf32> to vector<16x8xf32>
    %cst_43 = arith.constant 0.000000e+00 : f32
    %47 = vector.broadcast %cst_43 : f32 to vector<8x1024xf32>
    %48 = arith.cmpf ogt, %41, %47 : vector<8x1024xf32>
    %cst_44 = arith.constant 2.000000e-01 : f32
    %49 = vector.broadcast %cst_44 : f32 to vector<8x1024xf32>
    %50 = arith.mulf %49, %41 : vector<8x1024xf32>
    %51 = arith.select %48, %41, %50 : vector<8x1024xi1>, vector<8x1024xf32>
    %cst_45 = arith.constant dense<0.000000e+00> : vector<16x1024xf32>
    %52 = tpu.matmul %46, %51, %cst_45 {dimension_numbers = #tpu.dot_dimension_numbers<[1], [0], [0], [1], [0, 0, 1, 1], [], []>} : vector<16x8xf32>, vector<8x1024xf32>, vector<16x1024xf32> -> vector<16x1024xf32>
    %53 = arith.addf %36, %52 : vector<16x1024xf32>
    %c0_46 = arith.constant 0 : index
    %c3 = arith.constant 3 : index
    %c0_47 = arith.constant 0 : index
    %c0_48 = arith.constant 0 : index
    %54 = vector.load %arg2[%c0_46, %c3, %c0_47, %c0_48] : memref<1x8x8x1024xf32, #tpu.memory_space<vmem>>, vector<1x1x8x1024xf32>
    %55 = vector.shape_cast %54 : vector<1x1x8x1024xf32> to vector<8x1024xf32>
    %cst_49 = arith.constant dense<0.000000e+00> : vector<8x1024xf32>
    %56 = tpu.matmul %0, %55, %cst_49 {dimension_numbers = #tpu.dot_dimension_numbers<[1], [0], [0], [1], [0, 0, 1, 1], [], []>} : vector<8x8xf32>, vector<8x1024xf32>, vector<8x1024xf32> -> vector<8x1024xf32>
    %57 = vector.broadcast %1 : vector<8x1xf32> to vector<8x1024xf32>
    %58 = arith.addf %56, %57 : vector<8x1024xf32>
    %c0_50 = arith.constant 0 : index
    %c3_51 = arith.constant 3 : index
    %c0_52 = arith.constant 0 : index
    %c0_53 = arith.constant 0 : index
    %59 = vector.load %arg15[%c0_50, %c3_51, %c0_52, %c0_53] : memref<1x8x8x1024xf32, #tpu.memory_space<vmem>>, vector<1x1x8x1024xf32>
    %60 = vector.shape_cast %59 : vector<1x1x8x1024xf32> to vector<8x1024xf32>
    %61 = vector.shape_cast %58 : vector<8x1024xf32> to vector<1x1x8x1024xf32>
    tpu.vector_store %arg15[%c0_50, %c3_51, %c0_52, %c0_53], %61 {strides = array<i32>} : memref<1x8x8x1024xf32, #tpu.memory_space<vmem>>, vector<1x1x8x1024xf32>,
    %c3_54 = arith.constant 3 : index
    %c0_55 = arith.constant 0 : index
    %c0_56 = arith.constant 0 : index
    %62 = vector.load %arg5[%c3_54, %c0_55, %c0_56] : memref<8x16x8xf32, #tpu.memory_space<vmem>>, vector<1x16x8xf32>
    %63 = vector.shape_cast %62 : vector<1x16x8xf32> to vector<16x8xf32>
    %cst_57 = arith.constant 0.000000e+00 : f32
    %64 = vector.broadcast %cst_57 : f32 to vector<8x1024xf32>
    %65 = arith.cmpf ogt, %58, %64 : vector<8x1024xf32>
    %cst_58 = arith.constant 2.000000e-01 : f32
    %66 = vector.broadcast %cst_58 : f32 to vector<8x1024xf32>
    %67 = arith.mulf %66, %58 : vector<8x1024xf32>
    %68 = arith.select %65, %58, %67 : vector<8x1024xi1>, vector<8x1024xf32>
    %cst_59 = arith.constant dense<0.000000e+00> : vector<16x1024xf32>
    %69 = tpu.matmul %63, %68, %cst_59 {dimension_numbers = #tpu.dot_dimension_numbers<[1], [0], [0], [1], [0, 0, 1, 1], [], []>} : vector<16x8xf32>, vector<8x1024xf32>, vector<16x1024xf32> -> vector<16x1024xf32>
    %70 = arith.addf %53, %69 : vector<16x1024xf32>
    %c0_60 = arith.constant 0 : index
    %c4 = arith.constant 4 : index
    %c0_61 = arith.constant 0 : index
    %c0_62 = arith.constant 0 : index
    %71 = vector.load %arg2[%c0_60, %c4, %c0_61, %c0_62] : memref<1x8x8x1024xf32, #tpu.memory_space<vmem>>, vector<1x1x8x1024xf32>
    %72 = vector.shape_cast %71 : vector<1x1x8x1024xf32> to vector<8x1024xf32>
    %cst_63 = arith.constant dense<0.000000e+00> : vector<8x1024xf32>
    %73 = tpu.matmul %0, %72, %cst_63 {dimension_numbers = #tpu.dot_dimension_numbers<[1], [0], [0], [1], [0, 0, 1, 1], [], []>} : vector<8x8xf32>, vector<8x1024xf32>, vector<8x1024xf32> -> vector<8x1024xf32>
    %74 = vector.broadcast %1 : vector<8x1xf32> to vector<8x1024xf32>
    %75 = arith.addf %73, %74 : vector<8x1024xf32>
    %c0_64 = arith.constant 0 : index
    %c4_65 = arith.constant 4 : index
    %c0_66 = arith.constant 0 : index
    %c0_67 = arith.constant 0 : index
    %76 = vector.load %arg15[%c0_64, %c4_65, %c0_66, %c0_67] : memref<1x8x8x1024xf32, #tpu.memory_space<vmem>>, vector<1x1x8x1024xf32>
    %77 = vector.shape_cast %76 : vector<1x1x8x1024xf32> to vector<8x1024xf32>
    %78 = vector.shape_cast %75 : vector<8x1024xf32> to vector<1x1x8x1024xf32>
    tpu.vector_store %arg15[%c0_64, %c4_65, %c0_66, %c0_67], %78 {strides = array<i32>} : memref<1x8x8x1024xf32, #tpu.memory_space<vmem>>, vector<1x1x8x1024xf32>,
    %c4_68 = arith.constant 4 : index
    %c0_69 = arith.constant 0 : index
    %c0_70 = arith.constant 0 : index
    %79 = vector.load %arg5[%c4_68, %c0_69, %c0_70] : memref<8x16x8xf32, #tpu.memory_space<vmem>>, vector<1x16x8xf32>
    %80 = vector.shape_cast %79 : vector<1x16x8xf32> to vector<16x8xf32>
    %cst_71 = arith.constant 0.000000e+00 : f32
    %81 = vector.broadcast %cst_71 : f32 to vector<8x1024xf32>
    %82 = arith.cmpf ogt, %75, %81 : vector<8x1024xf32>
    %cst_72 = arith.constant 2.000000e-01 : f32
    %83 = vector.broadcast %cst_72 : f32 to vector<8x1024xf32>
    %84 = arith.mulf %83, %75 : vector<8x1024xf32>
    %85 = arith.select %82, %75, %84 : vector<8x1024xi1>, vector<8x1024xf32>
    %cst_73 = arith.constant dense<0.000000e+00> : vector<16x1024xf32>
    %86 = tpu.matmul %80, %85, %cst_73 {dimension_numbers = #tpu.dot_dimension_numbers<[1], [0], [0], [1], [0, 0, 1, 1], [], []>} : vector<16x8xf32>, vector<8x1024xf32>, vector<16x1024xf32> -> vector<16x1024xf32>
    %87 = arith.addf %70, %86 : vector<16x1024xf32>
    %c0_74 = arith.constant 0 : index
    %c5 = arith.constant 5 : index
    %c0_75 = arith.constant 0 : index
    %c0_76 = arith.constant 0 : index
    %88 = vector.load %arg2[%c0_74, %c5, %c0_75, %c0_76] : memref<1x8x8x1024xf32, #tpu.memory_space<vmem>>, vector<1x1x8x1024xf32>
    %89 = vector.shape_cast %88 : vector<1x1x8x1024xf32> to vector<8x1024xf32>
    %cst_77 = arith.constant dense<0.000000e+00> : vector<8x1024xf32>
    %90 = tpu.matmul %0, %89, %cst_77 {dimension_numbers = #tpu.dot_dimension_numbers<[1], [0], [0], [1], [0, 0, 1, 1], [], []>} : vector<8x8xf32>, vector<8x1024xf32>, vector<8x1024xf32> -> vector<8x1024xf32>
    %91 = vector.broadcast %1 : vector<8x1xf32> to vector<8x1024xf32>
    %92 = arith.addf %90, %91 : vector<8x1024xf32>
    %c0_78 = arith.constant 0 : index
    %c5_79 = arith.constant 5 : index
    %c0_80 = arith.constant 0 : index
    %c0_81 = arith.constant 0 : index
    %93 = vector.load %arg15[%c0_78, %c5_79, %c0_80, %c0_81] : memref<1x8x8x1024xf32, #tpu.memory_space<vmem>>, vector<1x1x8x1024xf32>
    %94 = vector.shape_cast %93 : vector<1x1x8x1024xf32> to vector<8x1024xf32>
    %95 = vector.shape_cast %92 : vector<8x1024xf32> to vector<1x1x8x1024xf32>
    tpu.vector_store %arg15[%c0_78, %c5_79, %c0_80, %c0_81], %95 {strides = array<i32>} : memref<1x8x8x1024xf32, #tpu.memory_space<vmem>>, vector<1x1x8x1024xf32>,
    %c5_82 = arith.constant 5 : index
    %c0_83 = arith.constant 0 : index
    %c0_84 = arith.constant 0 : index
    %96 = vector.load %arg5[%c5_82, %c0_83, %c0_84] : memref<8x16x8xf32, #tpu.memory_space<vmem>>, vector<1x16x8xf32>
    %97 = vector.shape_cast %96 : vector<1x16x8xf32> to vector<16x8xf32>
    %cst_85 = arith.constant 0.000000e+00 : f32
    %98 = vector.broadcast %cst_85 : f32 to vector<8x1024xf32>
    %99 = arith.cmpf ogt, %92, %98 : vector<8x1024xf32>
    %cst_86 = arith.constant 2.000000e-01 : f32
    %100 = vector.broadcast %cst_86 : f32 to vector<8x1024xf32>
    %101 = arith.mulf %100, %92 : vector<8x1024xf32>
    %102 = arith.select %99, %92, %101 : vector<8x1024xi1>, vector<8x1024xf32>
    %cst_87 = arith.constant dense<0.000000e+00> : vector<16x1024xf32>
    %103 = tpu.matmul %97, %102, %cst_87 {dimension_numbers = #tpu.dot_dimension_numbers<[1], [0], [0], [1], [0, 0, 1, 1], [], []>} : vector<16x8xf32>, vector<8x1024xf32>, vector<16x1024xf32> -> vector<16x1024xf32>
    %104 = arith.addf %87, %103 : vector<16x1024xf32>
    %c0_88 = arith.constant 0 : index
    %c6 = arith.constant 6 : index
    %c0_89 = arith.constant 0 : index
    %c0_90 = arith.constant 0 : index
    %105 = vector.load %arg2[%c0_88, %c6, %c0_89, %c0_90] : memref<1x8x8x1024xf32, #tpu.memory_space<vmem>>, vector<1x1x8x1024xf32>
    %106 = vector.shape_cast %105 : vector<1x1x8x1024xf32> to vector<8x1024xf32>
    %cst_91 = arith.constant dense<0.000000e+00> : vector<8x1024xf32>
    %107 = tpu.matmul %0, %106, %cst_91 {dimension_numbers = #tpu.dot_dimension_numbers<[1], [0], [0], [1], [0, 0, 1, 1], [], []>} : vector<8x8xf32>, vector<8x1024xf32>, vector<8x1024xf32> -> vector<8x1024xf32>
    %108 = vector.broadcast %1 : vector<8x1xf32> to vector<8x1024xf32>
    %109 = arith.addf %107, %108 : vector<8x1024xf32>
    %c0_92 = arith.constant 0 : index
    %c6_93 = arith.constant 6 : index
    %c0_94 = arith.constant 0 : index
    %c0_95 = arith.constant 0 : index
    %110 = vector.load %arg15[%c0_92, %c6_93, %c0_94, %c0_95] : memref<1x8x8x1024xf32, #tpu.memory_space<vmem>>, vector<1x1x8x1024xf32>
    %111 = vector.shape_cast %110 : vector<1x1x8x1024xf32> to vector<8x1024xf32>
    %112 = vector.shape_cast %109 : vector<8x1024xf32> to vector<1x1x8x1024xf32>
    tpu.vector_store %arg15[%c0_92, %c6_93, %c0_94, %c0_95], %112 {strides = array<i32>} : memref<1x8x8x1024xf32, #tpu.memory_space<vmem>>, vector<1x1x8x1024xf32>,
    %c6_96 = arith.constant 6 : index
    %c0_97 = arith.constant 0 : index
    %c0_98 = arith.constant 0 : index
    %113 = vector.load %arg5[%c6_96, %c0_97, %c0_98] : memref<8x16x8xf32, #tpu.memory_space<vmem>>, vector<1x16x8xf32>
    %114 = vector.shape_cast %113 : vector<1x16x8xf32> to vector<16x8xf32>
    %cst_99 = arith.constant 0.000000e+00 : f32
    %115 = vector.broadcast %cst_99 : f32 to vector<8x1024xf32>
    %116 = arith.cmpf ogt, %109, %115 : vector<8x1024xf32>
    %cst_100 = arith.constant 2.000000e-01 : f32
    %117 = vector.broadcast %cst_100 : f32 to vector<8x1024xf32>
    %118 = arith.mulf %117, %109 : vector<8x1024xf32>
    %119 = arith.select %116, %109, %118 : vector<8x1024xi1>, vector<8x1024xf32>
    %cst_101 = arith.constant dense<0.000000e+00> : vector<16x1024xf32>
    %120 = tpu.matmul %114, %119, %cst_101 {dimension_numbers = #tpu.dot_dimension_numbers<[1], [0], [0], [1], [0, 0, 1, 1], [], []>} : vector<16x8xf32>, vector<8x1024xf32>, vector<16x1024xf32> -> vector<16x1024xf32>
    %121 = arith.addf %104, %120 : vector<16x1024xf32>
    %c0_102 = arith.constant 0 : index
    %c7 = arith.constant 7 : index
    %c0_103 = arith.constant 0 : index
    %c0_104 = arith.constant 0 : index
    %122 = vector.load %arg2[%c0_102, %c7, %c0_103, %c0_104] : memref<1x8x8x1024xf32, #tpu.memory_space<vmem>>, vector<1x1x8x1024xf32>
    %123 = vector.shape_cast %122 : vector<1x1x8x1024xf32> to vector<8x1024xf32>
    %cst_105 = arith.constant dense<0.000000e+00> : vector<8x1024xf32>
    %124 = tpu.matmul %0, %123, %cst_105 {dimension_numbers = #tpu.dot_dimension_numbers<[1], [0], [0], [1], [0, 0, 1, 1], [], []>} : vector<8x8xf32>, vector<8x1024xf32>, vector<8x1024xf32> -> vector<8x1024xf32>
    %125 = vector.broadcast %1 : vector<8x1xf32> to vector<8x1024xf32>
    %126 = arith.addf %124, %125 : vector<8x1024xf32>
    %c0_106 = arith.constant 0 : index
    %c7_107 = arith.constant 7 : index
    %c0_108 = arith.constant 0 : index
    %c0_109 = arith.constant 0 : index
    %127 = vector.load %arg15[%c0_106, %c7_107, %c0_108, %c0_109] : memref<1x8x8x1024xf32, #tpu.memory_space<vmem>>, vector<1x1x8x1024xf32>
    %128 = vector.shape_cast %127 : vector<1x1x8x1024xf32> to vector<8x1024xf32>
    %129 = vector.shape_cast %126 : vector<8x1024xf32> to vector<1x1x8x1024xf32>
    tpu.vector_store %arg15[%c0_106, %c7_107, %c0_108, %c0_109], %129 {strides = array<i32>} : memref<1x8x8x1024xf32, #tpu.memory_space<vmem>>, vector<1x1x8x1024xf32>,
    %c7_110 = arith.constant 7 : index
    %c0_111 = arith.constant 0 : index
    %c0_112 = arith.constant 0 : index
    %130 = vector.load %arg5[%c7_110, %c0_111, %c0_112] : memref<8x16x8xf32, #tpu.memory_space<vmem>>, vector<1x16x8xf32>
    %131 = vector.shape_cast %130 : vector<1x16x8xf32> to vector<16x8xf32>
    %cst_113 = arith.constant 0.000000e+00 : f32
    %132 = vector.broadcast %cst_113 : f32 to vector<8x1024xf32>
    %133 = arith.cmpf ogt, %126, %132 : vector<8x1024xf32>
    %cst_114 = arith.constant 2.000000e-01 : f32
    %134 = vector.broadcast %cst_114 : f32 to vector<8x1024xf32>
    %135 = arith.mulf %134, %126 : vector<8x1024xf32>
    %136 = arith.select %133, %126, %135 : vector<8x1024xi1>, vector<8x1024xf32>
    %cst_115 = arith.constant dense<0.000000e+00> : vector<16x1024xf32>
    %137 = tpu.matmul %131, %136, %cst_115 {dimension_numbers = #tpu.dot_dimension_numbers<[1], [0], [0], [1], [0, 0, 1, 1], [], []>} : vector<16x8xf32>, vector<8x1024xf32>, vector<16x1024xf32> -> vector<16x1024xf32>
    %138 = arith.addf %121, %137 : vector<16x1024xf32>
    %c0_116 = arith.constant 0 : index
    %c0_117 = arith.constant 0 : index
    %139 = vector.load %arg6[%c0_116, %c0_117] : memref<16x1xf32, #tpu.memory_space<vmem>>, vector<16x1xf32>
    %140 = vector.broadcast %139 : vector<16x1xf32> to vector<16x1024xf32>
    %141 = arith.addf %138, %140 : vector<16x1024xf32>
    %c0_118 = arith.constant 0 : index
    %c0_119 = arith.constant 0 : index
    %c0_120 = arith.constant 0 : index
    %142 = vector.load %arg16[%c0_118, %c0_119, %c0_120] : memref<1x16x1024xf32, #tpu.memory_space<vmem>>, vector<1x16x1024xf32>
    %143 = vector.shape_cast %142 : vector<1x16x1024xf32> to vector<16x1024xf32>
    %144 = vector.shape_cast %141 : vector<16x1024xf32> to vector<1x16x1024xf32>
    tpu.vector_store %arg16[%c0_118, %c0_119, %c0_120], %144 {strides = array<i32>} : memref<1x16x1024xf32, #tpu.memory_space<vmem>>, vector<1x16x1024xf32>,
    %cst_121 = arith.constant 0.000000e+00 : f32
    %145 = vector.broadcast %cst_121 : f32 to vector<16x1024xf32>
    %146 = arith.cmpf ogt, %141, %145 : vector<16x1024xf32>
    %cst_122 = arith.constant 2.000000e-01 : f32
    %147 = vector.broadcast %cst_122 : f32 to vector<16x1024xf32>
    %148 = arith.mulf %147, %141 : vector<16x1024xf32>
    %149 = arith.select %146, %141, %148 : vector<16x1024xi1>, vector<16x1024xf32>
    %150 = arith.index_cast %arg1 : i32 to index
    %c0_123 = arith.constant 0 : index
    %c0_124 = arith.constant 0 : index
    %151 = vector.load %arg21[%150, %c0_123, %c0_124] : memref<2x16x1024xf32, #tpu.memory_space<vmem>>, vector<1x16x1024xf32>
    %152 = vector.shape_cast %151 : vector<1x16x1024xf32> to vector<16x1024xf32>
    %153 = vector.shape_cast %149 : vector<16x1024xf32> to vector<1x16x1024xf32>
    tpu.vector_store %arg21[%150, %c0_123, %c0_124], %153 {strides = array<i32>} : memref<2x16x1024xf32, #tpu.memory_space<vmem>>, vector<1x16x1024xf32>,
    %c1_i32 = arith.constant 1 : i32
    %154 = arith.cmpi eq, %arg1, %c1_i32 : i32
    %155 = arith.extui %154 : i1 to i32
    %c0_i32 = arith.constant 0 : i32
    %156 = arith.cmpi ne, %155, %c0_i32 : i32
    scf.if %156 {
      %cst_125 = arith.constant 0.000000e+00 : f32
      %157 = vector.broadcast %cst_125 : f32 to vector<32x256xf32>
      %c0_126 = arith.constant 0 : index
      %c0_127 = arith.constant 0 : index
      %c0_128 = arith.constant 0 : index
      %158 = vector.load %arg21[%c0_126, %c0_127, %c0_128] : memref<2x16x1024xf32, #tpu.memory_space<vmem>>, vector<1x16x1024xf32>
      %159 = vector.shape_cast %158 : vector<1x16x1024xf32> to vector<16x1024xf32>
      %160 = vector.extract_strided_slice %159 {offsets = [0, 0], sizes = [16, 256], strides = [1, 1]} : vector<16x1024xf32> to vector<16x256xf32>
      %c0_129 = arith.constant 0 : index
      %c0_130 = arith.constant 0 : index
      %c0_131 = arith.constant 0 : index
      %161 = vector.load %arg7[%c0_129, %c0_130, %c0_131] : memref<8x32x16xf32, #tpu.memory_space<vmem>>, vector<1x32x16xf32>
      %162 = vector.shape_cast %161 : vector<1x32x16xf32> to vector<32x16xf32>
      %cst_132 = arith.constant dense<0.000000e+00> : vector<32x256xf32>
      %163 = tpu.matmul %162, %160, %cst_132 {dimension_numbers = #tpu.dot_dimension_numbers<[1], [0], [0], [1], [0, 0, 1, 1], [], []>} : vector<32x16xf32>, vector<16x256xf32>, vector<32x256xf32> -> vector<32x256xf32>
      %164 = arith.addf %157, %163 : vector<32x256xf32>
      %c0_133 = arith.constant 0 : index
      %c0_134 = arith.constant 0 : index
      %c0_135 = arith.constant 0 : index
      %165 = vector.load %arg21[%c0_133, %c0_134, %c0_135] : memref<2x16x1024xf32, #tpu.memory_space<vmem>>, vector<1x16x1024xf32>
      %166 = vector.shape_cast %165 : vector<1x16x1024xf32> to vector<16x1024xf32>
      %167 = vector.extract_strided_slice %166 {offsets = [0, 256], sizes = [16, 256], strides = [1, 1]} : vector<16x1024xf32> to vector<16x256xf32>
      %c1_136 = arith.constant 1 : index
      %c0_137 = arith.constant 0 : index
      %c0_138 = arith.constant 0 : index
      %168 = vector.load %arg7[%c1_136, %c0_137, %c0_138] : memref<8x32x16xf32, #tpu.memory_space<vmem>>, vector<1x32x16xf32>
      %169 = vector.shape_cast %168 : vector<1x32x16xf32> to vector<32x16xf32>
      %cst_139 = arith.constant dense<0.000000e+00> : vector<32x256xf32>
      %170 = tpu.matmul %169, %167, %cst_139 {dimension_numbers = #tpu.dot_dimension_numbers<[1], [0], [0], [1], [0, 0, 1, 1], [], []>} : vector<32x16xf32>, vector<16x256xf32>, vector<32x256xf32> -> vector<32x256xf32>
      %171 = arith.addf %164, %170 : vector<32x256xf32>
      %c0_140 = arith.constant 0 : index
      %c0_141 = arith.constant 0 : index
      %c0_142 = arith.constant 0 : index
      %172 = vector.load %arg21[%c0_140, %c0_141, %c0_142] : memref<2x16x1024xf32, #tpu.memory_space<vmem>>, vector<1x16x1024xf32>
      %173 = vector.shape_cast %172 : vector<1x16x1024xf32> to vector<16x1024xf32>
      %174 = vector.extract_strided_slice %173 {offsets = [0, 512], sizes = [16, 256], strides = [1, 1]} : vector<16x1024xf32> to vector<16x256xf32>
      %c2_143 = arith.constant 2 : index
      %c0_144 = arith.constant 0 : index
      %c0_145 = arith.constant 0 : index
      %175 = vector.load %arg7[%c2_143, %c0_144, %c0_145] : memref<8x32x16xf32, #tpu.memory_space<vmem>>, vector<1x32x16xf32>
      %176 = vector.shape_cast %175 : vector<1x32x16xf32> to vector<32x16xf32>
      %cst_146 = arith.constant dense<0.000000e+00> : vector<32x256xf32>
      %177 = tpu.matmul %176, %174, %cst_146 {dimension_numbers = #tpu.dot_dimension_numbers<[1], [0], [0], [1], [0, 0, 1, 1], [], []>} : vector<32x16xf32>, vector<16x256xf32>, vector<32x256xf32> -> vector<32x256xf32>
      %178 = arith.addf %171, %177 : vector<32x256xf32>
      %c0_147 = arith.constant 0 : index
      %c0_148 = arith.constant 0 : index
      %c0_149 = arith.constant 0 : index
      %179 = vector.load %arg21[%c0_147, %c0_148, %c0_149] : memref<2x16x1024xf32, #tpu.memory_space<vmem>>, vector<1x16x1024xf32>
      %180 = vector.shape_cast %179 : vector<1x16x1024xf32> to vector<16x1024xf32>
      %181 = vector.extract_strided_slice %180 {offsets = [0, 768], sizes = [16, 256], strides = [1, 1]} : vector<16x1024xf32> to vector<16x256xf32>
      %c3_150 = arith.constant 3 : index
      %c0_151 = arith.constant 0 : index
      %c0_152 = arith.constant 0 : index
      %182 = vector.load %arg7[%c3_150, %c0_151, %c0_152] : memref<8x32x16xf32, #tpu.memory_space<vmem>>, vector<1x32x16xf32>
      %183 = vector.shape_cast %182 : vector<1x32x16xf32> to vector<32x16xf32>
      %cst_153 = arith.constant dense<0.000000e+00> : vector<32x256xf32>
      %184 = tpu.matmul %183, %181, %cst_153 {dimension_numbers = #tpu.dot_dimension_numbers<[1], [0], [0], [1], [0, 0, 1, 1], [], []>} : vector<32x16xf32>, vector<16x256xf32>, vector<32x256xf32> -> vector<32x256xf32>
      %185 = arith.addf %178, %184 : vector<32x256xf32>
      %c1_154 = arith.constant 1 : index
      %c0_155 = arith.constant 0 : index
      %c0_156 = arith.constant 0 : index
      %186 = vector.load %arg21[%c1_154, %c0_155, %c0_156] : memref<2x16x1024xf32, #tpu.memory_space<vmem>>, vector<1x16x1024xf32>
      %187 = vector.shape_cast %186 : vector<1x16x1024xf32> to vector<16x1024xf32>
      %188 = vector.extract_strided_slice %187 {offsets = [0, 0], sizes = [16, 256], strides = [1, 1]} : vector<16x1024xf32> to vector<16x256xf32>
      %c4_157 = arith.constant 4 : index
      %c0_158 = arith.constant 0 : index
      %c0_159 = arith.constant 0 : index
      %189 = vector.load %arg7[%c4_157, %c0_158, %c0_159] : memref<8x32x16xf32, #tpu.memory_space<vmem>>, vector<1x32x16xf32>
      %190 = vector.shape_cast %189 : vector<1x32x16xf32> to vector<32x16xf32>
      %cst_160 = arith.constant dense<0.000000e+00> : vector<32x256xf32>
      %191 = tpu.matmul %190, %188, %cst_160 {dimension_numbers = #tpu.dot_dimension_numbers<[1], [0], [0], [1], [0, 0, 1, 1], [], []>} : vector<32x16xf32>, vector<16x256xf32>, vector<32x256xf32> -> vector<32x256xf32>
      %192 = arith.addf %185, %191 : vector<32x256xf32>
      %c1_161 = arith.constant 1 : index
      %c0_162 = arith.constant 0 : index
      %c0_163 = arith.constant 0 : index
      %193 = vector.load %arg21[%c1_161, %c0_162, %c0_163] : memref<2x16x1024xf32, #tpu.memory_space<vmem>>, vector<1x16x1024xf32>
      %194 = vector.shape_cast %193 : vector<1x16x1024xf32> to vector<16x1024xf32>
      %195 = vector.extract_strided_slice %194 {offsets = [0, 256], sizes = [16, 256], strides = [1, 1]} : vector<16x1024xf32> to vector<16x256xf32>
      %c5_164 = arith.constant 5 : index
      %c0_165 = arith.constant 0 : index
      %c0_166 = arith.constant 0 : index
      %196 = vector.load %arg7[%c5_164, %c0_165, %c0_166] : memref<8x32x16xf32, #tpu.memory_space<vmem>>, vector<1x32x16xf32>
      %197 = vector.shape_cast %196 : vector<1x32x16xf32> to vector<32x16xf32>
      %cst_167 = arith.constant dense<0.000000e+00> : vector<32x256xf32>
      %198 = tpu.matmul %197, %195, %cst_167 {dimension_numbers = #tpu.dot_dimension_numbers<[1], [0], [0], [1], [0, 0, 1, 1], [], []>} : vector<32x16xf32>, vector<16x256xf32>, vector<32x256xf32> -> vector<32x256xf32>
      %199 = arith.addf %192, %198 : vector<32x256xf32>
      %c1_168 = arith.constant 1 : index
      %c0_169 = arith.constant 0 : index
      %c0_170 = arith.constant 0 : index
      %200 = vector.load %arg21[%c1_168, %c0_169, %c0_170] : memref<2x16x1024xf32, #tpu.memory_space<vmem>>, vector<1x16x1024xf32>
      %201 = vector.shape_cast %200 : vector<1x16x1024xf32> to vector<16x1024xf32>
      %202 = vector.extract_strided_slice %201 {offsets = [0, 512], sizes = [16, 256], strides = [1, 1]} : vector<16x1024xf32> to vector<16x256xf32>
      %c6_171 = arith.constant 6 : index
      %c0_172 = arith.constant 0 : index
      %c0_173 = arith.constant 0 : index
      %203 = vector.load %arg7[%c6_171, %c0_172, %c0_173] : memref<8x32x16xf32, #tpu.memory_space<vmem>>, vector<1x32x16xf32>
      %204 = vector.shape_cast %203 : vector<1x32x16xf32> to vector<32x16xf32>
      %cst_174 = arith.constant dense<0.000000e+00> : vector<32x256xf32>
      %205 = tpu.matmul %204, %202, %cst_174 {dimension_numbers = #tpu.dot_dimension_numbers<[1], [0], [0], [1], [0, 0, 1, 1], [], []>} : vector<32x16xf32>, vector<16x256xf32>, vector<32x256xf32> -> vector<32x256xf32>
      %206 = arith.addf %199, %205 : vector<32x256xf32>
      %c1_175 = arith.constant 1 : index
      %c0_176 = arith.constant 0 : index
      %c0_177 = arith.constant 0 : index
      %207 = vector.load %arg21[%c1_175, %c0_176, %c0_177] : memref<2x16x1024xf32, #tpu.memory_space<vmem>>, vector<1x16x1024xf32>
      %208 = vector.shape_cast %207 : vector<1x16x1024xf32> to vector<16x1024xf32>
      %209 = vector.extract_strided_slice %208 {offsets = [0, 768], sizes = [16, 256], strides = [1, 1]} : vector<16x1024xf32> to vector<16x256xf32>
      %c7_178 = arith.constant 7 : index
      %c0_179 = arith.constant 0 : index
      %c0_180 = arith.constant 0 : index
      %210 = vector.load %arg7[%c7_178, %c0_179, %c0_180] : memref<8x32x16xf32, #tpu.memory_space<vmem>>, vector<1x32x16xf32>
      %211 = vector.shape_cast %210 : vector<1x32x16xf32> to vector<32x16xf32>
      %cst_181 = arith.constant dense<0.000000e+00> : vector<32x256xf32>
      %212 = tpu.matmul %211, %209, %cst_181 {dimension_numbers = #tpu.dot_dimension_numbers<[1], [0], [0], [1], [0, 0, 1, 1], [], []>} : vector<32x16xf32>, vector<16x256xf32>, vector<32x256xf32> -> vector<32x256xf32>
      %213 = arith.addf %206, %212 : vector<32x256xf32>
      %c0_182 = arith.constant 0 : index
      %c0_183 = arith.constant 0 : index
      %214 = vector.load %arg8[%c0_182, %c0_183] : memref<32x1xf32, #tpu.memory_space<vmem>>, vector<32x1xf32>
      %215 = vector.broadcast %214 : vector<32x1xf32> to vector<32x256xf32>
      %216 = arith.addf %213, %215 : vector<32x256xf32>
      %c0_184 = arith.constant 0 : index
      %c0_185 = arith.constant 0 : index
      %c0_186 = arith.constant 0 : index
      %217 = vector.load %arg17[%c0_184, %c0_185, %c0_186] : memref<1x32x256xf32, #tpu.memory_space<vmem>>, vector<1x32x256xf32>
      %218 = vector.shape_cast %217 : vector<1x32x256xf32> to vector<32x256xf32>
      %219 = vector.shape_cast %216 : vector<32x256xf32> to vector<1x32x256xf32>
      tpu.vector_store %arg17[%c0_184, %c0_185, %c0_186], %219 {strides = array<i32>} : memref<1x32x256xf32, #tpu.memory_space<vmem>>, vector<1x32x256xf32>,
      %cst_187 = arith.constant 0.000000e+00 : f32
      %220 = vector.broadcast %cst_187 : f32 to vector<32x256xf32>
      %221 = arith.cmpf ogt, %216, %220 : vector<32x256xf32>
      %cst_188 = arith.constant 2.000000e-01 : f32
      %222 = vector.broadcast %cst_188 : f32 to vector<32x256xf32>
      %223 = arith.mulf %222, %216 : vector<32x256xf32>
      %224 = arith.select %221, %216, %223 : vector<32x256xi1>, vector<32x256xf32>
      %cst_189 = arith.constant 0.000000e+00 : f32
      %225 = vector.broadcast %cst_189 : f32 to vector<64x32xf32>
      %c0_190 = arith.constant 0 : index
      %c0_191 = arith.constant 0 : index
      %c0_192 = arith.constant 0 : index
      %226 = vector.load %arg9[%c0_190, %c0_191, %c0_192] : memref<8x64x32xf32, #tpu.memory_space<vmem>>, vector<1x64x32xf32>
      %227 = vector.shape_cast %226 : vector<1x64x32xf32> to vector<64x32xf32>
      %228 = vector.extract_strided_slice %224 {offsets = [0, 0], sizes = [32, 32], strides = [1, 1]} : vector<32x256xf32> to vector<32x32xf32>
      %cst_193 = arith.constant dense<0.000000e+00> : vector<64x32xf32>
      %229 = tpu.matmul %227, %228, %cst_193 {dimension_numbers = #tpu.dot_dimension_numbers<[1], [0], [0], [1], [0, 0, 1, 1], [], []>} : vector<64x32xf32>, vector<32x32xf32>, vector<64x32xf32> -> vector<64x32xf32>
      %230 = arith.addf %225, %229 : vector<64x32xf32>
      %c1_194 = arith.constant 1 : index
      %c0_195 = arith.constant 0 : index
      %c0_196 = arith.constant 0 : index
      %231 = vector.load %arg9[%c1_194, %c0_195, %c0_196] : memref<8x64x32xf32, #tpu.memory_space<vmem>>, vector<1x64x32xf32>
      %232 = vector.shape_cast %231 : vector<1x64x32xf32> to vector<64x32xf32>
      %233 = vector.extract_strided_slice %224 {offsets = [0, 32], sizes = [32, 32], strides = [1, 1]} : vector<32x256xf32> to vector<32x32xf32>
      %cst_197 = arith.constant dense<0.000000e+00> : vector<64x32xf32>
      %234 = tpu.matmul %232, %233, %cst_197 {dimension_numbers = #tpu.dot_dimension_numbers<[1], [0], [0], [1], [0, 0, 1, 1], [], []>} : vector<64x32xf32>, vector<32x32xf32>, vector<64x32xf32> -> vector<64x32xf32>
      %235 = arith.addf %230, %234 : vector<64x32xf32>
      %c2_198 = arith.constant 2 : index
      %c0_199 = arith.constant 0 : index
      %c0_200 = arith.constant 0 : index
      %236 = vector.load %arg9[%c2_198, %c0_199, %c0_200] : memref<8x64x32xf32, #tpu.memory_space<vmem>>, vector<1x64x32xf32>
      %237 = vector.shape_cast %236 : vector<1x64x32xf32> to vector<64x32xf32>
      %238 = vector.extract_strided_slice %224 {offsets = [0, 64], sizes = [32, 32], strides = [1, 1]} : vector<32x256xf32> to vector<32x32xf32>
      %cst_201 = arith.constant dense<0.000000e+00> : vector<64x32xf32>
      %239 = tpu.matmul %237, %238, %cst_201 {dimension_numbers = #tpu.dot_dimension_numbers<[1], [0], [0], [1], [0, 0, 1, 1], [], []>} : vector<64x32xf32>, vector<32x32xf32>, vector<64x32xf32> -> vector<64x32xf32>
      %240 = arith.addf %235, %239 : vector<64x32xf32>
      %c3_202 = arith.constant 3 : index
      %c0_203 = arith.constant 0 : index
      %c0_204 = arith.constant 0 : index
      %241 = vector.load %arg9[%c3_202, %c0_203, %c0_204] : memref<8x64x32xf32, #tpu.memory_space<vmem>>, vector<1x64x32xf32>
      %242 = vector.shape_cast %241 : vector<1x64x32xf32> to vector<64x32xf32>
      %243 = vector.extract_strided_slice %224 {offsets = [0, 96], sizes = [32, 32], strides = [1, 1]} : vector<32x256xf32> to vector<32x32xf32>
      %cst_205 = arith.constant dense<0.000000e+00> : vector<64x32xf32>
      %244 = tpu.matmul %242, %243, %cst_205 {dimension_numbers = #tpu.dot_dimension_numbers<[1], [0], [0], [1], [0, 0, 1, 1], [], []>} : vector<64x32xf32>, vector<32x32xf32>, vector<64x32xf32> -> vector<64x32xf32>
      %245 = arith.addf %240, %244 : vector<64x32xf32>
      %c4_206 = arith.constant 4 : index
      %c0_207 = arith.constant 0 : index
      %c0_208 = arith.constant 0 : index
      %246 = vector.load %arg9[%c4_206, %c0_207, %c0_208] : memref<8x64x32xf32, #tpu.memory_space<vmem>>, vector<1x64x32xf32>
      %247 = vector.shape_cast %246 : vector<1x64x32xf32> to vector<64x32xf32>
      %248 = vector.extract_strided_slice %224 {offsets = [0, 128], sizes = [32, 32], strides = [1, 1]} : vector<32x256xf32> to vector<32x32xf32>
      %cst_209 = arith.constant dense<0.000000e+00> : vector<64x32xf32>
      %249 = tpu.matmul %247, %248, %cst_209 {dimension_numbers = #tpu.dot_dimension_numbers<[1], [0], [0], [1], [0, 0, 1, 1], [], []>} : vector<64x32xf32>, vector<32x32xf32>, vector<64x32xf32> -> vector<64x32xf32>
      %250 = arith.addf %245, %249 : vector<64x32xf32>
      %c5_210 = arith.constant 5 : index
      %c0_211 = arith.constant 0 : index
      %c0_212 = arith.constant 0 : index
      %251 = vector.load %arg9[%c5_210, %c0_211, %c0_212] : memref<8x64x32xf32, #tpu.memory_space<vmem>>, vector<1x64x32xf32>
      %252 = vector.shape_cast %251 : vector<1x64x32xf32> to vector<64x32xf32>
      %253 = vector.extract_strided_slice %224 {offsets = [0, 160], sizes = [32, 32], strides = [1, 1]} : vector<32x256xf32> to vector<32x32xf32>
      %cst_213 = arith.constant dense<0.000000e+00> : vector<64x32xf32>
      %254 = tpu.matmul %252, %253, %cst_213 {dimension_numbers = #tpu.dot_dimension_numbers<[1], [0], [0], [1], [0, 0, 1, 1], [], []>} : vector<64x32xf32>, vector<32x32xf32>, vector<64x32xf32> -> vector<64x32xf32>
      %255 = arith.addf %250, %254 : vector<64x32xf32>
      %c6_214 = arith.constant 6 : index
      %c0_215 = arith.constant 0 : index
      %c0_216 = arith.constant 0 : index
      %256 = vector.load %arg9[%c6_214, %c0_215, %c0_216] : memref<8x64x32xf32, #tpu.memory_space<vmem>>, vector<1x64x32xf32>
      %257 = vector.shape_cast %256 : vector<1x64x32xf32> to vector<64x32xf32>
      %258 = vector.extract_strided_slice %224 {offsets = [0, 192], sizes = [32, 32], strides = [1, 1]} : vector<32x256xf32> to vector<32x32xf32>
      %cst_217 = arith.constant dense<0.000000e+00> : vector<64x32xf32>
      %259 = tpu.matmul %257, %258, %cst_217 {dimension_numbers = #tpu.dot_dimension_numbers<[1], [0], [0], [1], [0, 0, 1, 1], [], []>} : vector<64x32xf32>, vector<32x32xf32>, vector<64x32xf32> -> vector<64x32xf32>
      %260 = arith.addf %255, %259 : vector<64x32xf32>
      %c7_218 = arith.constant 7 : index
      %c0_219 = arith.constant 0 : index
      %c0_220 = arith.constant 0 : index
      %261 = vector.load %arg9[%c7_218, %c0_219, %c0_220] : memref<8x64x32xf32, #tpu.memory_space<vmem>>, vector<1x64x32xf32>
      %262 = vector.shape_cast %261 : vector<1x64x32xf32> to vector<64x32xf32>
      %263 = vector.extract_strided_slice %224 {offsets = [0, 224], sizes = [32, 32], strides = [1, 1]} : vector<32x256xf32> to vector<32x32xf32>
      %cst_221 = arith.constant dense<0.000000e+00> : vector<64x32xf32>
      %264 = tpu.matmul %262, %263, %cst_221 {dimension_numbers = #tpu.dot_dimension_numbers<[1], [0], [0], [1], [0, 0, 1, 1], [], []>} : vector<64x32xf32>, vector<32x32xf32>, vector<64x32xf32> -> vector<64x32xf32>
      %265 = arith.addf %260, %264 : vector<64x32xf32>
      %c0_222 = arith.constant 0 : index
      %c0_223 = arith.constant 0 : index
      %266 = vector.load %arg10[%c0_222, %c0_223] : memref<64x1xf32, #tpu.memory_space<vmem>>, vector<64x1xf32>
      %267 = vector.broadcast %266 : vector<64x1xf32> to vector<64x32xf32>
      %268 = arith.addf %265, %267 : vector<64x32xf32>
      %c0_224 = arith.constant 0 : index
      %c0_225 = arith.constant 0 : index
      %c0_226 = arith.constant 0 : index
      %269 = vector.load %arg18[%c0_224, %c0_225, %c0_226] : memref<1x64x32xf32, #tpu.memory_space<vmem>>, vector<1x64x32xf32>
      %270 = vector.shape_cast %269 : vector<1x64x32xf32> to vector<64x32xf32>
      %271 = vector.shape_cast %268 : vector<64x32xf32> to vector<1x64x32xf32>
      tpu.vector_store %arg18[%c0_224, %c0_225, %c0_226], %271 {strides = array<i32>} : memref<1x64x32xf32, #tpu.memory_space<vmem>>, vector<1x64x32xf32>,
      %cst_227 = arith.constant 0.000000e+00 : f32
      %272 = vector.broadcast %cst_227 : f32 to vector<64x32xf32>
      %273 = arith.cmpf ogt, %268, %272 : vector<64x32xf32>
      %cst_228 = arith.constant 2.000000e-01 : f32
      %274 = vector.broadcast %cst_228 : f32 to vector<64x32xf32>
      %275 = arith.mulf %274, %268 : vector<64x32xf32>
      %276 = arith.select %273, %268, %275 : vector<64x32xi1>, vector<64x32xf32>
      %cst_229 = arith.constant 0.000000e+00 : f32
      %277 = vector.broadcast %cst_229 : f32 to vector<64x4xf32>
      %c0_230 = arith.constant 0 : index
      %c0_231 = arith.constant 0 : index
      %c0_232 = arith.constant 0 : index
      %278 = vector.load %arg11[%c0_230, %c0_231, %c0_232] : memref<8x64x64xf32, #tpu.memory_space<vmem>>, vector<1x64x64xf32>
      %279 = vector.shape_cast %278 : vector<1x64x64xf32> to vector<64x64xf32>
      %280 = vector.extract_strided_slice %276 {offsets = [0, 0], sizes = [64, 4], strides = [1, 1]} : vector<64x32xf32> to vector<64x4xf32>
      %cst_233 = arith.constant dense<0.000000e+00> : vector<64x4xf32>
      %281 = tpu.matmul %279, %280, %cst_233 {dimension_numbers = #tpu.dot_dimension_numbers<[1], [0], [0], [1], [0, 0, 1, 1], [], []>} : vector<64x64xf32>, vector<64x4xf32>, vector<64x4xf32> -> vector<64x4xf32>
      %282 = arith.addf %277, %281 : vector<64x4xf32>
      %c1_234 = arith.constant 1 : index
      %c0_235 = arith.constant 0 : index
      %c0_236 = arith.constant 0 : index
      %283 = vector.load %arg11[%c1_234, %c0_235, %c0_236] : memref<8x64x64xf32, #tpu.memory_space<vmem>>, vector<1x64x64xf32>
      %284 = vector.shape_cast %283 : vector<1x64x64xf32> to vector<64x64xf32>
      %285 = vector.extract_strided_slice %276 {offsets = [0, 4], sizes = [64, 4], strides = [1, 1]} : vector<64x32xf32> to vector<64x4xf32>
      %cst_237 = arith.constant dense<0.000000e+00> : vector<64x4xf32>
      %286 = tpu.matmul %284, %285, %cst_237 {dimension_numbers = #tpu.dot_dimension_numbers<[1], [0], [0], [1], [0, 0, 1, 1], [], []>} : vector<64x64xf32>, vector<64x4xf32>, vector<64x4xf32> -> vector<64x4xf32>
      %287 = arith.addf %282, %286 : vector<64x4xf32>
      %c2_238 = arith.constant 2 : index
      %c0_239 = arith.constant 0 : index
      %c0_240 = arith.constant 0 : index
      %288 = vector.load %arg11[%c2_238, %c0_239, %c0_240] : memref<8x64x64xf32, #tpu.memory_space<vmem>>, vector<1x64x64xf32>
      %289 = vector.shape_cast %288 : vector<1x64x64xf32> to vector<64x64xf32>
      %290 = vector.extract_strided_slice %276 {offsets = [0, 8], sizes = [64, 4], strides = [1, 1]} : vector<64x32xf32> to vector<64x4xf32>
      %cst_241 = arith.constant dense<0.000000e+00> : vector<64x4xf32>
      %291 = tpu.matmul %289, %290, %cst_241 {dimension_numbers = #tpu.dot_dimension_numbers<[1], [0], [0], [1], [0, 0, 1, 1], [], []>} : vector<64x64xf32>, vector<64x4xf32>, vector<64x4xf32> -> vector<64x4xf32>
      %292 = arith.addf %287, %291 : vector<64x4xf32>
      %c3_242 = arith.constant 3 : index
      %c0_243 = arith.constant 0 : index
      %c0_244 = arith.constant 0 : index
      %293 = vector.load %arg11[%c3_242, %c0_243, %c0_244] : memref<8x64x64xf32, #tpu.memory_space<vmem>>, vector<1x64x64xf32>
      %294 = vector.shape_cast %293 : vector<1x64x64xf32> to vector<64x64xf32>
      %295 = vector.extract_strided_slice %276 {offsets = [0, 12], sizes = [64, 4], strides = [1, 1]} : vector<64x32xf32> to vector<64x4xf32>
      %cst_245 = arith.constant dense<0.000000e+00> : vector<64x4xf32>
      %296 = tpu.matmul %294, %295, %cst_245 {dimension_numbers = #tpu.dot_dimension_numbers<[1], [0], [0], [1], [0, 0, 1, 1], [], []>} : vector<64x64xf32>, vector<64x4xf32>, vector<64x4xf32> -> vector<64x4xf32>
      %297 = arith.addf %292, %296 : vector<64x4xf32>
      %c4_246 = arith.constant 4 : index
      %c0_247 = arith.constant 0 : index
      %c0_248 = arith.constant 0 : index
      %298 = vector.load %arg11[%c4_246, %c0_247, %c0_248] : memref<8x64x64xf32, #tpu.memory_space<vmem>>, vector<1x64x64xf32>
      %299 = vector.shape_cast %298 : vector<1x64x64xf32> to vector<64x64xf32>
      %300 = vector.extract_strided_slice %276 {offsets = [0, 16], sizes = [64, 4], strides = [1, 1]} : vector<64x32xf32> to vector<64x4xf32>
      %cst_249 = arith.constant dense<0.000000e+00> : vector<64x4xf32>
      %301 = tpu.matmul %299, %300, %cst_249 {dimension_numbers = #tpu.dot_dimension_numbers<[1], [0], [0], [1], [0, 0, 1, 1], [], []>} : vector<64x64xf32>, vector<64x4xf32>, vector<64x4xf32> -> vector<64x4xf32>
      %302 = arith.addf %297, %301 : vector<64x4xf32>
      %c5_250 = arith.constant 5 : index
      %c0_251 = arith.constant 0 : index
      %c0_252 = arith.constant 0 : index
      %303 = vector.load %arg11[%c5_250, %c0_251, %c0_252] : memref<8x64x64xf32, #tpu.memory_space<vmem>>, vector<1x64x64xf32>
      %304 = vector.shape_cast %303 : vector<1x64x64xf32> to vector<64x64xf32>
      %305 = vector.extract_strided_slice %276 {offsets = [0, 20], sizes = [64, 4], strides = [1, 1]} : vector<64x32xf32> to vector<64x4xf32>
      %cst_253 = arith.constant dense<0.000000e+00> : vector<64x4xf32>
      %306 = tpu.matmul %304, %305, %cst_253 {dimension_numbers = #tpu.dot_dimension_numbers<[1], [0], [0], [1], [0, 0, 1, 1], [], []>} : vector<64x64xf32>, vector<64x4xf32>, vector<64x4xf32> -> vector<64x4xf32>
      %307 = arith.addf %302, %306 : vector<64x4xf32>
      %c6_254 = arith.constant 6 : index
      %c0_255 = arith.constant 0 : index
      %c0_256 = arith.constant 0 : index
      %308 = vector.load %arg11[%c6_254, %c0_255, %c0_256] : memref<8x64x64xf32, #tpu.memory_space<vmem>>, vector<1x64x64xf32>
      %309 = vector.shape_cast %308 : vector<1x64x64xf32> to vector<64x64xf32>
      %310 = vector.extract_strided_slice %276 {offsets = [0, 24], sizes = [64, 4], strides = [1, 1]} : vector<64x32xf32> to vector<64x4xf32>
      %cst_257 = arith.constant dense<0.000000e+00> : vector<64x4xf32>
      %311 = tpu.matmul %309, %310, %cst_257 {dimension_numbers = #tpu.dot_dimension_numbers<[1], [0], [0], [1], [0, 0, 1, 1], [], []>} : vector<64x64xf32>, vector<64x4xf32>, vector<64x4xf32> -> vector<64x4xf32>
      %312 = arith.addf %307, %311 : vector<64x4xf32>
      %c7_258 = arith.constant 7 : index
      %c0_259 = arith.constant 0 : index
      %c0_260 = arith.constant 0 : index
      %313 = vector.load %arg11[%c7_258, %c0_259, %c0_260] : memref<8x64x64xf32, #tpu.memory_space<vmem>>, vector<1x64x64xf32>
      %314 = vector.shape_cast %313 : vector<1x64x64xf32> to vector<64x64xf32>
      %315 = vector.extract_strided_slice %276 {offsets = [0, 28], sizes = [64, 4], strides = [1, 1]} : vector<64x32xf32> to vector<64x4xf32>
      %cst_261 = arith.constant dense<0.000000e+00> : vector<64x4xf32>
      %316 = tpu.matmul %314, %315, %cst_261 {dimension_numbers = #tpu.dot_dimension_numbers<[1], [0], [0], [1], [0, 0, 1, 1], [], []>} : vector<64x64xf32>, vector<64x4xf32>, vector<64x4xf32> -> vector<64x4xf32>
      %317 = arith.addf %312, %316 : vector<64x4xf32>
      %c0_262 = arith.constant 0 : index
      %c0_263 = arith.constant 0 : index
      %318 = vector.load %arg12[%c0_262, %c0_263] : memref<64x1xf32, #tpu.memory_space<vmem>>, vector<64x1xf32>
      %319 = vector.broadcast %318 : vector<64x1xf32> to vector<64x4xf32>
      %320 = arith.addf %317, %319 : vector<64x4xf32>
      %c0_264 = arith.constant 0 : index
      %c0_265 = arith.constant 0 : index
      %c0_266 = arith.constant 0 : index
      %321 = vector.load %arg19[%c0_264, %c0_265, %c0_266] : memref<1x64x4xf32, #tpu.memory_space<vmem>>, vector<1x64x4xf32>
      %322 = vector.shape_cast %321 : vector<1x64x4xf32> to vector<64x4xf32>
      %323 = vector.shape_cast %320 : vector<64x4xf32> to vector<1x64x4xf32>
      tpu.vector_store %arg19[%c0_264, %c0_265, %c0_266], %323 {strides = array<i32>} : memref<1x64x4xf32, #tpu.memory_space<vmem>>, vector<1x64x4xf32>,
      %cst_267 = arith.constant 0.000000e+00 : f32
      %324 = vector.broadcast %cst_267 : f32 to vector<64x4xf32>
      %325 = arith.cmpf ogt, %320, %324 : vector<64x4xf32>
      %cst_268 = arith.constant 2.000000e-01 : f32
      %326 = vector.broadcast %cst_268 : f32 to vector<64x4xf32>
      %327 = arith.mulf %326, %320 : vector<64x4xf32>
      %328 = arith.select %325, %320, %327 : vector<64x4xi1>, vector<64x4xf32>
      %cst_269 = arith.constant 0.000000e+00 : f32
      %329 = vector.broadcast %cst_269 : f32 to vector<64x1xf32>
      %c0_270 = arith.constant 0 : index
      %c0_271 = arith.constant 0 : index
      %c0_272 = arith.constant 0 : index
      %330 = vector.load %arg13[%c0_270, %c0_271, %c0_272] : memref<4x64x64xf32, #tpu.memory_space<vmem>>, vector<1x64x64xf32>
      %331 = vector.shape_cast %330 : vector<1x64x64xf32> to vector<64x64xf32>
      %332 = vector.extract_strided_slice %328 {offsets = [0, 0], sizes = [64, 1], strides = [1, 1]} : vector<64x4xf32> to vector<64x1xf32>
      %cst_273 = arith.constant dense<0.000000e+00> : vector<64x1xf32>
      %333 = tpu.matmul %331, %332, %cst_273 {dimension_numbers = #tpu.dot_dimension_numbers<[1], [0], [0], [1], [0, 0, 1, 1], [], []>} : vector<64x64xf32>, vector<64x1xf32>, vector<64x1xf32> -> vector<64x1xf32>
      %334 = arith.addf %329, %333 : vector<64x1xf32>
      %c1_274 = arith.constant 1 : index
      %c0_275 = arith.constant 0 : index
      %c0_276 = arith.constant 0 : index
      %335 = vector.load %arg13[%c1_274, %c0_275, %c0_276] : memref<4x64x64xf32, #tpu.memory_space<vmem>>, vector<1x64x64xf32>
      %336 = vector.shape_cast %335 : vector<1x64x64xf32> to vector<64x64xf32>
      %337 = vector.extract_strided_slice %328 {offsets = [0, 1], sizes = [64, 1], strides = [1, 1]} : vector<64x4xf32> to vector<64x1xf32>
      %cst_277 = arith.constant dense<0.000000e+00> : vector<64x1xf32>
      %338 = tpu.matmul %336, %337, %cst_277 {dimension_numbers = #tpu.dot_dimension_numbers<[1], [0], [0], [1], [0, 0, 1, 1], [], []>} : vector<64x64xf32>, vector<64x1xf32>, vector<64x1xf32> -> vector<64x1xf32>
      %339 = arith.addf %334, %338 : vector<64x1xf32>
      %c2_278 = arith.constant 2 : index
      %c0_279 = arith.constant 0 : index
      %c0_280 = arith.constant 0 : index
      %340 = vector.load %arg13[%c2_278, %c0_279, %c0_280] : memref<4x64x64xf32, #tpu.memory_space<vmem>>, vector<1x64x64xf32>
      %341 = vector.shape_cast %340 : vector<1x64x64xf32> to vector<64x64xf32>
      %342 = vector.extract_strided_slice %328 {offsets = [0, 2], sizes = [64, 1], strides = [1, 1]} : vector<64x4xf32> to vector<64x1xf32>
      %cst_281 = arith.constant dense<0.000000e+00> : vector<64x1xf32>
      %343 = tpu.matmul %341, %342, %cst_281 {dimension_numbers = #tpu.dot_dimension_numbers<[1], [0], [0], [1], [0, 0, 1, 1], [], []>} : vector<64x64xf32>, vector<64x1xf32>, vector<64x1xf32> -> vector<64x1xf32>
      %344 = arith.addf %339, %343 : vector<64x1xf32>
      %c3_282 = arith.constant 3 : index
      %c0_283 = arith.constant 0 : index
      %c0_284 = arith.constant 0 : index
      %345 = vector.load %arg13[%c3_282, %c0_283, %c0_284] : memref<4x64x64xf32, #tpu.memory_space<vmem>>, vector<1x64x64xf32>
      %346 = vector.shape_cast %345 : vector<1x64x64xf32> to vector<64x64xf32>
      %347 = vector.extract_strided_slice %328 {offsets = [0, 3], sizes = [64, 1], strides = [1, 1]} : vector<64x4xf32> to vector<64x1xf32>
      %cst_285 = arith.constant dense<0.000000e+00> : vector<64x1xf32>
      %348 = tpu.matmul %346, %347, %cst_285 {dimension_numbers = #tpu.dot_dimension_numbers<[1], [0], [0], [1], [0, 0, 1, 1], [], []>} : vector<64x64xf32>, vector<64x1xf32>, vector<64x1xf32> -> vector<64x1xf32>
      %349 = arith.addf %344, %348 : vector<64x1xf32>
      %c0_286 = arith.constant 0 : index
      %c0_287 = arith.constant 0 : index
      %350 = vector.load %arg14[%c0_286, %c0_287] : memref<64x1xf32, #tpu.memory_space<vmem>>, vector<64x1xf32>
      %351 = arith.addf %349, %350 : vector<64x1xf32>
      %c0_288 = arith.constant 0 : index
      %c0_289 = arith.constant 0 : index
      %c0_290 = arith.constant 0 : index
      %352 = vector.load %arg20[%c0_288, %c0_289, %c0_290] : memref<1x64x1xf32, #tpu.memory_space<vmem>>, vector<1x64x1xf32>
      %353 = vector.shape_cast %352 : vector<1x64x1xf32> to vector<64x1xf32>
      %354 = vector.shape_cast %351 : vector<64x1xf32> to vector<1x64x1xf32>
      tpu.vector_store %arg20[%c0_288, %c0_289, %c0_290], %354 {strides = array<i32>} : memref<1x64x1xf32, #tpu.memory_space<vmem>>, vector<1x64x1xf32>,
    } else {
    }
    return
  }
  func.func @transform_0(%arg0: i32, %arg1: i32) -> (i32, i32, i32, i32) {
    %c0_i32 = arith.constant 0 : i32
    %c0_i32_0 = arith.constant 0 : i32
    %c0_i32_1 = arith.constant 0 : i32
    return %arg0, %c0_i32, %c0_i32_0, %arg1 : i32, i32, i32, i32
  }
  func.func @transform_1(%arg0: i32, %arg1: i32) -> (i32, i32) {
    %c0_i32 = arith.constant 0 : i32
    %c0_i32_0 = arith.constant 0 : i32
    %c0_i32_1 = arith.constant 0 : i32
    return %c0_i32, %c0_i32_0 : i32, i32
  }
  func.func @transform_2(%arg0: i32, %arg1: i32) -> (i32, i32) {
    %c0_i32 = arith.constant 0 : i32
    %c0_i32_0 = arith.constant 0 : i32
    %c0_i32_1 = arith.constant 0 : i32
    return %c0_i32, %c0_i32_0 : i32, i32
  }
  func.func @transform_3(%arg0: i32, %arg1: i32) -> (i32, i32, i32) {
    %c0_i32 = arith.constant 0 : i32
    %c0_i32_0 = arith.constant 0 : i32
    %c0_i32_1 = arith.constant 0 : i32
    %c0_i32_2 = arith.constant 0 : i32
    return %c0_i32, %c0_i32_0, %c0_i32_1 : i32, i32, i32
  }
  func.func @transform_4(%arg0: i32, %arg1: i32) -> (i32, i32) {
    %c0_i32 = arith.constant 0 : i32
    %c0_i32_0 = arith.constant 0 : i32
    %c0_i32_1 = arith.constant 0 : i32
    return %c0_i32, %c0_i32_0 : i32, i32
  }
  func.func @transform_5(%arg0: i32, %arg1: i32) -> (i32, i32, i32) {
    %c0_i32 = arith.constant 0 : i32
    %c0_i32_0 = arith.constant 0 : i32
    %c0_i32_1 = arith.constant 0 : i32
    %c0_i32_2 = arith.constant 0 : i32
    return %c0_i32, %c0_i32_0, %c0_i32_1 : i32, i32, i32
  }
  func.func @transform_6(%arg0: i32, %arg1: i32) -> (i32, i32) {
    %c0_i32 = arith.constant 0 : i32
    %c0_i32_0 = arith.constant 0 : i32
    %c0_i32_1 = arith.constant 0 : i32
    return %c0_i32, %c0_i32_0 : i32, i32
  }
  func.func @transform_7(%arg0: i32, %arg1: i32) -> (i32, i32, i32) {
    %c0_i32 = arith.constant 0 : i32
    %c0_i32_0 = arith.constant 0 : i32
    %c0_i32_1 = arith.constant 0 : i32
    %c0_i32_2 = arith.constant 0 : i32
    return %c0_i32, %c0_i32_0, %c0_i32_1 : i32, i32, i32
  }
  func.func @transform_8(%arg0: i32, %arg1: i32) -> (i32, i32) {
    %c0_i32 = arith.constant 0 : i32
    %c0_i32_0 = arith.constant 0 : i32
    %c0_i32_1 = arith.constant 0 : i32
    return %c0_i32, %c0_i32_0 : i32, i32
  }
  func.func @transform_9(%arg0: i32, %arg1: i32) -> (i32, i32, i32) {
    %c0_i32 = arith.constant 0 : i32
    %c0_i32_0 = arith.constant 0 : i32
    %c0_i32_1 = arith.constant 0 : i32
    %c0_i32_2 = arith.constant 0 : i32
    return %c0_i32, %c0_i32_0, %c0_i32_1 : i32, i32, i32
  }
  func.func @transform_10(%arg0: i32, %arg1: i32) -> (i32, i32) {
    %c0_i32 = arith.constant 0 : i32
    %c0_i32_0 = arith.constant 0 : i32
    %c0_i32_1 = arith.constant 0 : i32
    return %c0_i32, %c0_i32_0 : i32, i32
  }
  func.func @transform_11(%arg0: i32, %arg1: i32) -> (i32, i32, i32) {
    %c0_i32 = arith.constant 0 : i32
    %c0_i32_0 = arith.constant 0 : i32
    %c0_i32_1 = arith.constant 0 : i32
    %c0_i32_2 = arith.constant 0 : i32
    return %c0_i32, %c0_i32_0, %c0_i32_1 : i32, i32, i32
  }
  func.func @transform_12(%arg0: i32, %arg1: i32) -> (i32, i32) {
    %c0_i32 = arith.constant 0 : i32
    %c0_i32_0 = arith.constant 0 : i32
    %c0_i32_1 = arith.constant 0 : i32
    return %c0_i32, %c0_i32_0 : i32, i32
  }
  func.func @transform_13(%arg0: i32, %arg1: i32) -> (i32, i32, i32, i32) {
    %c0_i32 = arith.constant 0 : i32
    %c0_i32_0 = arith.constant 0 : i32
    %c0_i32_1 = arith.constant 0 : i32
    return %arg0, %c0_i32, %c0_i32_0, %arg1 : i32, i32, i32, i32
  }
  func.func @transform_14(%arg0: i32, %arg1: i32) -> (i32, i32, i32) {
    %c0_i32 = arith.constant 0 : i32
    %c0_i32_0 = arith.constant 0 : i32
    return %arg0, %c0_i32, %arg1 : i32, i32, i32
  }
  func.func @transform_15(%arg0: i32, %arg1: i32) -> (i32, i32, i32) {
    %c0_i32 = arith.constant 0 : i32
    %c0_i32_0 = arith.constant 0 : i32
    %c0_i32_1 = arith.constant 0 : i32
    return %arg0, %c0_i32, %c0_i32_0 : i32, i32, i32
  }
  func.func @transform_16(%arg0: i32, %arg1: i32) -> (i32, i32, i32) {
    %c0_i32 = arith.constant 0 : i32
    %c0_i32_0 = arith.constant 0 : i32
    %c0_i32_1 = arith.constant 0 : i32
    return %arg0, %c0_i32, %c0_i32_0 : i32, i32, i32
  }
  func.func @transform_17(%arg0: i32, %arg1: i32) -> (i32, i32, i32) {
    %c0_i32 = arith.constant 0 : i32
    %c0_i32_0 = arith.constant 0 : i32
    %c0_i32_1 = arith.constant 0 : i32
    return %arg0, %c0_i32, %c0_i32_0 : i32, i32, i32
  }
  func.func @transform_18(%arg0: i32, %arg1: i32) -> (i32, i32, i32) {
    %c0_i32 = arith.constant 0 : i32
    %c0_i32_0 = arith.constant 0 : i32
    %c0_i32_1 = arith.constant 0 : i32
    return %arg0, %c0_i32, %c0_i32_0 : i32, i32, i32
  }
}

</mosaic_0001>

<bundles_post_ra>
// kernel: _lambda_.1
= control target key start
LH: loop header
LB: loop body
LE: loop exit
PB: predicated region body
PF: predicated region fallthrough
CT: control target
= control target key end

     0   :  { %s11479_s0 = inlined_call_operand.vmem [shape: f32[2,8,8,2048], index: 0, kind: input, shape index: {}]   ;;  %s11480_s1 = inlined_call_operand.vmem [shape: f32[8,8], index: 1, kind: input, shape index: {}]   ;;  %s11481_s2 = inlined_call_operand.vmem [shape: f32[8,1], index: 2, kind: input, shape index: {}]   ;;  %s11482_s3 = inlined_call_operand.vmem [shape: f32[8,16,8], index: 3, kind: input, shape index: {}]   ;;  %s11483_s4 = inlined_call_operand.vmem [shape: f32[16,1], index: 4, kind: input, shape index: {}]   ;;  %s11484_s5 = inlined_call_operand.vmem [shape: f32[8,32,16], index: 5, kind: input, shape index: {}]   ;;  %s11485_s6 = inlined_call_operand.vmem [shape: f32[32,1], index: 6, kind: input, shape index: {}]   ;;  %s11486_s7 = inlined_call_operand.vmem [shape: f32[8,64,32], index: 7, kind: input, shape index: {}]   ;;  %s11487_s8 = inlined_call_operand.vmem [shape: f32[64,1], index: 8, kind: input, shape index: {}]   ;;  %s11488_s9 = inlined_call_operand.vmem [shape: f32[8,64,64], index: 9, kind: input, shape index: {}]   ;;  %s11489_s10 = inlined_call_operand.vmem [shape: f32[64,1], index: 10, kind: input, shape index: {}]   ;;  %s11490_s11 = inlined_call_operand.vmem [shape: f32[4,64,64], index: 11, kind: input, shape index: {}]   ;;  %s11491_s12 = inlined_call_operand.vmem [shape: f32[64,1], index: 12, kind: input, shape index: {}]   ;;  %s11492_s13 = inlined_call_operand.vmem [shape: f32[2,8,8,2048], index: 13, kind: output, shape index: {0}]   ;;  %s11493_s14 = inlined_call_operand.vmem [shape: f32[2,16,2048], index: 14, kind: output, shape index: {1}]   ;;  %s11494_s15 = inlined_call_operand.vmem [shape: f32[2,32,256], index: 15, kind: output, shape index: {2}]   ;;  %s11495_s16 = inlined_call_operand.vmem [shape: f32[2,64,32], index: 16, kind: output, shape index: {3}]   ;;  %s11496_s17 = inlined_call_operand.vmem [shape: f32[2,64,4], index: 17, kind: output, shape index: {4}]   ;;  %s11497_s18 = inlined_call_operand.vmem [shape: f32[2,64,1], index: 18, kind: output, shape index: {5}]  }
   0x1   :  { %11507 = sst [smem:[#allocation40_spill]] %s11479_s0 }
   0x2   :  { %11508 = sst [smem:[#allocation41_spill]] %s11480_s1 }
   0x3   :  { %11509 = sst [smem:[#allocation42_spill]] %s11481_s2 }
   0x4   :  { %11510 = sst [smem:[#allocation43_spill]] %s11482_s3 }
   0x5   :  { %11511 = sst [smem:[#allocation44_spill]] %s11483_s4 }
   0x6   :  { %11512 = sst [smem:[#allocation45_spill]] %s11488_s9 }
   0x7   :  { %11513 = sst [smem:[#allocation46_spill]] %s11490_s11 }
   0x8   :  { %11514 = sst [smem:[#allocation47_spill]] %s11491_s12 }
   0x9   :  { %11515 = sst [smem:[#allocation48_spill]] %s11492_s13 }
   0xa   :  { %11516 = sst [smem:[#allocation49_spill]] %s11493_s14 }
   0xb   :  { %11517 = sst [smem:[#allocation50_spill]] %s11494_s15 }
   0xc   :  { %s8747_s27 = smov 0   ;;  %s8749_s28 = smov 0  }
   0xd   :  { %s8751_s29 = smov 0   ;;  %s8753_s30 = smov 0  }
   0xe   :  { %s8755_s0 = smov 0   ;;  %s8757_s19 = smov 0  }
   0xf   :  { %s8759_s1 = smov 0  }
  0x10 LB: > { %11518 = sst [smem:[#allocation6_spill]] %s8631_s19  ;;  %s38_s20 = sadd.s32 1, %s8627_s0  ;;  %s8635_s1 = sphi %s8759_s1, %s29_s1   ;;  %s8631_s19 = sphi %s8757_s19, %s11599_s19   ;;  %s8627_s0 = sphi %s8755_s0, %s11603_s0   ;;  %s8623_s30 = sphi %s8753_s30, %s11597_s30   ;;  %s8619_s29 = sphi %s8751_s29, %s11602_s29   ;;  %s8615_s28 = sphi %s8749_s28, %s11601_s28   ;;  %s8611_s27 = sphi %s8747_s27, %s11600_s27  }
  0x11   : > { %p39_p0 = scmp.ge.s32.totalorder %s38_s20, 2  ;;  %s41_s21 = sadd.s32 1, %s8631_s19 }
  0x12   : > { %s7500_s22 = sadd.s32 4294967295, %s8635_s1   ;;  %p57_p1 = scmp.ne.s32.totalorder %s8615_s28, %s8611_s27 }
  0x13   : > { %s11605_s20 = smov (%p39_p0, %s38_s20), 0  ;;  %s11607_s21 = smov (!%p39_p0, %s41_s21), %s8631_s19 }
  0x14   : > { %11519 = sst [smem:[#allocation7_spill]] %s11605_s20  ;;  %p58_p2 = scmp.eq.s32.totalorder %s8635_s1, 0 }
  0x15   : > { %p43_p3 = scmp.ge.s32.totalorder %s11607_s21, 2  ;;  %p341_p4 = scmp.eq.s32.totalorder %s7500_s22, 3 }
  0x16   : > { %s46_s2 = ssub.s32 %s8627_s0, %s11605_s20  ;;  %p59_p5 = por %p58_p2, %p57_p1 }
  0x17   : > { %s11609_s21 = smov (%p43_p3, %s11607_s21), 0  ;;  %p8795_p6 = por %p341_p4, %p57_p1 }
  0x18   : > { %11520 = sst [smem:[#allocation8_spill]] %s11609_s21  ;;  %s45_s24 = ssub.s32 %s8631_s19, %s11609_s21 }
  0x19   : > { %s11521_s23 = scalar_select %p8795_p6, 1, 0 }
  0x1a   : > { %s47_s25 = sor.u32 %s46_s2, %s45_s24  ;;  %s50_s26 = sadd.s32 1, %s8615_s28 }
  0x1b   : > { %11522 = sst [smem:[#allocation9_spill]] %s11521_s23  ;;  %p48_p7 = scmp.eq.s32.totalorder %s47_s25, 0 }
  0x1c   : > { %p7503_p8 = scmp.ge.s32.totalorder %s8635_s1, 4 }
  0x1d   : > { %s8803_s14 = scalar_select %p48_p7, %s8615_s28, %s50_s26  }
  0x1e   : > { %531 = sbr.rel (%p7503_p8) target bundleno = 109 (0x6d), region = 64 }
  0x23   : > { %534 = sbr.rel (!%p59_p5) target bundleno = 109 (0x6d), region = 68  ;;  %s536_s22 = sand.u32 (%p59_p5), 1, %s8615_s28  }
  0x24   : > { %s7505_s20 = sshll.u32 (%p59_p5), %s8627_s0, 3  ;;  %s7504_s13 = sshll.u32 (%p59_p5), %s536_s22, 9 }
  0x25   : > { %s7506_s12 = sshll.u32 (%p59_p5), %s8631_s19, 7  ;;  %s11523_s2 = sld [smem:[#allocation40_spill]] (%p59_p5) }
  0x26   : > { %s541_s11 = sadd.s32 (%p59_p5), %s7506_s12, %s7505_s20  ;;  %s8817_s12 = scalar_lea.vmem (%p59_p5), [#allocation3], %s7504_s13 }
  0x27   : > { %s7507_s9 = sshll.u32 (%p59_p5), %s541_s11, 3 }
  0x2b   : > { %s8812_s24 = scalar_lea.vmem %s11523_s2, %s7507_s9 }
  0x2c   : > { %v556_v0 = vld [vmem:[%s8812_s24] sm:$0xff]  ;;  %v558_v1 = vld [vmem:[%s8812_s24 + $0x8] sm:$0xff]  ;;  %v560_v2 = vld [vmem:[%s8812_s24 + $0x10] sm:$0xff] }
  0x2d   : > { %557 = vst [vmem:[%s8817_s12] sm:$0xff] %v556_v0  ;;  %v562_v3 = vld [vmem:[%s8812_s24 + $0x18] sm:$0xff]  ;;  %v564_v4 = vld [vmem:[%s8812_s24 + $0x20] sm:$0xff]  ;;  %v566_v5 = vld [vmem:[%s8812_s24 + $0x28] sm:$0xff] }
  0x2e   : > { %559 = vst [vmem:[%s8817_s12 + $0x8] sm:$0xff] %v558_v1  ;;  %v568_v6 = vld [vmem:[%s8812_s24 + $0x30] sm:$0xff]  ;;  %v570_v7 = vld [vmem:[%s8812_s24 + $0x38] sm:$0xff]  ;;  %v572_v8 = vld [vmem:[%s8812_s24 + $0x80] sm:$0xff] }
  0x2f   : > { %561 = vst [vmem:[%s8817_s12 + $0x10] sm:$0xff] %v560_v2  ;;  %v574_v9 = vld [vmem:[%s8812_s24 + $0x88] sm:$0xff]  ;;  %v576_v10 = vld [vmem:[%s8812_s24 + $0x90] sm:$0xff]  ;;  %v578_v11 = vld [vmem:[%s8812_s24 + $0x98] sm:$0xff] }
  0x30   : > { %563 = vst [vmem:[%s8817_s12 + $0x18] sm:$0xff] %v562_v3  ;;  %v580_v12 = vld [vmem:[%s8812_s24 + $0xa0] sm:$0xff]  ;;  %v582_v13 = vld [vmem:[%s8812_s24 + $0xa8] sm:$0xff]  ;;  %v584_v14 = vld [vmem:[%s8812_s24 + $0xb0] sm:$0xff] }
  0x31   : > { %565 = vst [vmem:[%s8817_s12 + $0x20] sm:$0xff] %v564_v4  ;;  %v586_v15 = vld [vmem:[%s8812_s24 + $0xb8] sm:$0xff]  ;;  %v588_v16 = vld [vmem:[%s8812_s24 + $0x100] sm:$0xff]  ;;  %v590_v17 = vld [vmem:[%s8812_s24 + $0x108] sm:$0xff] }
  0x32   : > { %567 = vst [vmem:[%s8817_s12 + $0x28] sm:$0xff] %v566_v5  ;;  %v592_v18 = vld [vmem:[%s8812_s24 + $0x110] sm:$0xff]  ;;  %v594_v19 = vld [vmem:[%s8812_s24 + $0x118] sm:$0xff]  ;;  %v596_v20 = vld [vmem:[%s8812_s24 + $0x120] sm:$0xff] }
  0x33   : > { %569 = vst [vmem:[%s8817_s12 + $0x30] sm:$0xff] %v568_v6  ;;  %v598_v21 = vld [vmem:[%s8812_s24 + $0x128] sm:$0xff]  ;;  %v600_v22 = vld [vmem:[%s8812_s24 + $0x130] sm:$0xff]  ;;  %v602_v23 = vld [vmem:[%s8812_s24 + $0x138] sm:$0xff] }
  0x34   : > { %571 = vst [vmem:[%s8817_s12 + $0x38] sm:$0xff] %v570_v7  ;;  %v604_v24 = vld [vmem:[%s8812_s24 + $0x180] sm:$0xff]  ;;  %v606_v25 = vld [vmem:[%s8812_s24 + $0x188] sm:$0xff]  ;;  %v608_v26 = vld [vmem:[%s8812_s24 + $0x190] sm:$0xff] }
  0x35   : > { %573 = vst [vmem:[%s8817_s12 + $0x40] sm:$0xff] %v572_v8  ;;  %v610_v27 = vld [vmem:[%s8812_s24 + $0x198] sm:$0xff]  ;;  %v612_v28 = vld [vmem:[%s8812_s24 + $0x1a0] sm:$0xff]  ;;  %v614_v29 = vld [vmem:[%s8812_s24 + $0x1a8] sm:$0xff] }
  0x36   : > { %575 = vst [vmem:[%s8817_s12 + $0x48] sm:$0xff] %v574_v9  ;;  %v616_v30 = vld [vmem:[%s8812_s24 + $0x1b0] sm:$0xff]  ;;  %v618_v31 = vld [vmem:[%s8812_s24 + $0x1b8] sm:$0xff]  ;;  %v620_v32 = vld [vmem:[%s8812_s24 + $0x200] sm:$0xff] }
  0x37   : > { %577 = vst [vmem:[%s8817_s12 + $0x50] sm:$0xff] %v576_v10  ;;  %v622_v33 = vld [vmem:[%s8812_s24 + $0x208] sm:$0xff]  ;;  %v624_v34 = vld [vmem:[%s8812_s24 + $0x210] sm:$0xff]  ;;  %v626_v35 = vld [vmem:[%s8812_s24 + $0x218] sm:$0xff] }
  0x38   : > { %579 = vst [vmem:[%s8817_s12 + $0x58] sm:$0xff] %v578_v11  ;;  %v628_v36 = vld [vmem:[%s8812_s24 + $0x220] sm:$0xff]  ;;  %v630_v37 = vld [vmem:[%s8812_s24 + $0x228] sm:$0xff]  ;;  %v632_v38 = vld [vmem:[%s8812_s24 + $0x230] sm:$0xff] }
  0x39   : > { %581 = vst [vmem:[%s8817_s12 + $0x60] sm:$0xff] %v580_v12  ;;  %v634_v39 = vld [vmem:[%s8812_s24 + $0x238] sm:$0xff]  ;;  %v636_v40 = vld [vmem:[%s8812_s24 + $0x280] sm:$0xff]  ;;  %v638_v41 = vld [vmem:[%s8812_s24 + $0x288] sm:$0xff] }
  0x3a   : > { %583 = vst [vmem:[%s8817_s12 + $0x68] sm:$0xff] %v582_v13  ;;  %v640_v42 = vld [vmem:[%s8812_s24 + $0x290] sm:$0xff]  ;;  %v642_v43 = vld [vmem:[%s8812_s24 + $0x298] sm:$0xff]  ;;  %v644_v44 = vld [vmem:[%s8812_s24 + $0x2a0] sm:$0xff] }
  0x3b   : > { %585 = vst [vmem:[%s8817_s12 + $0x70] sm:$0xff] %v584_v14  ;;  %v646_v45 = vld [vmem:[%s8812_s24 + $0x2a8] sm:$0xff]  ;;  %v648_v46 = vld [vmem:[%s8812_s24 + $0x2b0] sm:$0xff]  ;;  %v650_v47 = vld [vmem:[%s8812_s24 + $0x2b8] sm:$0xff] }
  0x3c   : > { %587 = vst [vmem:[%s8817_s12 + $0x78] sm:$0xff] %v586_v15  ;;  %v652_v48 = vld [vmem:[%s8812_s24 + $0x300] sm:$0xff]  ;;  %v654_v49 = vld [vmem:[%s8812_s24 + $0x308] sm:$0xff]  ;;  %v656_v50 = vld [vmem:[%s8812_s24 + $0x310] sm:$0xff] }
  0x3d   : > { %589 = vst [vmem:[%s8817_s12 + $0x80] sm:$0xff] %v588_v16  ;;  %v658_v51 = vld [vmem:[%s8812_s24 + $0x318] sm:$0xff]  ;;  %v660_v52 = vld [vmem:[%s8812_s24 + $0x320] sm:$0xff]  ;;  %v662_v53 = vld [vmem:[%s8812_s24 + $0x328] sm:$0xff] }
  0x3e   : > { %591 = vst [vmem:[%s8817_s12 + $0x88] sm:$0xff] %v590_v17  ;;  %v664_v54 = vld [vmem:[%s8812_s24 + $0x330] sm:$0xff]  ;;  %v666_v55 = vld [vmem:[%s8812_s24 + $0x338] sm:$0xff]  ;;  %v668_v56 = vld [vmem:[%s8812_s24 + $0x380] sm:$0xff] }
  0x3f   : > { %593 = vst [vmem:[%s8817_s12 + $0x90] sm:$0xff] %v592_v18  ;;  %v670_v57 = vld [vmem:[%s8812_s24 + $0x388] sm:$0xff]  ;;  %v672_v58 = vld [vmem:[%s8812_s24 + $0x390] sm:$0xff]  ;;  %v674_v59 = vld [vmem:[%s8812_s24 + $0x398] sm:$0xff] }
  0x40   : > { %595 = vst [vmem:[%s8817_s12 + $0x98] sm:$0xff] %v594_v19  ;;  %v676_v60 = vld [vmem:[%s8812_s24 + $0x3a0] sm:$0xff]  ;;  %v678_v61 = vld [vmem:[%s8812_s24 + $0x3a8] sm:$0xff]  ;;  %v680_v62 = vld [vmem:[%s8812_s24 + $0x3b0] sm:$0xff] }
  0x41   : > { %597 = vst [vmem:[%s8817_s12 + $0xa0] sm:$0xff] %v596_v20  ;;  %v682_v63 = vld [vmem:[%s8812_s24 + $0x3b8] sm:$0xff] }
  0x42   : > { %599 = vst [vmem:[%s8817_s12 + $0xa8] sm:$0xff] %v598_v21 }
  0x43   : > { %601 = vst [vmem:[%s8817_s12 + $0xb0] sm:$0xff] %v600_v22 }
  0x44   : > { %603 = vst [vmem:[%s8817_s12 + $0xb8] sm:$0xff] %v602_v23 }
  0x45   : > { %605 = vst [vmem:[%s8817_s12 + $0xc0] sm:$0xff] %v604_v24 }
  0x46   : > { %607 = vst [vmem:[%s8817_s12 + $0xc8] sm:$0xff] %v606_v25 }
  0x47   : > { %609 = vst [vmem:[%s8817_s12 + $0xd0] sm:$0xff] %v608_v26 }
  0x48   : > { %611 = vst [vmem:[%s8817_s12 + $0xd8] sm:$0xff] %v610_v27 }
  0x49   : > { %613 = vst [vmem:[%s8817_s12 + $0xe0] sm:$0xff] %v612_v28 }
  0x4a   : > { %615 = vst [vmem:[%s8817_s12 + $0xe8] sm:$0xff] %v614_v29 }
  0x4b   : > { %617 = vst [vmem:[%s8817_s12 + $0xf0] sm:$0xff] %v616_v30 }
  0x4c   : > { %619 = vst [vmem:[%s8817_s12 + $0xf8] sm:$0xff] %v618_v31 }
  0x4d   : > { %621 = vst [vmem:[%s8817_s12 + $0x100] sm:$0xff] %v620_v32 }
  0x4e   : > { %623 = vst [vmem:[%s8817_s12 + $0x108] sm:$0xff] %v622_v33 }
  0x4f   : > { %625 = vst [vmem:[%s8817_s12 + $0x110] sm:$0xff] %v624_v34 }
  0x50   : > { %627 = vst [vmem:[%s8817_s12 + $0x118] sm:$0xff] %v626_v35 }
  0x51   : > { %629 = vst [vmem:[%s8817_s12 + $0x120] sm:$0xff] %v628_v36 }
  0x52   : > { %631 = vst [vmem:[%s8817_s12 + $0x128] sm:$0xff] %v630_v37 }
  0x53   : > { %633 = vst [vmem:[%s8817_s12 + $0x130] sm:$0xff] %v632_v38 }
  0x54   : > { %635 = vst [vmem:[%s8817_s12 + $0x138] sm:$0xff] %v634_v39 }
  0x55   : > { %637 = vst [vmem:[%s8817_s12 + $0x140] sm:$0xff] %v636_v40 }
  0x56   : > { %639 = vst [vmem:[%s8817_s12 + $0x148] sm:$0xff] %v638_v41 }
  0x57   : > { %641 = vst [vmem:[%s8817_s12 + $0x150] sm:$0xff] %v640_v42 }
  0x58   : > { %643 = vst [vmem:[%s8817_s12 + $0x158] sm:$0xff] %v642_v43 }
  0x59   : > { %645 = vst [vmem:[%s8817_s12 + $0x160] sm:$0xff] %v644_v44 }
  0x5a   : > { %647 = vst [vmem:[%s8817_s12 + $0x168] sm:$0xff] %v646_v45 }
  0x5b   : > { %649 = vst [vmem:[%s8817_s12 + $0x170] sm:$0xff] %v648_v46 }
  0x5c   : > { %651 = vst [vmem:[%s8817_s12 + $0x178] sm:$0xff] %v650_v47 }
  0x5d   : > { %653 = vst [vmem:[%s8817_s12 + $0x180] sm:$0xff] %v652_v48 }
  0x5e   : > { %655 = vst [vmem:[%s8817_s12 + $0x188] sm:$0xff] %v654_v49 }
  0x5f   : > { %657 = vst [vmem:[%s8817_s12 + $0x190] sm:$0xff] %v656_v50 }
  0x60   : > { %659 = vst [vmem:[%s8817_s12 + $0x198] sm:$0xff] %v658_v51 }
  0x61   : > { %661 = vst [vmem:[%s8817_s12 + $0x1a0] sm:$0xff] %v660_v52 }
  0x62   : > { %663 = vst [vmem:[%s8817_s12 + $0x1a8] sm:$0xff] %v662_v53 }
  0x63   : > { %665 = vst [vmem:[%s8817_s12 + $0x1b0] sm:$0xff] %v664_v54 }
  0x64   : > { %667 = vst [vmem:[%s8817_s12 + $0x1b8] sm:$0xff] %v666_v55 }
  0x65   : > { %669 = vst [vmem:[%s8817_s12 + $0x1c0] sm:$0xff] %v668_v56 }
  0x66   : > { %671 = vst [vmem:[%s8817_s12 + $0x1c8] sm:$0xff] %v670_v57 }
  0x67   : > { %673 = vst [vmem:[%s8817_s12 + $0x1d0] sm:$0xff] %v672_v58 }
  0x68   : > { %675 = vst [vmem:[%s8817_s12 + $0x1d8] sm:$0xff] %v674_v59 }
  0x69   : > { %677 = vst [vmem:[%s8817_s12 + $0x1e0] sm:$0xff] %v676_v60 }
  0x6a   : > { %679 = vst [vmem:[%s8817_s12 + $0x1e8] sm:$0xff] %v678_v61 }
  0x6b   : > { %681 = vst [vmem:[%s8817_s12 + $0x1f0] sm:$0xff] %v680_v62 }
  0x6c   : > { %683 = vst [vmem:[%s8817_s12 + $0x1f8] sm:$0xff] %v682_v63 }
  0x6d PF: > { %p7508_p9 = scmp.ge.s32.totalorder %s8635_s1, 1  ;;  %p688_p10 = scmp.lt.s32.totalorder %s8635_s1, 5 }
  0x6f   : > { %p689_p11 = pnand %p7508_p9, %p688_p10 }
  0x71   : > { %692 = sbr.rel (%p689_p11) target bundleno = 2991 (0xbaf), region = 91 }
  0x76   : > { %s11505_s9 = sand.u32 1, %s8611_s27   ;;  %p774_p12 = scmp.lt.s32.totalorder %s8623_s30, 1  ;;  %v8637_v1 = vmov 0   ;;  %vm809_vm0 = vcmask 64512  }
  0x77   : > { %s11524_s20 = sld [smem:[#allocation42_spill]]  ;;  %s8953_s21 = sshll.u32 %s11505_s9, 9  ;;  %8315 = vset.pattern.permute.xlu0 %v8637_v1  ;;  %8316 = vset.pattern.permute.xlu1 %v8637_v1 }
  0x78   : > { %s11525_s26 = sld [smem:[#allocation41_spill]]  ;;  %s8962_s2 = scalar_lea.vmem [#allocation3], %s8953_s21 }
  0x79   : > { %s775_s22 = scalar_select %p774_p12, %s8623_s30, 1  ;;  %v796_v3 = vld [vmem:[%s8962_s2] sm:$0xff]  ;;  %v797_v4 = vld [vmem:[%s8962_s2 + $0x8] sm:$0xff]  ;;  %v798_v5 = vld [vmem:[%s8962_s2 + $0x10] sm:$0xff] }
  0x7a   : > { %828 = vmatpush.msra.mxu0 %v796_v3  ;;  %848 = vmatpush.msra.mxu1 %v797_v4  ;;  %v799_v6 = vld [vmem:[%s8962_s2 + $0x18] sm:$0xff]  ;;  %v800_v7 = vld [vmem:[%s8962_s2 + $0x20] sm:$0xff]  ;;  %v801_v8 = vld [vmem:[%s8962_s2 + $0x28] sm:$0xff]  ;;  %s11526_s15 = sld [smem:[#allocation50_spill]]  ;;  %p7840_p13 = scmp.ne.s32.totalorder %s8619_s29, 1 }
  0x7b   : > { %s8239_s24 = sshll.u32 %s775_s22, 6  ;;  %868 = vmatpush.msra.mxu2 %v798_v5  ;;  %888 = vmatpush.msra.mxu3 %v799_v6  ;;  %v802_v9 = vld [vmem:[%s8962_s2 + $0x30] sm:$0xff]  ;;  %v803_v10 = vld [vmem:[%s8962_s2 + $0x38] sm:$0xff]  ;;  %v7528_v11 = vld [vmem:[%s8962_s2 + $0x40] sm:$0xff]  ;;  %s11527_s4 = sld [smem:[#allocation44_spill]] }
  0x7c   : > { %s8978_s25 = scalar_lea.vmem %s11495_s16, %s8239_s24  ;;  %s8989_s12 = scalar_lea.vmem %s11496_s17, %s8239_s24  ;;  %v7529_v12 = vld [vmem:[%s8962_s2 + $0x48] sm:$0xff]  ;;  %908 = vmatpush.msrb.mxu0 %v800_v7  ;;  %928 = vmatpush.msrb.mxu1 %v801_v8  ;;  %v7530_v13 = vld [vmem:[%s8962_s2 + $0x50] sm:$0xff]  ;;  %v7531_v14 = vld [vmem:[%s8962_s2 + $0x58] sm:$0xff] }
  0x7d   : > { %v795_v0 = vld [vmem:[%s11524_s20] sm:$0xff]  ;;  %s8994_s19 = scalar_lea.vmem %s11497_s18, %s8239_s24  ;;  %948 = vmatpush.msrb.mxu2 %v802_v9  ;;  %968 = vmatpush.msrb.mxu3 %v803_v10  ;;  %v7533_v17 = vld [vmem:[%s8962_s2 + $0x68] sm:$0xff]  ;;  %v7534_v18 = vld [vmem:[%s8962_s2 + $0x70] sm:$0xff]  ;;  %s11528_s3 = sld [smem:[#allocation43_spill]] }
  0x7e   : > { %v8958_v2 = vld [vmem:[%s11525_s26] sm:$0xff]  ;;  %806 = vperm.xlu0 %8315, %v795_v0   ;;  %v7535_v19 = vld [vmem:[%s8962_s2 + $0x78] sm:$0xff]  ;;  %s8639_s22 = smov (!%p7840_p13), 64   ;;  %s8640_s11 = smov (!%p7840_p13), 32  }
  0x7f   : > { %7520 = vmatmul.msk.f32.vlgmr.msra.gmra.mxu0 %vm809_vm0, %v8958_v2  ;;  %7521 = vmatmul.msk.f32.vlgmr.msra.gmra.mxu1 %vm809_vm0, %v8958_v2  ;;  %v7532_v16 = vld [vmem:[%s8962_s2 + $0x60] sm:$0xff]  ;;  %s8648_s9 = smov (!%p7840_p13), 108  }
  0x80   : > { %s8973_s13 = scalar_lea.vmem %s11526_s15, %s8239_s24  ;;  %7522 = vmatmul.msk.f32.vlgmr.msra.gmra.mxu2 %vm809_vm0, %v8958_v2  ;;  %7523 = vmatmul.msk.f32.vlgmr.msra.gmra.mxu3 %vm809_vm0, %v8958_v2  ;;  %s9044_s24 = scalar_lea.vmem [#allocation4], %s8953_s21 }
  0x81   : > { %v4058_v15 = vld [vmem:[%s11527_s4] sm:$0xff]  ;;  %1031 = vmatpush.msra.mxu0 %v7528_v11  ;;  %1051 = vmatpush.msra.mxu1 %v7529_v12  ;;  %s11589_s21 = sand.u32 1, %s8611_s27   ;;  %s8647_s15 = smov (!%p7840_p13), 100  }
  0x82   : > { %1071 = vmatpush.msra.mxu2 %v7530_v13  ;;  %1091 = vmatpush.msra.mxu3 %v7531_v14  ;;  %s7511_s20 = sshll.u32 %s11589_s21, 7  ;;  %s8650_s21 = smov (!%p7840_p13), 125  }
  0x83   : > { %v9086_v43 = vld [vmem:[%s11528_s3 + $0x10] sm:$0xff]  ;;  %v9105_v62 = vld [vmem:[%s11528_s3 + $0x18] sm:$0xff]  ;;  %s10003_s23 = scalar_lea.vmem [#allocation5], %s7511_s20  ;;  %s8651_s20 = smov (!%p7840_p13), 126  }
  0x86   : > { %4062 = vperm.xlu0 %8315, %v4058_v15  }
  0x87   : > { %7524 = vmatmul.msk.f32.vlgmr.msrb.gmra.mxu0 %vm809_vm0, %v8958_v2  ;;  %7525 = vmatmul.msk.f32.vlgmr.msrb.gmra.mxu1 %vm809_vm0, %v8958_v2 }
  0x88   : > { %7526 = vmatmul.msk.f32.vlgmr.msrb.gmra.mxu2 %vm809_vm0, %v8958_v2  ;;  %7527 = vmatmul.msk.f32.vlgmr.msrb.gmra.mxu3 %vm809_vm0, %v8958_v2 }
  0x89   : > { %1111 = vmatpush.msrb.mxu0 %v7532_v16  ;;  %1131 = vmatpush.msrb.mxu1 %v7533_v17 }
  0x8a   : > { %1151 = vmatpush.msrb.mxu2 %v7534_v18  ;;  %1171 = vmatpush.msrb.mxu3 %v7535_v19 }
  0x8f   : > { %7536 = vmatmul.msk.f32.vlgmr.msra.gmra.mxu0 %vm809_vm0, %v8958_v2  ;;  %7537 = vmatmul.msk.f32.vlgmr.msra.gmra.mxu1 %vm809_vm0, %v8958_v2 }
  0x90   : > { %7538 = vmatmul.msk.f32.vlgmr.msra.gmra.mxu2 %vm809_vm0, %v8958_v2  ;;  %7539 = vmatmul.msk.f32.vlgmr.msra.gmra.mxu3 %vm809_vm0, %v8958_v2 }
  0x97   : > { %7540 = vmatmul.msk.f32.vlgmr.msrb.gmra.mxu0 %vm809_vm0, %v8958_v2  ;;  %7541 = vmatmul.msk.f32.vlgmr.msrb.gmra.mxu1 %vm809_vm0, %v8958_v2 }
  0x98   : > { %7542 = vmatmul.msk.f32.vlgmr.msrb.gmra.mxu2 %vm809_vm0, %v8958_v2  ;;  %7543 = vmatmul.msk.f32.vlgmr.msrb.gmra.mxu3 %vm809_vm0, %v8958_v2 }
  0xf0   : > { %v9035_v20 = vpop.permute.xlu0 %806 }
  0xfc   : > { %v830_v21 = vpop.f32.mrf.mxu0  ;;  %v850_v22 = vpop.f32.mrf.mxu1 }
  0xfd   : > { %v9038_v23 = vadd.f32 %v830_v21, %v9035_v20  ;;  %v9041_v24 = vadd.f32 %v850_v22, %v9035_v20 }
  0xff   : > { %973 = vst [vmem:[%s9044_s24] sm:$0xff] %v9038_v23  ;;  %v991_v59 = vmul.f32 0.2, %v9038_v23  ;;  %vm983_vm7 = vcmp.gt.f32.partialorder %v9038_v23, 0.0  ;;  %v992_v63 = vmul.f32 0.2, %v9041_v24  ;;  %vm984_vm8 = vcmp.gt.f32.partialorder %v9041_v24, 0.0 }
 0x100   : > { %974 = vst [vmem:[%s9044_s24 + $0x8] sm:$0xff] %v9041_v24 }
 0x101   : > { %v999_v6 = vsel %vm983_vm7, %v9038_v23, %v991_v59  ;;  %v1000_v7 = vsel %vm984_vm8, %v9041_v24, %v992_v63 }
 0x103   : > { %v870_v25 = vpop.f32.mrf.mxu2  ;;  %v890_v26 = vpop.f32.mrf.mxu3 }
 0x104   : > { %v9051_v27 = vadd.f32 %v870_v25, %v9035_v20  ;;  %v9054_v28 = vadd.f32 %v890_v26, %v9035_v20  ;;  %v910_v29 = vpop.f32.mrf.mxu0  ;;  %v930_v30 = vpop.f32.mrf.mxu1  ;;  %v981_v25 = vld [vmem:[%s11528_s3] sm:$0xff] }
 0x105   : > { %v9059_v31 = vadd.f32 %v910_v29, %v9035_v20  ;;  %v9064_v32 = vadd.f32 %v930_v30, %v9035_v20  ;;  %v7586_v26 = vld [vmem:[%s8962_s2 + $0x80] sm:$0xff]  ;;  %v982_v29 = vld [vmem:[%s11528_s3 + $0x8] sm:$0xff]  ;;  %v7589_v30 = vld [vmem:[%s8962_s2 + $0x98] sm:$0xff] }
 0x106   : > { %975 = vst [vmem:[%s9044_s24 + $0x10] sm:$0xff] %v9051_v27  ;;  %v993_v8 = vmul.f32 0.2, %v9051_v27  ;;  %vm985_vm11 = vcmp.gt.f32.partialorder %v9051_v27, 0.0  ;;  %v994_v11 = vmul.f32 0.2, %v9054_v28 }
 0x107   : > { %976 = vst [vmem:[%s9044_s24 + $0x18] sm:$0xff] %v9054_v28  ;;  %vm986_vm12 = vcmp.gt.f32.partialorder %v9054_v28, 0.0  ;;  %v995_v13 = vmul.f32 0.2, %v9059_v31  ;;  %vm987_vm13 = vcmp.gt.f32.partialorder %v9059_v31, 0.0  ;;  %vm988_vm14 = vcmp.gt.f32.partialorder %v9064_v32, 0.0 }
 0x108   : > { %977 = vst [vmem:[%s9044_s24 + $0x20] sm:$0xff] %v9059_v31  ;;  %v996_v15 = vmul.f32 0.2, %v9064_v32  ;;  %v1001_v16 = vsel %vm985_vm11, %v9051_v27, %v993_v8  ;;  %v1002_v17 = vsel %vm986_vm12, %v9054_v28, %v994_v11  ;;  %v7587_v27 = vld [vmem:[%s8962_s2 + $0x88] sm:$0xff]  ;;  %v7588_v28 = vld [vmem:[%s8962_s2 + $0x90] sm:$0xff] }
 0x109   : > { %978 = vst [vmem:[%s9044_s24 + $0x28] sm:$0xff] %v9064_v32  ;;  %v1003_v18 = vsel %vm987_vm13, %v9059_v31, %v995_v13  ;;  %v7590_v31 = vld [vmem:[%s8962_s2 + $0xa0] sm:$0xff] }
 0x10a   : > { %v1004_v19 = vsel %vm988_vm14, %v9064_v32, %v996_v15  ;;  %v7591_v32 = vld [vmem:[%s8962_s2 + $0xa8] sm:$0xff] }
 0x10b   : > { %v950_v33 = vpop.f32.mrf.mxu2  ;;  %v970_v34 = vpop.f32.mrf.mxu3 }
 0x10c   : > { %v9071_v35 = vadd.f32 %v950_v33, %v9035_v20  ;;  %v9074_v36 = vadd.f32 %v970_v34, %v9035_v20  ;;  %v1033_v37 = vpop.f32.mrf.mxu0  ;;  %v1053_v38 = vpop.f32.mrf.mxu1  ;;  %v7592_v33 = vld [vmem:[%s8962_s2 + $0xb0] sm:$0xff]  ;;  %v7593_v34 = vld [vmem:[%s8962_s2 + $0xb8] sm:$0xff] }
 0x10d   : > { %v1034_v39 = vadd.f32 %v1033_v37, %v9035_v20  ;;  %v1054_v40 = vadd.f32 %v1053_v38, %v9035_v20 }
 0x10e   : > { %979 = vst [vmem:[%s9044_s24 + $0x30] sm:$0xff] %v9071_v35  ;;  %v997_v21 = vmul.f32 0.2, %v9071_v35  ;;  %vm989_vm15 = vcmp.gt.f32.partialorder %v9071_v35, 0.0  ;;  %v998_v22 = vmul.f32 0.2, %v9074_v36 }
 0x10f   : > { %980 = vst [vmem:[%s9044_s24 + $0x38] sm:$0xff] %v9074_v36  ;;  %vm1188_vm1 = vcmp.gt.f32.partialorder %v1034_v39, 0.0  ;;  %v1196_v41 = vmul.f32 0.2, %v1034_v39  ;;  %vm1189_vm2 = vcmp.gt.f32.partialorder %v1054_v40, 0.0 }
 0x110   : > { %7544 = vst [vmem:[%s9044_s24 + $0x40] sm:$0xff] %v1034_v39  ;;  %v1197_v42 = vmul.f32 0.2, %v1054_v40  ;;  %v1005_v23 = vsel %vm989_vm15, %v9071_v35, %v997_v21  ;;  %v9292_v21 = vld [vmem:[%s11528_s3 + $0x28] sm:$0xff] }
 0x111   : > { %7545 = vst [vmem:[%s9044_s24 + $0x48] sm:$0xff] %v1054_v40  ;;  %v1204_v44 = vsel %vm1188_vm1, %v1034_v39, %v1196_v41  ;;  %vm990_vm1 = vcmp.gt.f32.partialorder %v9074_v36, 0.0 }
 0x112   : > { %1233 = vmatpush.msra.mxu0 %v1204_v44  ;;  %v1205_v45 = vsel %vm1189_vm2, %v1054_v40, %v1197_v42  ;;  %v1006_v24 = vsel %vm990_vm1, %v9074_v36, %v998_v22 }
 0x113   : > { %v1073_v46 = vpop.f32.mrf.mxu2  ;;  %v1093_v47 = vpop.f32.mrf.mxu3  ;;  %1256 = vmatpush.msra.mxu1 %v1205_v45  ;;  %7554 = vmatmul.msk.f32.vlgmr.msra.gmra.mxu0 %vm809_vm0, %v9086_v43 }
 0x114   : > { %v1074_v48 = vadd.f32 %v1073_v46, %v9035_v20  ;;  %v1094_v49 = vadd.f32 %v1093_v47, %v9035_v20  ;;  %7556 = vmatmul.msk.f32.vlgmr.msra.gmra.mxu1 %vm809_vm0, %v9086_v43  ;;  %v1113_v50 = vpop.f32.mrf.mxu0  ;;  %v1133_v51 = vpop.f32.mrf.mxu1 }
 0x115   : > { %v1114_v52 = vadd.f32 %v1113_v50, %v9035_v20  ;;  %v1134_v53 = vadd.f32 %v1133_v51, %v9035_v20 }
 0x116   : > { %7546 = vst [vmem:[%s9044_s24 + $0x50] sm:$0xff] %v1074_v48  ;;  %vm1190_vm3 = vcmp.gt.f32.partialorder %v1074_v48, 0.0  ;;  %v1198_v54 = vmul.f32 0.2, %v1074_v48  ;;  %vm1191_vm4 = vcmp.gt.f32.partialorder %v1094_v49, 0.0 }
 0x117   : > { %7547 = vst [vmem:[%s9044_s24 + $0x58] sm:$0xff] %v1094_v49  ;;  %v1199_v55 = vmul.f32 0.2, %v1094_v49  ;;  %vm1192_vm5 = vcmp.gt.f32.partialorder %v1114_v52, 0.0  ;;  %v1200_v56 = vmul.f32 0.2, %v1114_v52 }
 0x118   : > { %7548 = vst [vmem:[%s9044_s24 + $0x60] sm:$0xff] %v1114_v52  ;;  %v1206_v57 = vsel %vm1190_vm3, %v1074_v48, %v1198_v54  ;;  %vm1193_vm6 = vcmp.gt.f32.partialorder %v1134_v53, 0.0  ;;  %v1201_v58 = vmul.f32 0.2, %v1134_v53 }
 0x119   : > { %7549 = vst [vmem:[%s9044_s24 + $0x68] sm:$0xff] %v1134_v53  ;;  %1279 = vmatpush.msra.mxu2 %v1206_v57  ;;  %v1207_v60 = vsel %vm1191_vm4, %v1094_v49, %v1199_v55  ;;  %v1208_v61 = vsel %vm1192_vm5, %v1114_v52, %v1200_v56 }
 0x11a   : > { %1302 = vmatpush.msra.mxu3 %v1207_v60  ;;  %7558 = vmatmul.msk.f32.vlgmr.msra.gmra.mxu2 %vm809_vm0, %v9086_v43  ;;  %v1209_v0 = vsel %vm1193_vm6, %v1134_v53, %v1201_v58 }
 0x11b   : > { %7560 = vmatmul.msk.f32.vlgmr.msra.gmra.mxu3 %vm809_vm0, %v9086_v43  ;;  %v1153_v1 = vpop.f32.mrf.mxu2  ;;  %v1173_v3 = vpop.f32.mrf.mxu3  ;;  %1325 = vmatpush.msrb.mxu0 %v1208_v61 }
 0x11c   : > { %v1154_v4 = vadd.f32 %v1153_v1, %v9035_v20  ;;  %v1174_v5 = vadd.f32 %v1173_v3, %v9035_v20  ;;  %1348 = vmatpush.msrb.mxu1 %v1209_v0  ;;  %7555 = vmatmul.msk.f32.gmra.mxu0 %vm809_vm0, %v9105_v62 }
 0x11d   : > { %7557 = vmatmul.msk.f32.gmra.mxu1 %vm809_vm0, %v9105_v62  ;;  %1423 = vmatpush.msra.mxu0 %v999_v6 }
 0x11e   : > { %7550 = vst [vmem:[%s9044_s24 + $0x70] sm:$0xff] %v1154_v4  ;;  %1446 = vmatpush.msra.mxu1 %v1000_v7  ;;  %vm1194_vm9 = vcmp.gt.f32.partialorder %v1154_v4, 0.0  ;;  %v1202_v9 = vmul.f32 0.2, %v1154_v4  ;;  %vm1195_vm10 = vcmp.gt.f32.partialorder %v1174_v5, 0.0 }
 0x11f   : > { %7551 = vst [vmem:[%s9044_s24 + $0x78] sm:$0xff] %v1174_v5  ;;  %v1203_v10 = vmul.f32 0.2, %v1174_v5 }
 0x120   : > { %v1210_v12 = vsel %vm1194_vm9, %v1154_v4, %v1202_v9  ;;  %v9277_v9 = vld [vmem:[%s11528_s3 + $0x20] sm:$0xff] }
 0x121   : > { %1371 = vmatpush.msrb.mxu2 %v1210_v12  ;;  %v1211_v14 = vsel %vm1195_vm10, %v1174_v5, %v1203_v10 }
 0x122   : > { %1394 = vmatpush.msrb.mxu3 %v1211_v14  ;;  %7559 = vmatmul.msk.f32.gmra.mxu2 %vm809_vm0, %v9105_v62 }
 0x123   : > { %7561 = vmatmul.msk.f32.gmra.mxu3 %vm809_vm0, %v9105_v62  ;;  %1469 = vmatpush.msra.mxu2 %v1001_v16 }
 0x124   : > { %1492 = vmatpush.msra.mxu3 %v1002_v17  ;;  %7562 = vmatmul.msk.f32.vlgmr.msrb.gmra.mxu0 %vm809_vm0, %v9086_v43 }
 0x125   : > { %7564 = vmatmul.msk.f32.vlgmr.msrb.gmra.mxu1 %vm809_vm0, %v9086_v43  ;;  %1515 = vmatpush.msrb.mxu0 %v1003_v18 }
 0x126   : > { %1538 = vmatpush.msrb.mxu1 %v1004_v19 }
 0x12a   : > { %7566 = vmatmul.msk.f32.vlgmr.msrb.gmra.mxu2 %vm809_vm0, %v9086_v43 }
 0x12b   : > { %7568 = vmatmul.msk.f32.vlgmr.msrb.gmra.mxu3 %vm809_vm0, %v9086_v43  ;;  %1561 = vmatpush.msrb.mxu2 %v1005_v23 }
 0x12c   : > { %1584 = vmatpush.msrb.mxu3 %v1006_v24  ;;  %7563 = vmatmul.msk.f32.gmra.mxu0 %vm809_vm0, %v9105_v62 }
 0x12d   : > { %7565 = vmatmul.msk.f32.gmra.mxu1 %vm809_vm0, %v9105_v62 }
 0x132   : > { %7567 = vmatmul.msk.f32.gmra.mxu2 %vm809_vm0, %v9105_v62 }
 0x133   : > { %7569 = vmatmul.msk.f32.gmra.mxu3 %vm809_vm0, %v9105_v62 }
 0x134   : > { %7570 = vmatmul.msk.f32.vlgmr.msra.gmra.mxu0 %vm809_vm0, %v981_v25 }
 0x135   : > { %7572 = vmatmul.msk.f32.vlgmr.msra.gmra.mxu1 %vm809_vm0, %v981_v25  ;;  %1616 = vmatpush.msra.mxu0 %v7586_v26 }
 0x136   : > { %1636 = vmatpush.msra.mxu1 %v7587_v27 }
 0x13a   : > { %7574 = vmatmul.msk.f32.vlgmr.msra.gmra.mxu2 %vm809_vm0, %v981_v25 }
 0x13b   : > { %7576 = vmatmul.msk.f32.vlgmr.msra.gmra.mxu3 %vm809_vm0, %v981_v25  ;;  %1656 = vmatpush.msra.mxu2 %v7588_v28  ;;  %v7629_v28 = vld [vmem:[%s8962_s2 + $0xc8] sm:$0xff] }
 0x13c   : > { %7571 = vmatmul.msk.f32.gmra.mxu0 %vm809_vm0, %v982_v29  ;;  %1676 = vmatpush.msra.mxu3 %v7589_v30 }
 0x13d   : > { %7573 = vmatmul.msk.f32.gmra.mxu1 %vm809_vm0, %v982_v29 }
 0x142   : > { %7575 = vmatmul.msk.f32.gmra.mxu2 %vm809_vm0, %v982_v29 }
 0x143   : > { %7577 = vmatmul.msk.f32.gmra.mxu3 %vm809_vm0, %v982_v29 }
 0x144   : > { %7578 = vmatmul.msk.f32.vlgmr.msrb.gmra.mxu0 %vm809_vm0, %v981_v25 }
 0x145   : > { %7580 = vmatmul.msk.f32.vlgmr.msrb.gmra.mxu1 %vm809_vm0, %v981_v25  ;;  %1696 = vmatpush.msrb.mxu0 %v7590_v31 }
 0x146   : > { %1716 = vmatpush.msrb.mxu1 %v7591_v32 }
 0x14a   : > { %7582 = vmatmul.msk.f32.vlgmr.msrb.gmra.mxu2 %vm809_vm0, %v981_v25 }
 0x14b   : > { %7584 = vmatmul.msk.f32.vlgmr.msrb.gmra.mxu3 %vm809_vm0, %v981_v25  ;;  %1736 = vmatpush.msrb.mxu2 %v7592_v33  ;;  %v7628_v25 = vld [vmem:[%s8962_s2 + $0xc0] sm:$0xff] }
 0x14c   : > { %7579 = vmatmul.msk.f32.gmra.mxu0 %vm809_vm0, %v982_v29  ;;  %1756 = vmatpush.msrb.mxu3 %v7593_v34 }
 0x14d   : > { %7581 = vmatmul.msk.f32.gmra.mxu1 %vm809_vm0, %v982_v29 }
 0x152   : > { %7583 = vmatmul.msk.f32.gmra.mxu2 %vm809_vm0, %v982_v29 }
 0x153   : > { %7585 = vmatmul.msk.f32.gmra.mxu3 %vm809_vm0, %v982_v29 }
 0x154   : > { %7594 = vmatmul.msk.f32.vlgmr.msra.gmra.mxu0 %vm809_vm0, %v8958_v2 }
 0x155   : > { %7595 = vmatmul.msk.f32.vlgmr.msra.gmra.mxu1 %vm809_vm0, %v8958_v2 }
 0x15a   : > { %7596 = vmatmul.msk.f32.vlgmr.msra.gmra.mxu2 %vm809_vm0, %v8958_v2 }
 0x15b   : > { %7597 = vmatmul.msk.f32.vlgmr.msra.gmra.mxu3 %vm809_vm0, %v8958_v2 }
 0x15c   : > { %7598 = vmatmul.msk.f32.vlgmr.msrb.gmra.mxu0 %vm809_vm0, %v8958_v2 }
 0x15d   : > { %7599 = vmatmul.msk.f32.vlgmr.msrb.gmra.mxu1 %vm809_vm0, %v8958_v2 }
 0x162   : > { %7600 = vmatmul.msk.f32.vlgmr.msrb.gmra.mxu2 %vm809_vm0, %v8958_v2 }
 0x163   : > { %7601 = vmatmul.msk.f32.vlgmr.msrb.gmra.mxu3 %vm809_vm0, %v8958_v2 }
 0x190   : > { %v9208_v35 = vpop.f32.mrf.mxu0 }
 0x191   : > { %v9210_v36 = vpop.f32.mrf.mxu1 }
 0x199   : > { %v9212_v37 = vpop.f32.mrf.mxu0 }
 0x19a   : > { %v9214_v38 = vpop.f32.mrf.mxu1 }
 0x19d   : > { %v9216_v39 = vpop.f32.mrf.mxu2 }
 0x19e   : > { %v9218_v40 = vpop.f32.mrf.mxu3 }
 0x1a1   : > { %v9220_v41 = vpop.f32.mrf.mxu0 }
 0x1a2   : > { %v9222_v42 = vpop.f32.mrf.mxu1 }
 0x1a5   : > { %v9224_v43 = vpop.f32.mrf.mxu2 }
 0x1a6   : > { %11529 = vst [vmem:[#allocation10_spill] sm:$0xff] %v9224_v43  ;;  %v9226_v44 = vpop.f32.mrf.mxu3 }
 0x1a7   : > { %11530 = vst [vmem:[#allocation11_spill] sm:$0xff] %v9226_v44 }
 0x1a9   : > { %v9228_v45 = vpop.f32.mrf.mxu0 }
 0x1aa   : > { %v9230_v46 = vpop.f32.mrf.mxu1 }
 0x1ad   : > { %v9232_v47 = vpop.f32.mrf.mxu2 }
 0x1ae   : > { %11531 = vst [vmem:[#allocation12_spill] sm:$0xff] %v9232_v47  ;;  %v9234_v48 = vpop.f32.mrf.mxu3 }
 0x1af   : > { %11532 = vst [vmem:[#allocation13_spill] sm:$0xff] %v9234_v48 }
 0x1b1   : > { %v9236_v49 = vpop.f32.mrf.mxu0 }
 0x1b2   : > { %v9238_v50 = vpop.f32.mrf.mxu1 }
 0x1b5   : > { %v9240_v51 = vpop.f32.mrf.mxu2 }
 0x1b6   : > { %11533 = vst [vmem:[#allocation14_spill] sm:$0xff] %v9240_v51  ;;  %v9242_v52 = vpop.f32.mrf.mxu3 }
 0x1b7   : > { %11534 = vst [vmem:[#allocation15_spill] sm:$0xff] %v9242_v52  ;;  %v9499_v52 = vld [vmem:[%s11528_s3 + $0x40] sm:$0xff] }
 0x1b9   : > { %v9244_v53 = vpop.f32.mrf.mxu0 }
 0x1ba   : > { %v9246_v54 = vpop.f32.mrf.mxu1 }
 0x1bd   : > { %v9248_v55 = vpop.f32.mrf.mxu2 }
 0x1be   : > { %v9250_v56 = vpop.f32.mrf.mxu3 }
 0x1c1   : > { %v9252_v57 = vpop.f32.mrf.mxu0 }
 0x1c2   : > { %v9254_v58 = vpop.f32.mrf.mxu1 }
 0x1c5   : > { %v9256_v59 = vpop.f32.mrf.mxu2 }
 0x1c6   : > { %11535 = vst [vmem:[#allocation16_spill] sm:$0xff] %v9256_v59  ;;  %v9258_v60 = vpop.f32.mrf.mxu3 }
 0x1c7   : > { %11536 = vst [vmem:[#allocation17_spill] sm:$0xff] %v9258_v60 }
 0x1c9   : > { %v9260_v61 = vpop.f32.mrf.mxu0 }
 0x1ca   : > { %v9262_v62 = vpop.f32.mrf.mxu1 }
 0x1cd   : > { %v9264_v63 = vpop.f32.mrf.mxu2 }
 0x1ce   : > { %11537 = vst [vmem:[#allocation18_spill] sm:$0xff] %v9264_v63  ;;  %v9266_v0 = vpop.f32.mrf.mxu3 }
 0x1cf   : > { %11538 = vst [vmem:[#allocation19_spill] sm:$0xff] %v9266_v0 }
 0x1d1   : > { %v1618_v1 = vpop.f32.mrf.mxu0 }
 0x1d2   : > { %v1619_v3 = vadd.f32 %v1618_v1, %v9035_v20  ;;  %v1638_v4 = vpop.f32.mrf.mxu1 }
 0x1d3   : > { %v1639_v5 = vadd.f32 %v1638_v4, %v9035_v20 }
 0x1d4   : > { %7602 = vst [vmem:[%s9044_s24 + $0x80] sm:$0xff] %v1619_v3  ;;  %vm1773_vm2 = vcmp.gt.f32.partialorder %v1619_v3, 0.0  ;;  %v1781_v6 = vmul.f32 0.2, %v1619_v3 }
 0x1d5   : > { %7603 = vst [vmem:[%s9044_s24 + $0x88] sm:$0xff] %v1639_v5  ;;  %v9272_v7 = vpop.f32.mrf.mxu2  ;;  %vm1774_vm3 = vcmp.gt.f32.partialorder %v1639_v5, 0.0  ;;  %v1782_v8 = vmul.f32 0.2, %v1639_v5 }
 0x1d6   : > { %11539 = vst [vmem:[#allocation20_spill] sm:$0xff] %v9272_v7  ;;  %v9279_v10 = vpop.f32.mrf.mxu3  ;;  %v1789_v11 = vsel %vm1773_vm2, %v1619_v3, %v1781_v6  ;;  %v7632_v3 = vld [vmem:[%s8962_s2 + $0xe0] sm:$0xff] }
 0x1d7   : > { %11540 = vst [vmem:[#allocation21_spill] sm:$0xff] %v9279_v10  ;;  %1818 = vmatpush.msra.mxu0 %v1789_v11  ;;  %v1790_v12 = vsel %vm1774_vm3, %v1639_v5, %v1782_v8  ;;  %v7633_v5 = vld [vmem:[%s8962_s2 + $0xe8] sm:$0xff] }
 0x1d8   : > { %1841 = vmatpush.msra.mxu1 %v1790_v12  ;;  %7612 = vmatmul.msk.f32.vlgmr.msra.gmra.mxu0 %vm809_vm0, %v9277_v9  ;;  %v7630_v12 = vld [vmem:[%s8962_s2 + $0xd0] sm:$0xff] }
 0x1d9   : > { %7614 = vmatmul.msk.f32.vlgmr.msra.gmra.mxu1 %vm809_vm0, %v9277_v9  ;;  %v1698_v13 = vpop.f32.mrf.mxu0 }
 0x1da   : > { %v1699_v14 = vadd.f32 %v1698_v13, %v9035_v20  ;;  %v1718_v15 = vpop.f32.mrf.mxu1 }
 0x1db   : > { %v1719_v16 = vadd.f32 %v1718_v15, %v9035_v20  ;;  %v7634_v15 = vld [vmem:[%s8962_s2 + $0xf0] sm:$0xff] }
 0x1dc   : > { %7606 = vst [vmem:[%s9044_s24 + $0xa0] sm:$0xff] %v1699_v14  ;;  %vm1777_vm4 = vcmp.gt.f32.partialorder %v1699_v14, 0.0  ;;  %v1785_v17 = vmul.f32 0.2, %v1699_v14 }
 0x1dd   : > { %7607 = vst [vmem:[%s9044_s24 + $0xa8] sm:$0xff] %v1719_v16  ;;  %v1658_v18 = vpop.f32.mrf.mxu2  ;;  %vm1778_vm5 = vcmp.gt.f32.partialorder %v1719_v16, 0.0  ;;  %v1786_v19 = vmul.f32 0.2, %v1719_v16 }
 0x1de   : > { %v1659_v22 = vadd.f32 %v1658_v18, %v9035_v20  ;;  %v1678_v23 = vpop.f32.mrf.mxu3  ;;  %v1793_v24 = vsel %vm1777_vm4, %v1699_v14, %v1785_v17  ;;  %v7631_v14 = vld [vmem:[%s8962_s2 + $0xd8] sm:$0xff] }
 0x1df   : > { %v1679_v26 = vadd.f32 %v1678_v23, %v9035_v20  ;;  %1910 = vmatpush.msrb.mxu0 %v1793_v24  ;;  %v1794_v27 = vsel %vm1778_vm5, %v1719_v16, %v1786_v19  ;;  %v7635_v16 = vld [vmem:[%s8962_s2 + $0xf8] sm:$0xff] }
 0x1e0   : > { %7604 = vst [vmem:[%s9044_s24 + $0x90] sm:$0xff] %v1659_v22  ;;  %1933 = vmatpush.msrb.mxu1 %v1794_v27  ;;  %7613 = vmatmul.msk.f32.gmra.mxu0 %vm809_vm0, %v9292_v21  ;;  %vm1775_vm6 = vcmp.gt.f32.partialorder %v1659_v22, 0.0  ;;  %v1783_v29 = vmul.f32 0.2, %v1659_v22 }
 0x1e1   : > { %7605 = vst [vmem:[%s9044_s24 + $0x98] sm:$0xff] %v1679_v26  ;;  %7615 = vmatmul.msk.f32.gmra.mxu1 %vm809_vm0, %v9292_v21  ;;  %vm1776_vm7 = vcmp.gt.f32.partialorder %v1679_v26, 0.0  ;;  %v1784_v30 = vmul.f32 0.2, %v1679_v26  ;;  %2027 = vmatpush.msra.mxu0 %v7628_v25 }
 0x1e2   : > { %v1791_v31 = vsel %vm1775_vm6, %v1659_v22, %v1783_v29  ;;  %2047 = vmatpush.msra.mxu1 %v7629_v28 }
 0x1e3   : > { %1864 = vmatpush.msra.mxu2 %v1791_v31  ;;  %v1792_v32 = vsel %vm1776_vm7, %v1679_v26, %v1784_v30 }
 0x1e4   : > { %1887 = vmatpush.msra.mxu3 %v1792_v32  ;;  %7616 = vmatmul.msk.f32.vlgmr.msra.gmra.mxu2 %vm809_vm0, %v9277_v9 }
 0x1e5   : > { %7618 = vmatmul.msk.f32.vlgmr.msra.gmra.mxu3 %vm809_vm0, %v9277_v9  ;;  %v1738_v33 = vpop.f32.mrf.mxu2 }
 0x1e6   : > { %v1739_v34 = vadd.f32 %v1738_v33, %v9035_v20  ;;  %v1758_v1 = vpop.f32.mrf.mxu3 }
 0x1e7   : > { %v1759_v4 = vadd.f32 %v1758_v1, %v9035_v20 }
 0x1e8   : > { %7608 = vst [vmem:[%s9044_s24 + $0xb0] sm:$0xff] %v1739_v34  ;;  %7620 = vmatmul.msk.f32.vlgmr.msrb.gmra.mxu0 %vm809_vm0, %v9277_v9  ;;  %vm1779_vm8 = vcmp.gt.f32.partialorder %v1739_v34, 0.0  ;;  %v1787_v6 = vmul.f32 0.2, %v1739_v34 }
 0x1e9   : > { %7609 = vst [vmem:[%s9044_s24 + $0xb8] sm:$0xff] %v1759_v4  ;;  %7622 = vmatmul.msk.f32.vlgmr.msrb.gmra.mxu1 %vm809_vm0, %v9277_v9  ;;  %vm1780_vm9 = vcmp.gt.f32.partialorder %v1759_v4, 0.0  ;;  %v1788_v8 = vmul.f32 0.2, %v1759_v4  ;;  %2107 = vmatpush.msrb.mxu0 %v7632_v3 }
 0x1ea   : > { %v1795_v11 = vsel %vm1779_vm8, %v1739_v34, %v1787_v6  ;;  %2127 = vmatpush.msrb.mxu1 %v7633_v5 }
 0x1eb   : > { %1956 = vmatpush.msrb.mxu2 %v1795_v11  ;;  %v1796_v13 = vsel %vm1780_vm9, %v1759_v4, %v1788_v8  ;;  %v9389_v4 = vld [vmem:[%s11528_s3 + $0x30] sm:$0xff] }
 0x1ec   : > { %1979 = vmatpush.msrb.mxu3 %v1796_v13  ;;  %7617 = vmatmul.msk.f32.gmra.mxu2 %vm809_vm0, %v9292_v21 }
 0x1ed   : > { %7619 = vmatmul.msk.f32.gmra.mxu3 %vm809_vm0, %v9292_v21  ;;  %2067 = vmatpush.msra.mxu2 %v7630_v12 }
 0x1ee   : > { %2087 = vmatpush.msra.mxu3 %v7631_v14 }
 0x1f0   : > { %7621 = vmatmul.msk.f32.gmra.mxu0 %vm809_vm0, %v9292_v21 }
 0x1f1   : > { %7623 = vmatmul.msk.f32.gmra.mxu1 %vm809_vm0, %v9292_v21 }
 0x1f4   : > { %7624 = vmatmul.msk.f32.vlgmr.msrb.gmra.mxu2 %vm809_vm0, %v9277_v9 }
 0x1f5   : > { %7626 = vmatmul.msk.f32.vlgmr.msrb.gmra.mxu3 %vm809_vm0, %v9277_v9  ;;  %2147 = vmatpush.msrb.mxu2 %v7634_v15 }
 0x1f6   : > { %2167 = vmatpush.msrb.mxu3 %v7635_v16 }
 0x1f8   : > { %7636 = vmatmul.msk.f32.vlgmr.msra.gmra.mxu0 %vm809_vm0, %v8958_v2 }
 0x1f9   : > { %7637 = vmatmul.msk.f32.vlgmr.msra.gmra.mxu1 %vm809_vm0, %v8958_v2 }
 0x1fc   : > { %7625 = vmatmul.msk.f32.gmra.mxu2 %vm809_vm0, %v9292_v21 }
 0x1fd   : > { %7627 = vmatmul.msk.f32.gmra.mxu3 %vm809_vm0, %v9292_v21 }
 0x200   : > { %7640 = vmatmul.msk.f32.vlgmr.msrb.gmra.mxu0 %vm809_vm0, %v8958_v2 }
 0x201   : > { %7641 = vmatmul.msk.f32.vlgmr.msrb.gmra.mxu1 %vm809_vm0, %v8958_v2 }
 0x204   : > { %7638 = vmatmul.msk.f32.vlgmr.msra.gmra.mxu2 %vm809_vm0, %v8958_v2 }
 0x205   : > { %7639 = vmatmul.msk.f32.vlgmr.msra.gmra.mxu3 %vm809_vm0, %v8958_v2 }
 0x20c   : > { %7642 = vmatmul.msk.f32.vlgmr.msrb.gmra.mxu2 %vm809_vm0, %v8958_v2 }
 0x20d   : > { %7643 = vmatmul.msk.f32.vlgmr.msrb.gmra.mxu3 %vm809_vm0, %v8958_v2 }
 0x255   : > { %v9354_v9 = vpop.f32.mrf.mxu0 }
 0x256   : > { %v9356_v17 = vpop.f32.mrf.mxu1 }
 0x25d   : > { %v9358_v18 = vpop.f32.mrf.mxu0 }
 0x25e   : > { %v9360_v19 = vpop.f32.mrf.mxu1 }
 0x265   : > { %v9362_v21 = vpop.f32.mrf.mxu0 }
 0x266   : > { %v9364_v22 = vpop.f32.mrf.mxu1 }
 0x267   : > { %v9366_v23 = vpop.f32.mrf.mxu2 }
 0x268   : > { %v9368_v24 = vpop.f32.mrf.mxu3 }
 0x26d   : > { %v9370_v25 = vpop.f32.mrf.mxu0 }
 0x26e   : > { %v9372_v26 = vpop.f32.mrf.mxu1 }
 0x26f   : > { %v9374_v27 = vpop.f32.mrf.mxu2 }
 0x270   : > { %11541 = vst [vmem:[#allocation22_spill] sm:$0xff] %v9374_v27  ;;  %v9376_v28 = vpop.f32.mrf.mxu3 }
 0x271   : > { %11542 = vst [vmem:[#allocation23_spill] sm:$0xff] %v9376_v28  ;;  %v9614_v28 = vld [vmem:[%s11528_s3 + $0x50] sm:$0xff] }
 0x275   : > { %v2029_v29 = vpop.f32.mrf.mxu0 }
 0x276   : > { %v2030_v30 = vadd.f32 %v2029_v29, %v9035_v20  ;;  %v2049_v31 = vpop.f32.mrf.mxu1 }
 0x277   : > { %v2050_v32 = vadd.f32 %v2049_v31, %v9035_v20  ;;  %v9380_v33 = vpop.f32.mrf.mxu2 }
 0x278   : > { %11543 = vst [vmem:[#allocation24_spill] sm:$0xff] %v9380_v33  ;;  %v9383_v34 = vpop.f32.mrf.mxu3  ;;  %vm2184_vm10 = vcmp.gt.f32.partialorder %v2030_v30, 0.0  ;;  %v2192_v1 = vmul.f32 0.2, %v2030_v30 }
 0x279   : > { %7644 = vst [vmem:[%s9044_s24 + $0xc0] sm:$0xff] %v2030_v30  ;;  %vm2185_vm11 = vcmp.gt.f32.partialorder %v2050_v32, 0.0  ;;  %v2193_v3 = vmul.f32 0.2, %v2050_v32 }
 0x27a   : > { %11544 = vst [vmem:[#allocation25_spill] sm:$0xff] %v9383_v34  ;;  %v2200_v5 = vsel %vm2184_vm10, %v2030_v30, %v2192_v1  ;;  %v9406_v30 = vld [vmem:[%s11528_s3 + $0x38] sm:$0xff] }
 0x27b   : > { %7645 = vst [vmem:[%s9044_s24 + $0xc8] sm:$0xff] %v2050_v32  ;;  %2229 = vmatpush.msra.mxu0 %v2200_v5  ;;  %v2201_v6 = vsel %vm2185_vm11, %v2050_v32, %v2193_v3  ;;  %v7670_v32 = vld [vmem:[%s8962_s2 + $0x100] sm:$0xff]  ;;  %v7671_v3 = vld [vmem:[%s8962_s2 + $0x108] sm:$0xff] }
 0x27c   : > { %2252 = vmatpush.msra.mxu1 %v2201_v6  ;;  %7654 = vmatmul.msk.f32.vlgmr.msra.gmra.mxu0 %vm809_vm0, %v9389_v4 }
 0x27d   : > { %7656 = vmatmul.msk.f32.vlgmr.msra.gmra.mxu1 %vm809_vm0, %v9389_v4  ;;  %v2109_v8 = vpop.f32.mrf.mxu0 }
 0x27e   : > { %v2110_v11 = vadd.f32 %v2109_v8, %v9035_v20  ;;  %v2129_v12 = vpop.f32.mrf.mxu1 }
 0x27f   : > { %v2130_v13 = vadd.f32 %v2129_v12, %v9035_v20  ;;  %v9397_v14 = vpop.f32.mrf.mxu2 }
 0x280   : > { %11545 = vst [vmem:[#allocation26_spill] sm:$0xff] %v9397_v14  ;;  %v9400_v15 = vpop.f32.mrf.mxu3  ;;  %vm2188_vm12 = vcmp.gt.f32.partialorder %v2110_v11, 0.0  ;;  %v2196_v16 = vmul.f32 0.2, %v2110_v11 }
 0x281   : > { %7648 = vst [vmem:[%s9044_s24 + $0xe0] sm:$0xff] %v2110_v11  ;;  %vm2189_vm13 = vcmp.gt.f32.partialorder %v2130_v13, 0.0  ;;  %v2197_v29 = vmul.f32 0.2, %v2130_v13 }
 0x282   : > { %11546 = vst [vmem:[#allocation27_spill] sm:$0xff] %v9400_v15  ;;  %v2204_v31 = vsel %vm2188_vm12, %v2110_v11, %v2196_v16 }
 0x283   : > { %7649 = vst [vmem:[%s9044_s24 + $0xe8] sm:$0xff] %v2130_v13  ;;  %2321 = vmatpush.msrb.mxu0 %v2204_v31  ;;  %v2205_v1 = vsel %vm2189_vm13, %v2130_v13, %v2197_v29  ;;  %v7674_v29 = vld [vmem:[%s8962_s2 + $0x120] sm:$0xff] }
 0x284   : > { %2344 = vmatpush.msrb.mxu1 %v2205_v1  ;;  %7655 = vmatmul.msk.f32.gmra.mxu0 %vm809_vm0, %v9406_v30 }
 0x285   : > { %7657 = vmatmul.msk.f32.gmra.mxu1 %vm809_vm0, %v9406_v30  ;;  %2438 = vmatpush.msra.mxu0 %v7670_v32  ;;  %v7675_v32 = vld [vmem:[%s8962_s2 + $0x128] sm:$0xff] }
 0x286   : > { %2458 = vmatpush.msra.mxu1 %v7671_v3 }
 0x287   : > { %v2069_v5 = vpop.f32.mrf.mxu2 }
 0x288   : > { %v2070_v6 = vadd.f32 %v2069_v5, %v9035_v20  ;;  %v2089_v8 = vpop.f32.mrf.mxu3 }
 0x289   : > { %v2090_v11 = vadd.f32 %v2089_v8, %v9035_v20 }
 0x28a   : > { %7646 = vst [vmem:[%s9044_s24 + $0xd0] sm:$0xff] %v2070_v6  ;;  %vm2186_vm14 = vcmp.gt.f32.partialorder %v2070_v6, 0.0  ;;  %v2194_v12 = vmul.f32 0.2, %v2070_v6 }
 0x28b   : > { %7647 = vst [vmem:[%s9044_s24 + $0xd8] sm:$0xff] %v2090_v11  ;;  %vm2187_vm15 = vcmp.gt.f32.partialorder %v2090_v11, 0.0  ;;  %v2195_v13 = vmul.f32 0.2, %v2090_v11 }
 0x28c   : > { %7662 = vmatmul.msk.f32.vlgmr.msrb.gmra.mxu0 %vm809_vm0, %v9389_v4  ;;  %v2202_v16 = vsel %vm2186_vm14, %v2070_v6, %v2194_v12 }
 0x28d   : > { %7664 = vmatmul.msk.f32.vlgmr.msrb.gmra.mxu1 %vm809_vm0, %v9389_v4  ;;  %2275 = vmatpush.msra.mxu2 %v2202_v16  ;;  %v2203_v31 = vsel %vm2187_vm15, %v2090_v11, %v2195_v13  ;;  %v7672_v13 = vld [vmem:[%s8962_s2 + $0x110] sm:$0xff] }
 0x28e   : > { %2298 = vmatpush.msra.mxu3 %v2203_v31  ;;  %7658 = vmatmul.msk.f32.vlgmr.msra.gmra.mxu2 %vm809_vm0, %v9389_v4  ;;  %v7676_v31 = vld [vmem:[%s8962_s2 + $0x130] sm:$0xff] }
 0x28f   : > { %7660 = vmatmul.msk.f32.vlgmr.msra.gmra.mxu3 %vm809_vm0, %v9389_v4  ;;  %v2149_v1 = vpop.f32.mrf.mxu2  ;;  %2518 = vmatpush.msrb.mxu0 %v7674_v29  ;;  %v7673_v29 = vld [vmem:[%s8962_s2 + $0x118] sm:$0xff] }
 0x290   : > { %v2150_v3 = vadd.f32 %v2149_v1, %v9035_v20  ;;  %v2169_v5 = vpop.f32.mrf.mxu3  ;;  %2538 = vmatpush.msrb.mxu1 %v7675_v32  ;;  %v7677_v32 = vld [vmem:[%s8962_s2 + $0x138] sm:$0xff] }
 0x291   : > { %v2170_v6 = vadd.f32 %v2169_v5, %v9035_v20 }
 0x292   : > { %7650 = vst [vmem:[%s9044_s24 + $0xf0] sm:$0xff] %v2150_v3  ;;  %vm2190_vm1 = vcmp.gt.f32.partialorder %v2150_v3, 0.0  ;;  %v2198_v8 = vmul.f32 0.2, %v2150_v3 }
 0x293   : > { %7651 = vst [vmem:[%s9044_s24 + $0xf8] sm:$0xff] %v2170_v6  ;;  %vm2191_vm2 = vcmp.gt.f32.partialorder %v2170_v6, 0.0  ;;  %v2199_v11 = vmul.f32 0.2, %v2170_v6 }
 0x294   : > { %7663 = vmatmul.msk.f32.gmra.mxu0 %vm809_vm0, %v9406_v30  ;;  %v2206_v12 = vsel %vm2190_vm1, %v2150_v3, %v2198_v8 }
 0x295   : > { %7665 = vmatmul.msk.f32.gmra.mxu1 %vm809_vm0, %v9406_v30  ;;  %2367 = vmatpush.msrb.mxu2 %v2206_v12  ;;  %v2207_v16 = vsel %vm2191_vm2, %v2170_v6, %v2199_v11 }
 0x296   : > { %2390 = vmatpush.msrb.mxu3 %v2207_v16  ;;  %7659 = vmatmul.msk.f32.gmra.mxu2 %vm809_vm0, %v9406_v30 }
 0x297   : > { %7661 = vmatmul.msk.f32.gmra.mxu3 %vm809_vm0, %v9406_v30  ;;  %2478 = vmatpush.msra.mxu2 %v7672_v13 }
 0x298   : > { %2498 = vmatpush.msra.mxu3 %v7673_v29 }
 0x29c   : > { %7678 = vmatmul.msk.f32.vlgmr.msra.gmra.mxu0 %vm809_vm0, %v8958_v2 }
 0x29d   : > { %7679 = vmatmul.msk.f32.vlgmr.msra.gmra.mxu1 %vm809_vm0, %v8958_v2 }
 0x29e   : > { %7666 = vmatmul.msk.f32.vlgmr.msrb.gmra.mxu2 %vm809_vm0, %v9389_v4 }
 0x29f   : > { %7668 = vmatmul.msk.f32.vlgmr.msrb.gmra.mxu3 %vm809_vm0, %v9389_v4  ;;  %2558 = vmatpush.msrb.mxu2 %v7676_v31 }
 0x2a0   : > { %2578 = vmatpush.msrb.mxu3 %v7677_v32 }
 0x2a4   : > { %7682 = vmatmul.msk.f32.vlgmr.msrb.gmra.mxu0 %vm809_vm0, %v8958_v2 }
 0x2a5   : > { %7683 = vmatmul.msk.f32.vlgmr.msrb.gmra.mxu1 %vm809_vm0, %v8958_v2 }
 0x2a6   : > { %7667 = vmatmul.msk.f32.gmra.mxu2 %vm809_vm0, %v9406_v30 }
 0x2a7   : > { %7669 = vmatmul.msk.f32.gmra.mxu3 %vm809_vm0, %v9406_v30 }
 0x2ae   : > { %7680 = vmatmul.msk.f32.vlgmr.msra.gmra.mxu2 %vm809_vm0, %v8958_v2 }
 0x2af   : > { %7681 = vmatmul.msk.f32.vlgmr.msra.gmra.mxu3 %vm809_vm0, %v8958_v2 }
 0x2b6   : > { %7684 = vmatmul.msk.f32.vlgmr.msrb.gmra.mxu2 %vm809_vm0, %v8958_v2 }
 0x2b7   : > { %7685 = vmatmul.msk.f32.vlgmr.msrb.gmra.mxu3 %vm809_vm0, %v8958_v2 }
 0x2f9   : > { %v9468_v4 = vpop.f32.mrf.mxu0 }
 0x2fa   : > { %v9470_v1 = vpop.f32.mrf.mxu1 }
 0x301   : > { %v9472_v3 = vpop.f32.mrf.mxu0 }
 0x302   : > { %v9474_v30 = vpop.f32.mrf.mxu1 }
 0x309   : > { %v9476_v5 = vpop.f32.mrf.mxu0 }
 0x30a   : > { %v9478_v6 = vpop.f32.mrf.mxu1 }
 0x311   : > { %v9480_v8 = vpop.f32.mrf.mxu2  ;;  %v9482_v11 = vpop.f32.mrf.mxu0 }
 0x312   : > { %v9484_v12 = vpop.f32.mrf.mxu3  ;;  %v9486_v2 = vpop.f32.mrf.mxu1 }
 0x319   : > { %v9488_v13 = vpop.f32.mrf.mxu2  ;;  %v2440_v16 = vpop.f32.mrf.mxu0 }
 0x31a   : > { %11547 = vst [vmem:[#allocation28_spill] sm:$0xff] %v9488_v13  ;;  %v9490_v29 = vpop.f32.mrf.mxu3  ;;  %v2441_v31 = vadd.f32 %v2440_v16, %v9035_v20  ;;  %v2460_v32 = vpop.f32.mrf.mxu1 }
 0x31b   : > { %11548 = vst [vmem:[#allocation29_spill] sm:$0xff] %v9490_v29  ;;  %v2461_v15 = vadd.f32 %v2460_v32, %v9035_v20 }
 0x31c   : > { %7686 = vst [vmem:[%s9044_s24 + $0x100] sm:$0xff] %v2441_v31  ;;  %vm2595_vm3 = vcmp.gt.f32.partialorder %v2441_v31, 0.0  ;;  %v2603_v14 = vmul.f32 0.2, %v2441_v31 }
 0x31d   : > { %7687 = vst [vmem:[%s9044_s24 + $0x108] sm:$0xff] %v2461_v15  ;;  %vm2596_vm4 = vcmp.gt.f32.partialorder %v2461_v15, 0.0  ;;  %v2604_v10 = vmul.f32 0.2, %v2461_v15 }
 0x31e   : > { %v2611_v7 = vsel %vm2595_vm3, %v2441_v31, %v2603_v14  ;;  %v9516_v14 = vld [vmem:[%s11528_s3 + $0x48] sm:$0xff]  ;;  %v7712_v31 = vld [vmem:[%s8962_s2 + $0x140] sm:$0xff] }
 0x31f   : > { %2640 = vmatpush.msra.mxu0 %v2611_v7  ;;  %v2612_v51 = vsel %vm2596_vm4, %v2461_v15, %v2604_v10 }
 0x320   : > { %2663 = vmatpush.msra.mxu1 %v2612_v51  ;;  %7696 = vmatmul.msk.f32.vlgmr.msra.gmra.mxu0 %vm809_vm0, %v9499_v52 }
 0x321   : > { %7698 = vmatmul.msk.f32.vlgmr.msra.gmra.mxu1 %vm809_vm0, %v9499_v52  ;;  %v9505_v16 = vpop.f32.mrf.mxu2  ;;  %v2520_v32 = vpop.f32.mrf.mxu0 }
 0x322   : > { %11549 = vst [vmem:[#allocation30_spill] sm:$0xff] %v9505_v16  ;;  %v9507_v34 = vpop.f32.mrf.mxu3  ;;  %v2521_v33 = vadd.f32 %v2520_v32, %v9035_v20  ;;  %v2540_v0 = vpop.f32.mrf.mxu1 }
 0x323   : > { %11550 = vst [vmem:[#allocation31_spill] sm:$0xff] %v9507_v34  ;;  %v2541_v7 = vadd.f32 %v2540_v0, %v9035_v20  ;;  %v7713_v34 = vld [vmem:[%s8962_s2 + $0x148] sm:$0xff] }
 0x324   : > { %7690 = vst [vmem:[%s9044_s24 + $0x120] sm:$0xff] %v2521_v33  ;;  %vm2599_vm5 = vcmp.gt.f32.partialorder %v2521_v33, 0.0  ;;  %v2607_v51 = vmul.f32 0.2, %v2521_v33 }
 0x325   : > { %7691 = vst [vmem:[%s9044_s24 + $0x128] sm:$0xff] %v2541_v7  ;;  %vm2600_vm6 = vcmp.gt.f32.partialorder %v2541_v7, 0.0  ;;  %v2608_v10 = vmul.f32 0.2, %v2541_v7 }
 0x326   : > { %v2615_v15 = vsel %vm2599_vm5, %v2521_v33, %v2607_v51  ;;  %v7716_v33 = vld [vmem:[%s8962_s2 + $0x160] sm:$0xff]  ;;  %v7717_v51 = vld [vmem:[%s8962_s2 + $0x168] sm:$0xff] }
 0x327   : > { %2732 = vmatpush.msrb.mxu0 %v2615_v15  ;;  %v2616_v32 = vsel %vm2600_vm6, %v2541_v7, %v2608_v10 }
 0x328   : > { %2755 = vmatpush.msrb.mxu1 %v2616_v32  ;;  %7697 = vmatmul.msk.f32.gmra.mxu0 %vm809_vm0, %v9516_v14 }
 0x329   : > { %7699 = vmatmul.msk.f32.gmra.mxu1 %vm809_vm0, %v9516_v14  ;;  %v9524_v0 = vpop.f32.mrf.mxu2  ;;  %2849 = vmatpush.msra.mxu0 %v7712_v31 }
 0x32a   : > { %11551 = vst [vmem:[#allocation32_spill] sm:$0xff] %v9524_v0  ;;  %v9526_v16 = vpop.f32.mrf.mxu3  ;;  %2869 = vmatpush.msra.mxu1 %v7713_v34 }
 0x32b   : > { %11552 = vst [vmem:[#allocation33_spill] sm:$0xff] %v9526_v16 }
 0x330   : > { %7704 = vmatmul.msk.f32.vlgmr.msrb.gmra.mxu0 %vm809_vm0, %v9499_v52 }
 0x331   : > { %7706 = vmatmul.msk.f32.vlgmr.msrb.gmra.mxu1 %vm809_vm0, %v9499_v52  ;;  %v2480_v7 = vpop.f32.mrf.mxu2  ;;  %2929 = vmatpush.msrb.mxu0 %v7716_v33 }
 0x332   : > { %v2481_v10 = vadd.f32 %v2480_v7, %v9035_v20  ;;  %v2500_v15 = vpop.f32.mrf.mxu3  ;;  %2949 = vmatpush.msrb.mxu1 %v7717_v51 }
 0x333   : > { %v2501_v31 = vadd.f32 %v2500_v15, %v9035_v20 }
 0x334   : > { %7688 = vst [vmem:[%s9044_s24 + $0x110] sm:$0xff] %v2481_v10  ;;  %vm2597_vm7 = vcmp.gt.f32.partialorder %v2481_v10, 0.0  ;;  %v2605_v32 = vmul.f32 0.2, %v2481_v10 }
 0x335   : > { %7689 = vst [vmem:[%s9044_s24 + $0x118] sm:$0xff] %v2501_v31  ;;  %vm2598_vm8 = vcmp.gt.f32.partialorder %v2501_v31, 0.0  ;;  %v2606_v34 = vmul.f32 0.2, %v2501_v31 }
 0x336   : > { %v2613_v16 = vsel %vm2597_vm7, %v2481_v10, %v2605_v32  ;;  %v7714_v32 = vld [vmem:[%s8962_s2 + $0x150] sm:$0xff] }
 0x337   : > { %2686 = vmatpush.msra.mxu2 %v2613_v16  ;;  %v2614_v0 = vsel %vm2598_vm8, %v2501_v31, %v2606_v34  ;;  %v7715_v34 = vld [vmem:[%s8962_s2 + $0x158] sm:$0xff] }
 0x338   : > { %2709 = vmatpush.msra.mxu3 %v2614_v0  ;;  %7700 = vmatmul.msk.f32.vlgmr.msra.gmra.mxu2 %vm809_vm0, %v9499_v52 }
 0x339   : > { %7702 = vmatmul.msk.f32.vlgmr.msra.gmra.mxu3 %vm809_vm0, %v9499_v52  ;;  %7705 = vmatmul.msk.f32.gmra.mxu0 %vm809_vm0, %v9516_v14  ;;  %v2560_v33 = vpop.f32.mrf.mxu2 }
 0x33a   : > { %7707 = vmatmul.msk.f32.gmra.mxu1 %vm809_vm0, %v9516_v14  ;;  %v2561_v51 = vadd.f32 %v2560_v33, %v9035_v20  ;;  %v2580_v16 = vpop.f32.mrf.mxu3  ;;  %v9559_v33 = vld [vmem:[%s11525_s26] sm:$0xff] }
 0x33b   : > { %v2581_v0 = vadd.f32 %v2580_v16, %v9035_v20  ;;  %v7719_v16 = vld [vmem:[%s8962_s2 + $0x178] sm:$0xff] }
 0x33c   : > { %7692 = vst [vmem:[%s9044_s24 + $0x130] sm:$0xff] %v2561_v51  ;;  %vm2601_vm9 = vcmp.gt.f32.partialorder %v2561_v51, 0.0  ;;  %v2609_v7 = vmul.f32 0.2, %v2561_v51 }
 0x33d   : > { %7693 = vst [vmem:[%s9044_s24 + $0x138] sm:$0xff] %v2581_v0  ;;  %vm2602_vm10 = vcmp.gt.f32.partialorder %v2581_v0, 0.0  ;;  %v2610_v10 = vmul.f32 0.2, %v2581_v0 }
 0x33e   : > { %v2617_v15 = vsel %vm2601_vm9, %v2561_v51, %v2609_v7  ;;  %v7718_v51 = vld [vmem:[%s8962_s2 + $0x170] sm:$0xff] }
 0x33f   : > { %2778 = vmatpush.msrb.mxu2 %v2617_v15  ;;  %v2618_v31 = vsel %vm2602_vm10, %v2581_v0, %v2610_v10 }
 0x340   : > { %2801 = vmatpush.msrb.mxu3 %v2618_v31  ;;  %7701 = vmatmul.msk.f32.gmra.mxu2 %vm809_vm0, %v9516_v14 }
 0x341   : > { %7703 = vmatmul.msk.f32.gmra.mxu3 %vm809_vm0, %v9516_v14  ;;  %7720 = vmatmul.msk.f32.vlgmr.msra.gmra.mxu0 %vm809_vm0, %v9559_v33 }
 0x342   : > { %7721 = vmatmul.msk.f32.vlgmr.msra.gmra.mxu1 %vm809_vm0, %v9559_v33  ;;  %2889 = vmatpush.msra.mxu2 %v7714_v32 }
 0x343   : > { %2909 = vmatpush.msra.mxu3 %v7715_v34 }
 0x348   : > { %7708 = vmatmul.msk.f32.vlgmr.msrb.gmra.mxu2 %vm809_vm0, %v9499_v52 }
 0x349   : > { %7710 = vmatmul.msk.f32.vlgmr.msrb.gmra.mxu3 %vm809_vm0, %v9499_v52  ;;  %7724 = vmatmul.msk.f32.vlgmr.msrb.gmra.mxu0 %vm809_vm0, %v9559_v33 }
 0x34a   : > { %7725 = vmatmul.msk.f32.vlgmr.msrb.gmra.mxu1 %vm809_vm0, %v9559_v33  ;;  %2969 = vmatpush.msrb.mxu2 %v7718_v51 }
 0x34b   : > { %2989 = vmatpush.msrb.mxu3 %v7719_v16 }
 0x350   : > { %7709 = vmatmul.msk.f32.gmra.mxu2 %vm809_vm0, %v9516_v14 }
 0x351   : > { %7711 = vmatmul.msk.f32.gmra.mxu3 %vm809_vm0, %v9516_v14 }
 0x358   : > { %7722 = vmatmul.msk.f32.vlgmr.msra.gmra.mxu2 %vm809_vm0, %v9559_v33 }
 0x359   : > { %7723 = vmatmul.msk.f32.vlgmr.msra.gmra.mxu3 %vm809_vm0, %v9559_v33 }
 0x360   : > { %7726 = vmatmul.msk.f32.vlgmr.msrb.gmra.mxu2 %vm809_vm0, %v9559_v33 }
 0x361   : > { %7727 = vmatmul.msk.f32.vlgmr.msrb.gmra.mxu3 %vm809_vm0, %v9559_v33 }
 0x39d   : > { %v9587_v52 = vpop.f32.mrf.mxu0 }
 0x39e   : > { %v9589_v0 = vpop.f32.mrf.mxu1 }
 0x3a5   : > { %v9591_v7 = vpop.f32.mrf.mxu0 }
 0x3a6   : > { %v9593_v14 = vpop.f32.mrf.mxu1 }
 0x3ad   : > { %v9595_v10 = vpop.f32.mrf.mxu0 }
 0x3ae   : > { %v9597_v15 = vpop.f32.mrf.mxu1 }
 0x3b6   : > { %v9599_v31 = vpop.f32.mrf.mxu0 }
 0x3b7   : > { %v9601_v32 = vpop.f32.mrf.mxu1 }
 0x3bb   : > { %v9603_v34 = vpop.f32.mrf.mxu2 }
 0x3bc   : > { %v9605_v51 = vpop.f32.mrf.mxu3 }
 0x3bd   : > { %11553 = vst [vmem:[#allocation34_spill] sm:$0xff] %v9605_v51 }
 0x3be   : > { %v2851_v16 = vpop.f32.mrf.mxu0 }
 0x3bf   : > { %v2852_v48 = vadd.f32 %v2851_v16, %v9035_v20  ;;  %v2871_v63 = vpop.f32.mrf.mxu1 }
 0x3c0   : > { %v2872_v47 = vadd.f32 %v2871_v63, %v9035_v20 }
 0x3c1   : > { %7728 = vst [vmem:[%s9044_s24 + $0x140] sm:$0xff] %v2852_v48  ;;  %vm3006_vm11 = vcmp.gt.f32.partialorder %v2852_v48, 0.0  ;;  %v3014_v29 = vmul.f32 0.2, %v2852_v48 }
 0x3c2   : > { %7729 = vst [vmem:[%s9044_s24 + $0x148] sm:$0xff] %v2872_v47  ;;  %vm3007_vm12 = vcmp.gt.f32.partialorder %v2872_v47, 0.0  ;;  %v3015_v13 = vmul.f32 0.2, %v2872_v47 }
 0x3c3   : > { %v9616_v27 = vpop.f32.mrf.mxu2  ;;  %v3022_v60 = vsel %vm3006_vm11, %v2852_v48, %v3014_v29  ;;  %v7754_v29 = vld [vmem:[%s8962_s2 + $0x180] sm:$0xff] }
 0x3c4   : > { %11554 = vst [vmem:[#allocation35_spill] sm:$0xff] %v9616_v27  ;;  %v9618_v16 = vpop.f32.mrf.mxu3  ;;  %3051 = vmatpush.msra.mxu0 %v3022_v60  ;;  %v3023_v63 = vsel %vm3007_vm12, %v2872_v47, %v3015_v13  ;;  %v9631_v60 = vld [vmem:[%s11528_s3 + $0x58] sm:$0xff] }
 0x3c5   : > { %11555 = vst [vmem:[#allocation36_spill] sm:$0xff] %v9618_v16  ;;  %3074 = vmatpush.msra.mxu1 %v3023_v63  ;;  %7738 = vmatmul.msk.f32.vlgmr.msra.gmra.mxu0 %vm809_vm0, %v9614_v28  ;;  %v7755_v16 = vld [vmem:[%s8962_s2 + $0x188] sm:$0xff] }
 0x3c6   : > { %7740 = vmatmul.msk.f32.vlgmr.msra.gmra.mxu1 %vm809_vm0, %v9614_v28  ;;  %v2931_v44 = vpop.f32.mrf.mxu0 }
 0x3c7   : > { %v2932_v59 = vadd.f32 %v2931_v44, %v9035_v20  ;;  %v2951_v43 = vpop.f32.mrf.mxu1 }
 0x3c8   : > { %v2952_v27 = vadd.f32 %v2951_v43, %v9035_v20 }
 0x3c9   : > { %7732 = vst [vmem:[%s9044_s24 + $0x160] sm:$0xff] %v2932_v59  ;;  %vm3010_vm13 = vcmp.gt.f32.partialorder %v2932_v59, 0.0  ;;  %v3018_v48 = vmul.f32 0.2, %v2932_v59 }
 0x3ca   : > { %7733 = vst [vmem:[%s9044_s24 + $0x168] sm:$0xff] %v2952_v27  ;;  %vm3011_vm14 = vcmp.gt.f32.partialorder %v2952_v27, 0.0  ;;  %v3019_v47 = vmul.f32 0.2, %v2952_v27 }
 0x3cb   : > { %v9633_v13 = vpop.f32.mrf.mxu2  ;;  %v3026_v44 = vsel %vm3010_vm13, %v2932_v59, %v3018_v48  ;;  %v7759_v48 = vld [vmem:[%s8962_s2 + $0x1a8] sm:$0xff] }
 0x3cc   : > { %11556 = vst [vmem:[#allocation37_spill] sm:$0xff] %v9633_v13  ;;  %v9636_v63 = vpop.f32.mrf.mxu3  ;;  %3143 = vmatpush.msrb.mxu0 %v3026_v44  ;;  %v3027_v43 = vsel %vm3011_vm14, %v2952_v27, %v3019_v47  ;;  %v7758_v13 = vld [vmem:[%s8962_s2 + $0x1a0] sm:$0xff] }
 0x3cd   : > { %3166 = vmatpush.msrb.mxu1 %v3027_v43  ;;  %7739 = vmatmul.msk.f32.gmra.mxu0 %vm809_vm0, %v9631_v60 }
 0x3ce   : > { %7741 = vmatmul.msk.f32.gmra.mxu1 %vm809_vm0, %v9631_v60  ;;  %3260 = vmatpush.msra.mxu0 %v7754_v29 }
 0x3cf   : > { %3280 = vmatpush.msra.mxu1 %v7755_v16 }
 0x3d3   : > { %v9643_v51 = vpop.f32.mrf.mxu2 }
 0x3d4   : > { %11557 = vst [vmem:[#allocation38_spill] sm:$0xff] %v9643_v51  ;;  %v9646_v59 = vpop.f32.mrf.mxu3 }
 0x3d5   : > { %11558 = vst [vmem:[#allocation39_spill] sm:$0xff] %v9646_v59  ;;  %7746 = vmatmul.msk.f32.vlgmr.msrb.gmra.mxu0 %vm809_vm0, %v9614_v28 }
 0x3d6   : > { %7748 = vmatmul.msk.f32.vlgmr.msrb.gmra.mxu1 %vm809_vm0, %v9614_v28  ;;  %3340 = vmatpush.msrb.mxu0 %v7758_v13 }
 0x3d7   : > { %3360 = vmatpush.msrb.mxu1 %v7759_v48 }
 0x3db   : > { %v2891_v27 = vpop.f32.mrf.mxu2 }
 0x3dc   : > { %v2892_v47 = vadd.f32 %v2891_v27, %v9035_v20  ;;  %v2911_v44 = vpop.f32.mrf.mxu3 }
 0x3dd   : > { %v2912_v16 = vadd.f32 %v2911_v44, %v9035_v20  ;;  %7747 = vmatmul.msk.f32.gmra.mxu0 %vm809_vm0, %v9631_v60 }
 0x3de   : > { %7730 = vst [vmem:[%s9044_s24 + $0x150] sm:$0xff] %v2892_v47  ;;  %7749 = vmatmul.msk.f32.gmra.mxu1 %vm809_vm0, %v9631_v60  ;;  %vm3008_vm15 = vcmp.gt.f32.partialorder %v2892_v47, 0.0  ;;  %v3016_v29 = vmul.f32 0.2, %v2892_v47 }
 0x3df   : > { %7731 = vst [vmem:[%s9044_s24 + $0x158] sm:$0xff] %v2912_v16  ;;  %vm3009_vm1 = vcmp.gt.f32.partialorder %v2912_v16, 0.0  ;;  %v3017_v13 = vmul.f32 0.2, %v2912_v16 }
 0x3e0   : > { %v3024_v43 = vsel %vm3008_vm15, %v2892_v47, %v3016_v29 }
 0x3e1   : > { %3097 = vmatpush.msra.mxu2 %v3024_v43  ;;  %v3025_v48 = vsel %vm3009_vm1, %v2912_v16, %v3017_v13  ;;  %v7756_v13 = vld [vmem:[%s8962_s2 + $0x190] sm:$0xff] }
 0x3e2   : > { %3120 = vmatpush.msra.mxu3 %v3025_v48  ;;  %7742 = vmatmul.msk.f32.vlgmr.msra.gmra.mxu2 %vm809_vm0, %v9614_v28  ;;  %v7757_v48 = vld [vmem:[%s8962_s2 + $0x198] sm:$0xff] }
 0x3e3   : > { %7744 = vmatmul.msk.f32.vlgmr.msra.gmra.mxu3 %vm809_vm0, %v9614_v28  ;;  %v2971_v27 = vpop.f32.mrf.mxu2 }
 0x3e4   : > { %v2972_v44 = vadd.f32 %v2971_v27, %v9035_v20  ;;  %v2991_v59 = vpop.f32.mrf.mxu3  ;;  %v7761_v27 = vld [vmem:[%s8962_s2 + $0x1b8] sm:$0xff] }
 0x3e5   : > { %v2992_v51 = vadd.f32 %v2991_v59, %v9035_v20  ;;  %7762 = vmatmul.msk.f32.vlgmr.msra.gmra.mxu0 %vm809_vm0, %v9559_v33  ;;  %v7760_v59 = vld [vmem:[%s8962_s2 + $0x1b0] sm:$0xff] }
 0x3e6   : > { %7734 = vst [vmem:[%s9044_s24 + $0x170] sm:$0xff] %v2972_v44  ;;  %7763 = vmatmul.msk.f32.vlgmr.msra.gmra.mxu1 %vm809_vm0, %v9559_v33  ;;  %vm3012_vm2 = vcmp.gt.f32.partialorder %v2972_v44, 0.0  ;;  %v3020_v47 = vmul.f32 0.2, %v2972_v44 }
 0x3e7   : > { %7735 = vst [vmem:[%s9044_s24 + $0x178] sm:$0xff] %v2992_v51  ;;  %vm3013_vm3 = vcmp.gt.f32.partialorder %v2992_v51, 0.0  ;;  %v3021_v16 = vmul.f32 0.2, %v2992_v51 }
 0x3e8   : > { %v3028_v29 = vsel %vm3012_vm2, %v2972_v44, %v3020_v47 }
 0x3e9   : > { %3189 = vmatpush.msrb.mxu2 %v3028_v29  ;;  %v3029_v43 = vsel %vm3013_vm3, %v2992_v51, %v3021_v16  ;;  %v1449_v51 = vadd.f32 %v9238_v50, %v9210_v36  ;;  %v1452_v36 = vadd.f32 %v9246_v54, %v9214_v38  ;;  %v1541_v54 = vadd.f32 %v9254_v58, %v9222_v42 }
 0x3ea   : > { %3212 = vmatpush.msrb.mxu3 %v3029_v43  ;;  %7743 = vmatmul.msk.f32.gmra.mxu2 %vm809_vm0, %v9631_v60  ;;  %v1544_v58 = vadd.f32 %v9262_v62, %v9230_v46  ;;  %v1472_v62 = vadd.f32 %v9248_v55, %v9216_v39  ;;  %v11559_v55 = vld [vmem:[#allocation34_spill] sm:$0xff] }
 0x3eb   : > { %7745 = vmatmul.msk.f32.gmra.mxu3 %vm809_vm0, %v9631_v60  ;;  %3300 = vmatpush.msra.mxu2 %v7756_v13  ;;  %v1988_v44 = vadd.f32 %v9356_v17, %v1449_v51  ;;  %v1996_v17 = vadd.f32 %v9360_v19, %v1452_v36 }
 0x3ec   : > { %3320 = vmatpush.msra.mxu3 %v7757_v48  ;;  %v1429_v48 = vadd.f32 %v9244_v53, %v9212_v37 }
 0x3ed   : > { %7766 = vmatmul.msk.f32.vlgmr.msrb.gmra.mxu0 %vm809_vm0, %v9559_v33  ;;  %v2399_v16 = vadd.f32 %v9470_v1, %v1988_v44  ;;  %v2407_v1 = vadd.f32 %v9474_v30, %v1996_v17 }
 0x3ee   : > { %7767 = vmatmul.msk.f32.vlgmr.msrb.gmra.mxu1 %vm809_vm0, %v9559_v33 }
 0x3ef   : > { %v2810_v13 = vadd.f32 %v9589_v0, %v2399_v16  ;;  %v2818_v37 = vadd.f32 %v9593_v14, %v2407_v1  ;;  %v1518_v0 = vadd.f32 %v9252_v57, %v9220_v41 }
 0x3f1   : > { %v1991_v19 = vadd.f32 %v9362_v21, %v1518_v0  ;;  %v11566_v0 = vld [vmem:[#allocation28_spill] sm:$0xff] }
 0x3f2   : > { %7750 = vmatmul.msk.f32.vlgmr.msrb.gmra.mxu2 %vm809_vm0, %v9614_v28 }
 0x3f3   : > { %7752 = vmatmul.msk.f32.vlgmr.msrb.gmra.mxu3 %vm809_vm0, %v9614_v28  ;;  %3380 = vmatpush.msrb.mxu2 %v7760_v59  ;;  %v1426_v28 = vadd.f32 %v9236_v49, %v9208_v35  ;;  %v2402_v30 = vadd.f32 %v9476_v5, %v1991_v19  ;;  %v2000_v5 = vadd.f32 %v9372_v26, %v1544_v58  ;;  %v11567_v19 = vld [vmem:[#allocation29_spill] sm:$0xff] }
 0x3f4   : > { %3400 = vmatpush.msrb.mxu3 %v7761_v27  ;;  %v1521_v27 = vadd.f32 %v9260_v61, %v9228_v45  ;;  %v1989_v26 = vadd.f32 %v9366_v23, %v1472_v62  ;;  %v11560_v23 = vld [vmem:[#allocation10_spill] sm:$0xff]  ;;  %v11572_v62 = vld [vmem:[#allocation13_spill] sm:$0xff] }
 0x3f5   : > { %v2813_v14 = vadd.f32 %v9595_v10, %v2402_v30  ;;  %v2411_v10 = vadd.f32 %v9486_v2, %v2000_v5  ;;  %v11570_v5 = vld [vmem:[#allocation12_spill] sm:$0xff] }
 0x3f6   : > { %v2400_v2 = vadd.f32 %v9480_v8, %v1989_v26 }
 0x3f7   : > { %v2822_v45 = vadd.f32 %v9601_v32, %v2411_v10 }
 0x3f8   : > { %v2811_v16 = vadd.f32 %v9603_v34, %v2400_v2  ;;  %v9778_v34 = vld [vmem:[%s11528_s3 + $0x60] sm:$0xff] }
 0x3fa   : > { %7751 = vmatmul.msk.f32.gmra.mxu2 %vm809_vm0, %v9631_v60 }
 0x3fb   : > { %7753 = vmatmul.msk.f32.gmra.mxu3 %vm809_vm0, %v9631_v60  ;;  %v1987_v60 = vadd.f32 %v9354_v9, %v1426_v28  ;;  %v1995_v9 = vadd.f32 %v9358_v18, %v1429_v48  ;;  %v11562_v48 = vld [vmem:[#allocation11_spill] sm:$0xff] }
 0x3fd   : > { %v2398_v47 = vadd.f32 %v9468_v4, %v1987_v60  ;;  %v2406_v4 = vadd.f32 %v9472_v3, %v1995_v9  ;;  %v1992_v3 = vadd.f32 %v9364_v22, %v1541_v54  ;;  %v1999_v22 = vadd.f32 %v9370_v25, %v1521_v27  ;;  %v11569_v27 = vld [vmem:[#allocation36_spill] sm:$0xff] }
 0x3fe   : > { %v1495_v25 = vadd.f32 %v9250_v56, %v9218_v40 }
 0x3ff   : > { %v2809_v29 = vadd.f32 %v9587_v52, %v2398_v47  ;;  %v2817_v52 = vadd.f32 %v9591_v7, %v2406_v4  ;;  %v2403_v7 = vadd.f32 %v9478_v6, %v1992_v3  ;;  %v2410_v6 = vadd.f32 %v9482_v11, %v1999_v22  ;;  %v11564_v4 = vld [vmem:[#allocation22_spill] sm:$0xff] }
 0x400   : > { %v1990_v11 = vadd.f32 %v9368_v24, %v1495_v25  ;;  %v11561_v24 = vld [vmem:[#allocation16_spill] sm:$0xff]  ;;  %v11573_v25 = vld [vmem:[#allocation19_spill] sm:$0xff] }
 0x401   : > { %v2814_v41 = vadd.f32 %v9597_v15, %v2403_v7  ;;  %v2821_v15 = vadd.f32 %v9599_v31, %v2410_v6  ;;  %v11571_v6 = vld [vmem:[#allocation18_spill] sm:$0xff]  ;;  %v1587_v26 = vadd.f32 %v11573_v25, %v11572_v62 }
 0x402   : > { %7764 = vmatmul.msk.f32.vlgmr.msra.gmra.mxu2 %vm809_vm0, %v9559_v33  ;;  %v2401_v32 = vadd.f32 %v9484_v12, %v1990_v11  ;;  %v1564_v10 = vadd.f32 %v11571_v6, %v11570_v5 }
 0x403   : > { %7765 = vmatmul.msk.f32.vlgmr.msra.gmra.mxu3 %vm809_vm0, %v9559_v33 }
 0x40a   : > { %7768 = vmatmul.msk.f32.vlgmr.msrb.gmra.mxu2 %vm809_vm0, %v9559_v33 }
 0x40b   : > { %7769 = vmatmul.msk.f32.vlgmr.msrb.gmra.mxu3 %vm809_vm0, %v9559_v33 }
 0x442   : > { %v3053_v43 = vpop.f32.mrf.mxu0 }
 0x443   : > { %v9713_v35 = vadd.f32 %v3053_v43, %v2809_v29  ;;  %v3076_v49 = vpop.f32.mrf.mxu1  ;;  %v2812_v29 = vadd.f32 %v11559_v55, %v2401_v32  ;;  %v11574_v32 = vld [vmem:[#allocation24_spill] sm:$0xff] }
 0x444   : > { %v9717_v50 = vadd.f32 %v3076_v49, %v2810_v13  ;;  %v1475_v13 = vadd.f32 %v11561_v24, %v11560_v23  ;;  %v11563_v49 = vld [vmem:[#allocation17_spill] sm:$0xff] }
 0x445   : > { %v1498_v36 = vadd.f32 %v11563_v49, %v11562_v48  ;;  %v11578_v24 = vld [vmem:[#allocation37_spill] sm:$0xff]  ;;  %v11579_v48 = vld [vmem:[#allocation14_spill] sm:$0xff]  ;;  %v11580_v49 = vld [vmem:[#allocation20_spill] sm:$0xff] }
 0x446   : > { %v1997_v1 = vadd.f32 %v11564_v4, %v1475_v13 }
 0x44a   : > { %v3056_v53 = vpop.f32.mrf.mxu0 }
 0x44b   : > { %v9727_v59 = vadd.f32 %v3056_v53, %v2817_v52  ;;  %v3079_v38 = vpop.f32.mrf.mxu1 }
 0x44c   : > { %v9731_v18 = vadd.f32 %v3079_v38, %v2818_v37  ;;  %v11565_v37 = vld [vmem:[#allocation23_spill] sm:$0xff]  ;;  %v2408_v38 = vadd.f32 %v11566_v0, %v1997_v1  ;;  %v7800_v0 = vld [vmem:[%s8962_s2 + $0x1e0] sm:$0xff] }
 0x44d   : > { %v1998_v53 = vadd.f32 %v11565_v37, %v1498_v36  ;;  %v1567_v36 = vadd.f32 %v11580_v49, %v11579_v48  ;;  %v11581_v1 = vld [vmem:[#allocation15_spill] sm:$0xff] }
 0x44f   : > { %v2409_v3 = vadd.f32 %v11567_v19, %v1998_v53  ;;  %v7801_v19 = vld [vmem:[%s8962_s2 + $0x1e8] sm:$0xff] }
 0x452   : > { %v3145_v57 = vpop.f32.mrf.mxu0 }
 0x453   : > { %v9741_v28 = vadd.f32 %v3145_v57, %v2813_v14  ;;  %v3168_v42 = vpop.f32.mrf.mxu1  ;;  %v11568_v14 = vld [vmem:[#allocation35_spill] sm:$0xff] }
 0x454   : > { %v9745_v21 = vadd.f32 %v3168_v42, %v2814_v41  ;;  %v2819_v41 = vadd.f32 %v11568_v14, %v2408_v38  ;;  %v2820_v42 = vadd.f32 %v11569_v27, %v2409_v3  ;;  %v11583_v38 = vld [vmem:[#allocation26_spill] sm:$0xff]  ;;  %v11584_v3 = vld [vmem:[#allocation27_spill] sm:$0xff]  ;;  %v11586_v14 = vld [vmem:[#allocation33_spill] sm:$0xff] }
 0x45a   : > { %v3148_v61 = vpop.f32.mrf.mxu0 }
 0x45b   : > { %v9753_v51 = vadd.f32 %v3148_v61, %v2821_v15  ;;  %v3171_v60 = vpop.f32.mrf.mxu1 }
 0x45c   : > { %v9755_v46 = vadd.f32 %v3171_v60, %v2822_v45  ;;  %v9805_v60 = vld [vmem:[%s11528_s3 + $0x68] sm:$0xff] }
 0x462   : > { %v3262_v31 = vpop.f32.mrf.mxu0 }
 0x463   : > { %v3263_v44 = vadd.f32 %v3262_v31, %v9035_v20  ;;  %v3282_v47 = vpop.f32.mrf.mxu1  ;;  %v7796_v31 = vld [vmem:[%s8962_s2 + $0x1c0] sm:$0xff] }
 0x464   : > { %v3283_v39 = vadd.f32 %v3282_v47, %v9035_v20 }
 0x465   : > { %7770 = vst [vmem:[%s9044_s24 + $0x180] sm:$0xff] %v3263_v44  ;;  %v3099_v40 = vpop.f32.mrf.mxu2  ;;  %vm3417_vm4 = vcmp.gt.f32.partialorder %v3263_v44, 0.0  ;;  %v3425_v56 = vmul.f32 0.2, %v3263_v44 }
 0x466   : > { %7771 = vst [vmem:[%s9044_s24 + $0x188] sm:$0xff] %v3283_v39  ;;  %v9773_v8 = vadd.f32 %v3099_v40, %v2811_v16  ;;  %v3122_v12 = vpop.f32.mrf.mxu3  ;;  %vm3418_vm5 = vcmp.gt.f32.partialorder %v3283_v39, 0.0  ;;  %v3426_v43 = vmul.f32 0.2, %v3283_v39  ;;  %v7797_v16 = vld [vmem:[%s8962_s2 + $0x1c8] sm:$0xff] }
 0x467   : > { %v9782_v9 = vadd.f32 %v3122_v12, %v2812_v29  ;;  %v3433_v17 = vsel %vm3417_vm4, %v3263_v44, %v3425_v56  ;;  %v1993_v44 = vadd.f32 %v11574_v32, %v1564_v10  ;;  %v11576_v29 = vld [vmem:[#allocation30_spill] sm:$0xff]  ;;  %v11577_v56 = vld [vmem:[#allocation31_spill] sm:$0xff] }
 0x468   : > { %3462 = vmatpush.msra.mxu0 %v3433_v17  ;;  %v3434_v52 = vsel %vm3418_vm5, %v3283_v39, %v3426_v43  ;;  %v11575_v39 = vld [vmem:[#allocation25_spill] sm:$0xff] }
 0x469   : > { %3485 = vmatpush.msra.mxu1 %v3434_v52  ;;  %7780 = vmatmul.msk.f32.vlgmr.msra.gmra.mxu0 %vm809_vm0, %v9778_v34  ;;  %v1994_v55 = vadd.f32 %v11575_v39, %v1587_v26  ;;  %v2404_v40 = vadd.f32 %v11576_v29, %v1993_v44  ;;  %v11582_v52 = vld [vmem:[#allocation21_spill] sm:$0xff] }
 0x46a   : > { %7782 = vmatmul.msk.f32.vlgmr.msra.gmra.mxu1 %vm809_vm0, %v9778_v34  ;;  %v3342_v54 = vpop.f32.mrf.mxu0  ;;  %v1590_v37 = vadd.f32 %v11582_v52, %v11581_v1 }
 0x46b   : > { %v3343_v30 = vadd.f32 %v3342_v54, %v9035_v20  ;;  %v3362_v7 = vpop.f32.mrf.mxu1  ;;  %v2405_v23 = vadd.f32 %v11577_v56, %v1994_v55  ;;  %v2815_v13 = vadd.f32 %v11578_v24, %v2404_v40  ;;  %v2001_v54 = vadd.f32 %v11583_v38, %v1567_v36  ;;  %v7798_v56 = vld [vmem:[%s8962_s2 + $0x1d0] sm:$0xff]  ;;  %v7799_v24 = vld [vmem:[%s8962_s2 + $0x1d8] sm:$0xff] }
 0x46c   : > { %v3363_v57 = vadd.f32 %v3362_v7, %v9035_v20 }
 0x46d   : > { %7774 = vst [vmem:[%s9044_s24 + $0x1a0] sm:$0xff] %v3343_v30  ;;  %v3102_v58 = vpop.f32.mrf.mxu2  ;;  %vm3421_vm6 = vcmp.gt.f32.partialorder %v3343_v30, 0.0  ;;  %v3429_v22 = vmul.f32 0.2, %v3343_v30  ;;  %v2816_v12 = vadd.f32 %v9636_v63, %v2405_v23  ;;  %v11585_v63 = vld [vmem:[#allocation32_spill] sm:$0xff] }
 0x46e   : > { %7775 = vst [vmem:[%s9044_s24 + $0x1a8] sm:$0xff] %v3363_v57  ;;  %v9800_v15 = vadd.f32 %v3102_v58, %v2819_v41  ;;  %v3125_v45 = vpop.f32.mrf.mxu3  ;;  %vm3422_vm7 = vcmp.gt.f32.partialorder %v3363_v57, 0.0  ;;  %v3430_v61 = vmul.f32 0.2, %v3363_v57  ;;  %v2412_v7 = vadd.f32 %v11585_v63, %v2001_v54 }
 0x46f   : > { %v9809_v11 = vadd.f32 %v3125_v45, %v2820_v42  ;;  %v3437_v2 = vsel %vm3421_vm6, %v3343_v30, %v3429_v22  ;;  %v2002_v30 = vadd.f32 %v11584_v3, %v1590_v37  ;;  %v11588_v42 = vld [vmem:[#allocation39_spill] sm:$0xff] }
 0x470   : > { %3554 = vmatpush.msrb.mxu0 %v3437_v2  ;;  %v3438_v47 = vsel %vm3422_vm7, %v3363_v57, %v3430_v61  ;;  %v11587_v57 = vld [vmem:[#allocation38_spill] sm:$0xff] }
 0x471   : > { %3577 = vmatpush.msrb.mxu1 %v3438_v47  ;;  %7781 = vmatmul.msk.f32.gmra.mxu0 %vm809_vm0, %v9805_v60  ;;  %v2413_v41 = vadd.f32 %v11586_v14, %v2002_v30  ;;  %v2823_v27 = vadd.f32 %v11587_v57, %v2412_v7 }
 0x472   : > { %7783 = vmatmul.msk.f32.gmra.mxu1 %vm809_vm0, %v9805_v60  ;;  %3671 = vmatpush.msra.mxu0 %v7796_v31 }
 0x473   : > { %3691 = vmatpush.msra.mxu1 %v7797_v16  ;;  %v2824_v58 = vadd.f32 %v11588_v42, %v2413_v41 }
 0x475   : > { %v3191_v43 = vpop.f32.mrf.mxu2 }
 0x476   : > { %v9825_v17 = vadd.f32 %v3191_v43, %v2815_v13  ;;  %v3214_v4 = vpop.f32.mrf.mxu3  ;;  %v7802_v13 = vld [vmem:[%s8962_s2 + $0x1f0] sm:$0xff] }
 0x477   : > { %v9829_v53 = vadd.f32 %v3214_v4, %v2816_v12  ;;  %v7803_v12 = vld [vmem:[%s8962_s2 + $0x1f8] sm:$0xff]  ;;  %s8243_s2 = sshll.u32 %s8619_s29, 7 }
 0x478   : > { %s10007_s27 = scalar_lea.vmem [#allocation2], %s8243_s2 }
 0x479   : > { %7788 = vmatmul.msk.f32.vlgmr.msrb.gmra.mxu0 %vm809_vm0, %v9778_v34 }
 0x47a   : > { %7790 = vmatmul.msk.f32.vlgmr.msrb.gmra.mxu1 %vm809_vm0, %v9778_v34  ;;  %3751 = vmatpush.msrb.mxu0 %v7800_v0 }
 0x47b   : > { %3771 = vmatpush.msrb.mxu1 %v7801_v19 }
 0x47d   : > { %v3194_v22 = vpop.f32.mrf.mxu2 }
 0x47e   : > { %v9843_v5 = vadd.f32 %v3194_v22, %v2823_v27  ;;  %v3217_v6 = vpop.f32.mrf.mxu3 }
 0x47f   : > { %v9845_v10 = vadd.f32 %v3217_v6, %v2824_v58 }
 0x481   : > { %7789 = vmatmul.msk.f32.gmra.mxu0 %vm809_vm0, %v9805_v60 }
 0x482   : > { %7791 = vmatmul.msk.f32.gmra.mxu1 %vm809_vm0, %v9805_v60 }
 0x485   : > { %v3302_v45 = vpop.f32.mrf.mxu2 }
 0x486   : > { %v3303_v61 = vadd.f32 %v3302_v45, %v9035_v20  ;;  %v3322_v62 = vpop.f32.mrf.mxu3 }
 0x487   : > { %v3323_v25 = vadd.f32 %v3322_v62, %v9035_v20 }
 0x488   : > { %7772 = vst [vmem:[%s9044_s24 + $0x190] sm:$0xff] %v3303_v61  ;;  %vm3419_vm8 = vcmp.gt.f32.partialorder %v3303_v61, 0.0  ;;  %v3427_v26 = vmul.f32 0.2, %v3303_v61 }
 0x489   : > { %7773 = vst [vmem:[%s9044_s24 + $0x198] sm:$0xff] %v3323_v25  ;;  %7804 = vmatmul.msk.f32.vlgmr.msra.gmra.mxu0 %vm809_vm0, %v9559_v33  ;;  %vm3420_vm9 = vcmp.gt.f32.partialorder %v3323_v25, 0.0  ;;  %v3428_v2 = vmul.f32 0.2, %v3323_v25 }
 0x48a   : > { %7805 = vmatmul.msk.f32.vlgmr.msra.gmra.mxu1 %vm809_vm0, %v9559_v33  ;;  %v3435_v31 = vsel %vm3419_vm8, %v3303_v61, %v3427_v26  ;;  %v7821_v61 = vld [vmem:[%s11528_s3 + $0x78] sm:$0xff] }
 0x48b   : > { %3508 = vmatpush.msra.mxu2 %v3435_v31  ;;  %v3436_v32 = vsel %vm3420_vm9, %v3323_v25, %v3428_v2 }
 0x48c   : > { %3531 = vmatpush.msra.mxu3 %v3436_v32  ;;  %7784 = vmatmul.msk.f32.vlgmr.msra.gmra.mxu2 %vm809_vm0, %v9778_v34 }
 0x48d   : > { %7786 = vmatmul.msk.f32.vlgmr.msra.gmra.mxu3 %vm809_vm0, %v9778_v34  ;;  %v3382_v44 = vpop.f32.mrf.mxu2 }
 0x48e   : > { %v3383_v47 = vadd.f32 %v3382_v44, %v9035_v20  ;;  %v3402_v16 = vpop.f32.mrf.mxu3 }
 0x48f   : > { %v3403_v39 = vadd.f32 %v3402_v16, %v9035_v20 }
 0x490   : > { %7776 = vst [vmem:[%s9044_s24 + $0x1b0] sm:$0xff] %v3383_v47  ;;  %vm3423_vm10 = vcmp.gt.f32.partialorder %v3383_v47, 0.0  ;;  %v3431_v55 = vmul.f32 0.2, %v3383_v47 }
 0x491   : > { %7777 = vst [vmem:[%s9044_s24 + $0x1b8] sm:$0xff] %v3403_v39  ;;  %7808 = vmatmul.msk.f32.vlgmr.msrb.gmra.mxu0 %vm809_vm0, %v9559_v33  ;;  %vm3424_vm11 = vcmp.gt.f32.partialorder %v3403_v39, 0.0  ;;  %v3432_v29 = vmul.f32 0.2, %v3403_v39 }
 0x492   : > { %7809 = vmatmul.msk.f32.vlgmr.msrb.gmra.mxu1 %vm809_vm0, %v9559_v33  ;;  %v3439_v40 = vsel %vm3423_vm10, %v3383_v47, %v3431_v55 }
 0x493   : > { %3600 = vmatpush.msrb.mxu2 %v3439_v40  ;;  %v3440_v23 = vsel %vm3424_vm11, %v3403_v39, %v3432_v29 }
 0x494   : > { %3623 = vmatpush.msrb.mxu3 %v3440_v23  ;;  %7785 = vmatmul.msk.f32.gmra.mxu2 %vm809_vm0, %v9805_v60 }
 0x495   : > { %7787 = vmatmul.msk.f32.gmra.mxu3 %vm809_vm0, %v9805_v60  ;;  %3711 = vmatpush.msra.mxu2 %v7798_v56 }
 0x496   : > { %3731 = vmatpush.msra.mxu3 %v7799_v24 }
 0x49c   : > { %7792 = vmatmul.msk.f32.vlgmr.msrb.gmra.mxu2 %vm809_vm0, %v9778_v34 }
 0x49d   : > { %7794 = vmatmul.msk.f32.vlgmr.msrb.gmra.mxu3 %vm809_vm0, %v9778_v34  ;;  %3791 = vmatpush.msrb.mxu2 %v7802_v13 }
 0x49e   : > { %3811 = vmatpush.msrb.mxu3 %v7803_v12 }
 0x4a4   : > { %7793 = vmatmul.msk.f32.gmra.mxu2 %vm809_vm0, %v9805_v60 }
 0x4a5   : > { %7795 = vmatmul.msk.f32.gmra.mxu3 %vm809_vm0, %v9805_v60 }
 0x4ac   : > { %7806 = vmatmul.msk.f32.vlgmr.msra.gmra.mxu2 %vm809_vm0, %v9559_v33 }
 0x4ad   : > { %7807 = vmatmul.msk.f32.vlgmr.msra.gmra.mxu3 %vm809_vm0, %v9559_v33 }
 0x4b4   : > { %7810 = vmatmul.msk.f32.vlgmr.msrb.gmra.mxu2 %vm809_vm0, %v9559_v33 }
 0x4b5   : > { %7811 = vmatmul.msk.f32.vlgmr.msrb.gmra.mxu3 %vm809_vm0, %v9559_v33 }
 0x4e6   : > { %v3464_v34 = vpop.f32.mrf.mxu0 }
 0x4e7   : > { %v9896_v43 = vadd.f32 %v3464_v34, %v9713_v35  ;;  %v3487_v48 = vpop.f32.mrf.mxu1 }
 0x4e8   : > { %v9899_v49 = vadd.f32 %v3487_v48, %v9717_v50 }
 0x4ee   : > { %v3467_v60 = vpop.f32.mrf.mxu0 }
 0x4ef   : > { %v9902_v36 = vadd.f32 %v3467_v60, %v9727_v59  ;;  %v3490_v4 = vpop.f32.mrf.mxu1 }
 0x4f0   : > { %v9905_v1 = vadd.f32 %v3490_v4, %v9731_v18  ;;  %v4059_v18 = vld [vmem:[%s11527_s4 + $0x8] sm:$0xff]  ;;  %s11591_s4 = sld [smem:[#allocation46_spill]] (!%p7840_p13) }
 0x4f1   : > { %4067 = vperm.xlu1 %8316, %v4059_v18  }
 0x4f6   : > { %v3556_v52 = vpop.f32.mrf.mxu0 }
 0x4f7   : > { %v9908_v33 = vadd.f32 %v3556_v52, %v9741_v28  ;;  %v3579_v35 = vpop.f32.mrf.mxu1 }
 0x4f8   : > { %v9911_v37 = vadd.f32 %v3579_v35, %v9745_v21 }
 0x4fe   : > { %v3559_v50 = vpop.f32.mrf.mxu0 }
 0x4ff   : > { %v9914_v0 = vadd.f32 %v3559_v50, %v9753_v51  ;;  %v3582_v59 = vpop.f32.mrf.mxu1  ;;  %v9997_v50 = vpop.permute.xlu0 %4062 }
 0x500   : > { %v9917_v38 = vadd.f32 %v3582_v59, %v9755_v46  ;;  %v9929_v46 = vld [vmem:[%s11528_s3 + $0x70] sm:$0xff]  ;;  %s8642_s3 = smov (!%p7840_p13), 116  }
 0x506   : > { %v3673_v28 = vpop.f32.mrf.mxu0 }
 0x507   : > { %v3674_v54 = vadd.f32 %v3673_v28, %v9035_v20  ;;  %v3693_v19 = vpop.f32.mrf.mxu1 }
 0x508   : > { %v3694_v21 = vadd.f32 %v3693_v19, %v9035_v20 }
 0x509   : > { %7812 = vst [vmem:[%s9044_s24 + $0x1c0] sm:$0xff] %v3674_v54  ;;  %vm3828_vm12 = vcmp.gt.f32.partialorder %v3674_v54, 0.0  ;;  %v3836_v3 = vmul.f32 0.2, %v3674_v54 }
 0x50a   : > { %7813 = vst [vmem:[%s9044_s24 + $0x1c8] sm:$0xff] %v3694_v21  ;;  %vm3829_vm13 = vcmp.gt.f32.partialorder %v3694_v21, 0.0  ;;  %v3837_v51 = vmul.f32 0.2, %v3694_v21 }
 0x50b   : > { %v3844_v30 = vsel %vm3828_vm12, %v3674_v54, %v3836_v3 }
 0x50c   : > { %3873 = vmatpush.msra.mxu0 %v3844_v30  ;;  %v3845_v63 = vsel %vm3829_vm13, %v3694_v21, %v3837_v51 }
 0x50d   : > { %3896 = vmatpush.msra.mxu1 %v3845_v63  ;;  %7822 = vmatmul.msk.f32.vlgmr.msra.gmra.mxu0 %vm809_vm0, %v9929_v46 }
 0x50e   : > { %7824 = vmatmul.msk.f32.vlgmr.msra.gmra.mxu1 %vm809_vm0, %v9929_v46  ;;  %v3753_v7 = vpop.f32.mrf.mxu0 }
 0x50f   : > { %v3754_v14 = vadd.f32 %v3753_v7, %v9035_v20  ;;  %v3773_v41 = vpop.f32.mrf.mxu1  ;;  %v3510_v57 = vpop.f32.mrf.mxu2 }
 0x510   : > { %v3774_v27 = vadd.f32 %v3773_v41, %v9035_v20  ;;  %v9938_v42 = vadd.f32 %v3510_v57, %v9773_v8  ;;  %v3533_v58 = vpop.f32.mrf.mxu3 }
 0x511   : > { %7816 = vst [vmem:[%s9044_s24 + $0x1e0] sm:$0xff] %v3754_v14  ;;  %v9942_v22 = vadd.f32 %v3533_v58, %v9782_v9  ;;  %vm3832_vm14 = vcmp.gt.f32.partialorder %v3754_v14, 0.0  ;;  %v3840_v6 = vmul.f32 0.2, %v3754_v14 }
 0x512   : > { %7817 = vst [vmem:[%s9044_s24 + $0x1e8] sm:$0xff] %v3774_v27  ;;  %vm3833_vm15 = vcmp.gt.f32.partialorder %v3774_v27, 0.0  ;;  %v3841_v45 = vmul.f32 0.2, %v3774_v27 }
 0x513   : > { %v3848_v62 = vsel %vm3832_vm14, %v3754_v14, %v3840_v6 }
 0x514   : > { %3965 = vmatpush.msrb.mxu0 %v3848_v62  ;;  %v3849_v25 = vsel %vm3833_vm15, %v3774_v27, %v3841_v45 }
 0x515   : > { %3988 = vmatpush.msrb.mxu1 %v3849_v25  ;;  %7823 = vmatmul.msk.f32.gmra.mxu0 %vm809_vm0, %v7821_v61 }
 0x516   : > { %7825 = vmatmul.msk.f32.gmra.mxu1 %vm809_vm0, %v7821_v61 }
 0x517   : > { %v3513_v8 = vpop.f32.mrf.mxu2 }
 0x518   : > { %v9951_v9 = vadd.f32 %v3513_v8, %v9800_v15  ;;  %v3536_v26 = vpop.f32.mrf.mxu3 }
 0x519   : > { %v9954_v2 = vadd.f32 %v3536_v26, %v9809_v11 }
 0x51d   : > { %7830 = vmatmul.msk.f32.vlgmr.msrb.gmra.mxu0 %vm809_vm0, %v9929_v46 }
 0x51e   : > { %7832 = vmatmul.msk.f32.vlgmr.msrb.gmra.mxu1 %vm809_vm0, %v9929_v46 }
 0x51f   : > { %v3602_v31 = vpop.f32.mrf.mxu2 }
 0x520   : > { %v9961_v32 = vadd.f32 %v3602_v31, %v9825_v17  ;;  %v3625_v44 = vpop.f32.mrf.mxu3 }
 0x521   : > { %v9964_v15 = vadd.f32 %v3625_v44, %v9829_v53 }
 0x525   : > { %7831 = vmatmul.msk.f32.gmra.mxu0 %vm809_vm0, %v7821_v61 }
 0x526   : > { %7833 = vmatmul.msk.f32.gmra.mxu1 %vm809_vm0, %v7821_v61 }
 0x527   : > { %v3605_v11 = vpop.f32.mrf.mxu2 }
 0x528   : > { %v9969_v47 = vadd.f32 %v3605_v11, %v9843_v5  ;;  %v3628_v16 = vpop.f32.mrf.mxu3 }
 0x529   : > { %v9972_v39 = vadd.f32 %v3628_v16, %v9845_v10 }
 0x52f   : > { %v3713_v55 = vpop.f32.mrf.mxu2 }
 0x530   : > { %v3714_v17 = vadd.f32 %v3713_v55, %v9035_v20  ;;  %v3733_v29 = vpop.f32.mrf.mxu3 }
 0x531   : > { %v3734_v40 = vadd.f32 %v3733_v29, %v9035_v20 }
 0x532   : > { %7814 = vst [vmem:[%s9044_s24 + $0x1d0] sm:$0xff] %v3714_v17  ;;  %vm3830_vm1 = vcmp.gt.f32.partialorder %v3714_v17, 0.0  ;;  %v3838_v53 = vmul.f32 0.2, %v3714_v17 }
 0x533   : > { %7815 = vst [vmem:[%s9044_s24 + $0x1d8] sm:$0xff] %v3734_v40  ;;  %vm3831_vm2 = vcmp.gt.f32.partialorder %v3734_v40, 0.0  ;;  %v3839_v56 = vmul.f32 0.2, %v3734_v40 }
 0x534   : > { %v3846_v5 = vsel %vm3830_vm1, %v3714_v17, %v3838_v53 }
 0x535   : > { %3919 = vmatpush.msra.mxu2 %v3846_v5  ;;  %v3847_v23 = vsel %vm3831_vm2, %v3734_v40, %v3839_v56 }
 0x536   : > { %3942 = vmatpush.msra.mxu3 %v3847_v23  ;;  %7826 = vmatmul.msk.f32.vlgmr.msra.gmra.mxu2 %vm809_vm0, %v9929_v46 }
 0x537   : > { %7828 = vmatmul.msk.f32.vlgmr.msra.gmra.mxu3 %vm809_vm0, %v9929_v46  ;;  %v3793_v10 = vpop.f32.mrf.mxu2 }
 0x538   : > { %v3794_v24 = vadd.f32 %v3793_v10, %v9035_v20  ;;  %v3813_v13 = vpop.f32.mrf.mxu3 }
 0x539   : > { %v3814_v12 = vadd.f32 %v3813_v13, %v9035_v20 }
 0x53a   : > { %7818 = vst [vmem:[%s9044_s24 + $0x1f0] sm:$0xff] %v3794_v24  ;;  %vm3834_vm3 = vcmp.gt.f32.partialorder %v3794_v24, 0.0  ;;  %v3842_v34 = vmul.f32 0.2, %v3794_v24 }
 0x53b   : > { %7819 = vst [vmem:[%s9044_s24 + $0x1f8] sm:$0xff] %v3814_v12  ;;  %vm3835_vm4 = vcmp.gt.f32.partialorder %v3814_v12, 0.0  ;;  %v3843_v48 = vmul.f32 0.2, %v3814_v12 }
 0x53c   : > { %v3850_v60 = vsel %vm3834_vm3, %v3794_v24, %v3842_v34 }
 0x53d   : > { %4011 = vmatpush.msrb.mxu2 %v3850_v60  ;;  %v3851_v4 = vsel %vm3835_vm4, %v3814_v12, %v3843_v48 }
 0x53e   : > { %4034 = vmatpush.msrb.mxu3 %v3851_v4  ;;  %7827 = vmatmul.msk.f32.gmra.mxu2 %vm809_vm0, %v7821_v61 }
 0x53f   : > { %7829 = vmatmul.msk.f32.gmra.mxu3 %vm809_vm0, %v7821_v61 }
 0x546   : > { %7834 = vmatmul.msk.f32.vlgmr.msrb.gmra.mxu2 %vm809_vm0, %v9929_v46 }
 0x547   : > { %7836 = vmatmul.msk.f32.vlgmr.msrb.gmra.mxu3 %vm809_vm0, %v9929_v46 }
 0x54e   : > { %7835 = vmatmul.msk.f32.gmra.mxu2 %vm809_vm0, %v7821_v61 }
 0x54f   : > { %7837 = vmatmul.msk.f32.gmra.mxu3 %vm809_vm0, %v7821_v61 }
 0x563   : > { %v10010_v3 = vpop.permute.xlu1 %4067 }
 0x58a   : > { %v3875_v20 = vpop.f32.mrf.mxu0 }
 0x58b   : > { %v4042_v52 = vadd.f32 %v3875_v20, %v9896_v43  ;;  %v3898_v35 = vpop.f32.mrf.mxu1 }
 0x58c   : > { %v4043_v59 = vadd.f32 %v3898_v35, %v9899_v49 }
 0x58d   : > { %v4070_v18 = vadd.f32 %v9997_v50, %v4042_v52 }
 0x58e   : > { %v4071_v28 = vadd.f32 %v9997_v50, %v4043_v59 }
 0x58f   : > { %4086 = vst [vmem:[%s10003_s23] sm:$0xff] %v4070_v18  ;;  %vm4102_vm0 = vcmp.gt.f32.partialorder %v4070_v18, 0.0  ;;  %v4118_v54 = vmul.f32 0.2, %v4070_v18 }
 0x590   : > { %4087 = vst [vmem:[%s10003_s23 + $0x8] sm:$0xff] %v4071_v28  ;;  %vm4103_vm5 = vcmp.gt.f32.partialorder %v4071_v28, 0.0  ;;  %v4119_v43 = vmul.f32 0.2, %v4071_v28 }
 0x591   : > { %v4134_v19 = vsel %vm4102_vm0, %v4070_v18, %v4118_v54 }
 0x592   : > { %4153 = vst [vmem:[%s10007_s27] sm:$0xff] %v4134_v19  ;;  %v4135_v49 = vsel %vm4103_vm5, %v4071_v28, %v4119_v43  ;;  %v3878_v21 = vpop.f32.mrf.mxu0 }
 0x593   : > { %4154 = vst [vmem:[%s10007_s27 + $0x8] sm:$0xff] %v4135_v49  ;;  %v4050_v51 = vadd.f32 %v3878_v21, %v9902_v36  ;;  %v3901_v46 = vpop.f32.mrf.mxu1 }
 0x594   : > { %v4051_v30 = vadd.f32 %v3901_v46, %v9905_v1 }
 0x595   : > { %v4078_v63 = vadd.f32 %v10010_v3, %v4050_v51 }
 0x596   : > { %v4079_v7 = vadd.f32 %v10010_v3, %v4051_v30 }
 0x597   : > { %4094 = vst [vmem:[%s10003_s23 + $0x40] sm:$0xff] %v4078_v63  ;;  %vm4110_vm6 = vcmp.gt.f32.partialorder %v4078_v63, 0.0  ;;  %v4126_v14 = vmul.f32 0.2, %v4078_v63 }
 0x598   : > { %4095 = vst [vmem:[%s10003_s23 + $0x48] sm:$0xff] %v4079_v7  ;;  %vm4111_vm7 = vcmp.gt.f32.partialorder %v4079_v7, 0.0  ;;  %v4127_v41 = vmul.f32 0.2, %v4079_v7 }
 0x599   : > { %v4142_v57 = vsel %vm4110_vm6, %v4078_v63, %v4126_v14 }
 0x59a   : > { %v4143_v27 = vsel %vm4111_vm7, %v4079_v7, %v4127_v41  ;;  %4161 = vst [vmem:[%s10007_s27 + $0x40] sm:$0xff] %v4142_v57  ;;  %v3967_v36 = vpop.f32.mrf.mxu0 }
 0x59b   : > { %4162 = vst [vmem:[%s10007_s27 + $0x48] sm:$0xff] %v4143_v27  ;;  %v4046_v1 = vadd.f32 %v3967_v36, %v9908_v33  ;;  %v3990_v58 = vpop.f32.mrf.mxu1 }
 0x59c   : > { %v4047_v6 = vadd.f32 %v3990_v58, %v9911_v37 }
 0x59d   : > { %v4074_v45 = vadd.f32 %v9997_v50, %v4046_v1 }
 0x59e   : > { %v4075_v61 = vadd.f32 %v9997_v50, %v4047_v6 }
 0x59f   : > { %4090 = vst [vmem:[%s10003_s23 + $0x20] sm:$0xff] %v4074_v45  ;;  %vm4106_vm8 = vcmp.gt.f32.partialorder %v4074_v45, 0.0  ;;  %v4122_v62 = vmul.f32 0.2, %v4074_v45 }
 0x5a0   : > { %4091 = vst [vmem:[%s10003_s23 + $0x28] sm:$0xff] %v4075_v61  ;;  %vm4107_vm9 = vcmp.gt.f32.partialorder %v4075_v61, 0.0  ;;  %v4123_v25 = vmul.f32 0.2, %v4075_v61 }
 0x5a1   : > { %v4138_v8 = vsel %vm4106_vm8, %v4074_v45, %v4122_v62 }
 0x5a2   : > { %4157 = vst [vmem:[%s10007_s27 + $0x20] sm:$0xff] %v4138_v8  ;;  %v4139_v26 = vsel %vm4107_vm9, %v4075_v61, %v4123_v25  ;;  %v3970_v33 = vpop.f32.mrf.mxu0 }
 0x5a3   : > { %4158 = vst [vmem:[%s10007_s27 + $0x28] sm:$0xff] %v4139_v26  ;;  %v4054_v37 = vadd.f32 %v3970_v33, %v9914_v0  ;;  %v3993_v31 = vpop.f32.mrf.mxu1 }
 0x5a4   : > { %v4055_v44 = vadd.f32 %v3993_v31, %v9917_v38 }
 0x5a5   : > { %v4082_v11 = vadd.f32 %v10010_v3, %v4054_v37 }
 0x5a6   : > { %v4083_v16 = vadd.f32 %v10010_v3, %v4055_v44 }
 0x5a7   : > { %4098 = vst [vmem:[%s10003_s23 + $0x60] sm:$0xff] %v4082_v11  ;;  %vm4114_vm10 = vcmp.gt.f32.partialorder %v4082_v11, 0.0  ;;  %v4130_v55 = vmul.f32 0.2, %v4082_v11 }
 0x5a8   : > { %4099 = vst [vmem:[%s10003_s23 + $0x68] sm:$0xff] %v4083_v16  ;;  %vm4115_vm11 = vcmp.gt.f32.partialorder %v4083_v16, 0.0  ;;  %v4131_v17 = vmul.f32 0.2, %v4083_v16 }
 0x5a9   : > { %v4146_v29 = vsel %vm4114_vm10, %v4082_v11, %v4130_v55 }
 0x5aa   : > { %4165 = vst [vmem:[%s10007_s27 + $0x60] sm:$0xff] %v4146_v29  ;;  %v4147_v40 = vsel %vm4115_vm11, %v4083_v16, %v4131_v17 }
 0x5ab   : > { %4166 = vst [vmem:[%s10007_s27 + $0x68] sm:$0xff] %v4147_v40 }
 0x5b9   : > { %v3921_v0 = vpop.f32.mrf.mxu2 }
 0x5ba   : > { %v4044_v38 = vadd.f32 %v3921_v0, %v9938_v42  ;;  %v3944_v53 = vpop.f32.mrf.mxu3 }
 0x5bb   : > { %v4045_v56 = vadd.f32 %v3944_v53, %v9942_v22 }
 0x5bc   : > { %v4072_v5 = vadd.f32 %v9997_v50, %v4044_v38 }
 0x5bd   : > { %v4073_v23 = vadd.f32 %v9997_v50, %v4045_v56 }
 0x5be   : > { %4088 = vst [vmem:[%s10003_s23 + $0x10] sm:$0xff] %v4072_v5  ;;  %vm4104_vm12 = vcmp.gt.f32.partialorder %v4072_v5, 0.0  ;;  %v4120_v10 = vmul.f32 0.2, %v4072_v5 }
 0x5bf   : > { %4089 = vst [vmem:[%s10003_s23 + $0x18] sm:$0xff] %v4073_v23  ;;  %vm4105_vm13 = vcmp.gt.f32.partialorder %v4073_v23, 0.0  ;;  %v4121_v24 = vmul.f32 0.2, %v4073_v23 }
 0x5c0   : > { %v4136_v13 = vsel %vm4104_vm12, %v4072_v5, %v4120_v10 }
 0x5c1   : > { %4155 = vst [vmem:[%s10007_s27 + $0x10] sm:$0xff] %v4136_v13  ;;  %v4137_v12 = vsel %vm4105_vm13, %v4073_v23, %v4121_v24  ;;  %v3924_v42 = vpop.f32.mrf.mxu2 }
 0x5c2   : > { %4156 = vst [vmem:[%s10007_s27 + $0x18] sm:$0xff] %v4137_v12  ;;  %v4052_v22 = vadd.f32 %v3924_v42, %v9951_v9  ;;  %v3947_v34 = vpop.f32.mrf.mxu3 }
 0x5c3   : > { %v4053_v48 = vadd.f32 %v3947_v34, %v9954_v2 }
 0x5c4   : > { %v4080_v60 = vadd.f32 %v10010_v3, %v4052_v22 }
 0x5c5   : > { %v4081_v4 = vadd.f32 %v10010_v3, %v4053_v48 }
 0x5c6   : > { %4096 = vst [vmem:[%s10003_s23 + $0x50] sm:$0xff] %v4080_v60  ;;  %vm4112_vm14 = vcmp.gt.f32.partialorder %v4080_v60, 0.0  ;;  %v4128_v20 = vmul.f32 0.2, %v4080_v60 }
 0x5c7   : > { %4097 = vst [vmem:[%s10003_s23 + $0x58] sm:$0xff] %v4081_v4  ;;  %vm4113_vm15 = vcmp.gt.f32.partialorder %v4081_v4, 0.0  ;;  %v4129_v52 = vmul.f32 0.2, %v4081_v4 }
 0x5c8   : > { %v4144_v35 = vsel %vm4112_vm14, %v4080_v60, %v4128_v20 }
 0x5c9   : > { %4163 = vst [vmem:[%s10007_s27 + $0x50] sm:$0xff] %v4144_v35  ;;  %v4145_v59 = vsel %vm4113_vm15, %v4081_v4, %v4129_v52  ;;  %v4013_v9 = vpop.f32.mrf.mxu2 }
 0x5ca   : > { %4164 = vst [vmem:[%s10007_s27 + $0x58] sm:$0xff] %v4145_v59  ;;  %v4048_v2 = vadd.f32 %v4013_v9, %v9961_v32  ;;  %v4036_v18 = vpop.f32.mrf.mxu3 }
 0x5cb   : > { %v4049_v28 = vadd.f32 %v4036_v18, %v9964_v15 }
 0x5cc   : > { %v4076_v54 = vadd.f32 %v9997_v50, %v4048_v2 }
 0x5cd   : > { %v4077_v43 = vadd.f32 %v9997_v50, %v4049_v28 }
 0x5ce   : > { %4092 = vst [vmem:[%s10003_s23 + $0x30] sm:$0xff] %v4076_v54  ;;  %vm4108_vm1 = vcmp.gt.f32.partialorder %v4076_v54, 0.0  ;;  %v4124_v19 = vmul.f32 0.2, %v4076_v54 }
 0x5cf   : > { %4093 = vst [vmem:[%s10003_s23 + $0x38] sm:$0xff] %v4077_v43  ;;  %vm4109_vm2 = vcmp.gt.f32.partialorder %v4077_v43, 0.0  ;;  %v4125_v49 = vmul.f32 0.2, %v4077_v43 }
 0x5d0   : > { %v4140_v21 = vsel %vm4108_vm1, %v4076_v54, %v4124_v19 }
 0x5d1   : > { %4159 = vst [vmem:[%s10007_s27 + $0x30] sm:$0xff] %v4140_v21  ;;  %v4141_v51 = vsel %vm4109_vm2, %v4077_v43, %v4125_v49  ;;  %v4016_v32 = vpop.f32.mrf.mxu2 }
 0x5d2   : > { %4160 = vst [vmem:[%s10007_s27 + $0x38] sm:$0xff] %v4141_v51  ;;  %v4056_v15 = vadd.f32 %v4016_v32, %v9969_v47  ;;  %v4039_v46 = vpop.f32.mrf.mxu3 }
 0x5d3   : > { %v4057_v50 = vadd.f32 %v4039_v46, %v9972_v39 }
 0x5d4   : > { %v4084_v30 = vadd.f32 %v10010_v3, %v4056_v15 }
 0x5d5   : > { %v4085_v63 = vadd.f32 %v10010_v3, %v4057_v50 }
 0x5d6   : > { %4100 = vst [vmem:[%s10003_s23 + $0x70] sm:$0xff] %v4084_v30  ;;  %vm4116_vm3 = vcmp.gt.f32.partialorder %v4084_v30, 0.0  ;;  %v4132_v7 = vmul.f32 0.2, %v4084_v30  ;;  %4172 = sbr.rel (%p7840_p13) target bundleno = 2895 (0xb4f), region = 99 }
 0x5d7   : > { %4101 = vst [vmem:[%s10003_s23 + $0x78] sm:$0xff] %v4085_v63  ;;  %vm4117_vm4 = vcmp.gt.f32.partialorder %v4085_v63, 0.0  ;;  %v4133_v14 = vmul.f32 0.2, %v4085_v63 }
 0x5d8   : > { %v4148_v41 = vsel %vm4116_vm3, %v4084_v30, %v4132_v7 }
 0x5d9   : > { %4167 = vst [vmem:[%s10007_s27 + $0x70] sm:$0xff] %v4148_v41  ;;  %v4149_v57 = vsel %vm4117_vm4, %v4085_v63, %v4133_v14 }
 0x5da   : > { %4168 = vst [vmem:[%s10007_s27 + $0x78] sm:$0xff] %v4149_v57  ;;  %s8644_s27 = smov (!%p7840_p13), 120  }
 0x5db   : > { %v7841_v45 = vld [vmem:[%s11484_s5 + $0x20] sm:$0xff]  ;;  %vm4198_vm0 = vcmask 130048   ;;  %v7842_v11 = vld [vmem:[%s11484_s5 + $0x28] sm:$0xff]  ;;  %v7843_v55 = vld [vmem:[%s11484_s5 + $0x30] sm:$0xff]  ;;  %v8638_v51 = vmov 0   ;;  %vm4951_vm13 = vcmask 261120  }
 0x5dc   : > { %v4189_v61 = vld [vmem:[%s11484_s5] sm:$0xff]  ;;  %v4190_v16 = vld [vmem:[%s11484_s5 + $0x8] sm:$0xff]  ;;  %v4191_v17 = vld [vmem:[%s11484_s5 + $0x10] sm:$0xff]  ;;  %8319 = vset.pattern.permute.xlu1 %v8638_v51  ;;  %8318 = vset.pattern.permute.xlu0 %v8638_v51 }
 0x5dd   : > { %v7844_v29 = vld [vmem:[%s11484_s5 + $0x38] sm:$0xff]  ;;  %v7861_v13 = vld [vmem:[%s11484_s5 + $0x40] sm:$0xff]  ;;  %v7862_v42 = vld [vmem:[%s11484_s5 + $0x48] sm:$0xff]  ;;  %8380 = vset.pattern.permute.xlu2 %v8638_v51 }
 0x5de   : > { %v4192_v40 = vld [vmem:[%s11484_s5 + $0x18] sm:$0xff]  ;;  %v7873_v12 = vld [vmem:[%s11484_s5 + $0x60] sm:$0xff]  ;;  %v7874_v22 = vld [vmem:[%s11484_s5 + $0x68] sm:$0xff] }
 0x5df   : > { %v7863_v34 = vld [vmem:[%s11484_s5 + $0x50] sm:$0xff]  ;;  %v7864_v60 = vld [vmem:[%s11484_s5 + $0x58] sm:$0xff]  ;;  %v7885_v54 = vld [vmem:[%s11484_s5 + $0x80] sm:$0xff] }
 0x5e0   : > { %v7875_v48 = vld [vmem:[%s11484_s5 + $0x70] sm:$0xff]  ;;  %v7876_v4 = vld [vmem:[%s11484_s5 + $0x78] sm:$0xff]  ;;  %v7897_v43 = vld [vmem:[%s11484_s5 + $0xa0] sm:$0xff] }
 0x5e1   : > { %v4183_v47 = vld [vmem:[#allocation2 + $0x50] sm:$0xff]  ;;  %v4184_v27 = vld [vmem:[#allocation2 + $0x58] sm:$0xff]  ;;  %v4181_v39 = vld [vmem:[#allocation2 + $0x40] sm:$0xff] }
 0x5e2   : > { %4225 = vmatpush.msra.mxu0 %v4183_v47  ;;  %4254 = vmatpush.msra.mxu1 %v4184_v27  ;;  %v4182_v36 = vld [vmem:[#allocation2 + $0x48] sm:$0xff]  ;;  %v4175_v3 = vld [vmem:[#allocation2 + $0x10] sm:$0xff]  ;;  %v4176_v1 = vld [vmem:[#allocation2 + $0x18] sm:$0xff] }
 0x5e3   : > { %4295 = vmatpush.msra.mxu2 %v4181_v39  ;;  %4324 = vmatpush.msra.mxu3 %v4182_v36  ;;  %v4173_v58 = vld [vmem:[#allocation2] sm:$0xff]  ;;  %v4174_v6 = vld [vmem:[#allocation2 + $0x8] sm:$0xff]  ;;  %v4187_v8 = vld [vmem:[#allocation2 + $0x70] sm:$0xff] }
 0x5e4   : > { %4226 = vmatpush.msra.mxu0 %v4175_v3  ;;  %4255 = vmatpush.msra.mxu1 %v4176_v1  ;;  %v4185_v62 = vld [vmem:[#allocation2 + $0x60] sm:$0xff]  ;;  %v4186_v25 = vld [vmem:[#allocation2 + $0x68] sm:$0xff]  ;;  %v4188_v26 = vld [vmem:[#allocation2 + $0x78] sm:$0xff] }
 0x5e5   : > { %4296 = vmatpush.msra.mxu2 %v4173_v58  ;;  %4325 = vmatpush.msra.mxu3 %v4174_v6  ;;  %v4177_v33 = vld [vmem:[#allocation2 + $0x20] sm:$0xff]  ;;  %v4178_v37 = vld [vmem:[#allocation2 + $0x28] sm:$0xff]  ;;  %v4179_v31 = vld [vmem:[#allocation2 + $0x30] sm:$0xff] }
 0x5e6   : > { %7845 = vmatmul.msk.f32.vlgmr.msra.gmra.mxu0 %vm4198_vm0, %v7841_v45  ;;  %7849 = vmatmul.msk.f32.vlgmr.msra.gmra.mxu1 %vm4198_vm0, %v7841_v45  ;;  %v4180_v44 = vld [vmem:[#allocation2 + $0x38] sm:$0xff]  ;;  %v4514_v0 = vld [vmem:[#allocation2 + $0xc0] sm:$0xff]  ;;  %v4515_v38 = vld [vmem:[#allocation2 + $0xc8] sm:$0xff] }
 0x5e7   : > { %7853 = vmatmul.msk.f32.vlgmr.msra.gmra.mxu2 %vm4198_vm0, %v4189_v61  ;;  %7857 = vmatmul.msk.f32.vlgmr.msra.gmra.mxu3 %vm4198_vm0, %v4189_v61  ;;  %v4516_v53 = vld [vmem:[#allocation2 + $0xd0] sm:$0xff]  ;;  %v4517_v56 = vld [vmem:[#allocation2 + $0xd8] sm:$0xff]  ;;  %v4506_v5 = vld [vmem:[#allocation2 + $0x80] sm:$0xff] }
 0x5e8   : > { %4370 = vmatpush.msrb.mxu0 %v4185_v62  ;;  %4399 = vmatpush.msrb.mxu1 %v4186_v25  ;;  %v4507_v23 = vld [vmem:[#allocation2 + $0x88] sm:$0xff]  ;;  %v4508_v10 = vld [vmem:[#allocation2 + $0x90] sm:$0xff]  ;;  %v4509_v24 = vld [vmem:[#allocation2 + $0x98] sm:$0xff] }
 0x5e9   : > { %4453 = vmatpush.msrb.mxu2 %v4187_v8  ;;  %4482 = vmatpush.msrb.mxu3 %v4188_v26  ;;  %v4518_v20 = vld [vmem:[#allocation2 + $0xe0] sm:$0xff]  ;;  %v4519_v52 = vld [vmem:[#allocation2 + $0xe8] sm:$0xff]  ;;  %v4520_v35 = vld [vmem:[#allocation2 + $0xf0] sm:$0xff] }
 0x5ea   : > { %4371 = vmatpush.msrb.mxu0 %v4177_v33  ;;  %4400 = vmatpush.msrb.mxu1 %v4178_v37  ;;  %v4521_v59 = vld [vmem:[#allocation2 + $0xf8] sm:$0xff]  ;;  %v4510_v9 = vld [vmem:[#allocation2 + $0xa0] sm:$0xff]  ;;  %v4511_v2 = vld [vmem:[#allocation2 + $0xa8] sm:$0xff] }
 0x5eb   : > { %4454 = vmatpush.msrb.mxu2 %v4179_v31  ;;  %4483 = vmatpush.msrb.mxu3 %v4180_v44  ;;  %v4512_v18 = vld [vmem:[#allocation2 + $0xb0] sm:$0xff]  ;;  %v4513_v28 = vld [vmem:[#allocation2 + $0xb8] sm:$0xff]  ;;  %v7886_v19 = vld [vmem:[%s11484_s5 + $0x88] sm:$0xff] }
 0x5ec   : > { %4553 = vmatpush.msra.mxu0 %v4514_v0  ;;  %4582 = vmatpush.msra.mxu1 %v4515_v38  ;;  %v7898_v49 = vld [vmem:[%s11484_s5 + $0xa8] sm:$0xff]  ;;  %v7887_v32 = vld [vmem:[%s11484_s5 + $0x90] sm:$0xff]  ;;  %v4854_v46 = vld [vmem:[%s11485_s6] sm:$0xff] }
 0x5ed   : > { %4636 = vmatpush.msra.mxu2 %v4516_v53  ;;  %4665 = vmatpush.msra.mxu3 %v4517_v56  ;;  %v4855_v21 = vld [vmem:[%s11485_s6 + $0x8] sm:$0xff]  ;;  %v7899_v15 = vld [vmem:[%s11484_s5 + $0xb0] sm:$0xff]  ;;  %v7888_v50 = vld [vmem:[%s11484_s5 + $0x98] sm:$0xff] }
 0x5ee   : > { %7846 = vmatmul.msk.f32.gmra.mxu0 %vm4198_vm0, %v7842_v11  ;;  %7850 = vmatmul.msk.f32.gmra.mxu1 %vm4198_vm0, %v7842_v11  ;;  %v7900_v30 = vld [vmem:[%s11484_s5 + $0xb8] sm:$0xff]  ;;  %v7909_v7 = vld [vmem:[%s11484_s5 + $0xc0] sm:$0xff]  ;;  %v4856_v41 = vld [vmem:[%s11485_s6 + $0x10] sm:$0xff] }
 0x5ef   : > { %7854 = vmatmul.msk.f32.gmra.mxu2 %vm4198_vm0, %v4190_v16  ;;  %7858 = vmatmul.msk.f32.gmra.mxu3 %vm4198_vm0, %v4190_v16  ;;  %v4857_v63 = vld [vmem:[%s11485_s6 + $0x18] sm:$0xff]  ;;  %v7921_v14 = vld [vmem:[%s11484_s5 + $0xe0] sm:$0xff]  ;;  %v7910_v57 = vld [vmem:[%s11484_s5 + $0xc8] sm:$0xff] }
 0x5f0   : > { %4554 = vmatpush.msra.mxu0 %v4506_v5  ;;  %4583 = vmatpush.msra.mxu1 %v4507_v23  ;;  %v7922_v47 = vld [vmem:[%s11484_s5 + $0xe8] sm:$0xff]  ;;  %v7911_v27 = vld [vmem:[%s11484_s5 + $0xd0] sm:$0xff]  ;;  %v7912_v36 = vld [vmem:[%s11484_s5 + $0xd8] sm:$0xff] }
 0x5f1   : > { %4637 = vmatpush.msra.mxu2 %v4508_v10  ;;  %4666 = vmatpush.msra.mxu3 %v4509_v24  ;;  %v7923_v39 = vld [vmem:[%s11484_s5 + $0xf0] sm:$0xff]  ;;  %v7924_v3 = vld [vmem:[%s11484_s5 + $0xf8] sm:$0xff] }
 0x5f2   : > { %4865 = vperm.xlu1 %8319, %v4855_v21   ;;  %4875 = vperm.xlu0 %8318, %v4857_v63  }
 0x5f6   : > { %7847 = vmatmul.msk.f32.gmra.mxu0 %vm4198_vm0, %v7843_v55  ;;  %7851 = vmatmul.msk.f32.gmra.mxu1 %vm4198_vm0, %v7843_v55 }
 0x5f7   : > { %7855 = vmatmul.msk.f32.gmra.mxu2 %vm4198_vm0, %v4191_v17  ;;  %7859 = vmatmul.msk.f32.gmra.mxu3 %vm4198_vm0, %v4191_v17 }
 0x5fa   : > { %4860 = vperm.xlu1 %8319, %v4854_v46   ;;  %4870 = vperm.xlu0 %8318, %v4856_v41  }
 0x5fe   : > { %7848 = vmatmul.msk.f32.gmra.mxu0 %vm4198_vm0, %v7844_v29  ;;  %7852 = vmatmul.msk.f32.gmra.mxu1 %vm4198_vm0, %v7844_v29 }
 0x5ff   : > { %7856 = vmatmul.msk.f32.gmra.mxu2 %vm4198_vm0, %v4192_v40  ;;  %7860 = vmatmul.msk.f32.gmra.mxu3 %vm4198_vm0, %v4192_v40 }
 0x606   : > { %7865 = vmatmul.msk.f32.vlgmr.msrb.gmra.mxu0 %vm4198_vm0, %v7861_v13  ;;  %7869 = vmatmul.msk.f32.vlgmr.msrb.gmra.mxu1 %vm4198_vm0, %v7861_v13 }
 0x607   : > { %7877 = vmatmul.msk.f32.vlgmr.msrb.gmra.mxu2 %vm4198_vm0, %v7873_v12  ;;  %7881 = vmatmul.msk.f32.vlgmr.msrb.gmra.mxu3 %vm4198_vm0, %v7873_v12 }
 0x608   : > { %4719 = vmatpush.msrb.mxu0 %v4518_v20  ;;  %4748 = vmatpush.msrb.mxu1 %v4519_v52 }
 0x609   : > { %4802 = vmatpush.msrb.mxu2 %v4520_v35  ;;  %4831 = vmatpush.msrb.mxu3 %v4521_v59 }
 0x60a   : > { %4720 = vmatpush.msrb.mxu0 %v4510_v9  ;;  %4749 = vmatpush.msrb.mxu1 %v4511_v2 }
 0x60b   : > { %4803 = vmatpush.msrb.mxu2 %v4512_v18  ;;  %4832 = vmatpush.msrb.mxu3 %v4513_v28 }
 0x60e   : > { %7866 = vmatmul.msk.f32.gmra.mxu0 %vm4198_vm0, %v7862_v42  ;;  %7870 = vmatmul.msk.f32.gmra.mxu1 %vm4198_vm0, %v7862_v42 }
 0x60f   : > { %7878 = vmatmul.msk.f32.gmra.mxu2 %vm4198_vm0, %v7874_v22  ;;  %7882 = vmatmul.msk.f32.gmra.mxu3 %vm4198_vm0, %v7874_v22 }
 0x616   : > { %7867 = vmatmul.msk.f32.gmra.mxu0 %vm4198_vm0, %v7863_v34  ;;  %7871 = vmatmul.msk.f32.gmra.mxu1 %vm4198_vm0, %v7863_v34 }
 0x617   : > { %7879 = vmatmul.msk.f32.gmra.mxu2 %vm4198_vm0, %v7875_v48  ;;  %7883 = vmatmul.msk.f32.gmra.mxu3 %vm4198_vm0, %v7875_v48 }
 0x61e   : > { %7868 = vmatmul.msk.f32.gmra.mxu0 %vm4198_vm0, %v7864_v60  ;;  %7872 = vmatmul.msk.f32.gmra.mxu1 %vm4198_vm0, %v7864_v60 }
 0x61f   : > { %7880 = vmatmul.msk.f32.gmra.mxu2 %vm4198_vm0, %v7876_v4  ;;  %7884 = vmatmul.msk.f32.gmra.mxu3 %vm4198_vm0, %v7876_v4 }
 0x626   : > { %7889 = vmatmul.msk.f32.vlgmr.msra.gmra.mxu0 %vm4198_vm0, %v7885_v54  ;;  %7893 = vmatmul.msk.f32.vlgmr.msra.gmra.mxu1 %vm4198_vm0, %v7885_v54 }
 0x627   : > { %7901 = vmatmul.msk.f32.vlgmr.msra.gmra.mxu2 %vm4198_vm0, %v7897_v43  ;;  %7905 = vmatmul.msk.f32.vlgmr.msra.gmra.mxu3 %vm4198_vm0, %v7897_v43 }
 0x62e   : > { %7890 = vmatmul.msk.f32.gmra.mxu0 %vm4198_vm0, %v7886_v19  ;;  %7894 = vmatmul.msk.f32.gmra.mxu1 %vm4198_vm0, %v7886_v19 }
 0x62f   : > { %7902 = vmatmul.msk.f32.gmra.mxu2 %vm4198_vm0, %v7898_v49  ;;  %7906 = vmatmul.msk.f32.gmra.mxu3 %vm4198_vm0, %v7898_v49 }
 0x636   : > { %7891 = vmatmul.msk.f32.gmra.mxu0 %vm4198_vm0, %v7887_v32  ;;  %7895 = vmatmul.msk.f32.gmra.mxu1 %vm4198_vm0, %v7887_v32 }
 0x637   : > { %7903 = vmatmul.msk.f32.gmra.mxu2 %vm4198_vm0, %v7899_v15  ;;  %7907 = vmatmul.msk.f32.gmra.mxu3 %vm4198_vm0, %v7899_v15 }
 0x63e   : > { %7892 = vmatmul.msk.f32.gmra.mxu0 %vm4198_vm0, %v7888_v50  ;;  %7896 = vmatmul.msk.f32.gmra.mxu1 %vm4198_vm0, %v7888_v50 }
 0x63f   : > { %7904 = vmatmul.msk.f32.gmra.mxu2 %vm4198_vm0, %v7900_v30  ;;  %7908 = vmatmul.msk.f32.gmra.mxu3 %vm4198_vm0, %v7900_v30 }
 0x646   : > { %7913 = vmatmul.msk.f32.vlgmr.msrb.gmra.mxu0 %vm4198_vm0, %v7909_v7  ;;  %7917 = vmatmul.msk.f32.vlgmr.msrb.gmra.mxu1 %vm4198_vm0, %v7909_v7 }
 0x647   : > { %7925 = vmatmul.msk.f32.vlgmr.msrb.gmra.mxu2 %vm4198_vm0, %v7921_v14  ;;  %7929 = vmatmul.msk.f32.vlgmr.msrb.gmra.mxu3 %vm4198_vm0, %v7921_v14 }
 0x64e   : > { %7914 = vmatmul.msk.f32.gmra.mxu0 %vm4198_vm0, %v7910_v57  ;;  %7918 = vmatmul.msk.f32.gmra.mxu1 %vm4198_vm0, %v7910_v57 }
 0x64f   : > { %7926 = vmatmul.msk.f32.gmra.mxu2 %vm4198_vm0, %v7922_v47  ;;  %7930 = vmatmul.msk.f32.gmra.mxu3 %vm4198_vm0, %v7922_v47 }
 0x656   : > { %7915 = vmatmul.msk.f32.gmra.mxu0 %vm4198_vm0, %v7911_v27  ;;  %7919 = vmatmul.msk.f32.gmra.mxu1 %vm4198_vm0, %v7911_v27 }
 0x657   : > { %7927 = vmatmul.msk.f32.gmra.mxu2 %vm4198_vm0, %v7923_v39  ;;  %7931 = vmatmul.msk.f32.gmra.mxu3 %vm4198_vm0, %v7923_v39 }
 0x65e   : > { %7916 = vmatmul.msk.f32.gmra.mxu0 %vm4198_vm0, %v7912_v36  ;;  %7920 = vmatmul.msk.f32.gmra.mxu1 %vm4198_vm0, %v7912_v36 }
 0x65f   : > { %7928 = vmatmul.msk.f32.gmra.mxu2 %vm4198_vm0, %v7924_v3  ;;  %7932 = vmatmul.msk.f32.gmra.mxu3 %vm4198_vm0, %v7924_v3 }
 0x663   : > { %v4228_v1 = vpop.f32.mrf.mxu0  ;;  %v4257_v58 = vpop.f32.mrf.mxu1 }
 0x664   : > { %v4866_v46 = vpop.permute.xlu1 %4865 }
 0x66a   : > { %v4298_v6 = vpop.f32.mrf.mxu2  ;;  %v4327_v45 = vpop.f32.mrf.mxu3 }
 0x66b   : > { %v4231_v61 = vpop.f32.mrf.mxu0  ;;  %v4260_v62 = vpop.f32.mrf.mxu1  ;;  %v4328_v28 = vadd.f32 %v4327_v45, %v4257_v58  ;;  %v4299_v51 = vadd.f32 %v4298_v6, %v4228_v1 }
 0x672   : > { %v4301_v25 = vpop.f32.mrf.mxu2  ;;  %v4330_v8 = vpop.f32.mrf.mxu3 }
 0x673   : > { %v10242_v26 = vpop.f32.mrf.mxu0  ;;  %v4263_v33 = vpop.f32.mrf.mxu1  ;;  %v4331_v32 = vadd.f32 %v4330_v8, %v4260_v62  ;;  %v4302_v39 = vadd.f32 %v4301_v25, %v4231_v61 }
 0x674   : > { %v4861_v8 = vpop.permute.xlu1 %4860 }
 0x67a   : > { %v10244_v37 = vpop.f32.mrf.mxu2  ;;  %v4333_v31 = vpop.f32.mrf.mxu3 }
 0x67b   : > { %v10246_v44 = vpop.f32.mrf.mxu0  ;;  %v10248_v11 = vpop.f32.mrf.mxu1  ;;  %v4334_v36 = vadd.f32 %v4333_v31, %v4263_v33 }
 0x682   : > { %v10250_v16 = vpop.f32.mrf.mxu2  ;;  %v10252_v55 = vpop.f32.mrf.mxu3 }
 0x683   : > { %v4373_v17 = vpop.f32.mrf.mxu0  ;;  %v4402_v29 = vpop.f32.mrf.mxu1  ;;  %v4337_v31 = vadd.f32 %v10252_v55, %v10248_v11 }
 0x684   : > { %v4415_v19 = vadd.f32 %v4402_v29, %v4328_v28  ;;  %v4414_v50 = vadd.f32 %v4373_v17, %v4299_v51 }
 0x68a   : > { %v4456_v40 = vpop.f32.mrf.mxu2  ;;  %v4485_v0 = vpop.f32.mrf.mxu3 }
 0x68b   : > { %v4376_v38 = vpop.f32.mrf.mxu0  ;;  %v4405_v53 = vpop.f32.mrf.mxu1  ;;  %v4498_v15 = vadd.f32 %v4485_v0, %v4415_v19  ;;  %v4497_v7 = vadd.f32 %v4456_v40, %v4414_v50 }
 0x68c   : > { %v4417_v14 = vadd.f32 %v4405_v53, %v4331_v32  ;;  %v4416_v1 = vadd.f32 %v4376_v38, %v4302_v39  ;;  %v4305_v38 = vadd.f32 %v10244_v37, %v10242_v26 }
 0x692   : > { %v4459_v56 = vpop.f32.mrf.mxu2  ;;  %v4488_v5 = vpop.f32.mrf.mxu3 }
 0x693   : > { %v10254_v23 = vpop.f32.mrf.mxu0  ;;  %v4408_v10 = vpop.f32.mrf.mxu1  ;;  %v4500_v3 = vadd.f32 %v4488_v5, %v4417_v14  ;;  %v4499_v17 = vadd.f32 %v4459_v56, %v4416_v1 }
 0x694   : > { %v4419_v28 = vadd.f32 %v4408_v10, %v4334_v36  ;;  %v4876_v10 = vpop.permute.xlu0 %4875 }
 0x69a   : > { %v10256_v24 = vpop.f32.mrf.mxu2  ;;  %v4491_v13 = vpop.f32.mrf.mxu3 }
 0x69b   : > { %v10258_v12 = vpop.f32.mrf.mxu0  ;;  %v10260_v42 = vpop.f32.mrf.mxu1  ;;  %v4502_v56 = vadd.f32 %v4491_v13, %v4419_v28 }
 0x69c   : > { %v4421_v51 = vadd.f32 %v10260_v42, %v4337_v31 }
 0x6a2   : > { %v10262_v22 = vpop.f32.mrf.mxu2  ;;  %v10264_v34 = vpop.f32.mrf.mxu3 }
 0x6a3   : > { %v4556_v48 = vpop.f32.mrf.mxu0  ;;  %v4585_v60 = vpop.f32.mrf.mxu1  ;;  %v4504_v42 = vadd.f32 %v10264_v34, %v4421_v51  ;;  %v5639_v51 = vld [vmem:[%s11487_s8 + $0x8] sm:$0xff] }
 0x6a4   : > { %v4598_v41 = vadd.f32 %v4585_v60, %v4498_v15  ;;  %v4597_v27 = vadd.f32 %v4556_v48, %v4497_v7 }
 0x6aa   : > { %v4639_v4 = vpop.f32.mrf.mxu2  ;;  %v4668_v20 = vpop.f32.mrf.mxu3 }
 0x6ab   : > { %v4559_v52 = vpop.f32.mrf.mxu0  ;;  %v4588_v35 = vpop.f32.mrf.mxu1  ;;  %v4680_v58 = vadd.f32 %v4639_v4, %v4597_v27  ;;  %v4681_v45 = vadd.f32 %v4668_v20, %v4598_v41  ;;  %v4418_v20 = vadd.f32 %v10254_v23, %v4305_v38  ;;  %v4308_v23 = vadd.f32 %v10250_v16, %v10246_v44 }
 0x6ac   : > { %v4600_v40 = vadd.f32 %v4588_v35, %v4500_v3  ;;  %v4599_v61 = vadd.f32 %v4559_v52, %v4499_v17 }
 0x6ad   : > { %v4501_v11 = vadd.f32 %v10256_v24, %v4418_v20 }
 0x6b2   : > { %v4642_v59 = vpop.f32.mrf.mxu2  ;;  %v4671_v9 = vpop.f32.mrf.mxu3 }
 0x6b3   : > { %v4562_v2 = vpop.f32.mrf.mxu0  ;;  %v4591_v18 = vpop.f32.mrf.mxu1  ;;  %v4682_v5 = vadd.f32 %v4642_v59, %v4599_v61  ;;  %v4683_v4 = vadd.f32 %v4671_v9, %v4600_v40 }
 0x6b4   : > { %v4602_v55 = vadd.f32 %v4591_v18, %v4502_v56  ;;  %v4601_v9 = vadd.f32 %v4562_v2, %v4501_v11 }
 0x6ba   : > { %v10266_v54 = vpop.f32.mrf.mxu2  ;;  %v10268_v43 = vpop.f32.mrf.mxu3 }
 0x6bb   : > { %v10270_v49 = vpop.f32.mrf.mxu0  ;;  %v10272_v21 = vpop.f32.mrf.mxu1  ;;  %v4684_v41 = vadd.f32 %v10266_v54, %v4601_v9  ;;  %v4685_v24 = vadd.f32 %v10268_v43, %v4602_v55  ;;  %v4919_v55 = vld [vmem:[%s11486_s7 + $0x8] sm:$0xff] }
 0x6bc   : > { %v4604_v43 = vadd.f32 %v10272_v21, %v4504_v42  ;;  %v7957_v42 = vld [vmem:[%s11486_s7 + $0x80] sm:$0xff] }
 0x6c2   : > { %v10274_v30 = vpop.f32.mrf.mxu2  ;;  %v10276_v63 = vpop.f32.mrf.mxu3 }
 0x6c3   : > { %v4722_v57 = vpop.f32.mrf.mxu0  ;;  %v4751_v47 = vpop.f32.mrf.mxu1 }
 0x6c4   : > { %v4763_v6 = vadd.f32 %v4722_v57, %v4680_v58  ;;  %v4764_v62 = vadd.f32 %v4751_v47, %v4681_v45  ;;  %v4420_v57 = vadd.f32 %v10258_v12, %v4308_v23  ;;  %v4871_v47 = vpop.permute.xlu0 %4870 }
 0x6c6   : > { %v4503_v54 = vadd.f32 %v10262_v22, %v4420_v57 }
 0x6c8   : > { %v4603_v12 = vadd.f32 %v10270_v49, %v4503_v54  ;;  %v7934_v54 = vld [vmem:[%s11486_s7 + $0x48] sm:$0xff] }
 0x6ca   : > { %v4805_v29 = vpop.f32.mrf.mxu2  ;;  %v4834_v0 = vpop.f32.mrf.mxu3 }
 0x6cb   : > { %v4846_v53 = vadd.f32 %v4805_v29, %v4763_v6  ;;  %v4847_v60 = vadd.f32 %v4834_v0, %v4764_v62  ;;  %v4725_v19 = vpop.f32.mrf.mxu0  ;;  %v4754_v48 = vpop.f32.mrf.mxu1  ;;  %v4686_v62 = vadd.f32 %v10274_v30, %v4603_v12 }
 0x6cc   : > { %v4765_v35 = vadd.f32 %v4725_v19, %v4682_v5  ;;  %v4766_v52 = vadd.f32 %v4754_v48, %v4683_v4 }
 0x6cd   : > { %v4878_v25 = vadd.f32 %v4861_v8, %v4846_v53  ;;  %v10278_v33 = vadd.f32 %v4861_v8, %v4847_v60  ;;  %v4687_v8 = vadd.f32 %v10276_v63, %v4604_v43 }
 0x6cf   : > { %4886 = vst [vmem:[%s8973_s13] sm:$0xff] %v4878_v25  ;;  %v4902_v50 = vmul.f32 0.2, %v4878_v25  ;;  %vm4894_vm5 = vcmp.gt.f32.partialorder %v4878_v25, 0.0  ;;  %v4903_v5 = vmul.f32 0.2, %v10278_v33  ;;  %vm4895_vm12 = vcmp.gt.f32.partialorder %v10278_v33, 0.0 }
 0x6d0   : > { %4887 = vst [vmem:[%s8973_s13 + $0x8] sm:$0xff] %v10278_v33 }
 0x6d1   : > { %v4910_v27 = vsel %vm4894_vm5, %v4878_v25, %v4902_v50 }
 0x6d2   : > { %v4808_v32 = vpop.f32.mrf.mxu2  ;;  %v4837_v15 = vpop.f32.mrf.mxu3 }
 0x6d3   : > { %v4848_v26 = vadd.f32 %v4808_v32, %v4765_v35  ;;  %v4849_v37 = vadd.f32 %v4837_v15, %v4766_v52  ;;  %v4728_v13 = vpop.f32.mrf.mxu0  ;;  %v4757_v59 = vpop.f32.mrf.mxu1  ;;  %v5645_v35 = vld [vmem:[%s11487_s8 + $0x38] sm:$0xff]  ;;  %v5643_v52 = vld [vmem:[%s11487_s8 + $0x28] sm:$0xff]  ;;  %v5640_v32 = vld [vmem:[%s11487_s8 + $0x10] sm:$0xff] }
 0x6d4   : > { %v4767_v2 = vadd.f32 %v4728_v13, %v4684_v41  ;;  %v4918_v15 = vld [vmem:[%s11486_s7] sm:$0xff] }
 0x6d5   : > { %v4880_v7 = vadd.f32 %v4866_v46, %v4848_v26  ;;  %v10290_v14 = vadd.f32 %v4866_v46, %v4849_v37  ;;  %v4768_v46 = vadd.f32 %v4757_v59, %v4685_v24 }
 0x6d7   : > { %4888 = vst [vmem:[%s8973_s13 + $0x10] sm:$0xff] %v4880_v7  ;;  %v4904_v18 = vmul.f32 0.2, %v4880_v7  ;;  %vm4896_vm6 = vcmp.gt.f32.partialorder %v4880_v7, 0.0  ;;  %v4905_v56 = vmul.f32 0.2, %v10290_v14 }
 0x6d8   : > { %4889 = vst [vmem:[%s8973_s13 + $0x18] sm:$0xff] %v10290_v14  ;;  %vm4897_vm11 = vcmp.gt.f32.partialorder %v10290_v14, 0.0 }
 0x6d9   : > { %v4912_v39 = vsel %vm4896_vm6, %v4880_v7, %v4904_v18  ;;  %v10324_v4 = vsel %vm4897_vm11, %v10290_v14, %v4905_v56  ;;  %v4920_v7 = vld [vmem:[%s11486_s7 + $0x10] sm:$0xff]  ;;  %v4921_v18 = vld [vmem:[%s11486_s7 + $0x18] sm:$0xff]  ;;  %vm5775_vm6 = vcmask 523264  }
 0x6da   : > { %v4811_v44 = vpop.f32.mrf.mxu2  ;;  %v4840_v16 = vpop.f32.mrf.mxu3  ;;  %v8320_v34 = vpack.i.bf16 %v4910_v27, %v4912_v39 }
 0x6db   : > { %v4850_v36 = vadd.f32 %v4811_v44, %v4767_v2  ;;  %v4851_v3 = vadd.f32 %v4840_v16, %v4768_v46  ;;  %v4731_v1 = vpop.f32.mrf.mxu0  ;;  %v4760_v6 = vpop.f32.mrf.mxu1  ;;  %v7933_v2 = vld [vmem:[%s11486_s7 + $0x40] sm:$0xff]  ;;  %v7958_v46 = vld [vmem:[%s11486_s7 + $0x88] sm:$0xff] }
 0x6dc   : > { %8321 = vrot.lane.b32.xlu1 %v8320_v34, %s8639_s22  ;;  %v4769_v22 = vadd.f32 %v4731_v1, %v4686_v62  ;;  %v4770_v21 = vadd.f32 %v4760_v6, %v4687_v8  ;;  %v4922_v44 = vld [vmem:[%s11486_s7 + $0x20] sm:$0xff]  ;;  %v7935_v8 = vld [vmem:[%s11486_s7 + $0x50] sm:$0xff] }
 0x6dd   : > { %v4882_v58 = vadd.f32 %v4871_v47, %v4850_v36  ;;  %v4883_v45 = vadd.f32 %v4871_v47, %v4851_v3  ;;  %v7959_v36 = vld [vmem:[%s11486_s7 + $0x90] sm:$0xff] }
 0x6df   : > { %4890 = vst [vmem:[%s8973_s13 + $0x20] sm:$0xff] %v4882_v58  ;;  %v4906_v40 = vmul.f32 0.2, %v4882_v58  ;;  %v4907_v49 = vmul.f32 0.2, %v4883_v45  ;;  %vm4898_vm7 = vcmp.gt.f32.partialorder %v4882_v58, 0.0 }
 0x6e0   : > { %4891 = vst [vmem:[%s8973_s13 + $0x28] sm:$0xff] %v4883_v45  ;;  %vm4899_vm8 = vcmp.gt.f32.partialorder %v4883_v45, 0.0 }
 0x6e1   : > { %v4914_v48 = vsel %vm4898_vm7, %v4882_v58, %v4906_v40  ;;  %v10311_v61 = vsel %vm4899_vm8, %v4883_v45, %v4907_v49  ;;  %v4923_v58 = vld [vmem:[%s11486_s7 + $0x28] sm:$0xff]  ;;  %vm6598_vm7 = vcmask 31744  }
 0x6e2   : > { %v4814_v17 = vpop.f32.mrf.mxu2  ;;  %v4843_v29 = vpop.f32.mrf.mxu3 }
 0x6e3   : > { %v4852_v0 = vadd.f32 %v4814_v17, %v4769_v22  ;;  %v4853_v28 = vadd.f32 %v4843_v29, %v4770_v21  ;;  %v7973_v21 = vld [vmem:[%s11486_s7 + $0xc0] sm:$0xff]  ;;  %v7960_v17 = vld [vmem:[%s11486_s7 + $0x98] sm:$0xff] }
 0x6e5   : > { %v4884_v53 = vadd.f32 %v4876_v10, %v4852_v0  ;;  %v4885_v60 = vadd.f32 %v4876_v10, %v4853_v28  ;;  %v10327_v10 = vsel %vm4895_vm12, %v10278_v33, %v4903_v5  ;;  %v5642_v33 = vld [vmem:[%s11487_s8 + $0x20] sm:$0xff]  ;;  %v4924_v28 = vld [vmem:[%s11486_s7 + $0x30] sm:$0xff] }
 0x6e6   : > { %v8355_v20 = vpack.i.bf16 %v10327_v10, %v10324_v4  ;;  %v7937_v5 = vld [vmem:[%s11486_s7 + $0x60] sm:$0xff] }
 0x6e7   : > { %4892 = vst [vmem:[%s8973_s13 + $0x30] sm:$0xff] %v4884_v53  ;;  %v4909_v30 = vmul.f32 0.2, %v4885_v60  ;;  %vm4900_vm9 = vcmp.gt.f32.partialorder %v4884_v53, 0.0  ;;  %v4908_v19 = vmul.f32 0.2, %v4884_v53 }
 0x6e8   : > { %4893 = vst [vmem:[%s8973_s13 + $0x38] sm:$0xff] %v4885_v60  ;;  %vm4901_vm10 = vcmp.gt.f32.partialorder %v4885_v60, 0.0  ;;  %s8641_s13 = smov 96  }
 0x6e9   : > { %v4916_v63 = vsel %vm4900_vm9, %v4884_v53, %v4908_v19  ;;  %v10313_v25 = vsel %vm4901_vm10, %v4885_v60, %v4909_v30  ;;  %v7936_v19 = vld [vmem:[%s11486_s7 + $0x58] sm:$0xff] }
 0x6ea   : > { %5053 = vmatpush.msra.mxu1 %v4916_v63  ;;  %v8340_v31 = vpack.i.bf16 %v4914_v48, %v4916_v63  ;;  %v8350_v38 = vpack.i.bf16 %v10311_v61, %v10313_v25 }
 0x6ec   : > { %8341 = vrot.lane.b32.xlu0 %v8340_v31, %s8640_s11  ;;  %8326 = vrot.lane.b32.xlu2 %v8340_v31, %s8639_s22 }
 0x6ed   : > { %5054 = vmatpush.msra.mxu1 %v4914_v48  ;;  %8351 = vrot.lane.b32.xlu1 %v8350_v38, %s8639_s22  ;;  %v7974_v48 = vld [vmem:[%s11486_s7 + $0xc8] sm:$0xff] }
 0x6ef   : > { %5055 = vmatpush.msra.mxu1 %v4912_v39 }
 0x6f1   : > { %5056 = vmatpush.msra.mxu1 %v4910_v27 }
 0x6f2   : > { %7949 = vmatmul.msk.f32.vlgmr.msra.gmra.mxu1 %vm4951_vm13, %v4918_v15  ;;  %v7977_v15 = vld [vmem:[%s11486_s7 + $0xe0] sm:$0xff] }
 0x6f4   : > { %8331 = vrot.lane.b32.xlu2 %v8340_v31, %s8641_s13  ;;  %8346 = vrot.lane.b32.xlu0 %v8320_v34, %s8640_s11 }
 0x6f5   : > { %8356 = vrot.lane.b32.xlu1 %v8355_v20, %s8639_s22  ;;  %s8646_s22 = smov 104  }
 0x6fa   : > { %7950 = vmatmul.msk.f32.gmra.mxu1 %vm4951_vm13, %v4919_v55  ;;  %v8007_v55 = vld [vmem:[%s11486_s7 + $0x150] sm:$0xff] }
 0x6fc   : > { %8371 = vrot.lane.b32.xlu0 %v8350_v38, %s8641_s13  ;;  %8336 = vrot.lane.b32.xlu2 %v8320_v34, %s8641_s13 }
 0x6fd   : > { %5683 = vperm.xlu1 %8319, %v5645_v35   ;;  %v7938_v35 = vld [vmem:[%s11486_s7 + $0x68] sm:$0xff] }
 0x702   : > { %7951 = vmatmul.msk.f32.gmra.mxu1 %vm4951_vm13, %v4920_v7  ;;  %v8022_v7 = vld [vmem:[%s11486_s7 + $0x188] sm:$0xff] }
 0x704   : > { %8376 = vrot.lane.b32.xlu0 %v8355_v20, %s8641_s13  ;;  %8361 = vrot.lane.b32.xlu2 %v8350_v38, %s8640_s11 }
 0x705   : > { %5668 = vperm.xlu1 %8319, %v5642_v33   ;;  %v7976_v33 = vld [vmem:[%s11486_s7 + $0xd8] sm:$0xff] }
 0x70a   : > { %7952 = vmatmul.msk.f32.gmra.mxu1 %vm4951_vm13, %v4921_v18  ;;  %v5644_v18 = vld [vmem:[%s11487_s8 + $0x30] sm:$0xff] }
 0x70c   : > { %5673 = vperm.xlu0 %8318, %v5643_v52   ;;  %8366 = vrot.lane.b32.xlu2 %v8355_v20, %s8640_s11  ;;  %v8005_v20 = vld [vmem:[%s11486_s7 + $0x140] sm:$0xff]  ;;  %v7963_v52 = vld [vmem:[%s11486_s7 + $0xb0] sm:$0xff]  ;;  %s8643_s11 = smov 124  }
 0x70d   : > { %5653 = vperm.xlu1 %8319, %v5639_v51   ;;  %v8006_v51 = vld [vmem:[%s11486_s7 + $0x148] sm:$0xff] }
 0x712   : > { %7953 = vmatmul.msk.f32.gmra.mxu1 %vm4951_vm13, %v4922_v44  ;;  %v8038_v44 = vld [vmem:[%s11486_s7 + $0x1c8] sm:$0xff] }
 0x714   : > { %5658 = vperm.xlu0 %8318, %v5640_v32   ;;  %v7939_v32 = vld [vmem:[%s11486_s7 + $0x70] sm:$0xff]  ;;  %5678 = vperm.xlu2 %8380, %v5644_v18  }
 0x71a   : > { %7954 = vmatmul.msk.f32.gmra.mxu1 %vm4951_vm13, %v4923_v58  ;;  %v8040_v58 = vld [vmem:[%s11486_s7 + $0x1d8] sm:$0xff] }
 0x722   : > { %7955 = vmatmul.msk.f32.gmra.mxu1 %vm4951_vm13, %v4924_v28  ;;  %v8043_v28 = vld [vmem:[%s11486_s7 + $0x1f0] sm:$0xff] }
 0x746   : > { %v8327_v11 = vpop.permute.xlu2 %8326 }
 0x747   : > { %v8328_v26 = vunpack.i.l.bf16 %v8327_v11  ;;  %v8329_v37 = vunpack.i.h.bf16 %v8327_v11  ;;  %v7964_v11 = vld [vmem:[%s11486_s7 + $0xb8] sm:$0xff] }
 0x749   : > { %5139 = vmatpush.msra.mxu2 %v8328_v26  ;;  %v7940_v26 = vld [vmem:[%s11486_s7 + $0x78] sm:$0xff] }
 0x74b   : > { %5140 = vmatpush.msra.mxu2 %v8329_v37  ;;  %v7978_v37 = vld [vmem:[%s11486_s7 + $0xe8] sm:$0xff] }
 0x74e   : > { %v8332_v13 = vpop.permute.xlu2 %8331  ;;  %v8322_v59 = vpop.permute.xlu1 %8321 }
 0x74f   : > { %v8333_v9 = vunpack.i.l.bf16 %v8332_v13  ;;  %v8323_v50 = vunpack.i.l.bf16 %v8322_v59  ;;  %v8334_v14 = vunpack.i.h.bf16 %v8332_v13  ;;  %v8324_v23 = vunpack.i.h.bf16 %v8322_v59  ;;  %v8021_v13 = vld [vmem:[%s11486_s7 + $0x180] sm:$0xff]  ;;  %v8008_v59 = vld [vmem:[%s11486_s7 + $0x158] sm:$0xff] }
 0x751   : > { %4988 = vmatpush.msra.mxu0 %v8333_v9  ;;  %5141 = vmatpush.msra.mxu2 %v8323_v50  ;;  %v7989_v9 = vld [vmem:[%s11486_s7 + $0x100] sm:$0xff]  ;;  %v7979_v50 = vld [vmem:[%s11486_s7 + $0xf0] sm:$0xff] }
 0x753   : > { %4989 = vmatpush.msra.mxu0 %v8334_v14  ;;  %5142 = vmatpush.msra.mxu2 %v8324_v23  ;;  %v8009_v14 = vld [vmem:[%s11486_s7 + $0x160] sm:$0xff]  ;;  %v7990_v23 = vld [vmem:[%s11486_s7 + $0x108] sm:$0xff] }
 0x754   : > { %7965 = vmatmul.msk.f32.vlgmr.msra.gmra.mxu2 %vm4951_vm13, %v7957_v42  ;;  %v7980_v42 = vld [vmem:[%s11486_s7 + $0xf8] sm:$0xff] }
 0x756   : > { %v8337_v41 = vpop.permute.xlu2 %8336 }
 0x757   : > { %v8338_v24 = vunpack.i.l.bf16 %v8337_v41  ;;  %v8339_v57 = vunpack.i.h.bf16 %v8337_v41  ;;  %v8023_v41 = vld [vmem:[%s11486_s7 + $0x190] sm:$0xff] }
 0x759   : > { %4990 = vmatpush.msra.mxu0 %v8338_v24  ;;  %v8010_v24 = vld [vmem:[%s11486_s7 + $0x168] sm:$0xff] }
 0x75b   : > { %4991 = vmatpush.msra.mxu0 %v8339_v57  ;;  %v7991_v57 = vld [vmem:[%s11486_s7 + $0x110] sm:$0xff] }
 0x75c   : > { %7941 = vmatmul.msk.f32.vlgmr.msra.gmra.mxu0 %vm4951_vm13, %v7933_v2  ;;  %7966 = vmatmul.msk.f32.gmra.mxu2 %vm4951_vm13, %v7958_v46  ;;  %v8037_v2 = vld [vmem:[%s11486_s7 + $0x1c0] sm:$0xff]  ;;  %v8024_v46 = vld [vmem:[%s11486_s7 + $0x198] sm:$0xff] }
 0x75d   : > { %5315 = vmatpush.msrb.mxu0 %v10313_v25  ;;  %v4925_v25 = vld [vmem:[%s11486_s7 + $0x38] sm:$0xff] }
 0x75e   : > { %v8342_v47 = vpop.permute.xlu0 %8341  ;;  %v8362_v3 = vpop.permute.xlu2 %8361  ;;  %7956 = vmatmul.msk.f32.gmra.mxu1 %vm4951_vm13, %v4925_v25 }
 0x75f   : > { %v8343_v27 = vunpack.i.l.bf16 %v8342_v47  ;;  %5316 = vmatpush.msrb.mxu0 %v10311_v61  ;;  %v8352_v39 = vpop.permute.xlu1 %8351  ;;  %v8344_v34 = vunpack.i.h.bf16 %v8342_v47  ;;  %v8363_v29 = vunpack.i.l.bf16 %v8362_v3  ;;  %v8364_v40 = vunpack.i.h.bf16 %v8362_v3  ;;  %v7961_v61 = vld [vmem:[%s11486_s7 + $0xa0] sm:$0xff]  ;;  %v8011_v47 = vld [vmem:[%s11486_s7 + $0x170] sm:$0xff]  ;;  %v8026_v3 = vld [vmem:[%s11486_s7 + $0x1a8] sm:$0xff] }
 0x760   : > { %v8353_v16 = vunpack.i.l.bf16 %v8352_v39  ;;  %v8354_v43 = vunpack.i.h.bf16 %v8352_v39  ;;  %v7992_v39 = vld [vmem:[%s11486_s7 + $0x118] sm:$0xff] }
 0x761   : > { %5317 = vmatpush.msrb.mxu0 %v10324_v4  ;;  %5233 = vmatpush.msra.mxu3 %v8343_v27  ;;  %v7975_v4 = vld [vmem:[%s11486_s7 + $0xd0] sm:$0xff]  ;;  %v5641_v27 = vld [vmem:[%s11487_s8 + $0x18] sm:$0xff] }
 0x762   : > { %5507 = vmatpush.msrb.mxu2 %v8353_v16  ;;  %5663 = vperm.xlu2 %8380, %v5641_v27   ;;  %v8025_v16 = vld [vmem:[%s11486_s7 + $0x1a0] sm:$0xff] }
 0x763   : > { %5318 = vmatpush.msrb.mxu0 %v10327_v10  ;;  %5234 = vmatpush.msra.mxu3 %v8344_v34  ;;  %v7962_v10 = vld [vmem:[%s11486_s7 + $0xa8] sm:$0xff]  ;;  %v8012_v34 = vld [vmem:[%s11486_s7 + $0x178] sm:$0xff] }
 0x764   : > { %5508 = vmatpush.msrb.mxu2 %v8354_v43  ;;  %7942 = vmatmul.msk.f32.gmra.mxu0 %vm4951_vm13, %v7934_v54  ;;  %v5638_v54 = vld [vmem:[%s11487_s8] sm:$0xff] }
 0x765   : > { %7967 = vmatmul.msk.f32.gmra.mxu2 %vm4951_vm13, %v7959_v36  ;;  %v7993_v43 = vld [vmem:[%s11486_s7 + $0x120] sm:$0xff]  ;;  %v8039_v36 = vld [vmem:[%s11486_s7 + $0x1d0] sm:$0xff] }
 0x766   : > { %v8347_v12 = vpop.permute.xlu0 %8346  ;;  %v8367_v0 = vpop.permute.xlu2 %8366 }
 0x767   : > { %v8348_v45 = vunpack.i.l.bf16 %v8347_v12  ;;  %v8357_v1 = vpop.permute.xlu1 %8356  ;;  %v8349_v62 = vunpack.i.h.bf16 %v8347_v12  ;;  %v8368_v60 = vunpack.i.l.bf16 %v8367_v0  ;;  %v8369_v63 = vunpack.i.h.bf16 %v8367_v0  ;;  %v7994_v12 = vld [vmem:[%s11486_s7 + $0x128] sm:$0xff] }
 0x768   : > { %v8358_v6 = vunpack.i.l.bf16 %v8357_v1  ;;  %v8359_v22 = vunpack.i.h.bf16 %v8357_v1  ;;  %v7995_v1 = vld [vmem:[%s11486_s7 + $0x130] sm:$0xff] }
 0x769   : > { %5235 = vmatpush.msra.mxu3 %v8348_v45  ;;  %v8027_v45 = vld [vmem:[%s11486_s7 + $0x1b0] sm:$0xff] }
 0x76a   : > { %5509 = vmatpush.msrb.mxu2 %v8358_v6  ;;  %5648 = vperm.xlu2 %8380, %v5638_v54   ;;  %v8041_v6 = vld [vmem:[%s11486_s7 + $0x1e0] sm:$0xff] }
 0x76b   : > { %5236 = vmatpush.msra.mxu3 %v8349_v62  ;;  %v8028_v62 = vld [vmem:[%s11486_s7 + $0x1b8] sm:$0xff] }
 0x76c   : > { %5510 = vmatpush.msrb.mxu2 %v8359_v22  ;;  %7943 = vmatmul.msk.f32.gmra.mxu0 %vm4951_vm13, %v7935_v8  ;;  %v7996_v22 = vld [vmem:[%s11486_s7 + $0x138] sm:$0xff] }
 0x76d   : > { %7981 = vmatmul.msk.f32.vlgmr.msra.gmra.mxu3 %vm4951_vm13, %v7973_v21  ;;  %7968 = vmatmul.msk.f32.gmra.mxu2 %vm4951_vm13, %v7960_v17  ;;  %v8042_v21 = vld [vmem:[%s11486_s7 + $0x1e8] sm:$0xff] }
 0x76e   : > { %5601 = vmatpush.msrb.mxu3 %v8363_v29  ;;  %v8372_v49 = vpop.permute.xlu0 %8371 }
 0x76f   : > { %v8373_v53 = vunpack.i.l.bf16 %v8372_v49  ;;  %v8374_v30 = vunpack.i.h.bf16 %v8372_v49  ;;  %v5058_v8 = vpop.f32.mrf.mxu1 }
 0x770   : > { %5602 = vmatpush.msrb.mxu3 %v8364_v40 }
 0x771   : > { %5413 = vmatpush.msrb.mxu1 %v8373_v53 }
 0x772   : > { %5603 = vmatpush.msrb.mxu3 %v8368_v60  ;;  %v8044_v60 = vld [vmem:[%s11486_s7 + $0x1f8] sm:$0xff] }
 0x773   : > { %5414 = vmatpush.msrb.mxu1 %v8374_v30 }
 0x774   : > { %5604 = vmatpush.msrb.mxu3 %v8369_v63  ;;  %7944 = vmatmul.msk.f32.gmra.mxu0 %vm4951_vm13, %v7936_v19 }
 0x775   : > { %7982 = vmatmul.msk.f32.gmra.mxu3 %vm4951_vm13, %v7974_v48  ;;  %7969 = vmatmul.msk.f32.gmra.mxu2 %vm4951_vm13, %v7961_v61 }
 0x776   : > { %v8377_v31 = vpop.permute.xlu0 %8376 }
 0x777   : > { %v8378_v38 = vunpack.i.l.bf16 %v8377_v31  ;;  %v8379_v56 = vunpack.i.h.bf16 %v8377_v31  ;;  %v5061_v17 = vpop.f32.mrf.mxu1 }
 0x779   : > { %5415 = vmatpush.msrb.mxu1 %v8378_v38 }
 0x77b   : > { %5416 = vmatpush.msrb.mxu1 %v8379_v56 }
 0x77c   : > { %7945 = vmatmul.msk.f32.gmra.mxu0 %vm4951_vm13, %v7937_v5  ;;  %8013 = vmatmul.msk.f32.vlgmr.msrb.gmra.mxu1 %vm4951_vm13, %v8005_v20 }
 0x77d   : > { %7983 = vmatmul.msk.f32.gmra.mxu3 %vm4951_vm13, %v7975_v4  ;;  %7970 = vmatmul.msk.f32.gmra.mxu2 %vm4951_vm13, %v7962_v10 }
 0x77f   : > { %v5064_v40 = vpop.f32.mrf.mxu1 }
 0x784   : > { %7946 = vmatmul.msk.f32.gmra.mxu0 %vm4951_vm13, %v7938_v35  ;;  %8014 = vmatmul.msk.f32.gmra.mxu1 %vm4951_vm13, %v8006_v51 }
 0x785   : > { %7984 = vmatmul.msk.f32.gmra.mxu3 %vm4951_vm13, %v7976_v33  ;;  %7971 = vmatmul.msk.f32.gmra.mxu2 %vm4951_vm13, %v7963_v52 }
 0x787   : > { %v5067_v19 = vpop.f32.mrf.mxu1 }
 0x78c   : > { %7947 = vmatmul.msk.f32.gmra.mxu0 %vm4951_vm13, %v7939_v32  ;;  %8015 = vmatmul.msk.f32.gmra.mxu1 %vm4951_vm13, %v8007_v55 }
 0x78d   : > { %7985 = vmatmul.msk.f32.gmra.mxu3 %vm4951_vm13, %v7977_v15  ;;  %7972 = vmatmul.msk.f32.gmra.mxu2 %vm4951_vm13, %v7964_v11 }
 0x78f   : > { %v10616_v31 = vpop.f32.mrf.mxu1 }
 0x794   : > { %7948 = vmatmul.msk.f32.gmra.mxu0 %vm4951_vm13, %v7940_v26  ;;  %8016 = vmatmul.msk.f32.gmra.mxu1 %vm4951_vm13, %v8008_v59 }
 0x795   : > { %7986 = vmatmul.msk.f32.gmra.mxu3 %vm4951_vm13, %v7978_v37  ;;  %8029 = vmatmul.msk.f32.vlgmr.msrb.gmra.mxu2 %vm4951_vm13, %v8021_v13 }
 0x797   : > { %v10622_v4 = vpop.f32.mrf.mxu1 }
 0x79c   : > { %7997 = vmatmul.msk.f32.vlgmr.msrb.gmra.mxu0 %vm4951_vm13, %v7989_v9  ;;  %8017 = vmatmul.msk.f32.gmra.mxu1 %vm4951_vm13, %v8009_v14  ;;  %v10644_v9 = vpop.permute.xlu2 %5678 }
 0x79d   : > { %7987 = vmatmul.msk.f32.gmra.mxu3 %vm4951_vm13, %v7979_v50  ;;  %8030 = vmatmul.msk.f32.gmra.mxu2 %vm4951_vm13, %v8022_v7 }
 0x79f   : > { %v10628_v33 = vpop.f32.mrf.mxu1 }
 0x7a4   : > { %7998 = vmatmul.msk.f32.gmra.mxu0 %vm4951_vm13, %v7990_v23  ;;  %8018 = vmatmul.msk.f32.gmra.mxu1 %vm4951_vm13, %v8010_v24  ;;  %v10648_v24 = vpop.permute.xlu1 %5683 }
 0x7a5   : > { %7988 = vmatmul.msk.f32.gmra.mxu3 %vm4951_vm13, %v7980_v42  ;;  %8031 = vmatmul.msk.f32.gmra.mxu2 %vm4951_vm13, %v8023_v41 }
 0x7ac   : > { %7999 = vmatmul.msk.f32.gmra.mxu0 %vm4951_vm13, %v7991_v57  ;;  %8019 = vmatmul.msk.f32.gmra.mxu1 %vm4951_vm13, %v8011_v47 }
 0x7ad   : > { %8045 = vmatmul.msk.f32.vlgmr.msrb.gmra.mxu3 %vm4951_vm13, %v8037_v2  ;;  %8032 = vmatmul.msk.f32.gmra.mxu2 %vm4951_vm13, %v8024_v46 }
 0x7b4   : > { %8000 = vmatmul.msk.f32.gmra.mxu0 %vm4951_vm13, %v7992_v39  ;;  %8020 = vmatmul.msk.f32.gmra.mxu1 %vm4951_vm13, %v8012_v34 }
 0x7b5   : > { %8046 = vmatmul.msk.f32.gmra.mxu3 %vm4951_vm13, %v8038_v44  ;;  %8033 = vmatmul.msk.f32.gmra.mxu2 %vm4951_vm13, %v8025_v16 }
 0x7bc   : > { %8001 = vmatmul.msk.f32.gmra.mxu0 %vm4951_vm13, %v7993_v43  ;;  %v5664_v57 = vpop.permute.xlu2 %5663  ;;  %v10652_v43 = vpop.permute.xlu1 %5668 }
 0x7bd   : > { %8047 = vmatmul.msk.f32.gmra.mxu3 %vm4951_vm13, %v8039_v36  ;;  %8034 = vmatmul.msk.f32.gmra.mxu2 %vm4951_vm13, %v8026_v3 }
 0x7c4   : > { %8002 = vmatmul.msk.f32.gmra.mxu0 %vm4951_vm13, %v7994_v12 }
 0x7c5   : > { %8048 = vmatmul.msk.f32.gmra.mxu3 %vm4951_vm13, %v8040_v58  ;;  %8035 = vmatmul.msk.f32.gmra.mxu2 %vm4951_vm13, %v8027_v45  ;;  %v5649_v45 = vpop.permute.xlu2 %5648 }
 0x7cc   : > { %8003 = vmatmul.msk.f32.gmra.mxu0 %vm4951_vm13, %v7995_v1 }
 0x7cd   : > { %8049 = vmatmul.msk.f32.gmra.mxu3 %vm4951_vm13, %v8041_v6  ;;  %8036 = vmatmul.msk.f32.gmra.mxu2 %vm4951_vm13, %v8028_v62 }
 0x7d4   : > { %8004 = vmatmul.msk.f32.gmra.mxu0 %vm4951_vm13, %v7996_v22 }
 0x7d5   : > { %8050 = vmatmul.msk.f32.gmra.mxu3 %vm4951_vm13, %v8042_v21 }
 0x7d7   : > { %v5144_v29 = vpop.f32.mrf.mxu2 }
 0x7d9   : > { %v4993_v0 = vpop.f32.mrf.mxu0 }
 0x7da   : > { %v5059_v7 = vadd.f32 %v5058_v8, %v4993_v0 }
 0x7db   : > { %v10636_v11 = vpop.f32.mrf.mxu1 }
 0x7dc   : > { %v5168_v42 = vadd.f32 %v5144_v29, %v5059_v7  ;;  %v5674_v29 = vpop.permute.xlu0 %5673 }
 0x7dd   : > { %8051 = vmatmul.msk.f32.gmra.mxu3 %vm4951_vm13, %v8043_v28 }
 0x7df   : > { %v5147_v49 = vpop.f32.mrf.mxu2 }
 0x7e1   : > { %v4996_v53 = vpop.f32.mrf.mxu0 }
 0x7e2   : > { %v5062_v2 = vadd.f32 %v5061_v17, %v4996_v53 }
 0x7e4   : > { %v5169_v44 = vadd.f32 %v5147_v49, %v5062_v2 }
 0x7e5   : > { %8052 = vmatmul.msk.f32.gmra.mxu3 %vm4951_vm13, %v8044_v60 }
 0x7e8   : > { %v5150_v30 = vpop.f32.mrf.mxu2 }
 0x7e9   : > { %v4999_v63 = vpop.f32.mrf.mxu0 }
 0x7ea   : > { %v5065_v36 = vadd.f32 %v5064_v40, %v4999_v63  ;;  %v5654_v63 = vpop.permute.xlu1 %5653 }
 0x7ec   : > { %v5170_v62 = vadd.f32 %v5150_v30, %v5065_v36 }
 0x7f0   : > { %v5238_v48 = vpop.f32.mrf.mxu3  ;;  %v5153_v61 = vpop.f32.mrf.mxu2 }
 0x7f1   : > { %v5002_v25 = vpop.f32.mrf.mxu0  ;;  %v5262_v18 = vadd.f32 %v5238_v48, %v5168_v42  ;;  %v5659_v42 = vpop.permute.xlu0 %5658 }
 0x7f2   : > { %v5068_v0 = vadd.f32 %v5067_v19, %v5002_v25 }
 0x7f4   : > { %v5171_v48 = vadd.f32 %v5153_v61, %v5068_v0 }
 0x7f8   : > { %v5241_v38 = vpop.f32.mrf.mxu3  ;;  %v10618_v56 = vpop.f32.mrf.mxu2 }
 0x7f9   : > { %v10620_v5 = vpop.f32.mrf.mxu0  ;;  %v5418_v59 = vpop.f32.mrf.mxu1  ;;  %v5263_v34 = vadd.f32 %v5241_v38, %v5169_v44 }
 0x7fa   : > { %v5071_v19 = vadd.f32 %v10616_v31, %v10620_v5 }
 0x7fc   : > { %v5172_v61 = vadd.f32 %v10618_v56, %v5071_v19 }
 0x800   : > { %v5244_v10 = vpop.f32.mrf.mxu3  ;;  %v10624_v20 = vpop.f32.mrf.mxu2 }
 0x801   : > { %v10626_v35 = vpop.f32.mrf.mxu0  ;;  %v5421_v41 = vpop.f32.mrf.mxu1  ;;  %v5264_v17 = vadd.f32 %v5244_v10, %v5170_v62 }
 0x802   : > { %v5074_v31 = vadd.f32 %v10622_v4, %v10626_v35 }
 0x804   : > { %v5173_v56 = vadd.f32 %v10624_v20, %v5074_v31 }
 0x808   : > { %v5247_v52 = vpop.f32.mrf.mxu3  ;;  %v10632_v32 = vpop.f32.mrf.mxu2 }
 0x809   : > { %v10630_v51 = vpop.f32.mrf.mxu0  ;;  %v5424_v54 = vpop.f32.mrf.mxu1 }
 0x80a   : > { %v5077_v4 = vadd.f32 %v10628_v33, %v10630_v51 }
 0x80c   : > { %v5174_v20 = vadd.f32 %v10632_v32, %v5077_v4 }
 0x810   : > { %v10634_v15 = vpop.f32.mrf.mxu3  ;;  %v10640_v26 = vpop.f32.mrf.mxu2 }
 0x811   : > { %v10638_v55 = vpop.f32.mrf.mxu0  ;;  %v5427_v49 = vpop.f32.mrf.mxu1 }
 0x812   : > { %v5080_v33 = vadd.f32 %v10636_v11, %v10638_v55 }
 0x818   : > { %v10642_v37 = vpop.f32.mrf.mxu3  ;;  %v5512_v50 = vpop.f32.mrf.mxu2 }
 0x819   : > { %v5320_v13 = vpop.f32.mrf.mxu0 }
 0x81a   : > { %v5344_v46 = vadd.f32 %v5320_v13, %v5262_v18 }
 0x81c   : > { %v5442_v16 = vadd.f32 %v5418_v59, %v5344_v46  ;;  %v5265_v59 = vadd.f32 %v5247_v52, %v5171_v48  ;;  %v5266_v52 = vadd.f32 %v10634_v15, %v5172_v61  ;;  %v5267_v15 = vadd.f32 %v10642_v37, %v5173_v56  ;;  %v6547_v56 = vld [vmem:[%s11489_s10 + $0x28] sm:$0xff] }
 0x81e   : > { %v5536_v3 = vadd.f32 %v5512_v50, %v5442_v16 }
 0x820   : > { %v10646_v14 = vpop.f32.mrf.mxu3  ;;  %v5515_v47 = vpop.f32.mrf.mxu2 }
 0x821   : > { %v5323_v23 = vpop.f32.mrf.mxu0  ;;  %v5268_v62 = vadd.f32 %v10646_v14, %v5174_v20 }
 0x822   : > { %v5345_v12 = vadd.f32 %v5323_v23, %v5263_v34 }
 0x824   : > { %v5443_v8 = vadd.f32 %v5421_v41, %v5345_v12  ;;  %v5430_v41 = vpop.f32.mrf.mxu1 }
 0x826   : > { %v5537_v28 = vadd.f32 %v5515_v47, %v5443_v8 }
 0x828   : > { %v10650_v27 = vpop.f32.mrf.mxu3  ;;  %v5518_v6 = vpop.f32.mrf.mxu2 }
 0x829   : > { %v5326_v39 = vpop.f32.mrf.mxu0 }
 0x82a   : > { %v5346_v40 = vadd.f32 %v5326_v39, %v5264_v17 }
 0x82c   : > { %v5444_v38 = vadd.f32 %v5424_v54, %v5346_v40  ;;  %v5433_v36 = vpop.f32.mrf.mxu1 }
 0x82e   : > { %v5538_v25 = vadd.f32 %v5518_v6, %v5444_v38 }
 0x830   : > { %v5606_v58 = vpop.f32.mrf.mxu3  ;;  %v5521_v13 = vpop.f32.mrf.mxu2 }
 0x831   : > { %v5630_v1 = vadd.f32 %v5606_v58, %v5536_v3  ;;  %v5329_v21 = vpop.f32.mrf.mxu0 }
 0x832   : > { %v5347_v50 = vadd.f32 %v5329_v21, %v5265_v59 }
 0x833   : > { %v10654_v22 = vadd.f32 %v5649_v45, %v5630_v1 }
 0x834   : > { %v5445_v18 = vadd.f32 %v5427_v49, %v5347_v50  ;;  %v5436_v37 = vpop.f32.mrf.mxu1 }
 0x835   : > { %5694 = vst.msk [vmem:[%s8978_s25] sm:$0xff] %vm4951_vm13, %v10654_v22  ;;  %vm5702_vm5 = vcmp.gt.f32.partialorder %v10654_v22, 0.0 }
 0x836   : > { %v5539_v5 = vadd.f32 %v5521_v13, %v5445_v18 }
 0x838   : > { %v5609_v53 = vpop.f32.mrf.mxu3  ;;  %v5524_v46 = vpop.f32.mrf.mxu2 }
 0x839   : > { %v5631_v60 = vadd.f32 %v5609_v53, %v5537_v28  ;;  %v5332_v10 = vpop.f32.mrf.mxu0  ;;  %v5175_v28 = vadd.f32 %v10640_v26, %v5080_v33 }
 0x83a   : > { %v5348_v47 = vadd.f32 %v5332_v10, %v5266_v52 }
 0x83b   : > { %v10659_v30 = vadd.f32 %v5654_v63, %v5631_v60  ;;  %v5269_v14 = vadd.f32 %v10650_v27, %v5175_v28 }
 0x83c   : > { %v5446_v34 = vadd.f32 %v5430_v41, %v5348_v47  ;;  %v5439_v48 = vpop.f32.mrf.mxu1 }
 0x83d   : > { %5695 = vst.msk [vmem:[%s8978_s25 + $0x8] sm:$0xff] %vm4951_vm13, %v10659_v30  ;;  %v5711_v52 = vmul.f32 0.2, %v10659_v30  ;;  %vm5703_vm0 = vcmp.gt.f32.partialorder %v10659_v30, 0.0 }
 0x83e   : > { %v5540_v35 = vadd.f32 %v5524_v46, %v5446_v34  ;;  %v6542_v34 = vld [vmem:[%s11489_s10] sm:$0xff] }
 0x83f   : > { %v5719_v47 = vsel %vm5703_vm0, %v10659_v30, %v5711_v52  ;;  %v6549_v30 = vld [vmem:[%s11489_s10 + $0x38] sm:$0xff] }
 0x840   : > { %v5612_v7 = vpop.f32.mrf.mxu3  ;;  %v5527_v12 = vpop.f32.mrf.mxu2 }
 0x841   : > { %v5632_v23 = vadd.f32 %v5612_v7, %v5538_v25  ;;  %v5335_v39 = vpop.f32.mrf.mxu0 }
 0x842   : > { %v5349_v3 = vadd.f32 %v5335_v39, %v5267_v15 }
 0x843   : > { %v10667_v2 = vadd.f32 %v5659_v42, %v5632_v23 }
 0x844   : > { %v5447_v6 = vadd.f32 %v5433_v36, %v5349_v3  ;;  %v6544_v36 = vld [vmem:[%s11489_s10 + $0x10] sm:$0xff] }
 0x845   : > { %5696 = vst.msk [vmem:[%s8978_s25 + $0x10] sm:$0xff] %vm4951_vm13, %v10667_v2  ;;  %v5712_v18 = vmul.f32 0.2, %v10667_v2  ;;  %vm5704_vm4 = vcmp.gt.f32.partialorder %v10667_v2, 0.0 }
 0x846   : > { %v5541_v51 = vadd.f32 %v5527_v12, %v5447_v6 }
 0x847   : > { %v5720_v46 = vsel %vm5704_vm4, %v10667_v2, %v5712_v18 }
 0x848   : > { %v5615_v44 = vpop.f32.mrf.mxu3  ;;  %v5530_v0 = vpop.f32.mrf.mxu2 }
 0x849   : > { %v5633_v16 = vadd.f32 %v5615_v44, %v5539_v5  ;;  %v5338_v1 = vpop.f32.mrf.mxu0  ;;  %v5710_v5 = vmul.f32 0.2, %v10654_v22  ;;  %v6545_v44 = vld [vmem:[%s11489_s10 + $0x18] sm:$0xff] }
 0x84a   : > { %v5350_v8 = vadd.f32 %v5338_v1, %v5268_v62 }
 0x84b   : > { %v10676_v54 = vadd.f32 %v5664_v57, %v5633_v16  ;;  %v5718_v2 = vsel %vm5702_vm5, %v10654_v22, %v5710_v5  ;;  %v6548_v22 = vld [vmem:[%s11489_s10 + $0x30] sm:$0xff]  ;;  %v6546_v16 = vld [vmem:[%s11489_s10 + $0x20] sm:$0xff] }
 0x84c   : > { %v5448_v32 = vadd.f32 %v5436_v37, %v5350_v8  ;;  %v8436_v39 = vpack.i.bf16 %v5718_v2, %v5719_v47 }
 0x84d   : > { %5697 = vst.msk [vmem:[%s8978_s25 + $0x18] sm:$0xff] %vm4951_vm13, %v10676_v54  ;;  %v5713_v61 = vmul.f32 0.2, %v10676_v54  ;;  %vm5705_vm3 = vcmp.gt.f32.partialorder %v10676_v54, 0.0 }
 0x84e   : > { %v5542_v60 = vadd.f32 %v5530_v0, %v5448_v32 }
 0x850   : > { %v5618_v58 = vpop.f32.mrf.mxu3  ;;  %v5533_v59 = vpop.f32.mrf.mxu2 }
 0x851   : > { %v5634_v45 = vadd.f32 %v5618_v58, %v5540_v35 }
 0x853   : > { %v5690_v57 = vadd.f32 %v10652_v43, %v5634_v45  ;;  %v5341_v43 = vpop.f32.mrf.mxu0 }
 0x854   : > { %v5351_v55 = vadd.f32 %v5341_v43, %v5269_v14 }
 0x855   : > { %5698 = vst.msk [vmem:[%s8978_s25 + $0x20] sm:$0xff] %vm4951_vm13, %v5690_v57  ;;  %v5714_v40 = vmul.f32 0.2, %v5690_v57  ;;  %vm5706_vm14 = vcmp.gt.f32.partialorder %v5690_v57, 0.0 }
 0x856   : > { %v5449_v27 = vadd.f32 %v5439_v48, %v5351_v55 }
 0x857   : > { %v5722_v11 = vsel %vm5706_vm14, %v5690_v57, %v5714_v40 }
 0x858   : > { %v5621_v21 = vpop.f32.mrf.mxu3  ;;  %v5543_v10 = vadd.f32 %v5533_v59, %v5449_v27 }
 0x859   : > { %v5635_v17 = vadd.f32 %v5621_v21, %v5541_v51 }
 0x85b   : > { %v5691_v49 = vadd.f32 %v5674_v29, %v5635_v17 }
 0x85d   : > { %5699 = vst.msk [vmem:[%s8978_s25 + $0x28] sm:$0xff] %vm4951_vm13, %v5691_v49  ;;  %vm5707_vm15 = vcmp.gt.f32.partialorder %v5691_v49, 0.0  ;;  %v5715_v53 = vmul.f32 0.2, %v5691_v49 }
 0x85f   : > { %v5723_v63 = vsel %vm5707_vm15, %v5691_v49, %v5715_v53 }
 0x860   : > { %v5624_v38 = vpop.f32.mrf.mxu3  ;;  %v8391_v13 = vpack.i.bf16 %v5722_v11, %v5723_v63 }
 0x861   : > { %v5636_v26 = vadd.f32 %v5624_v38, %v5542_v60 }
 0x862   : > { %8392 = vrot.lane.b32.xlu2 %v8391_v13, %s8642_s3  ;;  %8387 = vrot.lane.b32.xlu1 %v8391_v13, %s8643_s11 }
 0x863   : > { %v5692_v29 = vadd.f32 %v10644_v9, %v5636_v26  ;;  %8382 = vrot.lane.b32.xlu0 %v8391_v13, %s8644_s27 }
 0x865   : > { %5700 = vst.msk [vmem:[%s8978_s25 + $0x30] sm:$0xff] %vm4951_vm13, %v5692_v29  ;;  %v5716_v50 = vmul.f32 0.2, %v5692_v29  ;;  %vm5708_vm1 = vcmp.gt.f32.partialorder %v5692_v29, 0.0 }
 0x867   : > { %v5724_v42 = vsel %vm5708_vm1, %v5692_v29, %v5716_v50  ;;  %vm7038_vm1 = vcmask 7168  }
 0x868   : > { %v5627_v19 = vpop.f32.mrf.mxu3 }
 0x869   : > { %v5637_v25 = vadd.f32 %v5627_v19, %v5543_v10 }
 0x86b   : > { %v5693_v7 = vadd.f32 %v10648_v24, %v5637_v25  ;;  %v5721_v24 = vsel %vm5705_vm3, %v10676_v54, %v5713_v61  ;;  %v6543_v54 = vld [vmem:[%s11489_s10 + $0x8] sm:$0xff] }
 0x86c   : > { %v8421_v31 = vpack.i.bf16 %v5720_v46, %v5721_v24 }
 0x86d   : > { %5701 = vst.msk [vmem:[%s8978_s25 + $0x38] sm:$0xff] %vm4951_vm13, %v5693_v7  ;;  %vm5709_vm2 = vcmp.gt.f32.partialorder %v5693_v7, 0.0  ;;  %v5717_v23 = vmul.f32 0.2, %v5693_v7  ;;  %s8645_s25 = smov 112  }
 0x86f   : > { %v5725_v41 = vsel %vm5709_vm2, %v5693_v7, %v5717_v23 }
 0x870   : > { %5873 = vmatpush.msra.mxu1 %v5725_v41  ;;  %v8416_v9 = vpack.i.bf16 %v5724_v42, %v5725_v41 }
 0x872   : > { %5874 = vmatpush.msra.mxu1 %v5724_v42  ;;  %8417 = vrot.lane.b32.xlu2 %v8416_v9, %s8642_s3 }
 0x873   : > { %8407 = vrot.lane.b32.xlu1 %v8416_v9, %s8643_s11  ;;  %8397 = vrot.lane.b32.xlu0 %v8416_v9, %s8644_s27 }
 0x874   : > { %5875 = vmatpush.msra.mxu1 %v5723_v63 }
 0x876   : > { %5876 = vmatpush.msra.mxu1 %v5722_v11 }
 0x878   : > { %5877 = vmatpush.msra.mxu1 %v5721_v24 }
 0x87a   : > { %8422 = vrot.lane.b32.xlu2 %v8421_v31, %s8642_s3  ;;  %5878 = vmatpush.msra.mxu1 %v5720_v46 }
 0x87b   : > { %8412 = vrot.lane.b32.xlu1 %v8421_v31, %s8643_s11  ;;  %8402 = vrot.lane.b32.xlu0 %v8421_v31, %s8644_s27 }
 0x87c   : > { %5879 = vmatpush.msra.mxu1 %v5719_v47 }
 0x87e   : > { %5880 = vmatpush.msra.mxu1 %v5718_v2 }
 0x882   : > { %8437 = vrot.lane.b32.xlu2 %v8436_v39, %s8642_s3 }
 0x883   : > { %8432 = vrot.lane.b32.xlu1 %v8436_v39, %s8643_s11  ;;  %8427 = vrot.lane.b32.xlu0 %v8436_v39, %s8644_s27  ;;  %s11590_s11 = sld [smem:[#allocation45_spill]] }
 0x889   : > { %v5726_v57 = vld [vmem:[%s11590_s11] sm:$0xff]  ;;  %v5727_v17 = vld [vmem:[%s11590_s11 + $0x8] sm:$0xff]  ;;  %v5728_v48 = vld [vmem:[%s11590_s11 + $0x10] sm:$0xff] }
 0x88a   : > { %8447 = vrot.lane.b32.xlu2 %v8391_v13, %s8645_s25  ;;  %8069 = vmatmul.msk.f32.vlgmr.msra.gmra.mxu1 %vm5775_vm6, %v5726_v57  ;;  %v8093_v8 = vld [vmem:[%s11590_s11 + $0xc0] sm:$0xff]  ;;  %v8094_v14 = vld [vmem:[%s11590_s11 + $0xc8] sm:$0xff]  ;;  %v8095_v10 = vld [vmem:[%s11590_s11 + $0xd0] sm:$0xff] }
 0x88b   : > { %8442 = vrot.lane.b32.xlu1 %v8391_v13, %s8646_s22  ;;  %8452 = vrot.lane.b32.xlu0 %v8391_v13, %s8647_s15  ;;  %v5729_v25 = vld [vmem:[%s11590_s11 + $0x18] sm:$0xff]  ;;  %v8053_v24 = vld [vmem:[%s11590_s11 + $0x40] sm:$0xff] }
 0x88c   : > { %v8077_v52 = vld [vmem:[%s11590_s11 + $0x80] sm:$0xff]  ;;  %v8096_v46 = vld [vmem:[%s11590_s11 + $0xd8] sm:$0xff] }
 0x88d   : > { %v5730_v47 = vld [vmem:[%s11590_s11 + $0x20] sm:$0xff]  ;;  %v8080_v57 = vld [vmem:[%s11590_s11 + $0x98] sm:$0xff] }
 0x892   : > { %8462 = vrot.lane.b32.xlu2 %v8421_v31, %s8646_s22  ;;  %8070 = vmatmul.msk.f32.gmra.mxu1 %vm5775_vm6, %v5727_v17 }
 0x893   : > { %8457 = vrot.lane.b32.xlu1 %v8391_v13, %s8648_s9  ;;  %8467 = vrot.lane.b32.xlu0 %v8421_v31, %s8645_s25 }
 0x89a   : > { %8487 = vrot.lane.b32.xlu2 %v8416_v9, %s8647_s15  ;;  %8071 = vmatmul.msk.f32.gmra.mxu1 %vm5775_vm6, %v5728_v48  ;;  %v8081_v48 = vld [vmem:[%s11590_s11 + $0xa0] sm:$0xff] }
 0x89b   : > { %8477 = vrot.lane.b32.xlu1 %v8416_v9, %s8645_s25  ;;  %8472 = vrot.lane.b32.xlu0 %v8416_v9, %s8646_s22 }
 0x8a2   : > { %8492 = vrot.lane.b32.xlu2 %v8421_v31, %s8648_s9  ;;  %8072 = vmatmul.msk.f32.gmra.mxu1 %vm5775_vm6, %v5729_v25 }
 0x8a3   : > { %8482 = vrot.lane.b32.xlu1 %v8421_v31, %s8647_s15  ;;  %8497 = vrot.lane.b32.xlu0 %v8416_v9, %s8648_s9 }
 0x8aa   : > { %8512 = vrot.lane.b32.xlu2 %v8436_v39, %s8647_s15  ;;  %8073 = vmatmul.msk.f32.gmra.mxu1 %vm5775_vm6, %v5730_v47  ;;  %v8126_v47 = vld [vmem:[%s11590_s11 + $0x148] sm:$0xff] }
 0x8ab   : > { %8507 = vrot.lane.b32.xlu1 %v8436_v39, %s8645_s25  ;;  %8502 = vrot.lane.b32.xlu0 %v8436_v39, %s8646_s22 }
 0x8b2   : > { %6582 = vperm.xlu2 %8380, %v6548_v22   ;;  %v8054_v22 = vld [vmem:[%s11590_s11 + $0x48] sm:$0xff] }
 0x8b3   : > { %6587 = vperm.xlu1 %8319, %v6549_v30   ;;  %8517 = vrot.lane.b32.xlu0 %v8436_v39, %s8648_s9  ;;  %v8078_v30 = vld [vmem:[%s11590_s11 + $0x88] sm:$0xff]  ;;  %s8649_s9 = smov 127  }
 0x8ba   : > { %6567 = vperm.xlu2 %8380, %v6545_v44   ;;  %v8097_v44 = vld [vmem:[%s11590_s11 + $0xe0] sm:$0xff] }
 0x8bb   : > { %6572 = vperm.xlu1 %8319, %v6546_v16   ;;  %6577 = vperm.xlu0 %8318, %v6547_v56  }
 0x8bc   : > { %v8393_v15 = vpop.permute.xlu2 %8392 }
 0x8bd   : > { %v8394_v12 = vunpack.i.l.bf16 %v8393_v15  ;;  %v8395_v58 = vunpack.i.h.bf16 %v8393_v15  ;;  %v8098_v15 = vld [vmem:[%s11590_s11 + $0xe8] sm:$0xff] }
 0x8c2   : > { %6552 = vperm.xlu2 %8380, %v6542_v34   ;;  %v5731_v34 = vld [vmem:[%s11590_s11 + $0x28] sm:$0xff] }
 0x8c3   : > { %6557 = vperm.xlu1 %8319, %v6543_v54   ;;  %6562 = vperm.xlu0 %8318, %v6544_v36   ;;  %v8055_v54 = vld [vmem:[%s11590_s11 + $0x50] sm:$0xff] }
 0x8c4   : > { %8074 = vmatmul.msk.f32.gmra.mxu1 %vm5775_vm6, %v5731_v34  ;;  %v8079_v36 = vld [vmem:[%s11590_s11 + $0x90] sm:$0xff]  ;;  %v8128_v34 = vld [vmem:[%s11590_s11 + $0x158] sm:$0xff] }
 0x8cc   : > { %v8418_v4 = vpop.permute.xlu2 %8417 }
 0x8cd   : > { %v8419_v35 = vunpack.i.l.bf16 %v8418_v4  ;;  %v8420_v3 = vunpack.i.h.bf16 %v8418_v4 }
 0x8cf   : > { %6077 = vmatpush.msra.mxu3 %v8419_v35 }
 0x8d1   : > { %6078 = vmatpush.msra.mxu3 %v8420_v3  ;;  %v5732_v3 = vld [vmem:[%s11590_s11 + $0x30] sm:$0xff] }
 0x8d2   : > { %8075 = vmatmul.msk.f32.gmra.mxu1 %vm5775_vm6, %v5732_v3  ;;  %v8143_v3 = vld [vmem:[%s11590_s11 + $0x190] sm:$0xff] }
 0x8d3   : > { %6079 = vmatpush.msra.mxu3 %v8394_v12 }
 0x8d4   : > { %v8423_v45 = vpop.permute.xlu2 %8422  ;;  %v8388_v62 = vpop.permute.xlu1 %8387 }
 0x8d5   : > { %v8424_v1 = vunpack.i.l.bf16 %v8423_v45  ;;  %6080 = vmatpush.msra.mxu3 %v8395_v58  ;;  %v8425_v20 = vunpack.i.h.bf16 %v8423_v45  ;;  %v8383_v37 = vpop.permute.xlu0 %8382  ;;  %v8389_v53 = vunpack.i.l.bf16 %v8388_v62  ;;  %v8390_v11 = vunpack.i.h.bf16 %v8388_v62 }
 0x8d6   : > { %v8384_v60 = vunpack.i.l.bf16 %v8383_v37  ;;  %v8385_v55 = vunpack.i.h.bf16 %v8383_v37 }
 0x8d7   : > { %6081 = vmatpush.msra.mxu3 %v8424_v1 }
 0x8d9   : > { %6082 = vmatpush.msra.mxu3 %v8425_v20 }
 0x8dc   : > { %v8438_v6 = vpop.permute.xlu2 %8437 }
 0x8dd   : > { %v8439_v33 = vunpack.i.l.bf16 %v8438_v6  ;;  %v8440_v51 = vunpack.i.h.bf16 %v8438_v6  ;;  %v8056_v6 = vld [vmem:[%s11590_s11 + $0x58] sm:$0xff] }
 0x8df   : > { %6083 = vmatpush.msra.mxu3 %v8439_v33  ;;  %v8099_v33 = vld [vmem:[%s11590_s11 + $0xf0] sm:$0xff] }
 0x8e1   : > { %6084 = vmatpush.msra.mxu3 %v8440_v51 }
 0x8e2   : > { %8101 = vmatmul.msk.f32.vlgmr.msra.gmra.mxu3 %vm5775_vm6, %v8093_v8 }
 0x8e4   : > { %v10757_v21 = vpop.permute.xlu2 %8447 }
 0x8e5   : > { %v8408_v0 = vpop.permute.xlu1 %8407  ;;  %v8398_v28 = vpop.permute.xlu0 %8397  ;;  %v8449_v62 = vunpack.i.l.bf16 %v10757_v21  ;;  %v8450_v51 = vunpack.i.h.bf16 %v10757_v21 }
 0x8e6   : > { %v8409_v32 = vunpack.i.l.bf16 %v8408_v0  ;;  %v8399_v40 = vunpack.i.l.bf16 %v8398_v28  ;;  %v8410_v49 = vunpack.i.h.bf16 %v8408_v0  ;;  %v8400_v43 = vunpack.i.h.bf16 %v8398_v28  ;;  %v5733_v28 = vld [vmem:[%s11590_s11 + $0x38] sm:$0xff] }
 0x8e7   : > { %8076 = vmatmul.msk.f32.gmra.mxu1 %vm5775_vm6, %v5733_v28 }
 0x8e8   : > { %5808 = vmatpush.msra.mxu0 %v8409_v32  ;;  %5971 = vmatpush.msra.mxu2 %v8399_v40 }
 0x8ea   : > { %5809 = vmatpush.msra.mxu0 %v8410_v49  ;;  %5972 = vmatpush.msra.mxu2 %v8400_v43 }
 0x8eb   : > { %8102 = vmatmul.msk.f32.gmra.mxu3 %vm5775_vm6, %v8094_v14 }
 0x8ec   : > { %5810 = vmatpush.msra.mxu0 %v8389_v53  ;;  %5973 = vmatpush.msra.mxu2 %v8384_v60  ;;  %v10767_v63 = vpop.permute.xlu2 %8462 }
 0x8ed   : > { %v8413_v38 = vpop.permute.xlu1 %8412  ;;  %v8403_v13 = vpop.permute.xlu0 %8402  ;;  %v8464_v43 = vunpack.i.l.bf16 %v10767_v63  ;;  %v8465_v60 = vunpack.i.h.bf16 %v10767_v63  ;;  %v8100_v63 = vld [vmem:[%s11590_s11 + $0xf8] sm:$0xff] }
 0x8ee   : > { %v8414_v26 = vunpack.i.l.bf16 %v8413_v38  ;;  %v8404_v27 = vunpack.i.l.bf16 %v8403_v13  ;;  %5811 = vmatpush.msra.mxu0 %v8390_v11  ;;  %5974 = vmatpush.msra.mxu2 %v8385_v55  ;;  %v8415_v29 = vunpack.i.h.bf16 %v8413_v38  ;;  %v8405_v59 = vunpack.i.h.bf16 %v8403_v13  ;;  %v8057_v55 = vld [vmem:[%s11590_s11 + $0x60] sm:$0xff] }
 0x8f0   : > { %5812 = vmatpush.msra.mxu0 %v8414_v26  ;;  %5975 = vmatpush.msra.mxu2 %v8404_v27 }
 0x8f2   : > { %5813 = vmatpush.msra.mxu0 %v8415_v29  ;;  %5976 = vmatpush.msra.mxu2 %v8405_v59 }
 0x8f3   : > { %8103 = vmatmul.msk.f32.gmra.mxu3 %vm5775_vm6, %v8095_v10 }
 0x8f4   : > { %v8488_v19 = vpop.permute.xlu2 %8487 }
 0x8f5   : > { %v8489_v50 = vunpack.i.l.bf16 %v8488_v19  ;;  %v8433_v7 = vpop.permute.xlu1 %8432  ;;  %v8428_v23 = vpop.permute.xlu0 %8427  ;;  %v8490_v9 = vunpack.i.h.bf16 %v8488_v19 }
 0x8f6   : > { %v8434_v42 = vunpack.i.l.bf16 %v8433_v7  ;;  %v8429_v41 = vunpack.i.l.bf16 %v8428_v23  ;;  %v8435_v61 = vunpack.i.h.bf16 %v8433_v7  ;;  %v8430_v18 = vunpack.i.h.bf16 %v8428_v23 }
 0x8f7   : > { %6501 = vmatpush.msrb.mxu3 %v8489_v50 }
 0x8f8   : > { %5814 = vmatpush.msra.mxu0 %v8434_v42  ;;  %5977 = vmatpush.msra.mxu2 %v8429_v41  ;;  %v8058_v42 = vld [vmem:[%s11590_s11 + $0x68] sm:$0xff] }
 0x8f9   : > { %6502 = vmatpush.msrb.mxu3 %v8490_v9  ;;  %v8082_v41 = vld [vmem:[%s11590_s11 + $0xa8] sm:$0xff]  ;;  %v8157_v9 = vld [vmem:[%s11590_s11 + $0x1c0] sm:$0xff] }
 0x8fa   : > { %5815 = vmatpush.msra.mxu0 %v8435_v61  ;;  %5978 = vmatpush.msra.mxu2 %v8430_v18 }
 0x8fb   : > { %8061 = vmatmul.msk.f32.vlgmr.msra.gmra.mxu0 %vm5775_vm6, %v8053_v24  ;;  %8085 = vmatmul.msk.f32.vlgmr.msra.gmra.mxu2 %vm5775_vm6, %v8077_v52  ;;  %v8125_v52 = vld [vmem:[%s11590_s11 + $0x140] sm:$0xff] }
 0x8fc   : > { %8104 = vmatmul.msk.f32.gmra.mxu3 %vm5775_vm6, %v8096_v46  ;;  %v10830_v12 = vpop.permute.xlu2 %8492  ;;  %v8059_v46 = vld [vmem:[%s11590_s11 + $0x70] sm:$0xff] }
 0x8fd   : > { %v8443_v31 = vpop.permute.xlu1 %8442  ;;  %v8453_v5 = vpop.permute.xlu0 %8452  ;;  %v8494_v25 = vunpack.i.l.bf16 %v10830_v12  ;;  %v8495_v23 = vunpack.i.h.bf16 %v10830_v12  ;;  %v8162_v12 = vld [vmem:[%s11590_s11 + $0x1e8] sm:$0xff] }
 0x8fe   : > { %v8454_v2 = vunpack.i.l.bf16 %v8453_v5  ;;  %v8455_v39 = vunpack.i.h.bf16 %v8453_v5  ;;  %v8444_v37 = vunpack.i.l.bf16 %v8443_v31  ;;  %v8445_v8 = vunpack.i.h.bf16 %v8443_v31  ;;  %v8083_v31 = vld [vmem:[%s11590_s11 + $0xb0] sm:$0xff]  ;;  %v8158_v5 = vld [vmem:[%s11590_s11 + $0x1c8] sm:$0xff] }
 0x900   : > { %6503 = vmatpush.msrb.mxu3 %v8454_v2  ;;  %v8060_v2 = vld [vmem:[%s11590_s11 + $0x78] sm:$0xff] }
 0x902   : > { %6504 = vmatpush.msrb.mxu3 %v8455_v39  ;;  %v8084_v39 = vld [vmem:[%s11590_s11 + $0xb8] sm:$0xff] }
 0x903   : > { %8062 = vmatmul.msk.f32.gmra.mxu0 %vm5775_vm6, %v8054_v22  ;;  %8086 = vmatmul.msk.f32.gmra.mxu2 %vm5775_vm6, %v8078_v30  ;;  %v8159_v22 = vld [vmem:[%s11590_s11 + $0x1d0] sm:$0xff] }
 0x904   : > { %8105 = vmatmul.msk.f32.gmra.mxu3 %vm5775_vm6, %v8097_v44  ;;  %v8513_v21 = vpop.permute.xlu2 %8512  ;;  %v8127_v30 = vld [vmem:[%s11590_s11 + $0x150] sm:$0xff]  ;;  %v8109_v44 = vld [vmem:[%s11590_s11 + $0x100] sm:$0xff] }
 0x905   : > { %v10809_v16 = vpop.permute.xlu1 %8457  ;;  %v8468_v56 = vpop.permute.xlu0 %8467  ;;  %v8514_v38 = vunpack.i.l.bf16 %v8513_v21  ;;  %v8515_v26 = vunpack.i.h.bf16 %v8513_v21  ;;  %v8148_v21 = vld [vmem:[%s11590_s11 + $0x1b8] sm:$0xff] }
 0x906   : > { %v8469_v32 = vunpack.i.l.bf16 %v8468_v56  ;;  %v8470_v14 = vunpack.i.h.bf16 %v8468_v56  ;;  %v8459_v13 = vunpack.i.l.bf16 %v10809_v16  ;;  %v8460_v27 = vunpack.i.h.bf16 %v10809_v16  ;;  %v8141_v16 = vld [vmem:[%s11590_s11 + $0x180] sm:$0xff]  ;;  %v8160_v56 = vld [vmem:[%s11590_s11 + $0x1d8] sm:$0xff] }
 0x90b   : > { %8063 = vmatmul.msk.f32.gmra.mxu0 %vm5775_vm6, %v8055_v54  ;;  %8087 = vmatmul.msk.f32.gmra.mxu2 %vm5775_vm6, %v8079_v36  ;;  %v8110_v54 = vld [vmem:[%s11590_s11 + $0x108] sm:$0xff] }
 0x90c   : > { %8106 = vmatmul.msk.f32.gmra.mxu3 %vm5775_vm6, %v8098_v15  ;;  %v8142_v36 = vld [vmem:[%s11590_s11 + $0x188] sm:$0xff]  ;;  %v8161_v15 = vld [vmem:[%s11590_s11 + $0x1e0] sm:$0xff] }
 0x90d   : > { %v8478_v4 = vpop.permute.xlu1 %8477  ;;  %v8473_v35 = vpop.permute.xlu0 %8472 }
 0x90e   : > { %v8479_v58 = vunpack.i.l.bf16 %v8478_v4  ;;  %v8474_v45 = vunpack.i.l.bf16 %v8473_v35  ;;  %v8480_v1 = vunpack.i.h.bf16 %v8478_v4  ;;  %v8475_v20 = vunpack.i.h.bf16 %v8473_v35  ;;  %v8129_v4 = vld [vmem:[%s11590_s11 + $0x160] sm:$0xff]  ;;  %v8111_v35 = vld [vmem:[%s11590_s11 + $0x110] sm:$0xff] }
 0x910   : > { %6183 = vmatpush.msrb.mxu0 %v8479_v58  ;;  %6395 = vmatpush.msrb.mxu2 %v8474_v45  ;;  %v8130_v58 = vld [vmem:[%s11590_s11 + $0x168] sm:$0xff]  ;;  %v8112_v45 = vld [vmem:[%s11590_s11 + $0x118] sm:$0xff] }
 0x912   : > { %6184 = vmatpush.msrb.mxu0 %v8480_v1  ;;  %6396 = vmatpush.msrb.mxu2 %v8475_v20  ;;  %v8144_v1 = vld [vmem:[%s11590_s11 + $0x198] sm:$0xff]  ;;  %v8163_v20 = vld [vmem:[%s11590_s11 + $0x1f0] sm:$0xff] }
 0x913   : > { %8064 = vmatmul.msk.f32.gmra.mxu0 %vm5775_vm6, %v8056_v6  ;;  %8088 = vmatmul.msk.f32.gmra.mxu2 %vm5775_vm6, %v8080_v57  ;;  %v8131_v6 = vld [vmem:[%s11590_s11 + $0x170] sm:$0xff]  ;;  %v8113_v57 = vld [vmem:[%s11590_s11 + $0x120] sm:$0xff] }
 0x914   : > { %6185 = vmatpush.msrb.mxu0 %v8449_v62  ;;  %6397 = vmatpush.msrb.mxu2 %v8444_v37  ;;  %v8145_v62 = vld [vmem:[%s11590_s11 + $0x1a0] sm:$0xff]  ;;  %v8164_v37 = vld [vmem:[%s11590_s11 + $0x1f8] sm:$0xff] }
 0x915   : > { %v8483_v17 = vpop.permute.xlu1 %8482  ;;  %v8498_v0 = vpop.permute.xlu0 %8497  ;;  %8107 = vmatmul.msk.f32.gmra.mxu3 %vm5775_vm6, %v8099_v33 }
 0x916   : > { %v8484_v40 = vunpack.i.l.bf16 %v8483_v17  ;;  %v8499_v49 = vunpack.i.l.bf16 %v8498_v0  ;;  %6186 = vmatpush.msrb.mxu0 %v8450_v51  ;;  %6398 = vmatpush.msrb.mxu2 %v8445_v8  ;;  %v8500_v53 = vunpack.i.h.bf16 %v8498_v0  ;;  %v8485_v11 = vunpack.i.h.bf16 %v8483_v17  ;;  %v5882_v33 = vpop.f32.mrf.mxu1  ;;  %v8132_v51 = vld [vmem:[%s11590_s11 + $0x178] sm:$0xff]  ;;  %v8114_v8 = vld [vmem:[%s11590_s11 + $0x128] sm:$0xff] }
 0x917   : > { %v8146_v17 = vld [vmem:[%s11590_s11 + $0x1a8] sm:$0xff] }
 0x918   : > { %6187 = vmatpush.msrb.mxu0 %v8469_v32  ;;  %6289 = vmatpush.msrb.mxu1 %v8499_v49  ;;  %v8115_v32 = vld [vmem:[%s11590_s11 + $0x130] sm:$0xff] }
 0x919   : > { %6399 = vmatpush.msrb.mxu2 %v8464_v43  ;;  %6505 = vmatpush.msrb.mxu3 %v8484_v40  ;;  %v8147_v40 = vld [vmem:[%s11590_s11 + $0x1b0] sm:$0xff]  ;;  %v8116_v43 = vld [vmem:[%s11590_s11 + $0x138] sm:$0xff] }
 0x91a   : > { %6188 = vmatpush.msrb.mxu0 %v8470_v14  ;;  %6290 = vmatpush.msrb.mxu1 %v8500_v53 }
 0x91b   : > { %6400 = vmatpush.msrb.mxu2 %v8465_v60  ;;  %6506 = vmatpush.msrb.mxu3 %v8485_v11 }
 0x91c   : > { %8065 = vmatmul.msk.f32.gmra.mxu0 %vm5775_vm6, %v8057_v55  ;;  %8089 = vmatmul.msk.f32.gmra.mxu2 %vm5775_vm6, %v8081_v48 }
 0x91d   : > { %6291 = vmatpush.msrb.mxu1 %v8459_v13  ;;  %6507 = vmatpush.msrb.mxu3 %v8514_v38  ;;  %v8508_v29 = vpop.permute.xlu1 %8507  ;;  %v8503_v59 = vpop.permute.xlu0 %8502 }
 0x91e   : > { %v8509_v10 = vunpack.i.l.bf16 %v8508_v29  ;;  %v8504_v19 = vunpack.i.l.bf16 %v8503_v59  ;;  %8108 = vmatmul.msk.f32.gmra.mxu3 %vm5775_vm6, %v8100_v63  ;;  %v8510_v50 = vunpack.i.h.bf16 %v8508_v29  ;;  %v8505_v7 = vunpack.i.h.bf16 %v8503_v59  ;;  %v5885_v28 = vpop.f32.mrf.mxu1 }
 0x91f   : > { %6292 = vmatpush.msrb.mxu1 %v8460_v27  ;;  %6508 = vmatpush.msrb.mxu3 %v8515_v26 }
 0x920   : > { %6189 = vmatpush.msrb.mxu0 %v8509_v10  ;;  %6401 = vmatpush.msrb.mxu2 %v8504_v19 }
 0x921   : > { %6293 = vmatpush.msrb.mxu1 %v8494_v25 }
 0x922   : > { %6190 = vmatpush.msrb.mxu0 %v8510_v50  ;;  %6402 = vmatpush.msrb.mxu2 %v8505_v7 }
 0x923   : > { %6294 = vmatpush.msrb.mxu1 %v8495_v23 }
 0x924   : > { %8066 = vmatmul.msk.f32.gmra.mxu0 %vm5775_vm6, %v8058_v42  ;;  %8090 = vmatmul.msk.f32.gmra.mxu2 %vm5775_vm6, %v8082_v41 }
 0x925   : > { %v8518_v61 = vpop.permute.xlu0 %8517 }
 0x926   : > { %v8519_v18 = vunpack.i.l.bf16 %v8518_v61  ;;  %8165 = vmatmul.msk.f32.vlgmr.msrb.gmra.mxu3 %vm5775_vm6, %v8157_v9  ;;  %v8520_v24 = vunpack.i.h.bf16 %v8518_v61  ;;  %v5888_v14 = vpop.f32.mrf.mxu1 }
 0x928   : > { %6295 = vmatpush.msrb.mxu1 %v8519_v18 }
 0x92a   : > { %6296 = vmatpush.msrb.mxu1 %v8520_v24 }
 0x92b   : > { %8133 = vmatmul.msk.f32.vlgmr.msrb.gmra.mxu1 %vm5775_vm6, %v8125_v52 }
 0x92c   : > { %8067 = vmatmul.msk.f32.gmra.mxu0 %vm5775_vm6, %v8059_v46  ;;  %8091 = vmatmul.msk.f32.gmra.mxu2 %vm5775_vm6, %v8083_v31  ;;  %v11047_v46 = vpop.permute.xlu2 %6582 }
 0x92e   : > { %8166 = vmatmul.msk.f32.gmra.mxu3 %vm5775_vm6, %v8158_v5  ;;  %v5891_v11 = vpop.f32.mrf.mxu1 }
 0x933   : > { %8134 = vmatmul.msk.f32.gmra.mxu1 %vm5775_vm6, %v8126_v47 }
 0x934   : > { %8068 = vmatmul.msk.f32.gmra.mxu0 %vm5775_vm6, %v8060_v2  ;;  %8092 = vmatmul.msk.f32.gmra.mxu2 %vm5775_vm6, %v8084_v39 }
 0x936   : > { %8167 = vmatmul.msk.f32.gmra.mxu3 %vm5775_vm6, %v8159_v22  ;;  %v11023_v13 = vpop.f32.mrf.mxu1  ;;  %v11053_v22 = vpop.permute.xlu1 %6587 }
 0x93b   : > { %8135 = vmatmul.msk.f32.gmra.mxu1 %vm5775_vm6, %v8127_v30 }
 0x93c   : > { %8117 = vmatmul.msk.f32.vlgmr.msrb.gmra.mxu0 %vm5775_vm6, %v8109_v44  ;;  %8149 = vmatmul.msk.f32.vlgmr.msrb.gmra.mxu2 %vm5775_vm6, %v8141_v16 }
 0x93e   : > { %8168 = vmatmul.msk.f32.gmra.mxu3 %vm5775_vm6, %v8160_v56  ;;  %v6568_v56 = vpop.permute.xlu2 %6567 }
 0x941   : > { %v11027_v59 = vpop.f32.mrf.mxu1 }
 0x943   : > { %8136 = vmatmul.msk.f32.gmra.mxu1 %vm5775_vm6, %v8128_v34 }
 0x944   : > { %8118 = vmatmul.msk.f32.gmra.mxu0 %vm5775_vm6, %v8110_v54  ;;  %8150 = vmatmul.msk.f32.gmra.mxu2 %vm5775_vm6, %v8142_v36 }
 0x946   : > { %8169 = vmatmul.msk.f32.gmra.mxu3 %vm5775_vm6, %v8161_v15 }
 0x94b   : > { %8137 = vmatmul.msk.f32.gmra.mxu1 %vm5775_vm6, %v8129_v4 }
 0x94c   : > { %8119 = vmatmul.msk.f32.gmra.mxu0 %vm5775_vm6, %v8111_v35  ;;  %8151 = vmatmul.msk.f32.gmra.mxu2 %vm5775_vm6, %v8143_v3 }
 0x94e   : > { %8170 = vmatmul.msk.f32.gmra.mxu3 %vm5775_vm6, %v8162_v12  ;;  %v11057_v12 = vpop.permute.xlu1 %6572 }
 0x94f   : > { %v11031_v7 = vpop.f32.mrf.mxu1 }
 0x953   : > { %8138 = vmatmul.msk.f32.gmra.mxu1 %vm5775_vm6, %v8130_v58 }
 0x954   : > { %8120 = vmatmul.msk.f32.gmra.mxu0 %vm5775_vm6, %v8112_v45  ;;  %8152 = vmatmul.msk.f32.gmra.mxu2 %vm5775_vm6, %v8144_v1 }
 0x956   : > { %8171 = vmatmul.msk.f32.gmra.mxu3 %vm5775_vm6, %v8163_v20 }
 0x95b   : > { %8139 = vmatmul.msk.f32.gmra.mxu1 %vm5775_vm6, %v8131_v6 }
 0x95c   : > { %8121 = vmatmul.msk.f32.gmra.mxu0 %vm5775_vm6, %v8113_v57  ;;  %8153 = vmatmul.msk.f32.gmra.mxu2 %vm5775_vm6, %v8145_v62 }
 0x95e   : > { %8172 = vmatmul.msk.f32.gmra.mxu3 %vm5775_vm6, %v8164_v37  ;;  %v6553_v37 = vpop.permute.xlu2 %6552 }
 0x963   : > { %8140 = vmatmul.msk.f32.gmra.mxu1 %vm5775_vm6, %v8132_v51 }
 0x964   : > { %8122 = vmatmul.msk.f32.gmra.mxu0 %vm5775_vm6, %v8114_v8  ;;  %8154 = vmatmul.msk.f32.gmra.mxu2 %vm5775_vm6, %v8146_v17  ;;  %v11039_v9 = vpop.f32.mrf.mxu1 }
 0x965   : > { %v6086_v0 = vpop.f32.mrf.mxu3 }
 0x96c   : > { %8123 = vmatmul.msk.f32.gmra.mxu0 %vm5775_vm6, %v8115_v32  ;;  %8155 = vmatmul.msk.f32.gmra.mxu2 %vm5775_vm6, %v8147_v40  ;;  %v6578_v40 = vpop.permute.xlu0 %6577 }
 0x96e   : > { %v6089_v49 = vpop.f32.mrf.mxu3 }
 0x974   : > { %8124 = vmatmul.msk.f32.gmra.mxu0 %vm5775_vm6, %v8116_v43  ;;  %8156 = vmatmul.msk.f32.gmra.mxu2 %vm5775_vm6, %v8148_v21 }
 0x976   : > { %v6092_v53 = vpop.f32.mrf.mxu3 }
 0x978   : > { %v5817_v60 = vpop.f32.mrf.mxu0 }
 0x979   : > { %v5883_v2 = vadd.f32 %v5882_v33, %v5817_v60  ;;  %v6558_v60 = vpop.permute.xlu1 %6557 }
 0x97e   : > { %v5980_v55 = vpop.f32.mrf.mxu2 }
 0x97f   : > { %v11021_v48 = vpop.f32.mrf.mxu3  ;;  %v6004_v39 = vadd.f32 %v5980_v55, %v5883_v2 }
 0x980   : > { %v5820_v38 = vpop.f32.mrf.mxu0 }
 0x981   : > { %v6110_v16 = vadd.f32 %v6086_v0, %v6004_v39  ;;  %v5886_v54 = vadd.f32 %v5885_v28, %v5820_v38 }
 0x986   : > { %v5983_v63 = vpop.f32.mrf.mxu2 }
 0x987   : > { %v11025_v27 = vpop.f32.mrf.mxu3  ;;  %v6005_v4 = vadd.f32 %v5983_v63, %v5886_v54 }
 0x988   : > { %v5823_v26 = vpop.f32.mrf.mxu0 }
 0x989   : > { %v6111_v58 = vadd.f32 %v6089_v49, %v6005_v4  ;;  %v5889_v6 = vadd.f32 %v5888_v14, %v5823_v26 }
 0x98e   : > { %v5986_v29 = vpop.f32.mrf.mxu2 }
 0x98f   : > { %v11029_v19 = vpop.f32.mrf.mxu3  ;;  %v6006_v33 = vadd.f32 %v5986_v29, %v5889_v6 }
 0x990   : > { %v5826_v10 = vpop.f32.mrf.mxu0 }
 0x991   : > { %v6112_v28 = vadd.f32 %v6092_v53, %v6006_v33  ;;  %v5892_v43 = vadd.f32 %v5891_v11, %v5826_v10 }
 0x996   : > { %v5989_v25 = vpop.f32.mrf.mxu2 }
 0x997   : > { %v6007_v38 = vadd.f32 %v5989_v25, %v5892_v43 }
 0x998   : > { %v11033_v23 = vpop.f32.mrf.mxu3 }
 0x999   : > { %v5829_v50 = vpop.f32.mrf.mxu0  ;;  %v6113_v53 = vadd.f32 %v11021_v48, %v6007_v38 }
 0x99a   : > { %v5895_v11 = vadd.f32 %v11023_v13, %v5829_v50 }
 0x99f   : > { %v11035_v42 = vpop.f32.mrf.mxu2 }
 0x9a0   : > { %v6008_v25 = vadd.f32 %v11035_v42, %v5895_v11 }
 0x9a1   : > { %v11037_v41 = vpop.f32.mrf.mxu0  ;;  %v11043_v18 = vpop.f32.mrf.mxu3 }
 0x9a2   : > { %v6114_v48 = vadd.f32 %v11025_v27, %v6008_v25  ;;  %v5898_v13 = vadd.f32 %v11027_v59, %v11037_v41 }
 0x9a7   : > { %v11041_v61 = vpop.f32.mrf.mxu2 }
 0x9a8   : > { %v6298_v52 = vpop.f32.mrf.mxu1  ;;  %v6009_v42 = vadd.f32 %v11041_v61, %v5898_v13 }
 0x9a9   : > { %v11045_v24 = vpop.f32.mrf.mxu0  ;;  %v6510_v47 = vpop.f32.mrf.mxu3 }
 0x9aa   : > { %v6115_v27 = vadd.f32 %v11029_v19, %v6009_v42  ;;  %v5901_v59 = vadd.f32 %v11031_v7, %v11045_v24 }
 0x9af   : > { %v11049_v31 = vpop.f32.mrf.mxu2 }
 0x9b0   : > { %v6301_v44 = vpop.f32.mrf.mxu1  ;;  %v6010_v61 = vadd.f32 %v11049_v31, %v5901_v59 }
 0x9b1   : > { %v11051_v5 = vpop.f32.mrf.mxu0  ;;  %v6513_v15 = vpop.f32.mrf.mxu3 }
 0x9b2   : > { %v5904_v7 = vadd.f32 %v11039_v9, %v11051_v5 }
 0x9b7   : > { %v11055_v30 = vpop.f32.mrf.mxu2 }
 0x9b8   : > { %v6304_v20 = vpop.f32.mrf.mxu1 }
 0x9b9   : > { %v6192_v34 = vpop.f32.mrf.mxu0  ;;  %v6516_v8 = vpop.f32.mrf.mxu3 }
 0x9ba   : > { %v6216_v36 = vadd.f32 %v6192_v34, %v6110_v16 }
 0x9bc   : > { %v6322_v35 = vadd.f32 %v6298_v52, %v6216_v36 }
 0x9bf   : > { %v6404_v3 = vpop.f32.mrf.mxu2 }
 0x9c0   : > { %v6428_v45 = vadd.f32 %v6404_v3, %v6322_v35  ;;  %v6307_v55 = vpop.f32.mrf.mxu1 }
 0x9c1   : > { %v6195_v1 = vpop.f32.mrf.mxu0  ;;  %v6519_v52 = vpop.f32.mrf.mxu3 }
 0x9c2   : > { %v6217_v57 = vadd.f32 %v6195_v1, %v6111_v58  ;;  %v6534_v62 = vadd.f32 %v6510_v47, %v6428_v45 }
 0x9c4   : > { %v11059_v51 = vadd.f32 %v6553_v37, %v6534_v62  ;;  %v6323_v17 = vadd.f32 %v6301_v44, %v6217_v57  ;;  %v6563_v44 = vpop.permute.xlu0 %6562 }
 0x9c6   : > { %6599 = vst.msk [vmem:[%s8989_s12] sm:$0xff] %vm6598_vm7, %v11059_v51  ;;  %vm6607_vm15 = vcmp.gt.f32.partialorder %v11059_v51, 0.0 }
 0x9c7   : > { %v6407_v0 = vpop.f32.mrf.mxu2 }
 0x9c8   : > { %v6429_v32 = vadd.f32 %v6407_v0, %v6323_v17  ;;  %v6310_v34 = vpop.f32.mrf.mxu1  ;;  %v6116_v17 = vadd.f32 %v11033_v23, %v6010_v61  ;;  %v8173_v61 = vld [vmem:[%s11591_s4 + $0x40] sm:$0xff] }
 0x9c9   : > { %v6198_v49 = vpop.f32.mrf.mxu0  ;;  %v6522_v35 = vpop.f32.mrf.mxu3 }
 0x9ca   : > { %v6218_v21 = vadd.f32 %v6198_v49, %v6112_v28  ;;  %v6535_v14 = vadd.f32 %v6513_v15, %v6429_v32  ;;  %v6011_v49 = vadd.f32 %v11055_v30, %v5904_v7  ;;  %v8174_v7 = vld [vmem:[%s11591_s4 + $0x48] sm:$0xff] }
 0x9cc   : > { %v11064_v63 = vadd.f32 %v6558_v60, %v6535_v14  ;;  %v6324_v26 = vadd.f32 %v6304_v20, %v6218_v21  ;;  %v6117_v60 = vadd.f32 %v11043_v18, %v6011_v49  ;;  %v6633_v49 = vld [vmem:[%s11591_s4 + $0x10] sm:$0xff] }
 0x9ce   : > { %6600 = vst.msk [vmem:[%s8989_s12 + $0x8] sm:$0xff] %vm6598_vm7, %v11064_v63  ;;  %vm6608_vm14 = vcmp.gt.f32.partialorder %v11064_v63, 0.0 }
 0x9cf   : > { %v6410_v29 = vpop.f32.mrf.mxu2 }
 0x9d0   : > { %v6430_v47 = vadd.f32 %v6410_v29, %v6324_v26  ;;  %v6313_v20 = vpop.f32.mrf.mxu1 }
 0x9d1   : > { %v6201_v2 = vpop.f32.mrf.mxu0  ;;  %v6525_v37 = vpop.f32.mrf.mxu3 }
 0x9d2   : > { %v6219_v10 = vadd.f32 %v6201_v2, %v6113_v53  ;;  %v6536_v39 = vadd.f32 %v6516_v8, %v6430_v47 }
 0x9d4   : > { %v11072_v16 = vadd.f32 %v6563_v44, %v6536_v39  ;;  %v6325_v54 = vadd.f32 %v6307_v55, %v6219_v10 }
 0x9d6   : > { %6601 = vst.msk [vmem:[%s8989_s12 + $0x10] sm:$0xff] %vm6598_vm7, %v11072_v16  ;;  %vm6609_vm13 = vcmp.gt.f32.partialorder %v11072_v16, 0.0 }
 0x9d7   : > { %v6413_v36 = vpop.f32.mrf.mxu2 }
 0x9d8   : > { %v6431_v15 = vadd.f32 %v6413_v36, %v6325_v54  ;;  %v6316_v28 = vpop.f32.mrf.mxu1  ;;  %v6617_v36 = vmul.f32 0.2, %v11072_v16 }
 0x9d9   : > { %v6204_v4 = vpop.f32.mrf.mxu0 }
 0x9da   : > { %v6220_v50 = vadd.f32 %v6204_v4, %v6114_v48  ;;  %v6537_v3 = vadd.f32 %v6519_v52, %v6431_v15  ;;  %v6625_v48 = vsel %vm6609_vm13, %v11072_v16, %v6617_v36  ;;  %v6616_v15 = vmul.f32 0.2, %v11064_v63  ;;  %v8200_v36 = vld [vmem:[%s11591_s4 + $0x98] sm:$0xff] }
 0x9dc   : > { %v11081_v58 = vadd.f32 %v6568_v56, %v6537_v3  ;;  %v6326_v45 = vadd.f32 %v6310_v34, %v6220_v50  ;;  %v6624_v13 = vsel %vm6608_vm14, %v11064_v63, %v6616_v15  ;;  %v6638_v15 = vld [vmem:[%s11591_s4 + $0x38] sm:$0xff] }
 0x9de   : > { %6602 = vst.msk [vmem:[%s8989_s12 + $0x18] sm:$0xff] %vm6598_vm7, %v11081_v58  ;;  %v6618_v54 = vmul.f32 0.2, %v11081_v58  ;;  %vm6610_vm12 = vcmp.gt.f32.partialorder %v11081_v58, 0.0 }
 0x9df   : > { %v6416_v1 = vpop.f32.mrf.mxu2 }
 0x9e0   : > { %v6432_v6 = vadd.f32 %v6416_v1, %v6326_v45  ;;  %v6319_v52 = vpop.f32.mrf.mxu1 }
 0x9e1   : > { %v6207_v57 = vpop.f32.mrf.mxu0 }
 0x9e2   : > { %v6221_v41 = vadd.f32 %v6207_v57, %v6115_v27  ;;  %v6538_v62 = vadd.f32 %v6522_v35, %v6432_v6  ;;  %v6615_v35 = vmul.f32 0.2, %v11059_v51  ;;  %v6631_v6 = vld [vmem:[%s11591_s4] sm:$0xff] }
 0x9e4   : > { %v6594_v56 = vadd.f32 %v11057_v12, %v6538_v62  ;;  %v6327_v33 = vadd.f32 %v6313_v20, %v6221_v41  ;;  %v6528_v12 = vpop.f32.mrf.mxu3  ;;  %v6623_v16 = vsel %vm6607_vm15, %v11059_v51, %v6615_v35  ;;  %v8217_v35 = vld [vmem:[%s11591_s4 + $0xe0] sm:$0xff] }
 0x9e5   : > { %v8576_v50 = vpack.i.bf16 %v6623_v16, %v6624_v13 }
 0x9e6   : > { %6603 = vst.msk [vmem:[%s8989_s12 + $0x20] sm:$0xff] %vm6598_vm7, %v6594_v56  ;;  %v6619_v31 = vmul.f32 0.2, %v6594_v56  ;;  %vm6611_vm8 = vcmp.gt.f32.partialorder %v6594_v56, 0.0 }
 0x9e7   : > { %v6419_v8 = vpop.f32.mrf.mxu2 }
 0x9e8   : > { %v6433_v19 = vadd.f32 %v6419_v8, %v6327_v33  ;;  %v6627_v38 = vsel %vm6611_vm8, %v6594_v56, %v6619_v31  ;;  %v6632_v56 = vld [vmem:[%s11591_s4 + $0x8] sm:$0xff] }
 0x9e9   : > { %v6210_v0 = vpop.f32.mrf.mxu0 }
 0x9ea   : > { %v6222_v24 = vadd.f32 %v6210_v0, %v6116_v17  ;;  %v6539_v32 = vadd.f32 %v6525_v37, %v6433_v19 }
 0x9ec   : > { %v6595_v43 = vadd.f32 %v6578_v40, %v6539_v32  ;;  %v6328_v14 = vadd.f32 %v6316_v28, %v6222_v24  ;;  %v6531_v47 = vpop.f32.mrf.mxu3 }
 0x9ee   : > { %6604 = vst.msk [vmem:[%s8989_s12 + $0x28] sm:$0xff] %vm6598_vm7, %v6595_v43  ;;  %v6620_v21 = vmul.f32 0.2, %v6595_v43  ;;  %vm6612_vm9 = vcmp.gt.f32.partialorder %v6595_v43, 0.0 }
 0x9ef   : > { %v6422_v23 = vpop.f32.mrf.mxu2 }
 0x9f0   : > { %v6434_v55 = vadd.f32 %v6422_v23, %v6328_v14  ;;  %v6628_v9 = vsel %vm6612_vm9, %v6595_v43, %v6620_v21 }
 0x9f1   : > { %v6213_v5 = vpop.f32.mrf.mxu0  ;;  %v8531_v26 = vpack.i.bf16 %v6627_v38, %v6628_v9 }
 0x9f2   : > { %v6223_v29 = vadd.f32 %v6213_v5, %v6117_v60  ;;  %v6540_v30 = vadd.f32 %v6528_v12, %v6434_v55 }
 0x9f3   : > { %8532 = vrot.lane.b32.xlu2 %v8531_v26, %s8649_s9  ;;  %8527 = vrot.lane.b32.xlu1 %v8531_v26, %s8650_s21 }
 0x9f4   : > { %v6596_v40 = vadd.f32 %v11047_v46, %v6540_v30  ;;  %8522 = vrot.lane.b32.xlu0 %v8531_v26, %s8651_s20  ;;  %v6329_v18 = vadd.f32 %v6319_v52, %v6223_v29 }
 0x9f6   : > { %6605 = vst.msk [vmem:[%s8989_s12 + $0x30] sm:$0xff] %vm6598_vm7, %v6596_v40  ;;  %v6621_v39 = vmul.f32 0.2, %v6596_v40  ;;  %vm6613_vm10 = vcmp.gt.f32.partialorder %v6596_v40, 0.0 }
 0x9f7   : > { %v6425_v53 = vpop.f32.mrf.mxu2 }
 0x9f8   : > { %v6435_v2 = vadd.f32 %v6425_v53, %v6329_v18  ;;  %v6629_v46 = vsel %vm6613_vm10, %v6596_v40, %v6621_v39  ;;  %v8197_v18 = vld [vmem:[%s11591_s4 + $0x80] sm:$0xff] }
 0x9f9   : > { %v8213_v53 = vld [vmem:[%s11591_s4 + $0xc0] sm:$0xff] }
 0x9fa   : > { %v6541_v11 = vadd.f32 %v6531_v47, %v6435_v2  ;;  %v8176_v47 = vld [vmem:[%s11591_s4 + $0x58] sm:$0xff]  ;;  %v6635_v2 = vld [vmem:[%s11591_s4 + $0x20] sm:$0xff] }
 0x9fb   : > { %v8177_v39 = vld [vmem:[%s11591_s4 + $0x60] sm:$0xff] }
 0x9fc   : > { %v6597_v10 = vadd.f32 %v11053_v22, %v6541_v11  ;;  %v6626_v22 = vsel %vm6610_vm12, %v11081_v58, %v6618_v54  ;;  %v8198_v11 = vld [vmem:[%s11591_s4 + $0x88] sm:$0xff]  ;;  %v6637_v54 = vld [vmem:[%s11591_s4 + $0x30] sm:$0xff] }
 0x9fd   : > { %v8561_v4 = vpack.i.bf16 %v6625_v48, %v6626_v22 }
 0x9fe   : > { %6606 = vst.msk [vmem:[%s8989_s12 + $0x38] sm:$0xff] %vm6598_vm7, %v6597_v10  ;;  %vm6614_vm11 = vcmp.gt.f32.partialorder %v6597_v10, 0.0  ;;  %v6622_v44 = vmul.f32 0.2, %v6597_v10  ;;  %s11592_s12 = sld [smem:[#allocation47_spill]] }
 0xa00   : > { %v6630_v25 = vsel %vm6614_vm11, %v6597_v10, %v6622_v44  ;;  %v8214_v10 = vld [vmem:[%s11591_s4 + $0xc8] sm:$0xff] }
 0xa01   : > { %6777 = vmatpush.msra.mxu1 %v6630_v25  ;;  %v8556_v34 = vpack.i.bf16 %v6629_v46, %v6630_v25  ;;  %v6636_v44 = vld [vmem:[%s11591_s4 + $0x28] sm:$0xff]  ;;  %v8199_v25 = vld [vmem:[%s11591_s4 + $0x90] sm:$0xff] }
 0xa03   : > { %6778 = vmatpush.msra.mxu1 %v6629_v46  ;;  %8557 = vrot.lane.b32.xlu2 %v8556_v34, %s8649_s9  ;;  %v8215_v46 = vld [vmem:[%s11591_s4 + $0xd0] sm:$0xff] }
 0xa04   : > { %8547 = vrot.lane.b32.xlu1 %v8556_v34, %s8650_s21  ;;  %8537 = vrot.lane.b32.xlu0 %v8556_v34, %s8651_s20  ;;  %v8178_v34 = vld [vmem:[%s11591_s4 + $0x68] sm:$0xff] }
 0xa05   : > { %6779 = vmatpush.msra.mxu1 %v6628_v9  ;;  %v6634_v9 = vld [vmem:[%s11591_s4 + $0x18] sm:$0xff] }
 0xa07   : > { %6780 = vmatpush.msra.mxu1 %v6627_v38  ;;  %v8175_v38 = vld [vmem:[%s11591_s4 + $0x50] sm:$0xff] }
 0xa09   : > { %6781 = vmatpush.msra.mxu1 %v6626_v22  ;;  %v8216_v22 = vld [vmem:[%s11591_s4 + $0xd8] sm:$0xff] }
 0xa0b   : > { %8562 = vrot.lane.b32.xlu2 %v8561_v4, %s8649_s9  ;;  %6782 = vmatpush.msra.mxu1 %v6625_v48  ;;  %v8179_v48 = vld [vmem:[%s11591_s4 + $0x70] sm:$0xff] }
 0xa0c   : > { %8552 = vrot.lane.b32.xlu1 %v8561_v4, %s8650_s21  ;;  %8542 = vrot.lane.b32.xlu0 %v8561_v4, %s8651_s20  ;;  %v8201_v4 = vld [vmem:[%s11591_s4 + $0xa0] sm:$0xff] }
 0xa0d   : > { %6783 = vmatpush.msra.mxu1 %v6624_v13  ;;  %v8180_v13 = vld [vmem:[%s11591_s4 + $0x78] sm:$0xff] }
 0xa0f   : > { %6784 = vmatpush.msra.mxu1 %v6623_v16  ;;  %v8202_v16 = vld [vmem:[%s11591_s4 + $0xa8] sm:$0xff] }
 0xa10   : > { %8189 = vmatmul.msk.f32.vlgmr.msra.gmra.mxu1 %vm5775_vm6, %v6631_v6 }
 0xa13   : > { %8577 = vrot.lane.b32.xlu2 %v8576_v50, %s8649_s9 }
 0xa14   : > { %8572 = vrot.lane.b32.xlu1 %v8576_v50, %s8650_s21  ;;  %8567 = vrot.lane.b32.xlu0 %v8576_v50, %s8651_s20  ;;  %v8218_v50 = vld [vmem:[%s11591_s4 + $0xe8] sm:$0xff] }
 0xa18   : > { %8190 = vmatmul.msk.f32.gmra.mxu1 %vm5775_vm6, %v6632_v56 }
 0xa20   : > { %8191 = vmatmul.msk.f32.gmra.mxu1 %vm5775_vm6, %v6633_v49 }
 0xa28   : > { %8192 = vmatmul.msk.f32.gmra.mxu1 %vm5775_vm6, %v6634_v9 }
 0xa30   : > { %8193 = vmatmul.msk.f32.gmra.mxu1 %vm5775_vm6, %v6635_v2 }
 0xa38   : > { %8194 = vmatmul.msk.f32.gmra.mxu1 %vm5775_vm6, %v6636_v44 }
 0xa40   : > { %8195 = vmatmul.msk.f32.gmra.mxu1 %vm5775_vm6, %v6637_v54 }
 0xa48   : > { %8196 = vmatmul.msk.f32.gmra.mxu1 %vm5775_vm6, %v6638_v15 }
 0xa4d   : > { %v8533_v3 = vpop.permute.xlu2 %8532 }
 0xa4e   : > { %v8534_v1 = vunpack.i.l.bf16 %v8533_v3  ;;  %v8535_v20 = vunpack.i.h.bf16 %v8533_v3  ;;  %v8203_v3 = vld [vmem:[%s11591_s4 + $0xb0] sm:$0xff] }
 0xa5d   : > { %v8558_v42 = vpop.permute.xlu2 %8557 }
 0xa5e   : > { %v8559_v58 = vunpack.i.l.bf16 %v8558_v42  ;;  %v8560_v45 = vunpack.i.h.bf16 %v8558_v42  ;;  %v8219_v42 = vld [vmem:[%s11591_s4 + $0xf0] sm:$0xff] }
 0xa60   : > { %6712 = vmatpush.msra.mxu0 %v8559_v58  ;;  %v8204_v58 = vld [vmem:[%s11591_s4 + $0xb8] sm:$0xff] }
 0xa62   : > { %6713 = vmatpush.msra.mxu0 %v8560_v45  ;;  %v8220_v45 = vld [vmem:[%s11591_s4 + $0xf8] sm:$0xff] }
 0xa64   : > { %6714 = vmatpush.msra.mxu0 %v8534_v1 }
 0xa65   : > { %v8563_v63 = vpop.permute.xlu2 %8562  ;;  %v8528_v59 = vpop.permute.xlu1 %8527 }
 0xa66   : > { %v8564_v27 = vunpack.i.l.bf16 %v8563_v63  ;;  %6715 = vmatpush.msra.mxu0 %v8535_v20  ;;  %v8565_v51 = vunpack.i.h.bf16 %v8563_v63  ;;  %v8523_v41 = vpop.permute.xlu0 %8522  ;;  %v8529_v24 = vunpack.i.l.bf16 %v8528_v59  ;;  %v8530_v31 = vunpack.i.h.bf16 %v8528_v59 }
 0xa67   : > { %v8524_v32 = vunpack.i.l.bf16 %v8523_v41  ;;  %v8525_v43 = vunpack.i.h.bf16 %v8523_v41 }
 0xa68   : > { %6716 = vmatpush.msra.mxu0 %v8564_v27 }
 0xa6a   : > { %6717 = vmatpush.msra.mxu0 %v8565_v51 }
 0xa6d   : > { %v8578_v57 = vpop.permute.xlu2 %8577 }
 0xa6e   : > { %v8579_v62 = vunpack.i.l.bf16 %v8578_v57  ;;  %v8580_v37 = vunpack.i.h.bf16 %v8578_v57 }
 0xa70   : > { %6718 = vmatpush.msra.mxu0 %v8579_v62 }
 0xa72   : > { %6719 = vmatpush.msra.mxu0 %v8580_v37  ;;  %v7022_v37 = vld [vmem:[%s11592_s12] sm:$0xff] }
 0xa73   : > { %8181 = vmatmul.msk.f32.vlgmr.msra.gmra.mxu0 %vm5775_vm6, %v8173_v61 }
 0xa76   : > { %v8548_v33 = vpop.permute.xlu1 %8547  ;;  %v8538_v8 = vpop.permute.xlu0 %8537 }
 0xa77   : > { %v8549_v17 = vunpack.i.l.bf16 %v8548_v33  ;;  %v8539_v19 = vunpack.i.l.bf16 %v8538_v8  ;;  %v8550_v0 = vunpack.i.h.bf16 %v8548_v33  ;;  %v8540_v28 = vunpack.i.h.bf16 %v8538_v8 }
 0xa79   : > { %6875 = vmatpush.msra.mxu2 %v8539_v19  ;;  %6981 = vmatpush.msra.mxu3 %v8549_v17 }
 0xa7b   : > { %6876 = vmatpush.msra.mxu2 %v8540_v28  ;;  %6982 = vmatpush.msra.mxu3 %v8550_v0 }
 0xa7c   : > { %8182 = vmatmul.msk.f32.gmra.mxu0 %vm5775_vm6, %v8174_v7  ;;  %v7023_v7 = vld [vmem:[%s11592_s12 + $0x8] sm:$0xff] }
 0xa7d   : > { %6877 = vmatpush.msra.mxu2 %v8524_v32  ;;  %6983 = vmatpush.msra.mxu3 %v8529_v24 }
 0xa7e   : > { %v8553_v12 = vpop.permute.xlu1 %8552  ;;  %v8543_v21 = vpop.permute.xlu0 %8542 }
 0xa7f   : > { %v8554_v14 = vunpack.i.l.bf16 %v8553_v12  ;;  %v8544_v23 = vunpack.i.l.bf16 %v8543_v21  ;;  %6878 = vmatpush.msra.mxu2 %v8525_v43  ;;  %6984 = vmatpush.msra.mxu3 %v8530_v31  ;;  %v8555_v60 = vunpack.i.h.bf16 %v8553_v12  ;;  %v8545_v55 = vunpack.i.h.bf16 %v8543_v21  ;;  %v7024_v21 = vld [vmem:[%s11592_s12 + $0x10] sm:$0xff] }
 0xa81   : > { %6879 = vmatpush.msra.mxu2 %v8544_v23  ;;  %6985 = vmatpush.msra.mxu3 %v8554_v14 }
 0xa83   : > { %6880 = vmatpush.msra.mxu2 %v8545_v55  ;;  %6986 = vmatpush.msra.mxu3 %v8555_v60 }
 0xa84   : > { %8183 = vmatmul.msk.f32.gmra.mxu0 %vm5775_vm6, %v8175_v38 }
 0xa86   : > { %v8573_v5 = vpop.permute.xlu1 %8572  ;;  %v8568_v26 = vpop.permute.xlu0 %8567 }
 0xa87   : > { %v8574_v29 = vunpack.i.l.bf16 %v8573_v5  ;;  %v8569_v30 = vunpack.i.l.bf16 %v8568_v26  ;;  %v8575_v52 = vunpack.i.h.bf16 %v8573_v5  ;;  %v8570_v40 = vunpack.i.h.bf16 %v8568_v26 }
 0xa89   : > { %6881 = vmatpush.msra.mxu2 %v8569_v30  ;;  %6987 = vmatpush.msra.mxu3 %v8574_v29  ;;  %v7025_v29 = vld [vmem:[%s11592_s12 + $0x18] sm:$0xff] }
 0xa8b   : > { %6882 = vmatpush.msra.mxu2 %v8570_v40  ;;  %6988 = vmatpush.msra.mxu3 %v8575_v52 }
 0xa8c   : > { %8205 = vmatmul.msk.f32.vlgmr.msra.gmra.mxu2 %vm5775_vm6, %v8197_v18  ;;  %8221 = vmatmul.msk.f32.vlgmr.msra.gmra.mxu3 %vm5775_vm6, %v8213_v53 }
 0xa8d   : > { %8184 = vmatmul.msk.f32.gmra.mxu0 %vm5775_vm6, %v8176_v47  ;;  %v6786_v20 = vpop.f32.mrf.mxu1 }
 0xa94   : > { %8206 = vmatmul.msk.f32.gmra.mxu2 %vm5775_vm6, %v8198_v11  ;;  %8222 = vmatmul.msk.f32.gmra.mxu3 %vm5775_vm6, %v8214_v10  ;;  %v7026_v10 = vld [vmem:[%s11592_s12 + $0x20] sm:$0xff] }
 0xa95   : > { %8185 = vmatmul.msk.f32.gmra.mxu0 %vm5775_vm6, %v8177_v39  ;;  %v6789_v27 = vpop.f32.mrf.mxu1 }
 0xa9c   : > { %8207 = vmatmul.msk.f32.gmra.mxu2 %vm5775_vm6, %v8199_v25  ;;  %8223 = vmatmul.msk.f32.gmra.mxu3 %vm5775_vm6, %v8215_v46 }
 0xa9d   : > { %8186 = vmatmul.msk.f32.gmra.mxu0 %vm5775_vm6, %v8178_v34  ;;  %v6792_v57 = vpop.f32.mrf.mxu1 }
 0xaa4   : > { %8208 = vmatmul.msk.f32.gmra.mxu2 %vm5775_vm6, %v8200_v36  ;;  %8224 = vmatmul.msk.f32.gmra.mxu3 %vm5775_vm6, %v8216_v22 }
 0xaa5   : > { %8187 = vmatmul.msk.f32.gmra.mxu0 %vm5775_vm6, %v8179_v48  ;;  %v6795_v28 = vpop.f32.mrf.mxu1  ;;  %v7027_v48 = vld [vmem:[%s11592_s12 + $0x28] sm:$0xff] }
 0xaac   : > { %8209 = vmatmul.msk.f32.gmra.mxu2 %vm5775_vm6, %v8201_v4  ;;  %8225 = vmatmul.msk.f32.gmra.mxu3 %vm5775_vm6, %v8217_v35 }
 0xaad   : > { %8188 = vmatmul.msk.f32.gmra.mxu0 %vm5775_vm6, %v8180_v13  ;;  %v6798_v60 = vpop.f32.mrf.mxu1 }
 0xab4   : > { %8210 = vmatmul.msk.f32.gmra.mxu2 %vm5775_vm6, %v8202_v16  ;;  %8226 = vmatmul.msk.f32.gmra.mxu3 %vm5775_vm6, %v8218_v50 }
 0xab5   : > { %v6801_v53 = vpop.f32.mrf.mxu1 }
 0xabc   : > { %8211 = vmatmul.msk.f32.gmra.mxu2 %vm5775_vm6, %v8203_v3  ;;  %8227 = vmatmul.msk.f32.gmra.mxu3 %vm5775_vm6, %v8219_v42  ;;  %v7028_v3 = vld [vmem:[%s11592_s12 + $0x30] sm:$0xff] }
 0xabd   : > { %v6804_v34 = vpop.f32.mrf.mxu1 }
 0xac4   : > { %8212 = vmatmul.msk.f32.gmra.mxu2 %vm5775_vm6, %v8204_v58  ;;  %8228 = vmatmul.msk.f32.gmra.mxu3 %vm5775_vm6, %v8220_v45 }
 0xac5   : > { %v6807_v58 = vpop.f32.mrf.mxu1 }
 0xaf0   : > { %v6721_v1 = vpop.f32.mrf.mxu0 }
 0xaf1   : > { %v6787_v51 = vadd.f32 %v6786_v20, %v6721_v1 }
 0xaf9   : > { %v6724_v63 = vpop.f32.mrf.mxu0 }
 0xafa   : > { %v6790_v33 = vadd.f32 %v6789_v27, %v6724_v63 }
 0xb01   : > { %v6727_v6 = vpop.f32.mrf.mxu0 }
 0xb02   : > { %v6793_v49 = vadd.f32 %v6792_v57, %v6727_v6  ;;  %v7029_v6 = vld [vmem:[%s11592_s12 + $0x38] sm:$0xff] }
 0xb0a   : > { %v6730_v0 = vpop.f32.mrf.mxu0 }
 0xb0b   : > { %v6796_v38 = vadd.f32 %v6795_v28, %v6730_v0 }
 0xb0f   : > { %v6884_v59 = vpop.f32.mrf.mxu2  ;;  %v6990_v41 = vpop.f32.mrf.mxu3 }
 0xb10   : > { %v6908_v62 = vadd.f32 %v6884_v59, %v6787_v51 }
 0xb12   : > { %v7014_v61 = vadd.f32 %v6990_v41, %v6908_v62  ;;  %v6733_v23 = vpop.f32.mrf.mxu0 }
 0xb13   : > { %v6799_v40 = vadd.f32 %v6798_v60, %v6733_v23 }
 0xb14   : > { %v7030_v56 = vadd.f32 %v7022_v37, %v7014_v61 }
 0xb16   : > { %7039 = vst.msk [vmem:[%s8994_s19] sm:$0xff] %vm7038_vm1, %v7030_v56 }
 0xb17   : > { %v6887_v8 = vpop.f32.mrf.mxu2  ;;  %v6993_v17 = vpop.f32.mrf.mxu3 }
 0xb18   : > { %v6909_v19 = vadd.f32 %v6887_v8, %v6790_v33 }
 0xb1a   : > { %v7015_v24 = vadd.f32 %v6993_v17, %v6909_v19  ;;  %v6736_v18 = vpop.f32.mrf.mxu0 }
 0xb1b   : > { %v6802_v25 = vadd.f32 %v6801_v53, %v6736_v18 }
 0xb1c   : > { %v7031_v32 = vadd.f32 %v7023_v7, %v7015_v24 }
 0xb1e   : > { %7040 = vst.msk [vmem:[%s8994_s19 + $0x8] sm:$0xff] %vm7038_vm1, %v7031_v32 }
 0xb1f   : > { %v6890_v31 = vpop.f32.mrf.mxu2  ;;  %v6996_v43 = vpop.f32.mrf.mxu3 }
 0xb20   : > { %v6910_v12 = vadd.f32 %v6890_v31, %v6793_v49 }
 0xb22   : > { %v7016_v14 = vadd.f32 %v6996_v43, %v6910_v12  ;;  %v6739_v46 = vpop.f32.mrf.mxu0 }
 0xb23   : > { %v6805_v35 = vadd.f32 %v6804_v34, %v6739_v46 }
 0xb24   : > { %v7032_v55 = vadd.f32 %v7024_v21, %v7016_v14 }
 0xb26   : > { %7041 = vst.msk [vmem:[%s8994_s19 + $0x10] sm:$0xff] %vm7038_vm1, %v7032_v55 }
 0xb27   : > { %v6893_v9 = vpop.f32.mrf.mxu2  ;;  %v6999_v5 = vpop.f32.mrf.mxu3 }
 0xb28   : > { %v6911_v26 = vadd.f32 %v6893_v9, %v6796_v38 }
 0xb2a   : > { %v7017_v30 = vadd.f32 %v6999_v5, %v6911_v26  ;;  %v6742_v42 = vpop.f32.mrf.mxu0 }
 0xb2b   : > { %v6808_v20 = vadd.f32 %v6807_v58, %v6742_v42 }
 0xb2c   : > { %v7033_v52 = vadd.f32 %v7025_v29, %v7017_v30 }
 0xb2e   : > { %7042 = vst.msk [vmem:[%s8994_s19 + $0x18] sm:$0xff] %vm7038_vm1, %v7033_v52 }
 0xb2f   : > { %v6896_v47 = vpop.f32.mrf.mxu2  ;;  %v7002_v2 = vpop.f32.mrf.mxu3 }
 0xb30   : > { %v6912_v11 = vadd.f32 %v6896_v47, %v6799_v40 }
 0xb32   : > { %v7018_v39 = vadd.f32 %v7002_v2, %v6912_v11 }
 0xb34   : > { %v7034_v44 = vadd.f32 %v7026_v10, %v7018_v39 }
 0xb36   : > { %7043 = vst.msk [vmem:[%s8994_s19 + $0x20] sm:$0xff] %vm7038_vm1, %v7034_v44 }
 0xb37   : > { %v6899_v54 = vpop.f32.mrf.mxu2  ;;  %v7005_v36 = vpop.f32.mrf.mxu3 }
 0xb38   : > { %v6913_v22 = vadd.f32 %v6899_v54, %v6802_v25 }
 0xb3a   : > { %v7019_v15 = vadd.f32 %v7005_v36, %v6913_v22 }
 0xb3c   : > { %v7035_v4 = vadd.f32 %v7027_v48, %v7019_v15 }
 0xb3e   : > { %7044 = vst.msk [vmem:[%s8994_s19 + $0x28] sm:$0xff] %vm7038_vm1, %v7035_v4 }
 0xb3f   : > { %v6902_v13 = vpop.f32.mrf.mxu2  ;;  %v7008_v16 = vpop.f32.mrf.mxu3 }
 0xb40   : > { %v6914_v50 = vadd.f32 %v6902_v13, %v6805_v35 }
 0xb42   : > { %v7020_v45 = vadd.f32 %v7008_v16, %v6914_v50 }
 0xb44   : > { %v7036_v1 = vadd.f32 %v7028_v3, %v7020_v45 }
 0xb46   : > { %7045 = vst.msk [vmem:[%s8994_s19 + $0x30] sm:$0xff] %vm7038_vm1, %v7036_v1 }
 0xb47   : > { %v6905_v63 = vpop.f32.mrf.mxu2  ;;  %v7011_v27 = vpop.f32.mrf.mxu3 }
 0xb48   : > { %v6915_v51 = vadd.f32 %v6905_v63, %v6808_v20 }
 0xb4a   : > { %v7021_v57 = vadd.f32 %v7011_v27, %v6915_v51 }
 0xb4c   : > { %v7037_v59 = vadd.f32 %v7029_v6, %v7021_v57 }
 0xb4e   : > { %7046 = vst.msk [vmem:[%s8994_s19 + $0x38] sm:$0xff] %vm7038_vm1, %v7037_v59 }
 0xb4f PF: > { %7077 = sbr.rel (!%p8795_p6) target bundleno = 2967 (0xb97), region = 103  ;;  %s8231_s15 = sshll.u32 (%p8795_p6), %s8619_s29, 3  ;;  %v7095_v41 = vld [vmem:[%s9044_s24] sm:$0xff] (%p8795_p6)  ;;  %v7097_v62 = vld [vmem:[%s9044_s24 + $0x8] sm:$0xff] (%p8795_p6)  ;;  %v7099_v37 = vld [vmem:[%s9044_s24 + $0x10] sm:$0xff] (%p8795_p6) }
 0xb50   : > { %s8232_s13 = sshll.u32 (%p8795_p6), %s8623_s30, 7  ;;  %s11594_s2 = sld [smem:[#allocation48_spill]] (%p8795_p6)  ;;  %v7101_v61 = vld [vmem:[%s9044_s24 + $0x18] sm:$0xff] (%p8795_p6)  ;;  %v7103_v56 = vld [vmem:[%s9044_s24 + $0x20] sm:$0xff] (%p8795_p6)  ;;  %v7105_v33 = vld [vmem:[%s9044_s24 + $0x28] sm:$0xff] (%p8795_p6) }
 0xb51   : > { %s7080_s9 = sadd.s32 (%p8795_p6), %s8232_s13, %s8231_s15  ;;  %v7107_v8 = vld [vmem:[%s9044_s24 + $0x30] sm:$0xff] (%p8795_p6)  ;;  %v7109_v17 = vld [vmem:[%s9044_s24 + $0x38] sm:$0xff] (%p8795_p6)  ;;  %v7111_v19 = vld [vmem:[%s9044_s24 + $0x40] sm:$0xff] (%p8795_p6) }
 0xb52   : > { %s8233_s19 = sshll.u32 (%p8795_p6), %s7080_s9, 3  ;;  %v7113_v0 = vld [vmem:[%s9044_s24 + $0x48] sm:$0xff] (%p8795_p6)  ;;  %v7115_v28 = vld [vmem:[%s9044_s24 + $0x50] sm:$0xff] (%p8795_p6)  ;;  %v7117_v7 = vld [vmem:[%s9044_s24 + $0x58] sm:$0xff] (%p8795_p6) }
 0xb53   : > { %v7119_v24 = vld [vmem:[%s9044_s24 + $0x60] sm:$0xff] (%p8795_p6)  ;;  %v7121_v32 = vld [vmem:[%s9044_s24 + $0x68] sm:$0xff] (%p8795_p6)  ;;  %v7123_v49 = vld [vmem:[%s9044_s24 + $0x70] sm:$0xff] (%p8795_p6) }
 0xb54   : > { %v7125_v31 = vld [vmem:[%s9044_s24 + $0x78] sm:$0xff]  ;;  %v7127_v43 = vld [vmem:[%s9044_s24 + $0x80] sm:$0xff]  ;;  %v7129_v12 = vld [vmem:[%s9044_s24 + $0x88] sm:$0xff] }
 0xb55   : > { %v7131_v21 = vld [vmem:[%s9044_s24 + $0x90] sm:$0xff]  ;;  %v7133_v14 = vld [vmem:[%s9044_s24 + $0x98] sm:$0xff]  ;;  %v7135_v23 = vld [vmem:[%s9044_s24 + $0xa0] sm:$0xff] }
 0xb56   : > { %s11307_s3 = scalar_lea.vmem %s11594_s2, %s8233_s19  ;;  %v7137_v60 = vld [vmem:[%s9044_s24 + $0xa8] sm:$0xff]  ;;  %v7139_v55 = vld [vmem:[%s9044_s24 + $0xb0] sm:$0xff]  ;;  %v7141_v38 = vld [vmem:[%s9044_s24 + $0xb8] sm:$0xff] }
 0xb57   : > { %7096 = vst [vmem:[%s11307_s3] sm:$0xff] %v7095_v41  ;;  %v7143_v9 = vld [vmem:[%s9044_s24 + $0xc0] sm:$0xff]  ;;  %v7145_v5 = vld [vmem:[%s9044_s24 + $0xc8] sm:$0xff]  ;;  %v7147_v26 = vld [vmem:[%s9044_s24 + $0xd0] sm:$0xff] }
 0xb58   : > { %7098 = vst [vmem:[%s11307_s3 + $0x8] sm:$0xff] %v7097_v62  ;;  %v7149_v29 = vld [vmem:[%s9044_s24 + $0xd8] sm:$0xff]  ;;  %v7151_v30 = vld [vmem:[%s9044_s24 + $0xe0] sm:$0xff]  ;;  %v7153_v52 = vld [vmem:[%s9044_s24 + $0xe8] sm:$0xff] }
 0xb59   : > { %7100 = vst [vmem:[%s11307_s3 + $0x10] sm:$0xff] %v7099_v37  ;;  %v7155_v40 = vld [vmem:[%s9044_s24 + $0xf0] sm:$0xff]  ;;  %v7157_v18 = vld [vmem:[%s9044_s24 + $0xf8] sm:$0xff]  ;;  %v7159_v53 = vld [vmem:[%s9044_s24 + $0x100] sm:$0xff] }
 0xb5a   : > { %7102 = vst [vmem:[%s11307_s3 + $0x18] sm:$0xff] %v7101_v61  ;;  %v7161_v47 = vld [vmem:[%s9044_s24 + $0x108] sm:$0xff]  ;;  %v7163_v2 = vld [vmem:[%s9044_s24 + $0x110] sm:$0xff]  ;;  %v7165_v11 = vld [vmem:[%s9044_s24 + $0x118] sm:$0xff] }
 0xb5b   : > { %7104 = vst [vmem:[%s11307_s3 + $0x20] sm:$0xff] %v7103_v56  ;;  %v7167_v10 = vld [vmem:[%s9044_s24 + $0x120] sm:$0xff]  ;;  %v7169_v39 = vld [vmem:[%s9044_s24 + $0x128] sm:$0xff]  ;;  %v7171_v44 = vld [vmem:[%s9044_s24 + $0x130] sm:$0xff] }
 0xb5c   : > { %7106 = vst [vmem:[%s11307_s3 + $0x28] sm:$0xff] %v7105_v33  ;;  %v7173_v25 = vld [vmem:[%s9044_s24 + $0x138] sm:$0xff]  ;;  %v7175_v46 = vld [vmem:[%s9044_s24 + $0x140] sm:$0xff]  ;;  %v7177_v34 = vld [vmem:[%s9044_s24 + $0x148] sm:$0xff] }
 0xb5d   : > { %7108 = vst [vmem:[%s11307_s3 + $0x30] sm:$0xff] %v7107_v8  ;;  %v7179_v54 = vld [vmem:[%s9044_s24 + $0x150] sm:$0xff]  ;;  %v7181_v36 = vld [vmem:[%s9044_s24 + $0x158] sm:$0xff]  ;;  %v7183_v22 = vld [vmem:[%s9044_s24 + $0x160] sm:$0xff] }
 0xb5e   : > { %7110 = vst [vmem:[%s11307_s3 + $0x38] sm:$0xff] %v7109_v17  ;;  %v7185_v48 = vld [vmem:[%s9044_s24 + $0x168] sm:$0xff]  ;;  %v7187_v15 = vld [vmem:[%s9044_s24 + $0x170] sm:$0xff]  ;;  %v7189_v4 = vld [vmem:[%s9044_s24 + $0x178] sm:$0xff] }
 0xb5f   : > { %7112 = vst [vmem:[%s11307_s3 + $0x80] sm:$0xff] %v7111_v19  ;;  %v7191_v35 = vld [vmem:[%s9044_s24 + $0x180] sm:$0xff]  ;;  %v7193_v13 = vld [vmem:[%s9044_s24 + $0x188] sm:$0xff]  ;;  %v7195_v16 = vld [vmem:[%s9044_s24 + $0x190] sm:$0xff] }
 0xb60   : > { %7114 = vst [vmem:[%s11307_s3 + $0x88] sm:$0xff] %v7113_v0  ;;  %v7197_v50 = vld [vmem:[%s9044_s24 + $0x198] sm:$0xff]  ;;  %v7199_v3 = vld [vmem:[%s9044_s24 + $0x1a0] sm:$0xff]  ;;  %v7201_v42 = vld [vmem:[%s9044_s24 + $0x1a8] sm:$0xff] }
 0xb61   : > { %7116 = vst [vmem:[%s11307_s3 + $0x90] sm:$0xff] %v7115_v28  ;;  %v7203_v58 = vld [vmem:[%s9044_s24 + $0x1b0] sm:$0xff]  ;;  %v7205_v45 = vld [vmem:[%s9044_s24 + $0x1b8] sm:$0xff]  ;;  %v7207_v1 = vld [vmem:[%s9044_s24 + $0x1c0] sm:$0xff] }
 0xb62   : > { %7118 = vst [vmem:[%s11307_s3 + $0x98] sm:$0xff] %v7117_v7  ;;  %v7209_v20 = vld [vmem:[%s9044_s24 + $0x1c8] sm:$0xff]  ;;  %v7211_v63 = vld [vmem:[%s9044_s24 + $0x1d0] sm:$0xff]  ;;  %v7213_v27 = vld [vmem:[%s9044_s24 + $0x1d8] sm:$0xff] }
 0xb63   : > { %7120 = vst [vmem:[%s11307_s3 + $0xa0] sm:$0xff] %v7119_v24  ;;  %v7215_v51 = vld [vmem:[%s9044_s24 + $0x1e0] sm:$0xff]  ;;  %v7217_v6 = vld [vmem:[%s9044_s24 + $0x1e8] sm:$0xff]  ;;  %v7219_v57 = vld [vmem:[%s9044_s24 + $0x1f0] sm:$0xff] }
 0xb64   : > { %7122 = vst [vmem:[%s11307_s3 + $0xa8] sm:$0xff] %v7121_v32  ;;  %v7221_v59 = vld [vmem:[%s9044_s24 + $0x1f8] sm:$0xff] }
 0xb65   : > { %7124 = vst [vmem:[%s11307_s3 + $0xb0] sm:$0xff] %v7123_v49 }
 0xb66   : > { %7126 = vst [vmem:[%s11307_s3 + $0xb8] sm:$0xff] %v7125_v31 }
 0xb67   : > { %7128 = vst [vmem:[%s11307_s3 + $0x100] sm:$0xff] %v7127_v43 }
 0xb68   : > { %7130 = vst [vmem:[%s11307_s3 + $0x108] sm:$0xff] %v7129_v12 }
 0xb69   : > { %7132 = vst [vmem:[%s11307_s3 + $0x110] sm:$0xff] %v7131_v21 }
 0xb6a   : > { %7134 = vst [vmem:[%s11307_s3 + $0x118] sm:$0xff] %v7133_v14 }
 0xb6b   : > { %7136 = vst [vmem:[%s11307_s3 + $0x120] sm:$0xff] %v7135_v23 }
 0xb6c   : > { %7138 = vst [vmem:[%s11307_s3 + $0x128] sm:$0xff] %v7137_v60 }
 0xb6d   : > { %7140 = vst [vmem:[%s11307_s3 + $0x130] sm:$0xff] %v7139_v55 }
 0xb6e   : > { %7142 = vst [vmem:[%s11307_s3 + $0x138] sm:$0xff] %v7141_v38 }
 0xb6f   : > { %7144 = vst [vmem:[%s11307_s3 + $0x180] sm:$0xff] %v7143_v9 }
 0xb70   : > { %7146 = vst [vmem:[%s11307_s3 + $0x188] sm:$0xff] %v7145_v5 }
 0xb71   : > { %7148 = vst [vmem:[%s11307_s3 + $0x190] sm:$0xff] %v7147_v26 }
 0xb72   : > { %7150 = vst [vmem:[%s11307_s3 + $0x198] sm:$0xff] %v7149_v29 }
 0xb73   : > { %7152 = vst [vmem:[%s11307_s3 + $0x1a0] sm:$0xff] %v7151_v30 }
 0xb74   : > { %7154 = vst [vmem:[%s11307_s3 + $0x1a8] sm:$0xff] %v7153_v52 }
 0xb75   : > { %7156 = vst [vmem:[%s11307_s3 + $0x1b0] sm:$0xff] %v7155_v40 }
 0xb76   : > { %7158 = vst [vmem:[%s11307_s3 + $0x1b8] sm:$0xff] %v7157_v18 }
 0xb77   : > { %7160 = vst [vmem:[%s11307_s3 + $0x200] sm:$0xff] %v7159_v53 }
 0xb78   : > { %7162 = vst [vmem:[%s11307_s3 + $0x208] sm:$0xff] %v7161_v47 }
 0xb79   : > { %7164 = vst [vmem:[%s11307_s3 + $0x210] sm:$0xff] %v7163_v2 }
 0xb7a   : > { %7166 = vst [vmem:[%s11307_s3 + $0x218] sm:$0xff] %v7165_v11 }
 0xb7b   : > { %7168 = vst [vmem:[%s11307_s3 + $0x220] sm:$0xff] %v7167_v10 }
 0xb7c   : > { %7170 = vst [vmem:[%s11307_s3 + $0x228] sm:$0xff] %v7169_v39 }
 0xb7d   : > { %7172 = vst [vmem:[%s11307_s3 + $0x230] sm:$0xff] %v7171_v44 }
 0xb7e   : > { %7174 = vst [vmem:[%s11307_s3 + $0x238] sm:$0xff] %v7173_v25 }
 0xb7f   : > { %7176 = vst [vmem:[%s11307_s3 + $0x280] sm:$0xff] %v7175_v46 }
 0xb80   : > { %7178 = vst [vmem:[%s11307_s3 + $0x288] sm:$0xff] %v7177_v34 }
 0xb81   : > { %7180 = vst [vmem:[%s11307_s3 + $0x290] sm:$0xff] %v7179_v54 }
 0xb82   : > { %7182 = vst [vmem:[%s11307_s3 + $0x298] sm:$0xff] %v7181_v36 }
 0xb83   : > { %7184 = vst [vmem:[%s11307_s3 + $0x2a0] sm:$0xff] %v7183_v22 }
 0xb84   : > { %7186 = vst [vmem:[%s11307_s3 + $0x2a8] sm:$0xff] %v7185_v48 }
 0xb85   : > { %7188 = vst [vmem:[%s11307_s3 + $0x2b0] sm:$0xff] %v7187_v15 }
 0xb86   : > { %7190 = vst [vmem:[%s11307_s3 + $0x2b8] sm:$0xff] %v7189_v4 }
 0xb87   : > { %7192 = vst [vmem:[%s11307_s3 + $0x300] sm:$0xff] %v7191_v35 }
 0xb88   : > { %7194 = vst [vmem:[%s11307_s3 + $0x308] sm:$0xff] %v7193_v13 }
 0xb89   : > { %7196 = vst [vmem:[%s11307_s3 + $0x310] sm:$0xff] %v7195_v16 }
 0xb8a   : > { %7198 = vst [vmem:[%s11307_s3 + $0x318] sm:$0xff] %v7197_v50 }
 0xb8b   : > { %7200 = vst [vmem:[%s11307_s3 + $0x320] sm:$0xff] %v7199_v3 }
 0xb8c   : > { %7202 = vst [vmem:[%s11307_s3 + $0x328] sm:$0xff] %v7201_v42 }
 0xb8d   : > { %7204 = vst [vmem:[%s11307_s3 + $0x330] sm:$0xff] %v7203_v58 }
 0xb8e   : > { %7206 = vst [vmem:[%s11307_s3 + $0x338] sm:$0xff] %v7205_v45 }
 0xb8f   : > { %7208 = vst [vmem:[%s11307_s3 + $0x380] sm:$0xff] %v7207_v1 }
 0xb90   : > { %7210 = vst [vmem:[%s11307_s3 + $0x388] sm:$0xff] %v7209_v20 }
 0xb91   : > { %7212 = vst [vmem:[%s11307_s3 + $0x390] sm:$0xff] %v7211_v63 }
 0xb92   : > { %7214 = vst [vmem:[%s11307_s3 + $0x398] sm:$0xff] %v7213_v27 }
 0xb93   : > { %7216 = vst [vmem:[%s11307_s3 + $0x3a0] sm:$0xff] %v7215_v51 }
 0xb94   : > { %7218 = vst [vmem:[%s11307_s3 + $0x3a8] sm:$0xff] %v7217_v6 }
 0xb95   : > { %7220 = vst [vmem:[%s11307_s3 + $0x3b0] sm:$0xff] %v7219_v57 }
 0xb96   : > { %7222 = vst [vmem:[%s11307_s3 + $0x3b8] sm:$0xff] %v7221_v59 }
 0xb97 PF: > { %7228 = sbr.rel (!%p8795_p6) target bundleno = 2991 (0xbaf), region = 126  ;;  %s8234_s25 = sshll.u32 (%p8795_p6), %s8619_s29, 3  ;;  %v7246_v41 = vld [vmem:[%s10003_s23] sm:$0xff] (%p8795_p6)  ;;  %v7248_v62 = vld [vmem:[%s10003_s23 + $0x8] sm:$0xff] (%p8795_p6)  ;;  %v7250_v37 = vld [vmem:[%s10003_s23 + $0x10] sm:$0xff] (%p8795_p6) }
 0xb98   : > { %s8235_s22 = sshll.u32 (%p8795_p6), %s8623_s30, 5  ;;  %s11596_s19 = sld [smem:[#allocation49_spill]] (%p8795_p6)  ;;  %v7252_v61 = vld [vmem:[%s10003_s23 + $0x18] sm:$0xff] (%p8795_p6)  ;;  %v7254_v56 = vld [vmem:[%s10003_s23 + $0x20] sm:$0xff] (%p8795_p6)  ;;  %v7256_v33 = vld [vmem:[%s10003_s23 + $0x28] sm:$0xff] (%p8795_p6) }
 0xb99   : > { %s7231_s24 = sadd.s32 (%p8795_p6), %s8235_s22, %s8234_s25  ;;  %v7258_v8 = vld [vmem:[%s10003_s23 + $0x30] sm:$0xff] (%p8795_p6)  ;;  %v7260_v17 = vld [vmem:[%s10003_s23 + $0x38] sm:$0xff] (%p8795_p6)  ;;  %v7262_v19 = vld [vmem:[%s10003_s23 + $0x40] sm:$0xff] (%p8795_p6) }
 0xb9a   : > { %s8236_s15 = sshll.u32 (%p8795_p6), %s7231_s24, 3  ;;  %v7264_v0 = vld [vmem:[%s10003_s23 + $0x48] sm:$0xff] (%p8795_p6)  ;;  %v7266_v28 = vld [vmem:[%s10003_s23 + $0x50] sm:$0xff] (%p8795_p6)  ;;  %v7268_v7 = vld [vmem:[%s10003_s23 + $0x58] sm:$0xff] (%p8795_p6) }
 0xb9b   : > { %v7270_v24 = vld [vmem:[%s10003_s23 + $0x60] sm:$0xff] (%p8795_p6)  ;;  %v7272_v32 = vld [vmem:[%s10003_s23 + $0x68] sm:$0xff] (%p8795_p6)  ;;  %v7274_v49 = vld [vmem:[%s10003_s23 + $0x70] sm:$0xff] (%p8795_p6) }
 0xb9c   : > { %v7276_v31 = vld [vmem:[%s10003_s23 + $0x78] sm:$0xff] }
 0xb9e   : > { %s7233_s21 = scalar_lea.vmem %s11596_s19, %s8236_s15 }
 0xb9f   : > { %7247 = vst [vmem:[%s7233_s21] sm:$0xff] %v7246_v41 }
 0xba0   : > { %7249 = vst [vmem:[%s7233_s21 + $0x8] sm:$0xff] %v7248_v62 }
 0xba1   : > { %7251 = vst [vmem:[%s7233_s21 + $0x10] sm:$0xff] %v7250_v37 }
 0xba2   : > { %7253 = vst [vmem:[%s7233_s21 + $0x18] sm:$0xff] %v7252_v61 }
 0xba3   : > { %7255 = vst [vmem:[%s7233_s21 + $0x20] sm:$0xff] %v7254_v56 }
 0xba4   : > { %7257 = vst [vmem:[%s7233_s21 + $0x28] sm:$0xff] %v7256_v33 }
 0xba5   : > { %7259 = vst [vmem:[%s7233_s21 + $0x30] sm:$0xff] %v7258_v8 }
 0xba6   : > { %7261 = vst [vmem:[%s7233_s21 + $0x38] sm:$0xff] %v7260_v17 }
 0xba7   : > { %7263 = vst [vmem:[%s7233_s21 + $0x80] sm:$0xff] %v7262_v19 }
 0xba8   : > { %7265 = vst [vmem:[%s7233_s21 + $0x88] sm:$0xff] %v7264_v0 }
 0xba9   : > { %7267 = vst [vmem:[%s7233_s21 + $0x90] sm:$0xff] %v7266_v28 }
 0xbaa   : > { %7269 = vst [vmem:[%s7233_s21 + $0x98] sm:$0xff] %v7268_v7 }
 0xbab   : > { %7271 = vst [vmem:[%s7233_s21 + $0xa0] sm:$0xff] %v7270_v24 }
 0xbac   : > { %7273 = vst [vmem:[%s7233_s21 + $0xa8] sm:$0xff] %v7272_v32 }
 0xbad   : > { %7275 = vst [vmem:[%s7233_s21 + $0xb0] sm:$0xff] %v7274_v49 }
 0xbae   : > { %7277 = vst [vmem:[%s7233_s21 + $0xb8] sm:$0xff] %v7276_v31 }
 0xbaf PF: > { %s29_s1 = sadd.s32 1, %s8635_s1   ;;  %s11597_s30 = sld [smem:[#allocation6_spill]] }
 0xbb0   : > { %p26_p0 = scmp.ge.s32.totalorder %s29_s1, 6   ;;  %s11598_s20 = sld [smem:[#allocation7_spill]] }
 0xbb1   : > { %s11599_s19 = sld [smem:[#allocation8_spill]]  ;;  %s11600_s27 = smov %s8615_s28 }
 0xbb2   : > { %s11601_s28 = smov %s8803_s14  ;;  %s11602_s29 = smov %s8627_s0 }
 0xbb3   :  { %28 = sbr.rel (!%p26_p0) target bundleno = 16 (0x10), region = 287 }
 0xbb6   : > { %s11603_s0 = smov %s11598_s20 }

</bundles_post_ra>
